<compile_context>
chip_gen: v6e
topology: v6e:2x2x1
jax: 0.10.0
libtpu: 0.0.40
codegen_flags: <defaults>
</compile_context>

<pallas_src>
import functools

import jax
import jax.numpy as jnp
from jax.experimental import pallas as pl
from jax.experimental.pallas import tpu as pltpu


# ---------------------------------------------------------------------------
# Fused conv(5x5, valid) + bias + ReLU + 2x2/2 max-pool kernel.
# ---------------------------------------------------------------------------

def _conv_relu_pool_kernel(xe_ref, xo_ref, w_ref, b_ref, o_ref, col_ref,
                           *, k, cin, wp):
    """One grid step = one pooled output row of one image.

    xe_ref/xo_ref: (H, W//2, Cin) f32 — even / odd input columns (resident).
    w_ref:         (k*k*Cin, Cout) bf16, rows ordered (kh, kw, cin).
    b_ref:         (1, Cout) f32.
    o_ref:         (Wp, Cout) f32 pooled output row.
    col_ref:       (4, Wp, k*k*Cin) f32 scratch — im2col slab per quadrant.
    """
    p = pl.program_id(1)

    # Build the im2col patch slab for each of the 4 pooling quadrants
    # (conv-row parity `a`, conv-col parity `boff`) entirely in VMEM.
    for a in (0, 1):
        for di in range(k):
            band_e = xe_ref[2 * p + a + di]              # (W//2, Cin)
            band_o = xo_ref[2 * p + a + di]              # (W//2, Cin)
            for boff in (0, 1):
                quad = 2 * a + boff
                for dj in range(k):
                    e = boff + dj                        # input-column offset
                    band = band_e if (e % 2 == 0) else band_o
                    q = e // 2
                    c0 = (di * k + dj) * cin
                    col_ref[quad, :, c0:c0 + cin] = band[q:q + wp, :]

    # One MXU matmul per quadrant: bf16 x bf16 -> f32 accumulation.
    def quad_mm(qi):
        return jnp.dot(col_ref[qi].astype(jnp.bfloat16), w_ref[...],
                       preferred_element_type=jnp.float32)

    m = jnp.maximum(jnp.maximum(quad_mm(0), quad_mm(1)),
                    jnp.maximum(quad_mm(2), quad_mm(3)))
    # max_i(relu(x_i + b)) == relu(max_i(x_i) + b): bias/ReLU once, post-pool.
    o_ref[...] = jnp.maximum(m + b_ref[...], 0.0).astype(o_ref.dtype)


def conv_relu_pool(x_nhwc, w_col, bias_row, *, k=5):
    """x (B,H,W,Cin) f32; w_col (k*k*Cin,Cout) bf16; bias (1,Cout) f32.
    Returns pooled activation (B, (H-k+1)//2, (W-k+1)//2, Cout) f32."""
    B, H, W, Cin = x_nhwc.shape
    KKC, Cout = w_col.shape
    assert KKC == k * k * Cin and W % 2 == 0
    Ho, Wo = H - k + 1, W - k + 1
    Hp, Wp = Ho // 2, Wo // 2
    Wh = W // 2

    # Cheap XLA strided views (even/odd input columns); these replace both the
    # 25-slice HBM im2col and the 4 pooled-window copies of the old version.
    xe = x_nhwc[:, :, 0::2, :]
    xo = x_nhwc[:, :, 1::2, :]

    kernel = functools.partial(_conv_relu_pool_kernel, k=k, cin=Cin, wp=Wp)
    return pl.pallas_call(
        kernel,
        out_shape=jax.ShapeDtypeStruct((B, Hp, Wp, Cout), jnp.float32),
        grid=(B, Hp),
        in_specs=[
            pl.BlockSpec((None, H, Wh, Cin), lambda b, p: (b, 0, 0, 0)),
            pl.BlockSpec((None, H, Wh, Cin), lambda b, p: (b, 0, 0, 0)),
            pl.BlockSpec((KKC, Cout), lambda b, p: (0, 0)),
            pl.BlockSpec((1, Cout), lambda b, p: (0, 0)),
        ],
        out_specs=pl.BlockSpec((None, None, Wp, Cout),
                               lambda b, p: (b, p, 0, 0)),
        scratch_shapes=[pltpu.VMEM((4, Wp, KKC), jnp.float32)],
        compiler_params=pltpu.CompilerParams(
            dimension_semantics=("parallel", "arbitrary")),
    )(xe, xo, w_col, bias_row)


# ---------------------------------------------------------------------------
# Fused FC head: fc1 + ReLU + fc2 + ReLU + fc3 (lane-padded output).
# ---------------------------------------------------------------------------

def _fc_head_kernel(x_ref, w1_ref, b1_ref, w2_ref, b2_ref, w3_ref, b3_ref,
                    o_ref):
    h = jnp.dot(x_ref[...], w1_ref[...], preferred_element_type=jnp.float32)
    h = jnp.maximum(h + b1_ref[...], 0.0)
    h = jnp.dot(h.astype(jnp.bfloat16), w2_ref[...],
                preferred_element_type=jnp.float32)
    h = jnp.maximum(h + b2_ref[...], 0.0)
    h = jnp.dot(h.astype(jnp.bfloat16), w3_ref[...],
                preferred_element_type=jnp.float32)
    o_ref[...] = (h + b3_ref[...]).astype(o_ref.dtype)


def fc_head(x, w1, b1, w2, b2, w3, b3):
    """Returns (M, 128) f32 padded logits (first 10 columns are the model's)."""
    M, K = x.shape
    N1, N2, N3 = w1.shape[1], w2.shape[1], w3.shape[1]
    TM = M if M <= 256 else 256
    assert M % TM == 0, "batch must be <= 256 or a multiple of 256"
    return pl.pallas_call(
        _fc_head_kernel,
        out_shape=jax.ShapeDtypeStruct((M, N3), jnp.float32),
        grid=(M // TM,),
        in_specs=[
            pl.BlockSpec((TM, K), lambda i: (i, 0)),
            pl.BlockSpec((K, N1), lambda i: (0, 0)),
            pl.BlockSpec((1, N1), lambda i: (0, 0)),
            pl.BlockSpec((N1, N2), lambda i: (0, 0)),
            pl.BlockSpec((1, N2), lambda i: (0, 0)),
            pl.BlockSpec((N2, N3), lambda i: (0, 0)),
            pl.BlockSpec((1, N3), lambda i: (0, 0)),
        ],
        out_specs=pl.BlockSpec((TM, N3), lambda i: (i, 0)),
        compiler_params=pltpu.CompilerParams(
            dimension_semantics=("parallel",)),
    )(x.astype(jnp.bfloat16), w1, b1, w2, b2, w3, b3)


# ---------------------------------------------------------------------------
# Model forward + parameter preparation.
# ---------------------------------------------------------------------------

def model_forward(params, img_nchw):
    x = jnp.transpose(img_nchw, (0, 2, 3, 1)).astype(jnp.float32)  # NCHW->NHWC
    x = conv_relu_pool(x, params["conv1_w"], params["conv1_b"])    # (B,14,14,32)
    x = conv_relu_pool(x, params["conv2_w"], params["conv2_b"])    # (B,5,5,64)
    B = x.shape[0]
    x = x.reshape(B, 5 * 5 * 64)   # NHWC flatten; fc1 weight is pre-permuted.
    logits = fc_head(x, params["fc1_w"], params["fc1_b"],
                     params["fc2_w"], params["fc2_b"],
                     params["fc3_w"], params["fc3_b"])              # (B,128)
    return logits[:, :10]


def init_params(key):
    ks = jax.random.split(key, 10)

    def uniform(k_, shape, fan_in):
        bound = 1.0 / jnp.sqrt(jnp.float32(fan_in))
        return jax.random.uniform(k_, shape, jnp.float32, -bound, bound)

    return {
        "conv1_w": uniform(ks[0], (32, 3, 5, 5), 3 * 5 * 5),
        "conv1_b": uniform(ks[1], (32,), 3 * 5 * 5),
        "conv2_w": uniform(ks[2], (64, 32, 5, 5), 32 * 5 * 5),
        "conv2_b": uniform(ks[3], (64,), 32 * 5 * 5),
        # fc1 weight uses xavier_normal_ like the PyTorch module
        "fc1_w": jax.random.normal(ks[4], (200, 1600), jnp.float32)
                 * jnp.sqrt(2.0 / (1600 + 200)),
        "fc1_b": uniform(ks[5], (200,), 1600),
        "fc2_w": uniform(ks[6], (100, 200), 200),
        "fc2_b": uniform(ks[7], (100,), 200),
        "fc3_w": uniform(ks[8], (10, 100), 100),
        "fc3_b": uniform(ks[9], (10,), 100),
    }


def prepare_params(p, *, k=5, lane=128):
    """One-time conversion of PyTorch-layout params to kernel layout
    (run outside jit so no per-forward transposes / reshapes remain)."""
    def conv_w(w):   # (Cout, Cin, kh, kw) -> (kh*kw*Cin, Cout) bf16
        cout, cin = w.shape[0], w.shape[1]
        return (jnp.transpose(w, (2, 3, 1, 0))
                .reshape(k * k * cin, cout).astype(jnp.bfloat16))

    # PyTorch flattens (c, h, w); our activations are flattened NHWC, so
    # permute fc1's input dimension once here instead of transposing the
    # activation every forward.
    fc1 = p["fc1_w"].reshape(200, 64, 5, 5)                # (out, c, h, w)
    fc1 = jnp.transpose(fc1, (2, 3, 1, 0)).reshape(64 * 25, 200)

    w3 = jnp.pad(p["fc3_w"].T, ((0, 0), (0, lane - 10)))   # (100, 128)
    b3 = jnp.pad(p["fc3_b"], (0, lane - 10))               # (128,)

    row = lambda b: b.reshape(1, -1).astype(jnp.float32)
    return {
        "conv1_w": conv_w(p["conv1_w"]), "conv1_b": row(p["conv1_b"]),
        "conv2_w": conv_w(p["conv2_w"]), "conv2_b": row(p["conv2_b"]),
        "fc1_w": fc1.astype(jnp.bfloat16), "fc1_b": row(p["fc1_b"]),
        "fc2_w": p["fc2_w"].T.astype(jnp.bfloat16), "fc2_b": row(p["fc2_b"]),
        "fc3_w": w3.astype(jnp.bfloat16), "fc3_b": row(b3),
    }


if __name__ == "__main__":
    key = jax.random.PRNGKey(0)
    pkey, xkey = jax.random.split(key)
    params = prepare_params(init_params(pkey))
    # CIFAR-shaped input: batch=2, 3x32x32 NCHW (required by the 1600-d flatten).
    img = jax.random.normal(xkey, (2, 3, 32, 32), jnp.float32)

    fwd = jax.jit(model_forward)
    out = jax.block_until_ready(fwd(params, img))
    assert out.shape == (2, 10), out.shape
    print("KERNEL_OK")
</pallas_src>

<mosaic_0001>
module attributes {stable_mosaic.version = 11 : i64} {
  func.func @_conv_relu_pool_kernel(%arg0: i32, %arg1: i32, %arg2: memref<1x32x16x3xf32, #tpu.memory_space<vmem>>, %arg3: memref<1x32x16x3xf32, #tpu.memory_space<vmem>>, %arg4: memref<75x32xbf16, #tpu.memory_space<vmem>>, %arg5: memref<1x32xf32, #tpu.memory_space<vmem>>, %arg6: memref<1x1x14x32xf32, #tpu.memory_space<vmem>>, %arg7: memref<4x14x75xf32, #tpu.memory_space<vmem>>) attributes {dimension_semantics = [#tpu.dimension_semantics<parallel>, #tpu.dimension_semantics<arbitrary>], iteration_bounds = array<i64: 2, 14>, scalar_prefetch = 0 : i64, scratch_operands = 1 : i64, tpu.core_type = #tpu.core_type<tc>, window_params = [{transform_indices = @transform_0, window_bounds = array<i64: 1, 32, 16, 3>}, {transform_indices = @transform_1, window_bounds = array<i64: 1, 32, 16, 3>}, {pipeline_mode = #tpu.pipeline_mode<synchronous>, transform_indices = @transform_2, window_bounds = array<i64: 75, 32>}, {pipeline_mode = #tpu.pipeline_mode<synchronous>, transform_indices = @transform_3, window_bounds = array<i64: 1, 32>}, {transform_indices = @transform_4, window_bounds = array<i64: 1, 1, 14, 32>}]} {
    %c2_i32 = arith.constant 2 : i32
    %0 = arith.muli %c2_i32, %arg1 : i32
    %c0_i32 = arith.constant 0 : i32
    %1 = arith.addi %0, %c0_i32 : i32
    %c0_i32_0 = arith.constant 0 : i32
    %2 = arith.addi %1, %c0_i32_0 : i32
    %c0 = arith.constant 0 : index
    %3 = arith.index_cast %2 : i32 to index
    %c0_1 = arith.constant 0 : index
    %c0_2 = arith.constant 0 : index
    %4 = vector.load %arg2[%c0, %3, %c0_1, %c0_2] : memref<1x32x16x3xf32, #tpu.memory_space<vmem>>, vector<1x1x16x3xf32>
    %5 = vector.shape_cast %4 : vector<1x1x16x3xf32> to vector<16x3xf32>
    %c2_i32_3 = arith.constant 2 : i32
    %6 = arith.muli %c2_i32_3, %arg1 : i32
    %c0_i32_4 = arith.constant 0 : i32
    %7 = arith.addi %6, %c0_i32_4 : i32
    %c0_i32_5 = arith.constant 0 : i32
    %8 = arith.addi %7, %c0_i32_5 : i32
    %c0_6 = arith.constant 0 : index
    %9 = arith.index_cast %8 : i32 to index
    %c0_7 = arith.constant 0 : index
    %c0_8 = arith.constant 0 : index
    %10 = vector.load %arg3[%c0_6, %9, %c0_7, %c0_8] : memref<1x32x16x3xf32, #tpu.memory_space<vmem>>, vector<1x1x16x3xf32>
    %11 = vector.shape_cast %10 : vector<1x1x16x3xf32> to vector<16x3xf32>
    %12 = vector.extract_strided_slice %5 {offsets = [0, 0], sizes = [14, 3], strides = [1, 1]} : vector<16x3xf32> to vector<14x3xf32>
    %c0_9 = arith.constant 0 : index
    %c0_10 = arith.constant 0 : index
    %c0_11 = arith.constant 0 : index
    %13 = vector.load %arg7[%c0_9, %c0_10, %c0_11] : memref<4x14x75xf32, #tpu.memory_space<vmem>>, vector<1x14x3xf32>
    %14 = vector.shape_cast %13 : vector<1x14x3xf32> to vector<14x3xf32>
    %15 = vector.shape_cast %12 : vector<14x3xf32> to vector<1x14x3xf32>
    tpu.vector_store %arg7[%c0_9, %c0_10, %c0_11], %15 {strides = array<i32>} : memref<4x14x75xf32, #tpu.memory_space<vmem>>, vector<1x14x3xf32>,
    %16 = vector.extract_strided_slice %11 {offsets = [0, 0], sizes = [14, 3], strides = [1, 1]} : vector<16x3xf32> to vector<14x3xf32>
    %c0_12 = arith.constant 0 : index
    %c0_13 = arith.constant 0 : index
    %c3 = arith.constant 3 : index
    %17 = vector.load %arg7[%c0_12, %c0_13, %c3] : memref<4x14x75xf32, #tpu.memory_space<vmem>>, vector<1x14x3xf32>
    %18 = vector.shape_cast %17 : vector<1x14x3xf32> to vector<14x3xf32>
    %19 = vector.shape_cast %16 : vector<14x3xf32> to vector<1x14x3xf32>
    tpu.vector_store %arg7[%c0_12, %c0_13, %c3], %19 {strides = array<i32>} : memref<4x14x75xf32, #tpu.memory_space<vmem>>, vector<1x14x3xf32>,
    %20 = vector.extract_strided_slice %5 {offsets = [1, 0], sizes = [14, 3], strides = [1, 1]} : vector<16x3xf32> to vector<14x3xf32>
    %c0_14 = arith.constant 0 : index
    %c0_15 = arith.constant 0 : index
    %c6 = arith.constant 6 : index
    %21 = vector.load %arg7[%c0_14, %c0_15, %c6] : memref<4x14x75xf32, #tpu.memory_space<vmem>>, vector<1x14x3xf32>
    %22 = vector.shape_cast %21 : vector<1x14x3xf32> to vector<14x3xf32>
    %23 = vector.shape_cast %20 : vector<14x3xf32> to vector<1x14x3xf32>
    tpu.vector_store %arg7[%c0_14, %c0_15, %c6], %23 {strides = array<i32>} : memref<4x14x75xf32, #tpu.memory_space<vmem>>, vector<1x14x3xf32>,
    %24 = vector.extract_strided_slice %11 {offsets = [1, 0], sizes = [14, 3], strides = [1, 1]} : vector<16x3xf32> to vector<14x3xf32>
    %c0_16 = arith.constant 0 : index
    %c0_17 = arith.constant 0 : index
    %c9 = arith.constant 9 : index
    %25 = vector.load %arg7[%c0_16, %c0_17, %c9] : memref<4x14x75xf32, #tpu.memory_space<vmem>>, vector<1x14x3xf32>
    %26 = vector.shape_cast %25 : vector<1x14x3xf32> to vector<14x3xf32>
    %27 = vector.shape_cast %24 : vector<14x3xf32> to vector<1x14x3xf32>
    tpu.vector_store %arg7[%c0_16, %c0_17, %c9], %27 {strides = array<i32>} : memref<4x14x75xf32, #tpu.memory_space<vmem>>, vector<1x14x3xf32>,
    %28 = vector.extract_strided_slice %5 {offsets = [2, 0], sizes = [14, 3], strides = [1, 1]} : vector<16x3xf32> to vector<14x3xf32>
    %c0_18 = arith.constant 0 : index
    %c0_19 = arith.constant 0 : index
    %c12 = arith.constant 12 : index
    %29 = vector.load %arg7[%c0_18, %c0_19, %c12] : memref<4x14x75xf32, #tpu.memory_space<vmem>>, vector<1x14x3xf32>
    %30 = vector.shape_cast %29 : vector<1x14x3xf32> to vector<14x3xf32>
    %31 = vector.shape_cast %28 : vector<14x3xf32> to vector<1x14x3xf32>
    tpu.vector_store %arg7[%c0_18, %c0_19, %c12], %31 {strides = array<i32>} : memref<4x14x75xf32, #tpu.memory_space<vmem>>, vector<1x14x3xf32>,
    %32 = vector.extract_strided_slice %11 {offsets = [0, 0], sizes = [14, 3], strides = [1, 1]} : vector<16x3xf32> to vector<14x3xf32>
    %c1 = arith.constant 1 : index
    %c0_20 = arith.constant 0 : index
    %c0_21 = arith.constant 0 : index
    %33 = vector.load %arg7[%c1, %c0_20, %c0_21] : memref<4x14x75xf32, #tpu.memory_space<vmem>>, vector<1x14x3xf32>
    %34 = vector.shape_cast %33 : vector<1x14x3xf32> to vector<14x3xf32>
    %35 = vector.shape_cast %32 : vector<14x3xf32> to vector<1x14x3xf32>
    tpu.vector_store %arg7[%c1, %c0_20, %c0_21], %35 {strides = array<i32>} : memref<4x14x75xf32, #tpu.memory_space<vmem>>, vector<1x14x3xf32>,
    %36 = vector.extract_strided_slice %5 {offsets = [1, 0], sizes = [14, 3], strides = [1, 1]} : vector<16x3xf32> to vector<14x3xf32>
    %c1_22 = arith.constant 1 : index
    %c0_23 = arith.constant 0 : index
    %c3_24 = arith.constant 3 : index
    %37 = vector.load %arg7[%c1_22, %c0_23, %c3_24] : memref<4x14x75xf32, #tpu.memory_space<vmem>>, vector<1x14x3xf32>
    %38 = vector.shape_cast %37 : vector<1x14x3xf32> to vector<14x3xf32>
    %39 = vector.shape_cast %36 : vector<14x3xf32> to vector<1x14x3xf32>
    tpu.vector_store %arg7[%c1_22, %c0_23, %c3_24], %39 {strides = array<i32>} : memref<4x14x75xf32, #tpu.memory_space<vmem>>, vector<1x14x3xf32>,
    %40 = vector.extract_strided_slice %11 {offsets = [1, 0], sizes = [14, 3], strides = [1, 1]} : vector<16x3xf32> to vector<14x3xf32>
    %c1_25 = arith.constant 1 : index
    %c0_26 = arith.constant 0 : index
    %c6_27 = arith.constant 6 : index
    %41 = vector.load %arg7[%c1_25, %c0_26, %c6_27] : memref<4x14x75xf32, #tpu.memory_space<vmem>>, vector<1x14x3xf32>
    %42 = vector.shape_cast %41 : vector<1x14x3xf32> to vector<14x3xf32>
    %43 = vector.shape_cast %40 : vector<14x3xf32> to vector<1x14x3xf32>
    tpu.vector_store %arg7[%c1_25, %c0_26, %c6_27], %43 {strides = array<i32>} : memref<4x14x75xf32, #tpu.memory_space<vmem>>, vector<1x14x3xf32>,
    %44 = vector.extract_strided_slice %5 {offsets = [2, 0], sizes = [14, 3], strides = [1, 1]} : vector<16x3xf32> to vector<14x3xf32>
    %c1_28 = arith.constant 1 : index
    %c0_29 = arith.constant 0 : index
    %c9_30 = arith.constant 9 : index
    %45 = vector.load %arg7[%c1_28, %c0_29, %c9_30] : memref<4x14x75xf32, #tpu.memory_space<vmem>>, vector<1x14x3xf32>
    %46 = vector.shape_cast %45 : vector<1x14x3xf32> to vector<14x3xf32>
    %47 = vector.shape_cast %44 : vector<14x3xf32> to vector<1x14x3xf32>
    tpu.vector_store %arg7[%c1_28, %c0_29, %c9_30], %47 {strides = array<i32>} : memref<4x14x75xf32, #tpu.memory_space<vmem>>, vector<1x14x3xf32>,
    %48 = vector.extract_strided_slice %11 {offsets = [2, 0], sizes = [14, 3], strides = [1, 1]} : vector<16x3xf32> to vector<14x3xf32>
    %c1_31 = arith.constant 1 : index
    %c0_32 = arith.constant 0 : index
    %c12_33 = arith.constant 12 : index
    %49 = vector.load %arg7[%c1_31, %c0_32, %c12_33] : memref<4x14x75xf32, #tpu.memory_space<vmem>>, vector<1x14x3xf32>
    %50 = vector.shape_cast %49 : vector<1x14x3xf32> to vector<14x3xf32>
    %51 = vector.shape_cast %48 : vector<14x3xf32> to vector<1x14x3xf32>
    tpu.vector_store %arg7[%c1_31, %c0_32, %c12_33], %51 {strides = array<i32>} : memref<4x14x75xf32, #tpu.memory_space<vmem>>, vector<1x14x3xf32>,
    %c2_i32_34 = arith.constant 2 : i32
    %52 = arith.muli %c2_i32_34, %arg1 : i32
    %c0_i32_35 = arith.constant 0 : i32
    %53 = arith.addi %52, %c0_i32_35 : i32
    %c1_i32 = arith.constant 1 : i32
    %54 = arith.addi %53, %c1_i32 : i32
    %c0_36 = arith.constant 0 : index
    %55 = arith.index_cast %54 : i32 to index
    %c0_37 = arith.constant 0 : index
    %c0_38 = arith.constant 0 : index
    %56 = vector.load %arg2[%c0_36, %55, %c0_37, %c0_38] : memref<1x32x16x3xf32, #tpu.memory_space<vmem>>, vector<1x1x16x3xf32>
    %57 = vector.shape_cast %56 : vector<1x1x16x3xf32> to vector<16x3xf32>
    %c2_i32_39 = arith.constant 2 : i32
    %58 = arith.muli %c2_i32_39, %arg1 : i32
    %c0_i32_40 = arith.constant 0 : i32
    %59 = arith.addi %58, %c0_i32_40 : i32
    %c1_i32_41 = arith.constant 1 : i32
    %60 = arith.addi %59, %c1_i32_41 : i32
    %c0_42 = arith.constant 0 : index
    %61 = arith.index_cast %60 : i32 to index
    %c0_43 = arith.constant 0 : index
    %c0_44 = arith.constant 0 : index
    %62 = vector.load %arg3[%c0_42, %61, %c0_43, %c0_44] : memref<1x32x16x3xf32, #tpu.memory_space<vmem>>, vector<1x1x16x3xf32>
    %63 = vector.shape_cast %62 : vector<1x1x16x3xf32> to vector<16x3xf32>
    %64 = vector.extract_strided_slice %57 {offsets = [0, 0], sizes = [14, 3], strides = [1, 1]} : vector<16x3xf32> to vector<14x3xf32>
    %c0_45 = arith.constant 0 : index
    %c0_46 = arith.constant 0 : index
    %c15 = arith.constant 15 : index
    %65 = vector.load %arg7[%c0_45, %c0_46, %c15] : memref<4x14x75xf32, #tpu.memory_space<vmem>>, vector<1x14x3xf32>
    %66 = vector.shape_cast %65 : vector<1x14x3xf32> to vector<14x3xf32>
    %67 = vector.shape_cast %64 : vector<14x3xf32> to vector<1x14x3xf32>
    tpu.vector_store %arg7[%c0_45, %c0_46, %c15], %67 {strides = array<i32>} : memref<4x14x75xf32, #tpu.memory_space<vmem>>, vector<1x14x3xf32>,
    %68 = vector.extract_strided_slice %63 {offsets = [0, 0], sizes = [14, 3], strides = [1, 1]} : vector<16x3xf32> to vector<14x3xf32>
    %c0_47 = arith.constant 0 : index
    %c0_48 = arith.constant 0 : index
    %c18 = arith.constant 18 : index
    %69 = vector.load %arg7[%c0_47, %c0_48, %c18] : memref<4x14x75xf32, #tpu.memory_space<vmem>>, vector<1x14x3xf32>
    %70 = vector.shape_cast %69 : vector<1x14x3xf32> to vector<14x3xf32>
    %71 = vector.shape_cast %68 : vector<14x3xf32> to vector<1x14x3xf32>
    tpu.vector_store %arg7[%c0_47, %c0_48, %c18], %71 {strides = array<i32>} : memref<4x14x75xf32, #tpu.memory_space<vmem>>, vector<1x14x3xf32>,
    %72 = vector.extract_strided_slice %57 {offsets = [1, 0], sizes = [14, 3], strides = [1, 1]} : vector<16x3xf32> to vector<14x3xf32>
    %c0_49 = arith.constant 0 : index
    %c0_50 = arith.constant 0 : index
    %c21 = arith.constant 21 : index
    %73 = vector.load %arg7[%c0_49, %c0_50, %c21] : memref<4x14x75xf32, #tpu.memory_space<vmem>>, vector<1x14x3xf32>
    %74 = vector.shape_cast %73 : vector<1x14x3xf32> to vector<14x3xf32>
    %75 = vector.shape_cast %72 : vector<14x3xf32> to vector<1x14x3xf32>
    tpu.vector_store %arg7[%c0_49, %c0_50, %c21], %75 {strides = array<i32>} : memref<4x14x75xf32, #tpu.memory_space<vmem>>, vector<1x14x3xf32>,
    %76 = vector.extract_strided_slice %63 {offsets = [1, 0], sizes = [14, 3], strides = [1, 1]} : vector<16x3xf32> to vector<14x3xf32>
    %c0_51 = arith.constant 0 : index
    %c0_52 = arith.constant 0 : index
    %c24 = arith.constant 24 : index
    %77 = vector.load %arg7[%c0_51, %c0_52, %c24] : memref<4x14x75xf32, #tpu.memory_space<vmem>>, vector<1x14x3xf32>
    %78 = vector.shape_cast %77 : vector<1x14x3xf32> to vector<14x3xf32>
    %79 = vector.shape_cast %76 : vector<14x3xf32> to vector<1x14x3xf32>
    tpu.vector_store %arg7[%c0_51, %c0_52, %c24], %79 {strides = array<i32>} : memref<4x14x75xf32, #tpu.memory_space<vmem>>, vector<1x14x3xf32>,
    %80 = vector.extract_strided_slice %57 {offsets = [2, 0], sizes = [14, 3], strides = [1, 1]} : vector<16x3xf32> to vector<14x3xf32>
    %c0_53 = arith.constant 0 : index
    %c0_54 = arith.constant 0 : index
    %c27 = arith.constant 27 : index
    %81 = vector.load %arg7[%c0_53, %c0_54, %c27] : memref<4x14x75xf32, #tpu.memory_space<vmem>>, vector<1x14x3xf32>
    %82 = vector.shape_cast %81 : vector<1x14x3xf32> to vector<14x3xf32>
    %83 = vector.shape_cast %80 : vector<14x3xf32> to vector<1x14x3xf32>
    tpu.vector_store %arg7[%c0_53, %c0_54, %c27], %83 {strides = array<i32>} : memref<4x14x75xf32, #tpu.memory_space<vmem>>, vector<1x14x3xf32>,
    %84 = vector.extract_strided_slice %63 {offsets = [0, 0], sizes = [14, 3], strides = [1, 1]} : vector<16x3xf32> to vector<14x3xf32>
    %c1_55 = arith.constant 1 : index
    %c0_56 = arith.constant 0 : index
    %c15_57 = arith.constant 15 : index
    %85 = vector.load %arg7[%c1_55, %c0_56, %c15_57] : memref<4x14x75xf32, #tpu.memory_space<vmem>>, vector<1x14x3xf32>
    %86 = vector.shape_cast %85 : vector<1x14x3xf32> to vector<14x3xf32>
    %87 = vector.shape_cast %84 : vector<14x3xf32> to vector<1x14x3xf32>
    tpu.vector_store %arg7[%c1_55, %c0_56, %c15_57], %87 {strides = array<i32>} : memref<4x14x75xf32, #tpu.memory_space<vmem>>, vector<1x14x3xf32>,
    %88 = vector.extract_strided_slice %57 {offsets = [1, 0], sizes = [14, 3], strides = [1, 1]} : vector<16x3xf32> to vector<14x3xf32>
    %c1_58 = arith.constant 1 : index
    %c0_59 = arith.constant 0 : index
    %c18_60 = arith.constant 18 : index
    %89 = vector.load %arg7[%c1_58, %c0_59, %c18_60] : memref<4x14x75xf32, #tpu.memory_space<vmem>>, vector<1x14x3xf32>
    %90 = vector.shape_cast %89 : vector<1x14x3xf32> to vector<14x3xf32>
    %91 = vector.shape_cast %88 : vector<14x3xf32> to vector<1x14x3xf32>
    tpu.vector_store %arg7[%c1_58, %c0_59, %c18_60], %91 {strides = array<i32>} : memref<4x14x75xf32, #tpu.memory_space<vmem>>, vector<1x14x3xf32>,
    %92 = vector.extract_strided_slice %63 {offsets = [1, 0], sizes = [14, 3], strides = [1, 1]} : vector<16x3xf32> to vector<14x3xf32>
    %c1_61 = arith.constant 1 : index
    %c0_62 = arith.constant 0 : index
    %c21_63 = arith.constant 21 : index
    %93 = vector.load %arg7[%c1_61, %c0_62, %c21_63] : memref<4x14x75xf32, #tpu.memory_space<vmem>>, vector<1x14x3xf32>
    %94 = vector.shape_cast %93 : vector<1x14x3xf32> to vector<14x3xf32>
    %95 = vector.shape_cast %92 : vector<14x3xf32> to vector<1x14x3xf32>
    tpu.vector_store %arg7[%c1_61, %c0_62, %c21_63], %95 {strides = array<i32>} : memref<4x14x75xf32, #tpu.memory_space<vmem>>, vector<1x14x3xf32>,
    %96 = vector.extract_strided_slice %57 {offsets = [2, 0], sizes = [14, 3], strides = [1, 1]} : vector<16x3xf32> to vector<14x3xf32>
    %c1_64 = arith.constant 1 : index
    %c0_65 = arith.constant 0 : index
    %c24_66 = arith.constant 24 : index
    %97 = vector.load %arg7[%c1_64, %c0_65, %c24_66] : memref<4x14x75xf32, #tpu.memory_space<vmem>>, vector<1x14x3xf32>
    %98 = vector.shape_cast %97 : vector<1x14x3xf32> to vector<14x3xf32>
    %99 = vector.shape_cast %96 : vector<14x3xf32> to vector<1x14x3xf32>
    tpu.vector_store %arg7[%c1_64, %c0_65, %c24_66], %99 {strides = array<i32>} : memref<4x14x75xf32, #tpu.memory_space<vmem>>, vector<1x14x3xf32>,
    %100 = vector.extract_strided_slice %63 {offsets = [2, 0], sizes = [14, 3], strides = [1, 1]} : vector<16x3xf32> to vector<14x3xf32>
    %c1_67 = arith.constant 1 : index
    %c0_68 = arith.constant 0 : index
    %c27_69 = arith.constant 27 : index
    %101 = vector.load %arg7[%c1_67, %c0_68, %c27_69] : memref<4x14x75xf32, #tpu.memory_space<vmem>>, vector<1x14x3xf32>
    %102 = vector.shape_cast %101 : vector<1x14x3xf32> to vector<14x3xf32>
    %103 = vector.shape_cast %100 : vector<14x3xf32> to vector<1x14x3xf32>
    tpu.vector_store %arg7[%c1_67, %c0_68, %c27_69], %103 {strides = array<i32>} : memref<4x14x75xf32, #tpu.memory_space<vmem>>, vector<1x14x3xf32>,
    %c2_i32_70 = arith.constant 2 : i32
    %104 = arith.muli %c2_i32_70, %arg1 : i32
    %c0_i32_71 = arith.constant 0 : i32
    %105 = arith.addi %104, %c0_i32_71 : i32
    %c2_i32_72 = arith.constant 2 : i32
    %106 = arith.addi %105, %c2_i32_72 : i32
    %c0_73 = arith.constant 0 : index
    %107 = arith.index_cast %106 : i32 to index
    %c0_74 = arith.constant 0 : index
    %c0_75 = arith.constant 0 : index
    %108 = vector.load %arg2[%c0_73, %107, %c0_74, %c0_75] : memref<1x32x16x3xf32, #tpu.memory_space<vmem>>, vector<1x1x16x3xf32>
    %109 = vector.shape_cast %108 : vector<1x1x16x3xf32> to vector<16x3xf32>
    %c2_i32_76 = arith.constant 2 : i32
    %110 = arith.muli %c2_i32_76, %arg1 : i32
    %c0_i32_77 = arith.constant 0 : i32
    %111 = arith.addi %110, %c0_i32_77 : i32
    %c2_i32_78 = arith.constant 2 : i32
    %112 = arith.addi %111, %c2_i32_78 : i32
    %c0_79 = arith.constant 0 : index
    %113 = arith.index_cast %112 : i32 to index
    %c0_80 = arith.constant 0 : index
    %c0_81 = arith.constant 0 : index
    %114 = vector.load %arg3[%c0_79, %113, %c0_80, %c0_81] : memref<1x32x16x3xf32, #tpu.memory_space<vmem>>, vector<1x1x16x3xf32>
    %115 = vector.shape_cast %114 : vector<1x1x16x3xf32> to vector<16x3xf32>
    %116 = vector.extract_strided_slice %109 {offsets = [0, 0], sizes = [14, 3], strides = [1, 1]} : vector<16x3xf32> to vector<14x3xf32>
    %c0_82 = arith.constant 0 : index
    %c0_83 = arith.constant 0 : index
    %c30 = arith.constant 30 : index
    %117 = vector.load %arg7[%c0_82, %c0_83, %c30] : memref<4x14x75xf32, #tpu.memory_space<vmem>>, vector<1x14x3xf32>
    %118 = vector.shape_cast %117 : vector<1x14x3xf32> to vector<14x3xf32>
    %119 = vector.shape_cast %116 : vector<14x3xf32> to vector<1x14x3xf32>
    tpu.vector_store %arg7[%c0_82, %c0_83, %c30], %119 {strides = array<i32>} : memref<4x14x75xf32, #tpu.memory_space<vmem>>, vector<1x14x3xf32>,
    %120 = vector.extract_strided_slice %115 {offsets = [0, 0], sizes = [14, 3], strides = [1, 1]} : vector<16x3xf32> to vector<14x3xf32>
    %c0_84 = arith.constant 0 : index
    %c0_85 = arith.constant 0 : index
    %c33 = arith.constant 33 : index
    %121 = vector.load %arg7[%c0_84, %c0_85, %c33] : memref<4x14x75xf32, #tpu.memory_space<vmem>>, vector<1x14x3xf32>
    %122 = vector.shape_cast %121 : vector<1x14x3xf32> to vector<14x3xf32>
    %123 = vector.shape_cast %120 : vector<14x3xf32> to vector<1x14x3xf32>
    tpu.vector_store %arg7[%c0_84, %c0_85, %c33], %123 {strides = array<i32>} : memref<4x14x75xf32, #tpu.memory_space<vmem>>, vector<1x14x3xf32>,
    %124 = vector.extract_strided_slice %109 {offsets = [1, 0], sizes = [14, 3], strides = [1, 1]} : vector<16x3xf32> to vector<14x3xf32>
    %c0_86 = arith.constant 0 : index
    %c0_87 = arith.constant 0 : index
    %c36 = arith.constant 36 : index
    %125 = vector.load %arg7[%c0_86, %c0_87, %c36] : memref<4x14x75xf32, #tpu.memory_space<vmem>>, vector<1x14x3xf32>
    %126 = vector.shape_cast %125 : vector<1x14x3xf32> to vector<14x3xf32>
    %127 = vector.shape_cast %124 : vector<14x3xf32> to vector<1x14x3xf32>
    tpu.vector_store %arg7[%c0_86, %c0_87, %c36], %127 {strides = array<i32>} : memref<4x14x75xf32, #tpu.memory_space<vmem>>, vector<1x14x3xf32>,
    %128 = vector.extract_strided_slice %115 {offsets = [1, 0], sizes = [14, 3], strides = [1, 1]} : vector<16x3xf32> to vector<14x3xf32>
    %c0_88 = arith.constant 0 : index
    %c0_89 = arith.constant 0 : index
    %c39 = arith.constant 39 : index
    %129 = vector.load %arg7[%c0_88, %c0_89, %c39] : memref<4x14x75xf32, #tpu.memory_space<vmem>>, vector<1x14x3xf32>
    %130 = vector.shape_cast %129 : vector<1x14x3xf32> to vector<14x3xf32>
    %131 = vector.shape_cast %128 : vector<14x3xf32> to vector<1x14x3xf32>
    tpu.vector_store %arg7[%c0_88, %c0_89, %c39], %131 {strides = array<i32>} : memref<4x14x75xf32, #tpu.memory_space<vmem>>, vector<1x14x3xf32>,
    %132 = vector.extract_strided_slice %109 {offsets = [2, 0], sizes = [14, 3], strides = [1, 1]} : vector<16x3xf32> to vector<14x3xf32>
    %c0_90 = arith.constant 0 : index
    %c0_91 = arith.constant 0 : index
    %c42 = arith.constant 42 : index
    %133 = vector.load %arg7[%c0_90, %c0_91, %c42] : memref<4x14x75xf32, #tpu.memory_space<vmem>>, vector<1x14x3xf32>
    %134 = vector.shape_cast %133 : vector<1x14x3xf32> to vector<14x3xf32>
    %135 = vector.shape_cast %132 : vector<14x3xf32> to vector<1x14x3xf32>
    tpu.vector_store %arg7[%c0_90, %c0_91, %c42], %135 {strides = array<i32>} : memref<4x14x75xf32, #tpu.memory_space<vmem>>, vector<1x14x3xf32>,
    %136 = vector.extract_strided_slice %115 {offsets = [0, 0], sizes = [14, 3], strides = [1, 1]} : vector<16x3xf32> to vector<14x3xf32>
    %c1_92 = arith.constant 1 : index
    %c0_93 = arith.constant 0 : index
    %c30_94 = arith.constant 30 : index
    %137 = vector.load %arg7[%c1_92, %c0_93, %c30_94] : memref<4x14x75xf32, #tpu.memory_space<vmem>>, vector<1x14x3xf32>
    %138 = vector.shape_cast %137 : vector<1x14x3xf32> to vector<14x3xf32>
    %139 = vector.shape_cast %136 : vector<14x3xf32> to vector<1x14x3xf32>
    tpu.vector_store %arg7[%c1_92, %c0_93, %c30_94], %139 {strides = array<i32>} : memref<4x14x75xf32, #tpu.memory_space<vmem>>, vector<1x14x3xf32>,
    %140 = vector.extract_strided_slice %109 {offsets = [1, 0], sizes = [14, 3], strides = [1, 1]} : vector<16x3xf32> to vector<14x3xf32>
    %c1_95 = arith.constant 1 : index
    %c0_96 = arith.constant 0 : index
    %c33_97 = arith.constant 33 : index
    %141 = vector.load %arg7[%c1_95, %c0_96, %c33_97] : memref<4x14x75xf32, #tpu.memory_space<vmem>>, vector<1x14x3xf32>
    %142 = vector.shape_cast %141 : vector<1x14x3xf32> to vector<14x3xf32>
    %143 = vector.shape_cast %140 : vector<14x3xf32> to vector<1x14x3xf32>
    tpu.vector_store %arg7[%c1_95, %c0_96, %c33_97], %143 {strides = array<i32>} : memref<4x14x75xf32, #tpu.memory_space<vmem>>, vector<1x14x3xf32>,
    %144 = vector.extract_strided_slice %115 {offsets = [1, 0], sizes = [14, 3], strides = [1, 1]} : vector<16x3xf32> to vector<14x3xf32>
    %c1_98 = arith.constant 1 : index
    %c0_99 = arith.constant 0 : index
    %c36_100 = arith.constant 36 : index
    %145 = vector.load %arg7[%c1_98, %c0_99, %c36_100] : memref<4x14x75xf32, #tpu.memory_space<vmem>>, vector<1x14x3xf32>
    %146 = vector.shape_cast %145 : vector<1x14x3xf32> to vector<14x3xf32>
    %147 = vector.shape_cast %144 : vector<14x3xf32> to vector<1x14x3xf32>
    tpu.vector_store %arg7[%c1_98, %c0_99, %c36_100], %147 {strides = array<i32>} : memref<4x14x75xf32, #tpu.memory_space<vmem>>, vector<1x14x3xf32>,
    %148 = vector.extract_strided_slice %109 {offsets = [2, 0], sizes = [14, 3], strides = [1, 1]} : vector<16x3xf32> to vector<14x3xf32>
    %c1_101 = arith.constant 1 : index
    %c0_102 = arith.constant 0 : index
    %c39_103 = arith.constant 39 : index
    %149 = vector.load %arg7[%c1_101, %c0_102, %c39_103] : memref<4x14x75xf32, #tpu.memory_space<vmem>>, vector<1x14x3xf32>
    %150 = vector.shape_cast %149 : vector<1x14x3xf32> to vector<14x3xf32>
    %151 = vector.shape_cast %148 : vector<14x3xf32> to vector<1x14x3xf32>
    tpu.vector_store %arg7[%c1_101, %c0_102, %c39_103], %151 {strides = array<i32>} : memref<4x14x75xf32, #tpu.memory_space<vmem>>, vector<1x14x3xf32>,
    %152 = vector.extract_strided_slice %115 {offsets = [2, 0], sizes = [14, 3], strides = [1, 1]} : vector<16x3xf32> to vector<14x3xf32>
    %c1_104 = arith.constant 1 : index
    %c0_105 = arith.constant 0 : index
    %c42_106 = arith.constant 42 : index
    %153 = vector.load %arg7[%c1_104, %c0_105, %c42_106] : memref<4x14x75xf32, #tpu.memory_space<vmem>>, vector<1x14x3xf32>
    %154 = vector.shape_cast %153 : vector<1x14x3xf32> to vector<14x3xf32>
    %155 = vector.shape_cast %152 : vector<14x3xf32> to vector<1x14x3xf32>
    tpu.vector_store %arg7[%c1_104, %c0_105, %c42_106], %155 {strides = array<i32>} : memref<4x14x75xf32, #tpu.memory_space<vmem>>, vector<1x14x3xf32>,
    %c2_i32_107 = arith.constant 2 : i32
    %156 = arith.muli %c2_i32_107, %arg1 : i32
    %c0_i32_108 = arith.constant 0 : i32
    %157 = arith.addi %156, %c0_i32_108 : i32
    %c3_i32 = arith.constant 3 : i32
    %158 = arith.addi %157, %c3_i32 : i32
    %c0_109 = arith.constant 0 : index
    %159 = arith.index_cast %158 : i32 to index
    %c0_110 = arith.constant 0 : index
    %c0_111 = arith.constant 0 : index
    %160 = vector.load %arg2[%c0_109, %159, %c0_110, %c0_111] : memref<1x32x16x3xf32, #tpu.memory_space<vmem>>, vector<1x1x16x3xf32>
    %161 = vector.shape_cast %160 : vector<1x1x16x3xf32> to vector<16x3xf32>
    %c2_i32_112 = arith.constant 2 : i32
    %162 = arith.muli %c2_i32_112, %arg1 : i32
    %c0_i32_113 = arith.constant 0 : i32
    %163 = arith.addi %162, %c0_i32_113 : i32
    %c3_i32_114 = arith.constant 3 : i32
    %164 = arith.addi %163, %c3_i32_114 : i32
    %c0_115 = arith.constant 0 : index
    %165 = arith.index_cast %164 : i32 to index
    %c0_116 = arith.constant 0 : index
    %c0_117 = arith.constant 0 : index
    %166 = vector.load %arg3[%c0_115, %165, %c0_116, %c0_117] : memref<1x32x16x3xf32, #tpu.memory_space<vmem>>, vector<1x1x16x3xf32>
    %167 = vector.shape_cast %166 : vector<1x1x16x3xf32> to vector<16x3xf32>
    %168 = vector.extract_strided_slice %161 {offsets = [0, 0], sizes = [14, 3], strides = [1, 1]} : vector<16x3xf32> to vector<14x3xf32>
    %c0_118 = arith.constant 0 : index
    %c0_119 = arith.constant 0 : index
    %c45 = arith.constant 45 : index
    %169 = vector.load %arg7[%c0_118, %c0_119, %c45] : memref<4x14x75xf32, #tpu.memory_space<vmem>>, vector<1x14x3xf32>
    %170 = vector.shape_cast %169 : vector<1x14x3xf32> to vector<14x3xf32>
    %171 = vector.shape_cast %168 : vector<14x3xf32> to vector<1x14x3xf32>
    tpu.vector_store %arg7[%c0_118, %c0_119, %c45], %171 {strides = array<i32>} : memref<4x14x75xf32, #tpu.memory_space<vmem>>, vector<1x14x3xf32>,
    %172 = vector.extract_strided_slice %167 {offsets = [0, 0], sizes = [14, 3], strides = [1, 1]} : vector<16x3xf32> to vector<14x3xf32>
    %c0_120 = arith.constant 0 : index
    %c0_121 = arith.constant 0 : index
    %c48 = arith.constant 48 : index
    %173 = vector.load %arg7[%c0_120, %c0_121, %c48] : memref<4x14x75xf32, #tpu.memory_space<vmem>>, vector<1x14x3xf32>
    %174 = vector.shape_cast %173 : vector<1x14x3xf32> to vector<14x3xf32>
    %175 = vector.shape_cast %172 : vector<14x3xf32> to vector<1x14x3xf32>
    tpu.vector_store %arg7[%c0_120, %c0_121, %c48], %175 {strides = array<i32>} : memref<4x14x75xf32, #tpu.memory_space<vmem>>, vector<1x14x3xf32>,
    %176 = vector.extract_strided_slice %161 {offsets = [1, 0], sizes = [14, 3], strides = [1, 1]} : vector<16x3xf32> to vector<14x3xf32>
    %c0_122 = arith.constant 0 : index
    %c0_123 = arith.constant 0 : index
    %c51 = arith.constant 51 : index
    %177 = vector.load %arg7[%c0_122, %c0_123, %c51] : memref<4x14x75xf32, #tpu.memory_space<vmem>>, vector<1x14x3xf32>
    %178 = vector.shape_cast %177 : vector<1x14x3xf32> to vector<14x3xf32>
    %179 = vector.shape_cast %176 : vector<14x3xf32> to vector<1x14x3xf32>
    tpu.vector_store %arg7[%c0_122, %c0_123, %c51], %179 {strides = array<i32>} : memref<4x14x75xf32, #tpu.memory_space<vmem>>, vector<1x14x3xf32>,
    %180 = vector.extract_strided_slice %167 {offsets = [1, 0], sizes = [14, 3], strides = [1, 1]} : vector<16x3xf32> to vector<14x3xf32>
    %c0_124 = arith.constant 0 : index
    %c0_125 = arith.constant 0 : index
    %c54 = arith.constant 54 : index
    %181 = vector.load %arg7[%c0_124, %c0_125, %c54] : memref<4x14x75xf32, #tpu.memory_space<vmem>>, vector<1x14x3xf32>
    %182 = vector.shape_cast %181 : vector<1x14x3xf32> to vector<14x3xf32>
    %183 = vector.shape_cast %180 : vector<14x3xf32> to vector<1x14x3xf32>
    tpu.vector_store %arg7[%c0_124, %c0_125, %c54], %183 {strides = array<i32>} : memref<4x14x75xf32, #tpu.memory_space<vmem>>, vector<1x14x3xf32>,
    %184 = vector.extract_strided_slice %161 {offsets = [2, 0], sizes = [14, 3], strides = [1, 1]} : vector<16x3xf32> to vector<14x3xf32>
    %c0_126 = arith.constant 0 : index
    %c0_127 = arith.constant 0 : index
    %c57 = arith.constant 57 : index
    %185 = vector.load %arg7[%c0_126, %c0_127, %c57] : memref<4x14x75xf32, #tpu.memory_space<vmem>>, vector<1x14x3xf32>
    %186 = vector.shape_cast %185 : vector<1x14x3xf32> to vector<14x3xf32>
    %187 = vector.shape_cast %184 : vector<14x3xf32> to vector<1x14x3xf32>
    tpu.vector_store %arg7[%c0_126, %c0_127, %c57], %187 {strides = array<i32>} : memref<4x14x75xf32, #tpu.memory_space<vmem>>, vector<1x14x3xf32>,
    %188 = vector.extract_strided_slice %167 {offsets = [0, 0], sizes = [14, 3], strides = [1, 1]} : vector<16x3xf32> to vector<14x3xf32>
    %c1_128 = arith.constant 1 : index
    %c0_129 = arith.constant 0 : index
    %c45_130 = arith.constant 45 : index
    %189 = vector.load %arg7[%c1_128, %c0_129, %c45_130] : memref<4x14x75xf32, #tpu.memory_space<vmem>>, vector<1x14x3xf32>
    %190 = vector.shape_cast %189 : vector<1x14x3xf32> to vector<14x3xf32>
    %191 = vector.shape_cast %188 : vector<14x3xf32> to vector<1x14x3xf32>
    tpu.vector_store %arg7[%c1_128, %c0_129, %c45_130], %191 {strides = array<i32>} : memref<4x14x75xf32, #tpu.memory_space<vmem>>, vector<1x14x3xf32>,
    %192 = vector.extract_strided_slice %161 {offsets = [1, 0], sizes = [14, 3], strides = [1, 1]} : vector<16x3xf32> to vector<14x3xf32>
    %c1_131 = arith.constant 1 : index
    %c0_132 = arith.constant 0 : index
    %c48_133 = arith.constant 48 : index
    %193 = vector.load %arg7[%c1_131, %c0_132, %c48_133] : memref<4x14x75xf32, #tpu.memory_space<vmem>>, vector<1x14x3xf32>
    %194 = vector.shape_cast %193 : vector<1x14x3xf32> to vector<14x3xf32>
    %195 = vector.shape_cast %192 : vector<14x3xf32> to vector<1x14x3xf32>
    tpu.vector_store %arg7[%c1_131, %c0_132, %c48_133], %195 {strides = array<i32>} : memref<4x14x75xf32, #tpu.memory_space<vmem>>, vector<1x14x3xf32>,
    %196 = vector.extract_strided_slice %167 {offsets = [1, 0], sizes = [14, 3], strides = [1, 1]} : vector<16x3xf32> to vector<14x3xf32>
    %c1_134 = arith.constant 1 : index
    %c0_135 = arith.constant 0 : index
    %c51_136 = arith.constant 51 : index
    %197 = vector.load %arg7[%c1_134, %c0_135, %c51_136] : memref<4x14x75xf32, #tpu.memory_space<vmem>>, vector<1x14x3xf32>
    %198 = vector.shape_cast %197 : vector<1x14x3xf32> to vector<14x3xf32>
    %199 = vector.shape_cast %196 : vector<14x3xf32> to vector<1x14x3xf32>
    tpu.vector_store %arg7[%c1_134, %c0_135, %c51_136], %199 {strides = array<i32>} : memref<4x14x75xf32, #tpu.memory_space<vmem>>, vector<1x14x3xf32>,
    %200 = vector.extract_strided_slice %161 {offsets = [2, 0], sizes = [14, 3], strides = [1, 1]} : vector<16x3xf32> to vector<14x3xf32>
    %c1_137 = arith.constant 1 : index
    %c0_138 = arith.constant 0 : index
    %c54_139 = arith.constant 54 : index
    %201 = vector.load %arg7[%c1_137, %c0_138, %c54_139] : memref<4x14x75xf32, #tpu.memory_space<vmem>>, vector<1x14x3xf32>
    %202 = vector.shape_cast %201 : vector<1x14x3xf32> to vector<14x3xf32>
    %203 = vector.shape_cast %200 : vector<14x3xf32> to vector<1x14x3xf32>
    tpu.vector_store %arg7[%c1_137, %c0_138, %c54_139], %203 {strides = array<i32>} : memref<4x14x75xf32, #tpu.memory_space<vmem>>, vector<1x14x3xf32>,
    %204 = vector.extract_strided_slice %167 {offsets = [2, 0], sizes = [14, 3], strides = [1, 1]} : vector<16x3xf32> to vector<14x3xf32>
    %c1_140 = arith.constant 1 : index
    %c0_141 = arith.constant 0 : index
    %c57_142 = arith.constant 57 : index
    %205 = vector.load %arg7[%c1_140, %c0_141, %c57_142] : memref<4x14x75xf32, #tpu.memory_space<vmem>>, vector<1x14x3xf32>
    %206 = vector.shape_cast %205 : vector<1x14x3xf32> to vector<14x3xf32>
    %207 = vector.shape_cast %204 : vector<14x3xf32> to vector<1x14x3xf32>
    tpu.vector_store %arg7[%c1_140, %c0_141, %c57_142], %207 {strides = array<i32>} : memref<4x14x75xf32, #tpu.memory_space<vmem>>, vector<1x14x3xf32>,
    %c2_i32_143 = arith.constant 2 : i32
    %208 = arith.muli %c2_i32_143, %arg1 : i32
    %c0_i32_144 = arith.constant 0 : i32
    %209 = arith.addi %208, %c0_i32_144 : i32
    %c4_i32 = arith.constant 4 : i32
    %210 = arith.addi %209, %c4_i32 : i32
    %c0_145 = arith.constant 0 : index
    %211 = arith.index_cast %210 : i32 to index
    %c0_146 = arith.constant 0 : index
    %c0_147 = arith.constant 0 : index
    %212 = vector.load %arg2[%c0_145, %211, %c0_146, %c0_147] : memref<1x32x16x3xf32, #tpu.memory_space<vmem>>, vector<1x1x16x3xf32>
    %213 = vector.shape_cast %212 : vector<1x1x16x3xf32> to vector<16x3xf32>
    %c2_i32_148 = arith.constant 2 : i32
    %214 = arith.muli %c2_i32_148, %arg1 : i32
    %c0_i32_149 = arith.constant 0 : i32
    %215 = arith.addi %214, %c0_i32_149 : i32
    %c4_i32_150 = arith.constant 4 : i32
    %216 = arith.addi %215, %c4_i32_150 : i32
    %c0_151 = arith.constant 0 : index
    %217 = arith.index_cast %216 : i32 to index
    %c0_152 = arith.constant 0 : index
    %c0_153 = arith.constant 0 : index
    %218 = vector.load %arg3[%c0_151, %217, %c0_152, %c0_153] : memref<1x32x16x3xf32, #tpu.memory_space<vmem>>, vector<1x1x16x3xf32>
    %219 = vector.shape_cast %218 : vector<1x1x16x3xf32> to vector<16x3xf32>
    %220 = vector.extract_strided_slice %213 {offsets = [0, 0], sizes = [14, 3], strides = [1, 1]} : vector<16x3xf32> to vector<14x3xf32>
    %c0_154 = arith.constant 0 : index
    %c0_155 = arith.constant 0 : index
    %c60 = arith.constant 60 : index
    %221 = vector.load %arg7[%c0_154, %c0_155, %c60] : memref<4x14x75xf32, #tpu.memory_space<vmem>>, vector<1x14x3xf32>
    %222 = vector.shape_cast %221 : vector<1x14x3xf32> to vector<14x3xf32>
    %223 = vector.shape_cast %220 : vector<14x3xf32> to vector<1x14x3xf32>
    tpu.vector_store %arg7[%c0_154, %c0_155, %c60], %223 {strides = array<i32>} : memref<4x14x75xf32, #tpu.memory_space<vmem>>, vector<1x14x3xf32>,
    %224 = vector.extract_strided_slice %219 {offsets = [0, 0], sizes = [14, 3], strides = [1, 1]} : vector<16x3xf32> to vector<14x3xf32>
    %c0_156 = arith.constant 0 : index
    %c0_157 = arith.constant 0 : index
    %c63 = arith.constant 63 : index
    %225 = vector.load %arg7[%c0_156, %c0_157, %c63] : memref<4x14x75xf32, #tpu.memory_space<vmem>>, vector<1x14x3xf32>
    %226 = vector.shape_cast %225 : vector<1x14x3xf32> to vector<14x3xf32>
    %227 = vector.shape_cast %224 : vector<14x3xf32> to vector<1x14x3xf32>
    tpu.vector_store %arg7[%c0_156, %c0_157, %c63], %227 {strides = array<i32>} : memref<4x14x75xf32, #tpu.memory_space<vmem>>, vector<1x14x3xf32>,
    %228 = vector.extract_strided_slice %213 {offsets = [1, 0], sizes = [14, 3], strides = [1, 1]} : vector<16x3xf32> to vector<14x3xf32>
    %c0_158 = arith.constant 0 : index
    %c0_159 = arith.constant 0 : index
    %c66 = arith.constant 66 : index
    %229 = vector.load %arg7[%c0_158, %c0_159, %c66] : memref<4x14x75xf32, #tpu.memory_space<vmem>>, vector<1x14x3xf32>
    %230 = vector.shape_cast %229 : vector<1x14x3xf32> to vector<14x3xf32>
    %231 = vector.shape_cast %228 : vector<14x3xf32> to vector<1x14x3xf32>
    tpu.vector_store %arg7[%c0_158, %c0_159, %c66], %231 {strides = array<i32>} : memref<4x14x75xf32, #tpu.memory_space<vmem>>, vector<1x14x3xf32>,
    %232 = vector.extract_strided_slice %219 {offsets = [1, 0], sizes = [14, 3], strides = [1, 1]} : vector<16x3xf32> to vector<14x3xf32>
    %c0_160 = arith.constant 0 : index
    %c0_161 = arith.constant 0 : index
    %c69 = arith.constant 69 : index
    %233 = vector.load %arg7[%c0_160, %c0_161, %c69] : memref<4x14x75xf32, #tpu.memory_space<vmem>>, vector<1x14x3xf32>
    %234 = vector.shape_cast %233 : vector<1x14x3xf32> to vector<14x3xf32>
    %235 = vector.shape_cast %232 : vector<14x3xf32> to vector<1x14x3xf32>
    tpu.vector_store %arg7[%c0_160, %c0_161, %c69], %235 {strides = array<i32>} : memref<4x14x75xf32, #tpu.memory_space<vmem>>, vector<1x14x3xf32>,
    %236 = vector.extract_strided_slice %213 {offsets = [2, 0], sizes = [14, 3], strides = [1, 1]} : vector<16x3xf32> to vector<14x3xf32>
    %c0_162 = arith.constant 0 : index
    %c0_163 = arith.constant 0 : index
    %c72 = arith.constant 72 : index
    %237 = vector.load %arg7[%c0_162, %c0_163, %c72] : memref<4x14x75xf32, #tpu.memory_space<vmem>>, vector<1x14x3xf32>
    %238 = vector.shape_cast %237 : vector<1x14x3xf32> to vector<14x3xf32>
    %239 = vector.shape_cast %236 : vector<14x3xf32> to vector<1x14x3xf32>
    tpu.vector_store %arg7[%c0_162, %c0_163, %c72], %239 {strides = array<i32>} : memref<4x14x75xf32, #tpu.memory_space<vmem>>, vector<1x14x3xf32>,
    %240 = vector.extract_strided_slice %219 {offsets = [0, 0], sizes = [14, 3], strides = [1, 1]} : vector<16x3xf32> to vector<14x3xf32>
    %c1_164 = arith.constant 1 : index
    %c0_165 = arith.constant 0 : index
    %c60_166 = arith.constant 60 : index
    %241 = vector.load %arg7[%c1_164, %c0_165, %c60_166] : memref<4x14x75xf32, #tpu.memory_space<vmem>>, vector<1x14x3xf32>
    %242 = vector.shape_cast %241 : vector<1x14x3xf32> to vector<14x3xf32>
    %243 = vector.shape_cast %240 : vector<14x3xf32> to vector<1x14x3xf32>
    tpu.vector_store %arg7[%c1_164, %c0_165, %c60_166], %243 {strides = array<i32>} : memref<4x14x75xf32, #tpu.memory_space<vmem>>, vector<1x14x3xf32>,
    %244 = vector.extract_strided_slice %213 {offsets = [1, 0], sizes = [14, 3], strides = [1, 1]} : vector<16x3xf32> to vector<14x3xf32>
    %c1_167 = arith.constant 1 : index
    %c0_168 = arith.constant 0 : index
    %c63_169 = arith.constant 63 : index
    %245 = vector.load %arg7[%c1_167, %c0_168, %c63_169] : memref<4x14x75xf32, #tpu.memory_space<vmem>>, vector<1x14x3xf32>
    %246 = vector.shape_cast %245 : vector<1x14x3xf32> to vector<14x3xf32>
    %247 = vector.shape_cast %244 : vector<14x3xf32> to vector<1x14x3xf32>
    tpu.vector_store %arg7[%c1_167, %c0_168, %c63_169], %247 {strides = array<i32>} : memref<4x14x75xf32, #tpu.memory_space<vmem>>, vector<1x14x3xf32>,
    %248 = vector.extract_strided_slice %219 {offsets = [1, 0], sizes = [14, 3], strides = [1, 1]} : vector<16x3xf32> to vector<14x3xf32>
    %c1_170 = arith.constant 1 : index
    %c0_171 = arith.constant 0 : index
    %c66_172 = arith.constant 66 : index
    %249 = vector.load %arg7[%c1_170, %c0_171, %c66_172] : memref<4x14x75xf32, #tpu.memory_space<vmem>>, vector<1x14x3xf32>
    %250 = vector.shape_cast %249 : vector<1x14x3xf32> to vector<14x3xf32>
    %251 = vector.shape_cast %248 : vector<14x3xf32> to vector<1x14x3xf32>
    tpu.vector_store %arg7[%c1_170, %c0_171, %c66_172], %251 {strides = array<i32>} : memref<4x14x75xf32, #tpu.memory_space<vmem>>, vector<1x14x3xf32>,
    %252 = vector.extract_strided_slice %213 {offsets = [2, 0], sizes = [14, 3], strides = [1, 1]} : vector<16x3xf32> to vector<14x3xf32>
    %c1_173 = arith.constant 1 : index
    %c0_174 = arith.constant 0 : index
    %c69_175 = arith.constant 69 : index
    %253 = vector.load %arg7[%c1_173, %c0_174, %c69_175] : memref<4x14x75xf32, #tpu.memory_space<vmem>>, vector<1x14x3xf32>
    %254 = vector.shape_cast %253 : vector<1x14x3xf32> to vector<14x3xf32>
    %255 = vector.shape_cast %252 : vector<14x3xf32> to vector<1x14x3xf32>
    tpu.vector_store %arg7[%c1_173, %c0_174, %c69_175], %255 {strides = array<i32>} : memref<4x14x75xf32, #tpu.memory_space<vmem>>, vector<1x14x3xf32>,
    %256 = vector.extract_strided_slice %219 {offsets = [2, 0], sizes = [14, 3], strides = [1, 1]} : vector<16x3xf32> to vector<14x3xf32>
    %c1_176 = arith.constant 1 : index
    %c0_177 = arith.constant 0 : index
    %c72_178 = arith.constant 72 : index
    %257 = vector.load %arg7[%c1_176, %c0_177, %c72_178] : memref<4x14x75xf32, #tpu.memory_space<vmem>>, vector<1x14x3xf32>
    %258 = vector.shape_cast %257 : vector<1x14x3xf32> to vector<14x3xf32>
    %259 = vector.shape_cast %256 : vector<14x3xf32> to vector<1x14x3xf32>
    tpu.vector_store %arg7[%c1_176, %c0_177, %c72_178], %259 {strides = array<i32>} : memref<4x14x75xf32, #tpu.memory_space<vmem>>, vector<1x14x3xf32>,
    %c2_i32_179 = arith.constant 2 : i32
    %260 = arith.muli %c2_i32_179, %arg1 : i32
    %c1_i32_180 = arith.constant 1 : i32
    %261 = arith.addi %260, %c1_i32_180 : i32
    %c0_i32_181 = arith.constant 0 : i32
    %262 = arith.addi %261, %c0_i32_181 : i32
    %c0_182 = arith.constant 0 : index
    %263 = arith.index_cast %262 : i32 to index
    %c0_183 = arith.constant 0 : index
    %c0_184 = arith.constant 0 : index
    %264 = vector.load %arg2[%c0_182, %263, %c0_183, %c0_184] : memref<1x32x16x3xf32, #tpu.memory_space<vmem>>, vector<1x1x16x3xf32>
    %265 = vector.shape_cast %264 : vector<1x1x16x3xf32> to vector<16x3xf32>
    %c2_i32_185 = arith.constant 2 : i32
    %266 = arith.muli %c2_i32_185, %arg1 : i32
    %c1_i32_186 = arith.constant 1 : i32
    %267 = arith.addi %266, %c1_i32_186 : i32
    %c0_i32_187 = arith.constant 0 : i32
    %268 = arith.addi %267, %c0_i32_187 : i32
    %c0_188 = arith.constant 0 : index
    %269 = arith.index_cast %268 : i32 to index
    %c0_189 = arith.constant 0 : index
    %c0_190 = arith.constant 0 : index
    %270 = vector.load %arg3[%c0_188, %269, %c0_189, %c0_190] : memref<1x32x16x3xf32, #tpu.memory_space<vmem>>, vector<1x1x16x3xf32>
    %271 = vector.shape_cast %270 : vector<1x1x16x3xf32> to vector<16x3xf32>
    %272 = vector.extract_strided_slice %265 {offsets = [0, 0], sizes = [14, 3], strides = [1, 1]} : vector<16x3xf32> to vector<14x3xf32>
    %c2 = arith.constant 2 : index
    %c0_191 = arith.constant 0 : index
    %c0_192 = arith.constant 0 : index
    %273 = vector.load %arg7[%c2, %c0_191, %c0_192] : memref<4x14x75xf32, #tpu.memory_space<vmem>>, vector<1x14x3xf32>
    %274 = vector.shape_cast %273 : vector<1x14x3xf32> to vector<14x3xf32>
    %275 = vector.shape_cast %272 : vector<14x3xf32> to vector<1x14x3xf32>
    tpu.vector_store %arg7[%c2, %c0_191, %c0_192], %275 {strides = array<i32>} : memref<4x14x75xf32, #tpu.memory_space<vmem>>, vector<1x14x3xf32>,
    %276 = vector.extract_strided_slice %271 {offsets = [0, 0], sizes = [14, 3], strides = [1, 1]} : vector<16x3xf32> to vector<14x3xf32>
    %c2_193 = arith.constant 2 : index
    %c0_194 = arith.constant 0 : index
    %c3_195 = arith.constant 3 : index
    %277 = vector.load %arg7[%c2_193, %c0_194, %c3_195] : memref<4x14x75xf32, #tpu.memory_space<vmem>>, vector<1x14x3xf32>
    %278 = vector.shape_cast %277 : vector<1x14x3xf32> to vector<14x3xf32>
    %279 = vector.shape_cast %276 : vector<14x3xf32> to vector<1x14x3xf32>
    tpu.vector_store %arg7[%c2_193, %c0_194, %c3_195], %279 {strides = array<i32>} : memref<4x14x75xf32, #tpu.memory_space<vmem>>, vector<1x14x3xf32>,
    %280 = vector.extract_strided_slice %265 {offsets = [1, 0], sizes = [14, 3], strides = [1, 1]} : vector<16x3xf32> to vector<14x3xf32>
    %c2_196 = arith.constant 2 : index
    %c0_197 = arith.constant 0 : index
    %c6_198 = arith.constant 6 : index
    %281 = vector.load %arg7[%c2_196, %c0_197, %c6_198] : memref<4x14x75xf32, #tpu.memory_space<vmem>>, vector<1x14x3xf32>
    %282 = vector.shape_cast %281 : vector<1x14x3xf32> to vector<14x3xf32>
    %283 = vector.shape_cast %280 : vector<14x3xf32> to vector<1x14x3xf32>
    tpu.vector_store %arg7[%c2_196, %c0_197, %c6_198], %283 {strides = array<i32>} : memref<4x14x75xf32, #tpu.memory_space<vmem>>, vector<1x14x3xf32>,
    %284 = vector.extract_strided_slice %271 {offsets = [1, 0], sizes = [14, 3], strides = [1, 1]} : vector<16x3xf32> to vector<14x3xf32>
    %c2_199 = arith.constant 2 : index
    %c0_200 = arith.constant 0 : index
    %c9_201 = arith.constant 9 : index
    %285 = vector.load %arg7[%c2_199, %c0_200, %c9_201] : memref<4x14x75xf32, #tpu.memory_space<vmem>>, vector<1x14x3xf32>
    %286 = vector.shape_cast %285 : vector<1x14x3xf32> to vector<14x3xf32>
    %287 = vector.shape_cast %284 : vector<14x3xf32> to vector<1x14x3xf32>
    tpu.vector_store %arg7[%c2_199, %c0_200, %c9_201], %287 {strides = array<i32>} : memref<4x14x75xf32, #tpu.memory_space<vmem>>, vector<1x14x3xf32>,
    %288 = vector.extract_strided_slice %265 {offsets = [2, 0], sizes = [14, 3], strides = [1, 1]} : vector<16x3xf32> to vector<14x3xf32>
    %c2_202 = arith.constant 2 : index
    %c0_203 = arith.constant 0 : index
    %c12_204 = arith.constant 12 : index
    %289 = vector.load %arg7[%c2_202, %c0_203, %c12_204] : memref<4x14x75xf32, #tpu.memory_space<vmem>>, vector<1x14x3xf32>
    %290 = vector.shape_cast %289 : vector<1x14x3xf32> to vector<14x3xf32>
    %291 = vector.shape_cast %288 : vector<14x3xf32> to vector<1x14x3xf32>
    tpu.vector_store %arg7[%c2_202, %c0_203, %c12_204], %291 {strides = array<i32>} : memref<4x14x75xf32, #tpu.memory_space<vmem>>, vector<1x14x3xf32>,
    %292 = vector.extract_strided_slice %271 {offsets = [0, 0], sizes = [14, 3], strides = [1, 1]} : vector<16x3xf32> to vector<14x3xf32>
    %c3_205 = arith.constant 3 : index
    %c0_206 = arith.constant 0 : index
    %c0_207 = arith.constant 0 : index
    %293 = vector.load %arg7[%c3_205, %c0_206, %c0_207] : memref<4x14x75xf32, #tpu.memory_space<vmem>>, vector<1x14x3xf32>
    %294 = vector.shape_cast %293 : vector<1x14x3xf32> to vector<14x3xf32>
    %295 = vector.shape_cast %292 : vector<14x3xf32> to vector<1x14x3xf32>
    tpu.vector_store %arg7[%c3_205, %c0_206, %c0_207], %295 {strides = array<i32>} : memref<4x14x75xf32, #tpu.memory_space<vmem>>, vector<1x14x3xf32>,
    %296 = vector.extract_strided_slice %265 {offsets = [1, 0], sizes = [14, 3], strides = [1, 1]} : vector<16x3xf32> to vector<14x3xf32>
    %c3_208 = arith.constant 3 : index
    %c0_209 = arith.constant 0 : index
    %c3_210 = arith.constant 3 : index
    %297 = vector.load %arg7[%c3_208, %c0_209, %c3_210] : memref<4x14x75xf32, #tpu.memory_space<vmem>>, vector<1x14x3xf32>
    %298 = vector.shape_cast %297 : vector<1x14x3xf32> to vector<14x3xf32>
    %299 = vector.shape_cast %296 : vector<14x3xf32> to vector<1x14x3xf32>
    tpu.vector_store %arg7[%c3_208, %c0_209, %c3_210], %299 {strides = array<i32>} : memref<4x14x75xf32, #tpu.memory_space<vmem>>, vector<1x14x3xf32>,
    %300 = vector.extract_strided_slice %271 {offsets = [1, 0], sizes = [14, 3], strides = [1, 1]} : vector<16x3xf32> to vector<14x3xf32>
    %c3_211 = arith.constant 3 : index
    %c0_212 = arith.constant 0 : index
    %c6_213 = arith.constant 6 : index
    %301 = vector.load %arg7[%c3_211, %c0_212, %c6_213] : memref<4x14x75xf32, #tpu.memory_space<vmem>>, vector<1x14x3xf32>
    %302 = vector.shape_cast %301 : vector<1x14x3xf32> to vector<14x3xf32>
    %303 = vector.shape_cast %300 : vector<14x3xf32> to vector<1x14x3xf32>
    tpu.vector_store %arg7[%c3_211, %c0_212, %c6_213], %303 {strides = array<i32>} : memref<4x14x75xf32, #tpu.memory_space<vmem>>, vector<1x14x3xf32>,
    %304 = vector.extract_strided_slice %265 {offsets = [2, 0], sizes = [14, 3], strides = [1, 1]} : vector<16x3xf32> to vector<14x3xf32>
    %c3_214 = arith.constant 3 : index
    %c0_215 = arith.constant 0 : index
    %c9_216 = arith.constant 9 : index
    %305 = vector.load %arg7[%c3_214, %c0_215, %c9_216] : memref<4x14x75xf32, #tpu.memory_space<vmem>>, vector<1x14x3xf32>
    %306 = vector.shape_cast %305 : vector<1x14x3xf32> to vector<14x3xf32>
    %307 = vector.shape_cast %304 : vector<14x3xf32> to vector<1x14x3xf32>
    tpu.vector_store %arg7[%c3_214, %c0_215, %c9_216], %307 {strides = array<i32>} : memref<4x14x75xf32, #tpu.memory_space<vmem>>, vector<1x14x3xf32>,
    %308 = vector.extract_strided_slice %271 {offsets = [2, 0], sizes = [14, 3], strides = [1, 1]} : vector<16x3xf32> to vector<14x3xf32>
    %c3_217 = arith.constant 3 : index
    %c0_218 = arith.constant 0 : index
    %c12_219 = arith.constant 12 : index
    %309 = vector.load %arg7[%c3_217, %c0_218, %c12_219] : memref<4x14x75xf32, #tpu.memory_space<vmem>>, vector<1x14x3xf32>
    %310 = vector.shape_cast %309 : vector<1x14x3xf32> to vector<14x3xf32>
    %311 = vector.shape_cast %308 : vector<14x3xf32> to vector<1x14x3xf32>
    tpu.vector_store %arg7[%c3_217, %c0_218, %c12_219], %311 {strides = array<i32>} : memref<4x14x75xf32, #tpu.memory_space<vmem>>, vector<1x14x3xf32>,
    %c2_i32_220 = arith.constant 2 : i32
    %312 = arith.muli %c2_i32_220, %arg1 : i32
    %c1_i32_221 = arith.constant 1 : i32
    %313 = arith.addi %312, %c1_i32_221 : i32
    %c1_i32_222 = arith.constant 1 : i32
    %314 = arith.addi %313, %c1_i32_222 : i32
    %c0_223 = arith.constant 0 : index
    %315 = arith.index_cast %314 : i32 to index
    %c0_224 = arith.constant 0 : index
    %c0_225 = arith.constant 0 : index
    %316 = vector.load %arg2[%c0_223, %315, %c0_224, %c0_225] : memref<1x32x16x3xf32, #tpu.memory_space<vmem>>, vector<1x1x16x3xf32>
    %317 = vector.shape_cast %316 : vector<1x1x16x3xf32> to vector<16x3xf32>
    %c2_i32_226 = arith.constant 2 : i32
    %318 = arith.muli %c2_i32_226, %arg1 : i32
    %c1_i32_227 = arith.constant 1 : i32
    %319 = arith.addi %318, %c1_i32_227 : i32
    %c1_i32_228 = arith.constant 1 : i32
    %320 = arith.addi %319, %c1_i32_228 : i32
    %c0_229 = arith.constant 0 : index
    %321 = arith.index_cast %320 : i32 to index
    %c0_230 = arith.constant 0 : index
    %c0_231 = arith.constant 0 : index
    %322 = vector.load %arg3[%c0_229, %321, %c0_230, %c0_231] : memref<1x32x16x3xf32, #tpu.memory_space<vmem>>, vector<1x1x16x3xf32>
    %323 = vector.shape_cast %322 : vector<1x1x16x3xf32> to vector<16x3xf32>
    %324 = vector.extract_strided_slice %317 {offsets = [0, 0], sizes = [14, 3], strides = [1, 1]} : vector<16x3xf32> to vector<14x3xf32>
    %c2_232 = arith.constant 2 : index
    %c0_233 = arith.constant 0 : index
    %c15_234 = arith.constant 15 : index
    %325 = vector.load %arg7[%c2_232, %c0_233, %c15_234] : memref<4x14x75xf32, #tpu.memory_space<vmem>>, vector<1x14x3xf32>
    %326 = vector.shape_cast %325 : vector<1x14x3xf32> to vector<14x3xf32>
    %327 = vector.shape_cast %324 : vector<14x3xf32> to vector<1x14x3xf32>
    tpu.vector_store %arg7[%c2_232, %c0_233, %c15_234], %327 {strides = array<i32>} : memref<4x14x75xf32, #tpu.memory_space<vmem>>, vector<1x14x3xf32>,
    %328 = vector.extract_strided_slice %323 {offsets = [0, 0], sizes = [14, 3], strides = [1, 1]} : vector<16x3xf32> to vector<14x3xf32>
    %c2_235 = arith.constant 2 : index
    %c0_236 = arith.constant 0 : index
    %c18_237 = arith.constant 18 : index
    %329 = vector.load %arg7[%c2_235, %c0_236, %c18_237] : memref<4x14x75xf32, #tpu.memory_space<vmem>>, vector<1x14x3xf32>
    %330 = vector.shape_cast %329 : vector<1x14x3xf32> to vector<14x3xf32>
    %331 = vector.shape_cast %328 : vector<14x3xf32> to vector<1x14x3xf32>
    tpu.vector_store %arg7[%c2_235, %c0_236, %c18_237], %331 {strides = array<i32>} : memref<4x14x75xf32, #tpu.memory_space<vmem>>, vector<1x14x3xf32>,
    %332 = vector.extract_strided_slice %317 {offsets = [1, 0], sizes = [14, 3], strides = [1, 1]} : vector<16x3xf32> to vector<14x3xf32>
    %c2_238 = arith.constant 2 : index
    %c0_239 = arith.constant 0 : index
    %c21_240 = arith.constant 21 : index
    %333 = vector.load %arg7[%c2_238, %c0_239, %c21_240] : memref<4x14x75xf32, #tpu.memory_space<vmem>>, vector<1x14x3xf32>
    %334 = vector.shape_cast %333 : vector<1x14x3xf32> to vector<14x3xf32>
    %335 = vector.shape_cast %332 : vector<14x3xf32> to vector<1x14x3xf32>
    tpu.vector_store %arg7[%c2_238, %c0_239, %c21_240], %335 {strides = array<i32>} : memref<4x14x75xf32, #tpu.memory_space<vmem>>, vector<1x14x3xf32>,
    %336 = vector.extract_strided_slice %323 {offsets = [1, 0], sizes = [14, 3], strides = [1, 1]} : vector<16x3xf32> to vector<14x3xf32>
    %c2_241 = arith.constant 2 : index
    %c0_242 = arith.constant 0 : index
    %c24_243 = arith.constant 24 : index
    %337 = vector.load %arg7[%c2_241, %c0_242, %c24_243] : memref<4x14x75xf32, #tpu.memory_space<vmem>>, vector<1x14x3xf32>
    %338 = vector.shape_cast %337 : vector<1x14x3xf32> to vector<14x3xf32>
    %339 = vector.shape_cast %336 : vector<14x3xf32> to vector<1x14x3xf32>
    tpu.vector_store %arg7[%c2_241, %c0_242, %c24_243], %339 {strides = array<i32>} : memref<4x14x75xf32, #tpu.memory_space<vmem>>, vector<1x14x3xf32>,
    %340 = vector.extract_strided_slice %317 {offsets = [2, 0], sizes = [14, 3], strides = [1, 1]} : vector<16x3xf32> to vector<14x3xf32>
    %c2_244 = arith.constant 2 : index
    %c0_245 = arith.constant 0 : index
    %c27_246 = arith.constant 27 : index
    %341 = vector.load %arg7[%c2_244, %c0_245, %c27_246] : memref<4x14x75xf32, #tpu.memory_space<vmem>>, vector<1x14x3xf32>
    %342 = vector.shape_cast %341 : vector<1x14x3xf32> to vector<14x3xf32>
    %343 = vector.shape_cast %340 : vector<14x3xf32> to vector<1x14x3xf32>
    tpu.vector_store %arg7[%c2_244, %c0_245, %c27_246], %343 {strides = array<i32>} : memref<4x14x75xf32, #tpu.memory_space<vmem>>, vector<1x14x3xf32>,
    %344 = vector.extract_strided_slice %323 {offsets = [0, 0], sizes = [14, 3], strides = [1, 1]} : vector<16x3xf32> to vector<14x3xf32>
    %c3_247 = arith.constant 3 : index
    %c0_248 = arith.constant 0 : index
    %c15_249 = arith.constant 15 : index
    %345 = vector.load %arg7[%c3_247, %c0_248, %c15_249] : memref<4x14x75xf32, #tpu.memory_space<vmem>>, vector<1x14x3xf32>
    %346 = vector.shape_cast %345 : vector<1x14x3xf32> to vector<14x3xf32>
    %347 = vector.shape_cast %344 : vector<14x3xf32> to vector<1x14x3xf32>
    tpu.vector_store %arg7[%c3_247, %c0_248, %c15_249], %347 {strides = array<i32>} : memref<4x14x75xf32, #tpu.memory_space<vmem>>, vector<1x14x3xf32>,
    %348 = vector.extract_strided_slice %317 {offsets = [1, 0], sizes = [14, 3], strides = [1, 1]} : vector<16x3xf32> to vector<14x3xf32>
    %c3_250 = arith.constant 3 : index
    %c0_251 = arith.constant 0 : index
    %c18_252 = arith.constant 18 : index
    %349 = vector.load %arg7[%c3_250, %c0_251, %c18_252] : memref<4x14x75xf32, #tpu.memory_space<vmem>>, vector<1x14x3xf32>
    %350 = vector.shape_cast %349 : vector<1x14x3xf32> to vector<14x3xf32>
    %351 = vector.shape_cast %348 : vector<14x3xf32> to vector<1x14x3xf32>
    tpu.vector_store %arg7[%c3_250, %c0_251, %c18_252], %351 {strides = array<i32>} : memref<4x14x75xf32, #tpu.memory_space<vmem>>, vector<1x14x3xf32>,
    %352 = vector.extract_strided_slice %323 {offsets = [1, 0], sizes = [14, 3], strides = [1, 1]} : vector<16x3xf32> to vector<14x3xf32>
    %c3_253 = arith.constant 3 : index
    %c0_254 = arith.constant 0 : index
    %c21_255 = arith.constant 21 : index
    %353 = vector.load %arg7[%c3_253, %c0_254, %c21_255] : memref<4x14x75xf32, #tpu.memory_space<vmem>>, vector<1x14x3xf32>
    %354 = vector.shape_cast %353 : vector<1x14x3xf32> to vector<14x3xf32>
    %355 = vector.shape_cast %352 : vector<14x3xf32> to vector<1x14x3xf32>
    tpu.vector_store %arg7[%c3_253, %c0_254, %c21_255], %355 {strides = array<i32>} : memref<4x14x75xf32, #tpu.memory_space<vmem>>, vector<1x14x3xf32>,
    %356 = vector.extract_strided_slice %317 {offsets = [2, 0], sizes = [14, 3], strides = [1, 1]} : vector<16x3xf32> to vector<14x3xf32>
    %c3_256 = arith.constant 3 : index
    %c0_257 = arith.constant 0 : index
    %c24_258 = arith.constant 24 : index
    %357 = vector.load %arg7[%c3_256, %c0_257, %c24_258] : memref<4x14x75xf32, #tpu.memory_space<vmem>>, vector<1x14x3xf32>
    %358 = vector.shape_cast %357 : vector<1x14x3xf32> to vector<14x3xf32>
    %359 = vector.shape_cast %356 : vector<14x3xf32> to vector<1x14x3xf32>
    tpu.vector_store %arg7[%c3_256, %c0_257, %c24_258], %359 {strides = array<i32>} : memref<4x14x75xf32, #tpu.memory_space<vmem>>, vector<1x14x3xf32>,
    %360 = vector.extract_strided_slice %323 {offsets = [2, 0], sizes = [14, 3], strides = [1, 1]} : vector<16x3xf32> to vector<14x3xf32>
    %c3_259 = arith.constant 3 : index
    %c0_260 = arith.constant 0 : index
    %c27_261 = arith.constant 27 : index
    %361 = vector.load %arg7[%c3_259, %c0_260, %c27_261] : memref<4x14x75xf32, #tpu.memory_space<vmem>>, vector<1x14x3xf32>
    %362 = vector.shape_cast %361 : vector<1x14x3xf32> to vector<14x3xf32>
    %363 = vector.shape_cast %360 : vector<14x3xf32> to vector<1x14x3xf32>
    tpu.vector_store %arg7[%c3_259, %c0_260, %c27_261], %363 {strides = array<i32>} : memref<4x14x75xf32, #tpu.memory_space<vmem>>, vector<1x14x3xf32>,
    %c2_i32_262 = arith.constant 2 : i32
    %364 = arith.muli %c2_i32_262, %arg1 : i32
    %c1_i32_263 = arith.constant 1 : i32
    %365 = arith.addi %364, %c1_i32_263 : i32
    %c2_i32_264 = arith.constant 2 : i32
    %366 = arith.addi %365, %c2_i32_264 : i32
    %c0_265 = arith.constant 0 : index
    %367 = arith.index_cast %366 : i32 to index
    %c0_266 = arith.constant 0 : index
    %c0_267 = arith.constant 0 : index
    %368 = vector.load %arg2[%c0_265, %367, %c0_266, %c0_267] : memref<1x32x16x3xf32, #tpu.memory_space<vmem>>, vector<1x1x16x3xf32>
    %369 = vector.shape_cast %368 : vector<1x1x16x3xf32> to vector<16x3xf32>
    %c2_i32_268 = arith.constant 2 : i32
    %370 = arith.muli %c2_i32_268, %arg1 : i32
    %c1_i32_269 = arith.constant 1 : i32
    %371 = arith.addi %370, %c1_i32_269 : i32
    %c2_i32_270 = arith.constant 2 : i32
    %372 = arith.addi %371, %c2_i32_270 : i32
    %c0_271 = arith.constant 0 : index
    %373 = arith.index_cast %372 : i32 to index
    %c0_272 = arith.constant 0 : index
    %c0_273 = arith.constant 0 : index
    %374 = vector.load %arg3[%c0_271, %373, %c0_272, %c0_273] : memref<1x32x16x3xf32, #tpu.memory_space<vmem>>, vector<1x1x16x3xf32>
    %375 = vector.shape_cast %374 : vector<1x1x16x3xf32> to vector<16x3xf32>
    %376 = vector.extract_strided_slice %369 {offsets = [0, 0], sizes = [14, 3], strides = [1, 1]} : vector<16x3xf32> to vector<14x3xf32>
    %c2_274 = arith.constant 2 : index
    %c0_275 = arith.constant 0 : index
    %c30_276 = arith.constant 30 : index
    %377 = vector.load %arg7[%c2_274, %c0_275, %c30_276] : memref<4x14x75xf32, #tpu.memory_space<vmem>>, vector<1x14x3xf32>
    %378 = vector.shape_cast %377 : vector<1x14x3xf32> to vector<14x3xf32>
    %379 = vector.shape_cast %376 : vector<14x3xf32> to vector<1x14x3xf32>
    tpu.vector_store %arg7[%c2_274, %c0_275, %c30_276], %379 {strides = array<i32>} : memref<4x14x75xf32, #tpu.memory_space<vmem>>, vector<1x14x3xf32>,
    %380 = vector.extract_strided_slice %375 {offsets = [0, 0], sizes = [14, 3], strides = [1, 1]} : vector<16x3xf32> to vector<14x3xf32>
    %c2_277 = arith.constant 2 : index
    %c0_278 = arith.constant 0 : index
    %c33_279 = arith.constant 33 : index
    %381 = vector.load %arg7[%c2_277, %c0_278, %c33_279] : memref<4x14x75xf32, #tpu.memory_space<vmem>>, vector<1x14x3xf32>
    %382 = vector.shape_cast %381 : vector<1x14x3xf32> to vector<14x3xf32>
    %383 = vector.shape_cast %380 : vector<14x3xf32> to vector<1x14x3xf32>
    tpu.vector_store %arg7[%c2_277, %c0_278, %c33_279], %383 {strides = array<i32>} : memref<4x14x75xf32, #tpu.memory_space<vmem>>, vector<1x14x3xf32>,
    %384 = vector.extract_strided_slice %369 {offsets = [1, 0], sizes = [14, 3], strides = [1, 1]} : vector<16x3xf32> to vector<14x3xf32>
    %c2_280 = arith.constant 2 : index
    %c0_281 = arith.constant 0 : index
    %c36_282 = arith.constant 36 : index
    %385 = vector.load %arg7[%c2_280, %c0_281, %c36_282] : memref<4x14x75xf32, #tpu.memory_space<vmem>>, vector<1x14x3xf32>
    %386 = vector.shape_cast %385 : vector<1x14x3xf32> to vector<14x3xf32>
    %387 = vector.shape_cast %384 : vector<14x3xf32> to vector<1x14x3xf32>
    tpu.vector_store %arg7[%c2_280, %c0_281, %c36_282], %387 {strides = array<i32>} : memref<4x14x75xf32, #tpu.memory_space<vmem>>, vector<1x14x3xf32>,
    %388 = vector.extract_strided_slice %375 {offsets = [1, 0], sizes = [14, 3], strides = [1, 1]} : vector<16x3xf32> to vector<14x3xf32>
    %c2_283 = arith.constant 2 : index
    %c0_284 = arith.constant 0 : index
    %c39_285 = arith.constant 39 : index
    %389 = vector.load %arg7[%c2_283, %c0_284, %c39_285] : memref<4x14x75xf32, #tpu.memory_space<vmem>>, vector<1x14x3xf32>
    %390 = vector.shape_cast %389 : vector<1x14x3xf32> to vector<14x3xf32>
    %391 = vector.shape_cast %388 : vector<14x3xf32> to vector<1x14x3xf32>
    tpu.vector_store %arg7[%c2_283, %c0_284, %c39_285], %391 {strides = array<i32>} : memref<4x14x75xf32, #tpu.memory_space<vmem>>, vector<1x14x3xf32>,
    %392 = vector.extract_strided_slice %369 {offsets = [2, 0], sizes = [14, 3], strides = [1, 1]} : vector<16x3xf32> to vector<14x3xf32>
    %c2_286 = arith.constant 2 : index
    %c0_287 = arith.constant 0 : index
    %c42_288 = arith.constant 42 : index
    %393 = vector.load %arg7[%c2_286, %c0_287, %c42_288] : memref<4x14x75xf32, #tpu.memory_space<vmem>>, vector<1x14x3xf32>
    %394 = vector.shape_cast %393 : vector<1x14x3xf32> to vector<14x3xf32>
    %395 = vector.shape_cast %392 : vector<14x3xf32> to vector<1x14x3xf32>
    tpu.vector_store %arg7[%c2_286, %c0_287, %c42_288], %395 {strides = array<i32>} : memref<4x14x75xf32, #tpu.memory_space<vmem>>, vector<1x14x3xf32>,
    %396 = vector.extract_strided_slice %375 {offsets = [0, 0], sizes = [14, 3], strides = [1, 1]} : vector<16x3xf32> to vector<14x3xf32>
    %c3_289 = arith.constant 3 : index
    %c0_290 = arith.constant 0 : index
    %c30_291 = arith.constant 30 : index
    %397 = vector.load %arg7[%c3_289, %c0_290, %c30_291] : memref<4x14x75xf32, #tpu.memory_space<vmem>>, vector<1x14x3xf32>
    %398 = vector.shape_cast %397 : vector<1x14x3xf32> to vector<14x3xf32>
    %399 = vector.shape_cast %396 : vector<14x3xf32> to vector<1x14x3xf32>
    tpu.vector_store %arg7[%c3_289, %c0_290, %c30_291], %399 {strides = array<i32>} : memref<4x14x75xf32, #tpu.memory_space<vmem>>, vector<1x14x3xf32>,
    %400 = vector.extract_strided_slice %369 {offsets = [1, 0], sizes = [14, 3], strides = [1, 1]} : vector<16x3xf32> to vector<14x3xf32>
    %c3_292 = arith.constant 3 : index
    %c0_293 = arith.constant 0 : index
    %c33_294 = arith.constant 33 : index
    %401 = vector.load %arg7[%c3_292, %c0_293, %c33_294] : memref<4x14x75xf32, #tpu.memory_space<vmem>>, vector<1x14x3xf32>
    %402 = vector.shape_cast %401 : vector<1x14x3xf32> to vector<14x3xf32>
    %403 = vector.shape_cast %400 : vector<14x3xf32> to vector<1x14x3xf32>
    tpu.vector_store %arg7[%c3_292, %c0_293, %c33_294], %403 {strides = array<i32>} : memref<4x14x75xf32, #tpu.memory_space<vmem>>, vector<1x14x3xf32>,
    %404 = vector.extract_strided_slice %375 {offsets = [1, 0], sizes = [14, 3], strides = [1, 1]} : vector<16x3xf32> to vector<14x3xf32>
    %c3_295 = arith.constant 3 : index
    %c0_296 = arith.constant 0 : index
    %c36_297 = arith.constant 36 : index
    %405 = vector.load %arg7[%c3_295, %c0_296, %c36_297] : memref<4x14x75xf32, #tpu.memory_space<vmem>>, vector<1x14x3xf32>
    %406 = vector.shape_cast %405 : vector<1x14x3xf32> to vector<14x3xf32>
    %407 = vector.shape_cast %404 : vector<14x3xf32> to vector<1x14x3xf32>
    tpu.vector_store %arg7[%c3_295, %c0_296, %c36_297], %407 {strides = array<i32>} : memref<4x14x75xf32, #tpu.memory_space<vmem>>, vector<1x14x3xf32>,
    %408 = vector.extract_strided_slice %369 {offsets = [2, 0], sizes = [14, 3], strides = [1, 1]} : vector<16x3xf32> to vector<14x3xf32>
    %c3_298 = arith.constant 3 : index
    %c0_299 = arith.constant 0 : index
    %c39_300 = arith.constant 39 : index
    %409 = vector.load %arg7[%c3_298, %c0_299, %c39_300] : memref<4x14x75xf32, #tpu.memory_space<vmem>>, vector<1x14x3xf32>
    %410 = vector.shape_cast %409 : vector<1x14x3xf32> to vector<14x3xf32>
    %411 = vector.shape_cast %408 : vector<14x3xf32> to vector<1x14x3xf32>
    tpu.vector_store %arg7[%c3_298, %c0_299, %c39_300], %411 {strides = array<i32>} : memref<4x14x75xf32, #tpu.memory_space<vmem>>, vector<1x14x3xf32>,
    %412 = vector.extract_strided_slice %375 {offsets = [2, 0], sizes = [14, 3], strides = [1, 1]} : vector<16x3xf32> to vector<14x3xf32>
    %c3_301 = arith.constant 3 : index
    %c0_302 = arith.constant 0 : index
    %c42_303 = arith.constant 42 : index
    %413 = vector.load %arg7[%c3_301, %c0_302, %c42_303] : memref<4x14x75xf32, #tpu.memory_space<vmem>>, vector<1x14x3xf32>
    %414 = vector.shape_cast %413 : vector<1x14x3xf32> to vector<14x3xf32>
    %415 = vector.shape_cast %412 : vector<14x3xf32> to vector<1x14x3xf32>
    tpu.vector_store %arg7[%c3_301, %c0_302, %c42_303], %415 {strides = array<i32>} : memref<4x14x75xf32, #tpu.memory_space<vmem>>, vector<1x14x3xf32>,
    %c2_i32_304 = arith.constant 2 : i32
    %416 = arith.muli %c2_i32_304, %arg1 : i32
    %c1_i32_305 = arith.constant 1 : i32
    %417 = arith.addi %416, %c1_i32_305 : i32
    %c3_i32_306 = arith.constant 3 : i32
    %418 = arith.addi %417, %c3_i32_306 : i32
    %c0_307 = arith.constant 0 : index
    %419 = arith.index_cast %418 : i32 to index
    %c0_308 = arith.constant 0 : index
    %c0_309 = arith.constant 0 : index
    %420 = vector.load %arg2[%c0_307, %419, %c0_308, %c0_309] : memref<1x32x16x3xf32, #tpu.memory_space<vmem>>, vector<1x1x16x3xf32>
    %421 = vector.shape_cast %420 : vector<1x1x16x3xf32> to vector<16x3xf32>
    %c2_i32_310 = arith.constant 2 : i32
    %422 = arith.muli %c2_i32_310, %arg1 : i32
    %c1_i32_311 = arith.constant 1 : i32
    %423 = arith.addi %422, %c1_i32_311 : i32
    %c3_i32_312 = arith.constant 3 : i32
    %424 = arith.addi %423, %c3_i32_312 : i32
    %c0_313 = arith.constant 0 : index
    %425 = arith.index_cast %424 : i32 to index
    %c0_314 = arith.constant 0 : index
    %c0_315 = arith.constant 0 : index
    %426 = vector.load %arg3[%c0_313, %425, %c0_314, %c0_315] : memref<1x32x16x3xf32, #tpu.memory_space<vmem>>, vector<1x1x16x3xf32>
    %427 = vector.shape_cast %426 : vector<1x1x16x3xf32> to vector<16x3xf32>
    %428 = vector.extract_strided_slice %421 {offsets = [0, 0], sizes = [14, 3], strides = [1, 1]} : vector<16x3xf32> to vector<14x3xf32>
    %c2_316 = arith.constant 2 : index
    %c0_317 = arith.constant 0 : index
    %c45_318 = arith.constant 45 : index
    %429 = vector.load %arg7[%c2_316, %c0_317, %c45_318] : memref<4x14x75xf32, #tpu.memory_space<vmem>>, vector<1x14x3xf32>
    %430 = vector.shape_cast %429 : vector<1x14x3xf32> to vector<14x3xf32>
    %431 = vector.shape_cast %428 : vector<14x3xf32> to vector<1x14x3xf32>
    tpu.vector_store %arg7[%c2_316, %c0_317, %c45_318], %431 {strides = array<i32>} : memref<4x14x75xf32, #tpu.memory_space<vmem>>, vector<1x14x3xf32>,
    %432 = vector.extract_strided_slice %427 {offsets = [0, 0], sizes = [14, 3], strides = [1, 1]} : vector<16x3xf32> to vector<14x3xf32>
    %c2_319 = arith.constant 2 : index
    %c0_320 = arith.constant 0 : index
    %c48_321 = arith.constant 48 : index
    %433 = vector.load %arg7[%c2_319, %c0_320, %c48_321] : memref<4x14x75xf32, #tpu.memory_space<vmem>>, vector<1x14x3xf32>
    %434 = vector.shape_cast %433 : vector<1x14x3xf32> to vector<14x3xf32>
    %435 = vector.shape_cast %432 : vector<14x3xf32> to vector<1x14x3xf32>
    tpu.vector_store %arg7[%c2_319, %c0_320, %c48_321], %435 {strides = array<i32>} : memref<4x14x75xf32, #tpu.memory_space<vmem>>, vector<1x14x3xf32>,
    %436 = vector.extract_strided_slice %421 {offsets = [1, 0], sizes = [14, 3], strides = [1, 1]} : vector<16x3xf32> to vector<14x3xf32>
    %c2_322 = arith.constant 2 : index
    %c0_323 = arith.constant 0 : index
    %c51_324 = arith.constant 51 : index
    %437 = vector.load %arg7[%c2_322, %c0_323, %c51_324] : memref<4x14x75xf32, #tpu.memory_space<vmem>>, vector<1x14x3xf32>
    %438 = vector.shape_cast %437 : vector<1x14x3xf32> to vector<14x3xf32>
    %439 = vector.shape_cast %436 : vector<14x3xf32> to vector<1x14x3xf32>
    tpu.vector_store %arg7[%c2_322, %c0_323, %c51_324], %439 {strides = array<i32>} : memref<4x14x75xf32, #tpu.memory_space<vmem>>, vector<1x14x3xf32>,
    %440 = vector.extract_strided_slice %427 {offsets = [1, 0], sizes = [14, 3], strides = [1, 1]} : vector<16x3xf32> to vector<14x3xf32>
    %c2_325 = arith.constant 2 : index
    %c0_326 = arith.constant 0 : index
    %c54_327 = arith.constant 54 : index
    %441 = vector.load %arg7[%c2_325, %c0_326, %c54_327] : memref<4x14x75xf32, #tpu.memory_space<vmem>>, vector<1x14x3xf32>
    %442 = vector.shape_cast %441 : vector<1x14x3xf32> to vector<14x3xf32>
    %443 = vector.shape_cast %440 : vector<14x3xf32> to vector<1x14x3xf32>
    tpu.vector_store %arg7[%c2_325, %c0_326, %c54_327], %443 {strides = array<i32>} : memref<4x14x75xf32, #tpu.memory_space<vmem>>, vector<1x14x3xf32>,
    %444 = vector.extract_strided_slice %421 {offsets = [2, 0], sizes = [14, 3], strides = [1, 1]} : vector<16x3xf32> to vector<14x3xf32>
    %c2_328 = arith.constant 2 : index
    %c0_329 = arith.constant 0 : index
    %c57_330 = arith.constant 57 : index
    %445 = vector.load %arg7[%c2_328, %c0_329, %c57_330] : memref<4x14x75xf32, #tpu.memory_space<vmem>>, vector<1x14x3xf32>
    %446 = vector.shape_cast %445 : vector<1x14x3xf32> to vector<14x3xf32>
    %447 = vector.shape_cast %444 : vector<14x3xf32> to vector<1x14x3xf32>
    tpu.vector_store %arg7[%c2_328, %c0_329, %c57_330], %447 {strides = array<i32>} : memref<4x14x75xf32, #tpu.memory_space<vmem>>, vector<1x14x3xf32>,
    %448 = vector.extract_strided_slice %427 {offsets = [0, 0], sizes = [14, 3], strides = [1, 1]} : vector<16x3xf32> to vector<14x3xf32>
    %c3_331 = arith.constant 3 : index
    %c0_332 = arith.constant 0 : index
    %c45_333 = arith.constant 45 : index
    %449 = vector.load %arg7[%c3_331, %c0_332, %c45_333] : memref<4x14x75xf32, #tpu.memory_space<vmem>>, vector<1x14x3xf32>
    %450 = vector.shape_cast %449 : vector<1x14x3xf32> to vector<14x3xf32>
    %451 = vector.shape_cast %448 : vector<14x3xf32> to vector<1x14x3xf32>
    tpu.vector_store %arg7[%c3_331, %c0_332, %c45_333], %451 {strides = array<i32>} : memref<4x14x75xf32, #tpu.memory_space<vmem>>, vector<1x14x3xf32>,
    %452 = vector.extract_strided_slice %421 {offsets = [1, 0], sizes = [14, 3], strides = [1, 1]} : vector<16x3xf32> to vector<14x3xf32>
    %c3_334 = arith.constant 3 : index
    %c0_335 = arith.constant 0 : index
    %c48_336 = arith.constant 48 : index
    %453 = vector.load %arg7[%c3_334, %c0_335, %c48_336] : memref<4x14x75xf32, #tpu.memory_space<vmem>>, vector<1x14x3xf32>
    %454 = vector.shape_cast %453 : vector<1x14x3xf32> to vector<14x3xf32>
    %455 = vector.shape_cast %452 : vector<14x3xf32> to vector<1x14x3xf32>
    tpu.vector_store %arg7[%c3_334, %c0_335, %c48_336], %455 {strides = array<i32>} : memref<4x14x75xf32, #tpu.memory_space<vmem>>, vector<1x14x3xf32>,
    %456 = vector.extract_strided_slice %427 {offsets = [1, 0], sizes = [14, 3], strides = [1, 1]} : vector<16x3xf32> to vector<14x3xf32>
    %c3_337 = arith.constant 3 : index
    %c0_338 = arith.constant 0 : index
    %c51_339 = arith.constant 51 : index
    %457 = vector.load %arg7[%c3_337, %c0_338, %c51_339] : memref<4x14x75xf32, #tpu.memory_space<vmem>>, vector<1x14x3xf32>
    %458 = vector.shape_cast %457 : vector<1x14x3xf32> to vector<14x3xf32>
    %459 = vector.shape_cast %456 : vector<14x3xf32> to vector<1x14x3xf32>
    tpu.vector_store %arg7[%c3_337, %c0_338, %c51_339], %459 {strides = array<i32>} : memref<4x14x75xf32, #tpu.memory_space<vmem>>, vector<1x14x3xf32>,
    %460 = vector.extract_strided_slice %421 {offsets = [2, 0], sizes = [14, 3], strides = [1, 1]} : vector<16x3xf32> to vector<14x3xf32>
    %c3_340 = arith.constant 3 : index
    %c0_341 = arith.constant 0 : index
    %c54_342 = arith.constant 54 : index
    %461 = vector.load %arg7[%c3_340, %c0_341, %c54_342] : memref<4x14x75xf32, #tpu.memory_space<vmem>>, vector<1x14x3xf32>
    %462 = vector.shape_cast %461 : vector<1x14x3xf32> to vector<14x3xf32>
    %463 = vector.shape_cast %460 : vector<14x3xf32> to vector<1x14x3xf32>
    tpu.vector_store %arg7[%c3_340, %c0_341, %c54_342], %463 {strides = array<i32>} : memref<4x14x75xf32, #tpu.memory_space<vmem>>, vector<1x14x3xf32>,
    %464 = vector.extract_strided_slice %427 {offsets = [2, 0], sizes = [14, 3], strides = [1, 1]} : vector<16x3xf32> to vector<14x3xf32>
    %c3_343 = arith.constant 3 : index
    %c0_344 = arith.constant 0 : index
    %c57_345 = arith.constant 57 : index
    %465 = vector.load %arg7[%c3_343, %c0_344, %c57_345] : memref<4x14x75xf32, #tpu.memory_space<vmem>>, vector<1x14x3xf32>
    %466 = vector.shape_cast %465 : vector<1x14x3xf32> to vector<14x3xf32>
    %467 = vector.shape_cast %464 : vector<14x3xf32> to vector<1x14x3xf32>
    tpu.vector_store %arg7[%c3_343, %c0_344, %c57_345], %467 {strides = array<i32>} : memref<4x14x75xf32, #tpu.memory_space<vmem>>, vector<1x14x3xf32>,
    %c2_i32_346 = arith.constant 2 : i32
    %468 = arith.muli %c2_i32_346, %arg1 : i32
    %c1_i32_347 = arith.constant 1 : i32
    %469 = arith.addi %468, %c1_i32_347 : i32
    %c4_i32_348 = arith.constant 4 : i32
    %470 = arith.addi %469, %c4_i32_348 : i32
    %c0_349 = arith.constant 0 : index
    %471 = arith.index_cast %470 : i32 to index
    %c0_350 = arith.constant 0 : index
    %c0_351 = arith.constant 0 : index
    %472 = vector.load %arg2[%c0_349, %471, %c0_350, %c0_351] : memref<1x32x16x3xf32, #tpu.memory_space<vmem>>, vector<1x1x16x3xf32>
    %473 = vector.shape_cast %472 : vector<1x1x16x3xf32> to vector<16x3xf32>
    %c2_i32_352 = arith.constant 2 : i32
    %474 = arith.muli %c2_i32_352, %arg1 : i32
    %c1_i32_353 = arith.constant 1 : i32
    %475 = arith.addi %474, %c1_i32_353 : i32
    %c4_i32_354 = arith.constant 4 : i32
    %476 = arith.addi %475, %c4_i32_354 : i32
    %c0_355 = arith.constant 0 : index
    %477 = arith.index_cast %476 : i32 to index
    %c0_356 = arith.constant 0 : index
    %c0_357 = arith.constant 0 : index
    %478 = vector.load %arg3[%c0_355, %477, %c0_356, %c0_357] : memref<1x32x16x3xf32, #tpu.memory_space<vmem>>, vector<1x1x16x3xf32>
    %479 = vector.shape_cast %478 : vector<1x1x16x3xf32> to vector<16x3xf32>
    %480 = vector.extract_strided_slice %473 {offsets = [0, 0], sizes = [14, 3], strides = [1, 1]} : vector<16x3xf32> to vector<14x3xf32>
    %c2_358 = arith.constant 2 : index
    %c0_359 = arith.constant 0 : index
    %c60_360 = arith.constant 60 : index
    %481 = vector.load %arg7[%c2_358, %c0_359, %c60_360] : memref<4x14x75xf32, #tpu.memory_space<vmem>>, vector<1x14x3xf32>
    %482 = vector.shape_cast %481 : vector<1x14x3xf32> to vector<14x3xf32>
    %483 = vector.shape_cast %480 : vector<14x3xf32> to vector<1x14x3xf32>
    tpu.vector_store %arg7[%c2_358, %c0_359, %c60_360], %483 {strides = array<i32>} : memref<4x14x75xf32, #tpu.memory_space<vmem>>, vector<1x14x3xf32>,
    %484 = vector.extract_strided_slice %479 {offsets = [0, 0], sizes = [14, 3], strides = [1, 1]} : vector<16x3xf32> to vector<14x3xf32>
    %c2_361 = arith.constant 2 : index
    %c0_362 = arith.constant 0 : index
    %c63_363 = arith.constant 63 : index
    %485 = vector.load %arg7[%c2_361, %c0_362, %c63_363] : memref<4x14x75xf32, #tpu.memory_space<vmem>>, vector<1x14x3xf32>
    %486 = vector.shape_cast %485 : vector<1x14x3xf32> to vector<14x3xf32>
    %487 = vector.shape_cast %484 : vector<14x3xf32> to vector<1x14x3xf32>
    tpu.vector_store %arg7[%c2_361, %c0_362, %c63_363], %487 {strides = array<i32>} : memref<4x14x75xf32, #tpu.memory_space<vmem>>, vector<1x14x3xf32>,
    %488 = vector.extract_strided_slice %473 {offsets = [1, 0], sizes = [14, 3], strides = [1, 1]} : vector<16x3xf32> to vector<14x3xf32>
    %c2_364 = arith.constant 2 : index
    %c0_365 = arith.constant 0 : index
    %c66_366 = arith.constant 66 : index
    %489 = vector.load %arg7[%c2_364, %c0_365, %c66_366] : memref<4x14x75xf32, #tpu.memory_space<vmem>>, vector<1x14x3xf32>
    %490 = vector.shape_cast %489 : vector<1x14x3xf32> to vector<14x3xf32>
    %491 = vector.shape_cast %488 : vector<14x3xf32> to vector<1x14x3xf32>
    tpu.vector_store %arg7[%c2_364, %c0_365, %c66_366], %491 {strides = array<i32>} : memref<4x14x75xf32, #tpu.memory_space<vmem>>, vector<1x14x3xf32>,
    %492 = vector.extract_strided_slice %479 {offsets = [1, 0], sizes = [14, 3], strides = [1, 1]} : vector<16x3xf32> to vector<14x3xf32>
    %c2_367 = arith.constant 2 : index
    %c0_368 = arith.constant 0 : index
    %c69_369 = arith.constant 69 : index
    %493 = vector.load %arg7[%c2_367, %c0_368, %c69_369] : memref<4x14x75xf32, #tpu.memory_space<vmem>>, vector<1x14x3xf32>
    %494 = vector.shape_cast %493 : vector<1x14x3xf32> to vector<14x3xf32>
    %495 = vector.shape_cast %492 : vector<14x3xf32> to vector<1x14x3xf32>
    tpu.vector_store %arg7[%c2_367, %c0_368, %c69_369], %495 {strides = array<i32>} : memref<4x14x75xf32, #tpu.memory_space<vmem>>, vector<1x14x3xf32>,
    %496 = vector.extract_strided_slice %473 {offsets = [2, 0], sizes = [14, 3], strides = [1, 1]} : vector<16x3xf32> to vector<14x3xf32>
    %c2_370 = arith.constant 2 : index
    %c0_371 = arith.constant 0 : index
    %c72_372 = arith.constant 72 : index
    %497 = vector.load %arg7[%c2_370, %c0_371, %c72_372] : memref<4x14x75xf32, #tpu.memory_space<vmem>>, vector<1x14x3xf32>
    %498 = vector.shape_cast %497 : vector<1x14x3xf32> to vector<14x3xf32>
    %499 = vector.shape_cast %496 : vector<14x3xf32> to vector<1x14x3xf32>
    tpu.vector_store %arg7[%c2_370, %c0_371, %c72_372], %499 {strides = array<i32>} : memref<4x14x75xf32, #tpu.memory_space<vmem>>, vector<1x14x3xf32>,
    %500 = vector.extract_strided_slice %479 {offsets = [0, 0], sizes = [14, 3], strides = [1, 1]} : vector<16x3xf32> to vector<14x3xf32>
    %c3_373 = arith.constant 3 : index
    %c0_374 = arith.constant 0 : index
    %c60_375 = arith.constant 60 : index
    %501 = vector.load %arg7[%c3_373, %c0_374, %c60_375] : memref<4x14x75xf32, #tpu.memory_space<vmem>>, vector<1x14x3xf32>
    %502 = vector.shape_cast %501 : vector<1x14x3xf32> to vector<14x3xf32>
    %503 = vector.shape_cast %500 : vector<14x3xf32> to vector<1x14x3xf32>
    tpu.vector_store %arg7[%c3_373, %c0_374, %c60_375], %503 {strides = array<i32>} : memref<4x14x75xf32, #tpu.memory_space<vmem>>, vector<1x14x3xf32>,
    %504 = vector.extract_strided_slice %473 {offsets = [1, 0], sizes = [14, 3], strides = [1, 1]} : vector<16x3xf32> to vector<14x3xf32>
    %c3_376 = arith.constant 3 : index
    %c0_377 = arith.constant 0 : index
    %c63_378 = arith.constant 63 : index
    %505 = vector.load %arg7[%c3_376, %c0_377, %c63_378] : memref<4x14x75xf32, #tpu.memory_space<vmem>>, vector<1x14x3xf32>
    %506 = vector.shape_cast %505 : vector<1x14x3xf32> to vector<14x3xf32>
    %507 = vector.shape_cast %504 : vector<14x3xf32> to vector<1x14x3xf32>
    tpu.vector_store %arg7[%c3_376, %c0_377, %c63_378], %507 {strides = array<i32>} : memref<4x14x75xf32, #tpu.memory_space<vmem>>, vector<1x14x3xf32>,
    %508 = vector.extract_strided_slice %479 {offsets = [1, 0], sizes = [14, 3], strides = [1, 1]} : vector<16x3xf32> to vector<14x3xf32>
    %c3_379 = arith.constant 3 : index
    %c0_380 = arith.constant 0 : index
    %c66_381 = arith.constant 66 : index
    %509 = vector.load %arg7[%c3_379, %c0_380, %c66_381] : memref<4x14x75xf32, #tpu.memory_space<vmem>>, vector<1x14x3xf32>
    %510 = vector.shape_cast %509 : vector<1x14x3xf32> to vector<14x3xf32>
    %511 = vector.shape_cast %508 : vector<14x3xf32> to vector<1x14x3xf32>
    tpu.vector_store %arg7[%c3_379, %c0_380, %c66_381], %511 {strides = array<i32>} : memref<4x14x75xf32, #tpu.memory_space<vmem>>, vector<1x14x3xf32>,
    %512 = vector.extract_strided_slice %473 {offsets = [2, 0], sizes = [14, 3], strides = [1, 1]} : vector<16x3xf32> to vector<14x3xf32>
    %c3_382 = arith.constant 3 : index
    %c0_383 = arith.constant 0 : index
    %c69_384 = arith.constant 69 : index
    %513 = vector.load %arg7[%c3_382, %c0_383, %c69_384] : memref<4x14x75xf32, #tpu.memory_space<vmem>>, vector<1x14x3xf32>
    %514 = vector.shape_cast %513 : vector<1x14x3xf32> to vector<14x3xf32>
    %515 = vector.shape_cast %512 : vector<14x3xf32> to vector<1x14x3xf32>
    tpu.vector_store %arg7[%c3_382, %c0_383, %c69_384], %515 {strides = array<i32>} : memref<4x14x75xf32, #tpu.memory_space<vmem>>, vector<1x14x3xf32>,
    %516 = vector.extract_strided_slice %479 {offsets = [2, 0], sizes = [14, 3], strides = [1, 1]} : vector<16x3xf32> to vector<14x3xf32>
    %c3_385 = arith.constant 3 : index
    %c0_386 = arith.constant 0 : index
    %c72_387 = arith.constant 72 : index
    %517 = vector.load %arg7[%c3_385, %c0_386, %c72_387] : memref<4x14x75xf32, #tpu.memory_space<vmem>>, vector<1x14x3xf32>
    %518 = vector.shape_cast %517 : vector<1x14x3xf32> to vector<14x3xf32>
    %519 = vector.shape_cast %516 : vector<14x3xf32> to vector<1x14x3xf32>
    tpu.vector_store %arg7[%c3_385, %c0_386, %c72_387], %519 {strides = array<i32>} : memref<4x14x75xf32, #tpu.memory_space<vmem>>, vector<1x14x3xf32>,
    %c0_388 = arith.constant 0 : index
    %c0_389 = arith.constant 0 : index
    %c0_390 = arith.constant 0 : index
    %520 = vector.load %arg7[%c0_388, %c0_389, %c0_390] : memref<4x14x75xf32, #tpu.memory_space<vmem>>, vector<1x14x75xf32>
    %521 = vector.shape_cast %520 : vector<1x14x75xf32> to vector<14x75xf32>
    %522 = arith.truncf %521 : vector<14x75xf32> to vector<14x75xbf16>
    %c0_391 = arith.constant 0 : index
    %c0_392 = arith.constant 0 : index
    %523 = vector.load %arg4[%c0_391, %c0_392] : memref<75x32xbf16, #tpu.memory_space<vmem>>, vector<75x32xbf16>
    %cst = arith.constant dense<0.000000e+00> : vector<14x32xf32>
    %524 = tpu.matmul %522, %523, %cst {dimension_numbers = #tpu.dot_dimension_numbers<[1], [0], [0], [1], [0, 0, 1, 1], [], []>} : vector<14x75xbf16>, vector<75x32xbf16>, vector<14x32xf32> -> vector<14x32xf32>
    %c1_393 = arith.constant 1 : index
    %c0_394 = arith.constant 0 : index
    %c0_395 = arith.constant 0 : index
    %525 = vector.load %arg7[%c1_393, %c0_394, %c0_395] : memref<4x14x75xf32, #tpu.memory_space<vmem>>, vector<1x14x75xf32>
    %526 = vector.shape_cast %525 : vector<1x14x75xf32> to vector<14x75xf32>
    %527 = arith.truncf %526 : vector<14x75xf32> to vector<14x75xbf16>
    %c0_396 = arith.constant 0 : index
    %c0_397 = arith.constant 0 : index
    %528 = vector.load %arg4[%c0_396, %c0_397] : memref<75x32xbf16, #tpu.memory_space<vmem>>, vector<75x32xbf16>
    %cst_398 = arith.constant dense<0.000000e+00> : vector<14x32xf32>
    %529 = tpu.matmul %527, %528, %cst_398 {dimension_numbers = #tpu.dot_dimension_numbers<[1], [0], [0], [1], [0, 0, 1, 1], [], []>} : vector<14x75xbf16>, vector<75x32xbf16>, vector<14x32xf32> -> vector<14x32xf32>
    %530 = arith.maximumf %524, %529 : vector<14x32xf32>
    %c2_399 = arith.constant 2 : index
    %c0_400 = arith.constant 0 : index
    %c0_401 = arith.constant 0 : index
    %531 = vector.load %arg7[%c2_399, %c0_400, %c0_401] : memref<4x14x75xf32, #tpu.memory_space<vmem>>, vector<1x14x75xf32>
    %532 = vector.shape_cast %531 : vector<1x14x75xf32> to vector<14x75xf32>
    %533 = arith.truncf %532 : vector<14x75xf32> to vector<14x75xbf16>
    %c0_402 = arith.constant 0 : index
    %c0_403 = arith.constant 0 : index
    %534 = vector.load %arg4[%c0_402, %c0_403] : memref<75x32xbf16, #tpu.memory_space<vmem>>, vector<75x32xbf16>
    %cst_404 = arith.constant dense<0.000000e+00> : vector<14x32xf32>
    %535 = tpu.matmul %533, %534, %cst_404 {dimension_numbers = #tpu.dot_dimension_numbers<[1], [0], [0], [1], [0, 0, 1, 1], [], []>} : vector<14x75xbf16>, vector<75x32xbf16>, vector<14x32xf32> -> vector<14x32xf32>
    %c3_405 = arith.constant 3 : index
    %c0_406 = arith.constant 0 : index
    %c0_407 = arith.constant 0 : index
    %536 = vector.load %arg7[%c3_405, %c0_406, %c0_407] : memref<4x14x75xf32, #tpu.memory_space<vmem>>, vector<1x14x75xf32>
    %537 = vector.shape_cast %536 : vector<1x14x75xf32> to vector<14x75xf32>
    %538 = arith.truncf %537 : vector<14x75xf32> to vector<14x75xbf16>
    %c0_408 = arith.constant 0 : index
    %c0_409 = arith.constant 0 : index
    %539 = vector.load %arg4[%c0_408, %c0_409] : memref<75x32xbf16, #tpu.memory_space<vmem>>, vector<75x32xbf16>
    %cst_410 = arith.constant dense<0.000000e+00> : vector<14x32xf32>
    %540 = tpu.matmul %538, %539, %cst_410 {dimension_numbers = #tpu.dot_dimension_numbers<[1], [0], [0], [1], [0, 0, 1, 1], [], []>} : vector<14x75xbf16>, vector<75x32xbf16>, vector<14x32xf32> -> vector<14x32xf32>
    %541 = arith.maximumf %535, %540 : vector<14x32xf32>
    %542 = arith.maximumf %530, %541 : vector<14x32xf32>
    %c0_411 = arith.constant 0 : index
    %c0_412 = arith.constant 0 : index
    %543 = vector.load %arg5[%c0_411, %c0_412] : memref<1x32xf32, #tpu.memory_space<vmem>>, vector<1x32xf32>
    %544 = vector.broadcast %543 : vector<1x32xf32> to vector<14x32xf32>
    %545 = arith.addf %542, %544 : vector<14x32xf32>
    %cst_413 = arith.constant 0.000000e+00 : f32
    %546 = vector.broadcast %cst_413 : f32 to vector<14x32xf32>
    %547 = arith.maximumf %545, %546 : vector<14x32xf32>
    %c0_414 = arith.constant 0 : index
    %c0_415 = arith.constant 0 : index
    %c0_416 = arith.constant 0 : index
    %c0_417 = arith.constant 0 : index
    %548 = vector.load %arg6[%c0_414, %c0_415, %c0_416, %c0_417] : memref<1x1x14x32xf32, #tpu.memory_space<vmem>>, vector<1x1x14x32xf32>
    %549 = vector.shape_cast %548 : vector<1x1x14x32xf32> to vector<14x32xf32>
    %550 = vector.shape_cast %547 : vector<14x32xf32> to vector<1x1x14x32xf32>
    tpu.vector_store %arg6[%c0_414, %c0_415, %c0_416, %c0_417], %550 {strides = array<i32>} : memref<1x1x14x32xf32, #tpu.memory_space<vmem>>, vector<1x1x14x32xf32>,
    return
  }
  func.func @transform_0(%arg0: i32, %arg1: i32) -> (i32, i32, i32, i32) {
    %c0_i32 = arith.constant 0 : i32
    %c0_i32_0 = arith.constant 0 : i32
    %c0_i32_1 = arith.constant 0 : i32
    %c0_i32_2 = arith.constant 0 : i32
    return %arg0, %c0_i32, %c0_i32_0, %c0_i32_1 : i32, i32, i32, i32
  }
  func.func @transform_1(%arg0: i32, %arg1: i32) -> (i32, i32, i32, i32) {
    %c0_i32 = arith.constant 0 : i32
    %c0_i32_0 = arith.constant 0 : i32
    %c0_i32_1 = arith.constant 0 : i32
    %c0_i32_2 = arith.constant 0 : i32
    return %arg0, %c0_i32, %c0_i32_0, %c0_i32_1 : i32, i32, i32, i32
  }
  func.func @transform_2(%arg0: i32, %arg1: i32) -> (i32, i32) {
    %c0_i32 = arith.constant 0 : i32
    %c0_i32_0 = arith.constant 0 : i32
    %c0_i32_1 = arith.constant 0 : i32
    return %c0_i32, %c0_i32_0 : i32, i32
  }
  func.func @transform_3(%arg0: i32, %arg1: i32) -> (i32, i32) {
    %c0_i32 = arith.constant 0 : i32
    %c0_i32_0 = arith.constant 0 : i32
    %c0_i32_1 = arith.constant 0 : i32
    return %c0_i32, %c0_i32_0 : i32, i32
  }
  func.func @transform_4(%arg0: i32, %arg1: i32) -> (i32, i32, i32, i32) {
    %c0_i32 = arith.constant 0 : i32
    %c0_i32_0 = arith.constant 0 : i32
    %c0_i32_1 = arith.constant 0 : i32
    return %arg0, %arg1, %c0_i32, %c0_i32_0 : i32, i32, i32, i32
  }
}

module attributes {stable_mosaic.version = 11 : i64} {
  func.func @_conv_relu_pool_kernel(%arg0: i32, %arg1: i32, %arg2: memref<1x14x7x32xf32, #tpu.memory_space<vmem>>, %arg3: memref<1x14x7x32xf32, #tpu.memory_space<vmem>>, %arg4: memref<800x64xbf16, #tpu.memory_space<vmem>>, %arg5: memref<1x64xf32, #tpu.memory_space<vmem>>, %arg6: memref<1x1x5x64xf32, #tpu.memory_space<vmem>>, %arg7: memref<4x5x800xf32, #tpu.memory_space<vmem>>) attributes {dimension_semantics = [#tpu.dimension_semantics<parallel>, #tpu.dimension_semantics<arbitrary>], iteration_bounds = array<i64: 2, 5>, scalar_prefetch = 0 : i64, scratch_operands = 1 : i64, tpu.core_type = #tpu.core_type<tc>, window_params = [{transform_indices = @transform_0, window_bounds = array<i64: 1, 14, 7, 32>}, {transform_indices = @transform_1, window_bounds = array<i64: 1, 14, 7, 32>}, {pipeline_mode = #tpu.pipeline_mode<synchronous>, transform_indices = @transform_2, window_bounds = array<i64: 800, 64>}, {pipeline_mode = #tpu.pipeline_mode<synchronous>, transform_indices = @transform_3, window_bounds = array<i64: 1, 64>}, {transform_indices = @transform_4, window_bounds = array<i64: 1, 1, 5, 64>}]} {
    %c2_i32 = arith.constant 2 : i32
    %0 = arith.muli %c2_i32, %arg1 : i32
    %c0_i32 = arith.constant 0 : i32
    %1 = arith.addi %0, %c0_i32 : i32
    %c0_i32_0 = arith.constant 0 : i32
    %2 = arith.addi %1, %c0_i32_0 : i32
    %c0 = arith.constant 0 : index
    %3 = arith.index_cast %2 : i32 to index
    %c0_1 = arith.constant 0 : index
    %c0_2 = arith.constant 0 : index
    %4 = vector.load %arg2[%c0, %3, %c0_1, %c0_2] : memref<1x14x7x32xf32, #tpu.memory_space<vmem>>, vector<1x1x7x32xf32>
    %5 = vector.shape_cast %4 : vector<1x1x7x32xf32> to vector<7x32xf32>
    %c2_i32_3 = arith.constant 2 : i32
    %6 = arith.muli %c2_i32_3, %arg1 : i32
    %c0_i32_4 = arith.constant 0 : i32
    %7 = arith.addi %6, %c0_i32_4 : i32
    %c0_i32_5 = arith.constant 0 : i32
    %8 = arith.addi %7, %c0_i32_5 : i32
    %c0_6 = arith.constant 0 : index
    %9 = arith.index_cast %8 : i32 to index
    %c0_7 = arith.constant 0 : index
    %c0_8 = arith.constant 0 : index
    %10 = vector.load %arg3[%c0_6, %9, %c0_7, %c0_8] : memref<1x14x7x32xf32, #tpu.memory_space<vmem>>, vector<1x1x7x32xf32>
    %11 = vector.shape_cast %10 : vector<1x1x7x32xf32> to vector<7x32xf32>
    %12 = vector.extract_strided_slice %5 {offsets = [0, 0], sizes = [5, 32], strides = [1, 1]} : vector<7x32xf32> to vector<5x32xf32>
    %c0_9 = arith.constant 0 : index
    %c0_10 = arith.constant 0 : index
    %c0_11 = arith.constant 0 : index
    %13 = vector.load %arg7[%c0_9, %c0_10, %c0_11] : memref<4x5x800xf32, #tpu.memory_space<vmem>>, vector<1x5x32xf32>
    %14 = vector.shape_cast %13 : vector<1x5x32xf32> to vector<5x32xf32>
    %15 = vector.shape_cast %12 : vector<5x32xf32> to vector<1x5x32xf32>
    tpu.vector_store %arg7[%c0_9, %c0_10, %c0_11], %15 {strides = array<i32>} : memref<4x5x800xf32, #tpu.memory_space<vmem>>, vector<1x5x32xf32>,
    %16 = vector.extract_strided_slice %11 {offsets = [0, 0], sizes = [5, 32], strides = [1, 1]} : vector<7x32xf32> to vector<5x32xf32>
    %c0_12 = arith.constant 0 : index
    %c0_13 = arith.constant 0 : index
    %c32 = arith.constant 32 : index
    %17 = vector.load %arg7[%c0_12, %c0_13, %c32] : memref<4x5x800xf32, #tpu.memory_space<vmem>>, vector<1x5x32xf32>
    %18 = vector.shape_cast %17 : vector<1x5x32xf32> to vector<5x32xf32>
    %19 = vector.shape_cast %16 : vector<5x32xf32> to vector<1x5x32xf32>
    tpu.vector_store %arg7[%c0_12, %c0_13, %c32], %19 {strides = array<i32>} : memref<4x5x800xf32, #tpu.memory_space<vmem>>, vector<1x5x32xf32>,
    %20 = vector.extract_strided_slice %5 {offsets = [1, 0], sizes = [5, 32], strides = [1, 1]} : vector<7x32xf32> to vector<5x32xf32>
    %c0_14 = arith.constant 0 : index
    %c0_15 = arith.constant 0 : index
    %c64 = arith.constant 64 : index
    %21 = vector.load %arg7[%c0_14, %c0_15, %c64] : memref<4x5x800xf32, #tpu.memory_space<vmem>>, vector<1x5x32xf32>
    %22 = vector.shape_cast %21 : vector<1x5x32xf32> to vector<5x32xf32>
    %23 = vector.shape_cast %20 : vector<5x32xf32> to vector<1x5x32xf32>
    tpu.vector_store %arg7[%c0_14, %c0_15, %c64], %23 {strides = array<i32>} : memref<4x5x800xf32, #tpu.memory_space<vmem>>, vector<1x5x32xf32>,
    %24 = vector.extract_strided_slice %11 {offsets = [1, 0], sizes = [5, 32], strides = [1, 1]} : vector<7x32xf32> to vector<5x32xf32>
    %c0_16 = arith.constant 0 : index
    %c0_17 = arith.constant 0 : index
    %c96 = arith.constant 96 : index
    %25 = vector.load %arg7[%c0_16, %c0_17, %c96] : memref<4x5x800xf32, #tpu.memory_space<vmem>>, vector<1x5x32xf32>
    %26 = vector.shape_cast %25 : vector<1x5x32xf32> to vector<5x32xf32>
    %27 = vector.shape_cast %24 : vector<5x32xf32> to vector<1x5x32xf32>
    tpu.vector_store %arg7[%c0_16, %c0_17, %c96], %27 {strides = array<i32>} : memref<4x5x800xf32, #tpu.memory_space<vmem>>, vector<1x5x32xf32>,
    %28 = vector.extract_strided_slice %5 {offsets = [2, 0], sizes = [5, 32], strides = [1, 1]} : vector<7x32xf32> to vector<5x32xf32>
    %c0_18 = arith.constant 0 : index
    %c0_19 = arith.constant 0 : index
    %c128 = arith.constant 128 : index
    %29 = vector.load %arg7[%c0_18, %c0_19, %c128] : memref<4x5x800xf32, #tpu.memory_space<vmem>>, vector<1x5x32xf32>
    %30 = vector.shape_cast %29 : vector<1x5x32xf32> to vector<5x32xf32>
    %31 = vector.shape_cast %28 : vector<5x32xf32> to vector<1x5x32xf32>
    tpu.vector_store %arg7[%c0_18, %c0_19, %c128], %31 {strides = array<i32>} : memref<4x5x800xf32, #tpu.memory_space<vmem>>, vector<1x5x32xf32>,
    %32 = vector.extract_strided_slice %11 {offsets = [0, 0], sizes = [5, 32], strides = [1, 1]} : vector<7x32xf32> to vector<5x32xf32>
    %c1 = arith.constant 1 : index
    %c0_20 = arith.constant 0 : index
    %c0_21 = arith.constant 0 : index
    %33 = vector.load %arg7[%c1, %c0_20, %c0_21] : memref<4x5x800xf32, #tpu.memory_space<vmem>>, vector<1x5x32xf32>
    %34 = vector.shape_cast %33 : vector<1x5x32xf32> to vector<5x32xf32>
    %35 = vector.shape_cast %32 : vector<5x32xf32> to vector<1x5x32xf32>
    tpu.vector_store %arg7[%c1, %c0_20, %c0_21], %35 {strides = array<i32>} : memref<4x5x800xf32, #tpu.memory_space<vmem>>, vector<1x5x32xf32>,
    %36 = vector.extract_strided_slice %5 {offsets = [1, 0], sizes = [5, 32], strides = [1, 1]} : vector<7x32xf32> to vector<5x32xf32>
    %c1_22 = arith.constant 1 : index
    %c0_23 = arith.constant 0 : index
    %c32_24 = arith.constant 32 : index
    %37 = vector.load %arg7[%c1_22, %c0_23, %c32_24] : memref<4x5x800xf32, #tpu.memory_space<vmem>>, vector<1x5x32xf32>
    %38 = vector.shape_cast %37 : vector<1x5x32xf32> to vector<5x32xf32>
    %39 = vector.shape_cast %36 : vector<5x32xf32> to vector<1x5x32xf32>
    tpu.vector_store %arg7[%c1_22, %c0_23, %c32_24], %39 {strides = array<i32>} : memref<4x5x800xf32, #tpu.memory_space<vmem>>, vector<1x5x32xf32>,
    %40 = vector.extract_strided_slice %11 {offsets = [1, 0], sizes = [5, 32], strides = [1, 1]} : vector<7x32xf32> to vector<5x32xf32>
    %c1_25 = arith.constant 1 : index
    %c0_26 = arith.constant 0 : index
    %c64_27 = arith.constant 64 : index
    %41 = vector.load %arg7[%c1_25, %c0_26, %c64_27] : memref<4x5x800xf32, #tpu.memory_space<vmem>>, vector<1x5x32xf32>
    %42 = vector.shape_cast %41 : vector<1x5x32xf32> to vector<5x32xf32>
    %43 = vector.shape_cast %40 : vector<5x32xf32> to vector<1x5x32xf32>
    tpu.vector_store %arg7[%c1_25, %c0_26, %c64_27], %43 {strides = array<i32>} : memref<4x5x800xf32, #tpu.memory_space<vmem>>, vector<1x5x32xf32>,
    %44 = vector.extract_strided_slice %5 {offsets = [2, 0], sizes = [5, 32], strides = [1, 1]} : vector<7x32xf32> to vector<5x32xf32>
    %c1_28 = arith.constant 1 : index
    %c0_29 = arith.constant 0 : index
    %c96_30 = arith.constant 96 : index
    %45 = vector.load %arg7[%c1_28, %c0_29, %c96_30] : memref<4x5x800xf32, #tpu.memory_space<vmem>>, vector<1x5x32xf32>
    %46 = vector.shape_cast %45 : vector<1x5x32xf32> to vector<5x32xf32>
    %47 = vector.shape_cast %44 : vector<5x32xf32> to vector<1x5x32xf32>
    tpu.vector_store %arg7[%c1_28, %c0_29, %c96_30], %47 {strides = array<i32>} : memref<4x5x800xf32, #tpu.memory_space<vmem>>, vector<1x5x32xf32>,
    %48 = vector.extract_strided_slice %11 {offsets = [2, 0], sizes = [5, 32], strides = [1, 1]} : vector<7x32xf32> to vector<5x32xf32>
    %c1_31 = arith.constant 1 : index
    %c0_32 = arith.constant 0 : index
    %c128_33 = arith.constant 128 : index
    %49 = vector.load %arg7[%c1_31, %c0_32, %c128_33] : memref<4x5x800xf32, #tpu.memory_space<vmem>>, vector<1x5x32xf32>
    %50 = vector.shape_cast %49 : vector<1x5x32xf32> to vector<5x32xf32>
    %51 = vector.shape_cast %48 : vector<5x32xf32> to vector<1x5x32xf32>
    tpu.vector_store %arg7[%c1_31, %c0_32, %c128_33], %51 {strides = array<i32>} : memref<4x5x800xf32, #tpu.memory_space<vmem>>, vector<1x5x32xf32>,
    %c2_i32_34 = arith.constant 2 : i32
    %52 = arith.muli %c2_i32_34, %arg1 : i32
    %c0_i32_35 = arith.constant 0 : i32
    %53 = arith.addi %52, %c0_i32_35 : i32
    %c1_i32 = arith.constant 1 : i32
    %54 = arith.addi %53, %c1_i32 : i32
    %c0_36 = arith.constant 0 : index
    %55 = arith.index_cast %54 : i32 to index
    %c0_37 = arith.constant 0 : index
    %c0_38 = arith.constant 0 : index
    %56 = vector.load %arg2[%c0_36, %55, %c0_37, %c0_38] : memref<1x14x7x32xf32, #tpu.memory_space<vmem>>, vector<1x1x7x32xf32>
    %57 = vector.shape_cast %56 : vector<1x1x7x32xf32> to vector<7x32xf32>
    %c2_i32_39 = arith.constant 2 : i32
    %58 = arith.muli %c2_i32_39, %arg1 : i32
    %c0_i32_40 = arith.constant 0 : i32
    %59 = arith.addi %58, %c0_i32_40 : i32
    %c1_i32_41 = arith.constant 1 : i32
    %60 = arith.addi %59, %c1_i32_41 : i32
    %c0_42 = arith.constant 0 : index
    %61 = arith.index_cast %60 : i32 to index
    %c0_43 = arith.constant 0 : index
    %c0_44 = arith.constant 0 : index
    %62 = vector.load %arg3[%c0_42, %61, %c0_43, %c0_44] : memref<1x14x7x32xf32, #tpu.memory_space<vmem>>, vector<1x1x7x32xf32>
    %63 = vector.shape_cast %62 : vector<1x1x7x32xf32> to vector<7x32xf32>
    %64 = vector.extract_strided_slice %57 {offsets = [0, 0], sizes = [5, 32], strides = [1, 1]} : vector<7x32xf32> to vector<5x32xf32>
    %c0_45 = arith.constant 0 : index
    %c0_46 = arith.constant 0 : index
    %c160 = arith.constant 160 : index
    %65 = vector.load %arg7[%c0_45, %c0_46, %c160] : memref<4x5x800xf32, #tpu.memory_space<vmem>>, vector<1x5x32xf32>
    %66 = vector.shape_cast %65 : vector<1x5x32xf32> to vector<5x32xf32>
    %67 = vector.shape_cast %64 : vector<5x32xf32> to vector<1x5x32xf32>
    tpu.vector_store %arg7[%c0_45, %c0_46, %c160], %67 {strides = array<i32>} : memref<4x5x800xf32, #tpu.memory_space<vmem>>, vector<1x5x32xf32>,
    %68 = vector.extract_strided_slice %63 {offsets = [0, 0], sizes = [5, 32], strides = [1, 1]} : vector<7x32xf32> to vector<5x32xf32>
    %c0_47 = arith.constant 0 : index
    %c0_48 = arith.constant 0 : index
    %c192 = arith.constant 192 : index
    %69 = vector.load %arg7[%c0_47, %c0_48, %c192] : memref<4x5x800xf32, #tpu.memory_space<vmem>>, vector<1x5x32xf32>
    %70 = vector.shape_cast %69 : vector<1x5x32xf32> to vector<5x32xf32>
    %71 = vector.shape_cast %68 : vector<5x32xf32> to vector<1x5x32xf32>
    tpu.vector_store %arg7[%c0_47, %c0_48, %c192], %71 {strides = array<i32>} : memref<4x5x800xf32, #tpu.memory_space<vmem>>, vector<1x5x32xf32>,
    %72 = vector.extract_strided_slice %57 {offsets = [1, 0], sizes = [5, 32], strides = [1, 1]} : vector<7x32xf32> to vector<5x32xf32>
    %c0_49 = arith.constant 0 : index
    %c0_50 = arith.constant 0 : index
    %c224 = arith.constant 224 : index
    %73 = vector.load %arg7[%c0_49, %c0_50, %c224] : memref<4x5x800xf32, #tpu.memory_space<vmem>>, vector<1x5x32xf32>
    %74 = vector.shape_cast %73 : vector<1x5x32xf32> to vector<5x32xf32>
    %75 = vector.shape_cast %72 : vector<5x32xf32> to vector<1x5x32xf32>
    tpu.vector_store %arg7[%c0_49, %c0_50, %c224], %75 {strides = array<i32>} : memref<4x5x800xf32, #tpu.memory_space<vmem>>, vector<1x5x32xf32>,
    %76 = vector.extract_strided_slice %63 {offsets = [1, 0], sizes = [5, 32], strides = [1, 1]} : vector<7x32xf32> to vector<5x32xf32>
    %c0_51 = arith.constant 0 : index
    %c0_52 = arith.constant 0 : index
    %c256 = arith.constant 256 : index
    %77 = vector.load %arg7[%c0_51, %c0_52, %c256] : memref<4x5x800xf32, #tpu.memory_space<vmem>>, vector<1x5x32xf32>
    %78 = vector.shape_cast %77 : vector<1x5x32xf32> to vector<5x32xf32>
    %79 = vector.shape_cast %76 : vector<5x32xf32> to vector<1x5x32xf32>
    tpu.vector_store %arg7[%c0_51, %c0_52, %c256], %79 {strides = array<i32>} : memref<4x5x800xf32, #tpu.memory_space<vmem>>, vector<1x5x32xf32>,
    %80 = vector.extract_strided_slice %57 {offsets = [2, 0], sizes = [5, 32], strides = [1, 1]} : vector<7x32xf32> to vector<5x32xf32>
    %c0_53 = arith.constant 0 : index
    %c0_54 = arith.constant 0 : index
    %c288 = arith.constant 288 : index
    %81 = vector.load %arg7[%c0_53, %c0_54, %c288] : memref<4x5x800xf32, #tpu.memory_space<vmem>>, vector<1x5x32xf32>
    %82 = vector.shape_cast %81 : vector<1x5x32xf32> to vector<5x32xf32>
    %83 = vector.shape_cast %80 : vector<5x32xf32> to vector<1x5x32xf32>
    tpu.vector_store %arg7[%c0_53, %c0_54, %c288], %83 {strides = array<i32>} : memref<4x5x800xf32, #tpu.memory_space<vmem>>, vector<1x5x32xf32>,
    %84 = vector.extract_strided_slice %63 {offsets = [0, 0], sizes = [5, 32], strides = [1, 1]} : vector<7x32xf32> to vector<5x32xf32>
    %c1_55 = arith.constant 1 : index
    %c0_56 = arith.constant 0 : index
    %c160_57 = arith.constant 160 : index
    %85 = vector.load %arg7[%c1_55, %c0_56, %c160_57] : memref<4x5x800xf32, #tpu.memory_space<vmem>>, vector<1x5x32xf32>
    %86 = vector.shape_cast %85 : vector<1x5x32xf32> to vector<5x32xf32>
    %87 = vector.shape_cast %84 : vector<5x32xf32> to vector<1x5x32xf32>
    tpu.vector_store %arg7[%c1_55, %c0_56, %c160_57], %87 {strides = array<i32>} : memref<4x5x800xf32, #tpu.memory_space<vmem>>, vector<1x5x32xf32>,
    %88 = vector.extract_strided_slice %57 {offsets = [1, 0], sizes = [5, 32], strides = [1, 1]} : vector<7x32xf32> to vector<5x32xf32>
    %c1_58 = arith.constant 1 : index
    %c0_59 = arith.constant 0 : index
    %c192_60 = arith.constant 192 : index
    %89 = vector.load %arg7[%c1_58, %c0_59, %c192_60] : memref<4x5x800xf32, #tpu.memory_space<vmem>>, vector<1x5x32xf32>
    %90 = vector.shape_cast %89 : vector<1x5x32xf32> to vector<5x32xf32>
    %91 = vector.shape_cast %88 : vector<5x32xf32> to vector<1x5x32xf32>
    tpu.vector_store %arg7[%c1_58, %c0_59, %c192_60], %91 {strides = array<i32>} : memref<4x5x800xf32, #tpu.memory_space<vmem>>, vector<1x5x32xf32>,
    %92 = vector.extract_strided_slice %63 {offsets = [1, 0], sizes = [5, 32], strides = [1, 1]} : vector<7x32xf32> to vector<5x32xf32>
    %c1_61 = arith.constant 1 : index
    %c0_62 = arith.constant 0 : index
    %c224_63 = arith.constant 224 : index
    %93 = vector.load %arg7[%c1_61, %c0_62, %c224_63] : memref<4x5x800xf32, #tpu.memory_space<vmem>>, vector<1x5x32xf32>
    %94 = vector.shape_cast %93 : vector<1x5x32xf32> to vector<5x32xf32>
    %95 = vector.shape_cast %92 : vector<5x32xf32> to vector<1x5x32xf32>
    tpu.vector_store %arg7[%c1_61, %c0_62, %c224_63], %95 {strides = array<i32>} : memref<4x5x800xf32, #tpu.memory_space<vmem>>, vector<1x5x32xf32>,
    %96 = vector.extract_strided_slice %57 {offsets = [2, 0], sizes = [5, 32], strides = [1, 1]} : vector<7x32xf32> to vector<5x32xf32>
    %c1_64 = arith.constant 1 : index
    %c0_65 = arith.constant 0 : index
    %c256_66 = arith.constant 256 : index
    %97 = vector.load %arg7[%c1_64, %c0_65, %c256_66] : memref<4x5x800xf32, #tpu.memory_space<vmem>>, vector<1x5x32xf32>
    %98 = vector.shape_cast %97 : vector<1x5x32xf32> to vector<5x32xf32>
    %99 = vector.shape_cast %96 : vector<5x32xf32> to vector<1x5x32xf32>
    tpu.vector_store %arg7[%c1_64, %c0_65, %c256_66], %99 {strides = array<i32>} : memref<4x5x800xf32, #tpu.memory_space<vmem>>, vector<1x5x32xf32>,
    %100 = vector.extract_strided_slice %63 {offsets = [2, 0], sizes = [5, 32], strides = [1, 1]} : vector<7x32xf32> to vector<5x32xf32>
    %c1_67 = arith.constant 1 : index
    %c0_68 = arith.constant 0 : index
    %c288_69 = arith.constant 288 : index
    %101 = vector.load %arg7[%c1_67, %c0_68, %c288_69] : memref<4x5x800xf32, #tpu.memory_space<vmem>>, vector<1x5x32xf32>
    %102 = vector.shape_cast %101 : vector<1x5x32xf32> to vector<5x32xf32>
    %103 = vector.shape_cast %100 : vector<5x32xf32> to vector<1x5x32xf32>
    tpu.vector_store %arg7[%c1_67, %c0_68, %c288_69], %103 {strides = array<i32>} : memref<4x5x800xf32, #tpu.memory_space<vmem>>, vector<1x5x32xf32>,
    %c2_i32_70 = arith.constant 2 : i32
    %104 = arith.muli %c2_i32_70, %arg1 : i32
    %c0_i32_71 = arith.constant 0 : i32
    %105 = arith.addi %104, %c0_i32_71 : i32
    %c2_i32_72 = arith.constant 2 : i32
    %106 = arith.addi %105, %c2_i32_72 : i32
    %c0_73 = arith.constant 0 : index
    %107 = arith.index_cast %106 : i32 to index
    %c0_74 = arith.constant 0 : index
    %c0_75 = arith.constant 0 : index
    %108 = vector.load %arg2[%c0_73, %107, %c0_74, %c0_75] : memref<1x14x7x32xf32, #tpu.memory_space<vmem>>, vector<1x1x7x32xf32>
    %109 = vector.shape_cast %108 : vector<1x1x7x32xf32> to vector<7x32xf32>
    %c2_i32_76 = arith.constant 2 : i32
    %110 = arith.muli %c2_i32_76, %arg1 : i32
    %c0_i32_77 = arith.constant 0 : i32
    %111 = arith.addi %110, %c0_i32_77 : i32
    %c2_i32_78 = arith.constant 2 : i32
    %112 = arith.addi %111, %c2_i32_78 : i32
    %c0_79 = arith.constant 0 : index
    %113 = arith.index_cast %112 : i32 to index
    %c0_80 = arith.constant 0 : index
    %c0_81 = arith.constant 0 : index
    %114 = vector.load %arg3[%c0_79, %113, %c0_80, %c0_81] : memref<1x14x7x32xf32, #tpu.memory_space<vmem>>, vector<1x1x7x32xf32>
    %115 = vector.shape_cast %114 : vector<1x1x7x32xf32> to vector<7x32xf32>
    %116 = vector.extract_strided_slice %109 {offsets = [0, 0], sizes = [5, 32], strides = [1, 1]} : vector<7x32xf32> to vector<5x32xf32>
    %c0_82 = arith.constant 0 : index
    %c0_83 = arith.constant 0 : index
    %c320 = arith.constant 320 : index
    %117 = vector.load %arg7[%c0_82, %c0_83, %c320] : memref<4x5x800xf32, #tpu.memory_space<vmem>>, vector<1x5x32xf32>
    %118 = vector.shape_cast %117 : vector<1x5x32xf32> to vector<5x32xf32>
    %119 = vector.shape_cast %116 : vector<5x32xf32> to vector<1x5x32xf32>
    tpu.vector_store %arg7[%c0_82, %c0_83, %c320], %119 {strides = array<i32>} : memref<4x5x800xf32, #tpu.memory_space<vmem>>, vector<1x5x32xf32>,
    %120 = vector.extract_strided_slice %115 {offsets = [0, 0], sizes = [5, 32], strides = [1, 1]} : vector<7x32xf32> to vector<5x32xf32>
    %c0_84 = arith.constant 0 : index
    %c0_85 = arith.constant 0 : index
    %c352 = arith.constant 352 : index
    %121 = vector.load %arg7[%c0_84, %c0_85, %c352] : memref<4x5x800xf32, #tpu.memory_space<vmem>>, vector<1x5x32xf32>
    %122 = vector.shape_cast %121 : vector<1x5x32xf32> to vector<5x32xf32>
    %123 = vector.shape_cast %120 : vector<5x32xf32> to vector<1x5x32xf32>
    tpu.vector_store %arg7[%c0_84, %c0_85, %c352], %123 {strides = array<i32>} : memref<4x5x800xf32, #tpu.memory_space<vmem>>, vector<1x5x32xf32>,
    %124 = vector.extract_strided_slice %109 {offsets = [1, 0], sizes = [5, 32], strides = [1, 1]} : vector<7x32xf32> to vector<5x32xf32>
    %c0_86 = arith.constant 0 : index
    %c0_87 = arith.constant 0 : index
    %c384 = arith.constant 384 : index
    %125 = vector.load %arg7[%c0_86, %c0_87, %c384] : memref<4x5x800xf32, #tpu.memory_space<vmem>>, vector<1x5x32xf32>
    %126 = vector.shape_cast %125 : vector<1x5x32xf32> to vector<5x32xf32>
    %127 = vector.shape_cast %124 : vector<5x32xf32> to vector<1x5x32xf32>
    tpu.vector_store %arg7[%c0_86, %c0_87, %c384], %127 {strides = array<i32>} : memref<4x5x800xf32, #tpu.memory_space<vmem>>, vector<1x5x32xf32>,
    %128 = vector.extract_strided_slice %115 {offsets = [1, 0], sizes = [5, 32], strides = [1, 1]} : vector<7x32xf32> to vector<5x32xf32>
    %c0_88 = arith.constant 0 : index
    %c0_89 = arith.constant 0 : index
    %c416 = arith.constant 416 : index
    %129 = vector.load %arg7[%c0_88, %c0_89, %c416] : memref<4x5x800xf32, #tpu.memory_space<vmem>>, vector<1x5x32xf32>
    %130 = vector.shape_cast %129 : vector<1x5x32xf32> to vector<5x32xf32>
    %131 = vector.shape_cast %128 : vector<5x32xf32> to vector<1x5x32xf32>
    tpu.vector_store %arg7[%c0_88, %c0_89, %c416], %131 {strides = array<i32>} : memref<4x5x800xf32, #tpu.memory_space<vmem>>, vector<1x5x32xf32>,
    %132 = vector.extract_strided_slice %109 {offsets = [2, 0], sizes = [5, 32], strides = [1, 1]} : vector<7x32xf32> to vector<5x32xf32>
    %c0_90 = arith.constant 0 : index
    %c0_91 = arith.constant 0 : index
    %c448 = arith.constant 448 : index
    %133 = vector.load %arg7[%c0_90, %c0_91, %c448] : memref<4x5x800xf32, #tpu.memory_space<vmem>>, vector<1x5x32xf32>
    %134 = vector.shape_cast %133 : vector<1x5x32xf32> to vector<5x32xf32>
    %135 = vector.shape_cast %132 : vector<5x32xf32> to vector<1x5x32xf32>
    tpu.vector_store %arg7[%c0_90, %c0_91, %c448], %135 {strides = array<i32>} : memref<4x5x800xf32, #tpu.memory_space<vmem>>, vector<1x5x32xf32>,
    %136 = vector.extract_strided_slice %115 {offsets = [0, 0], sizes = [5, 32], strides = [1, 1]} : vector<7x32xf32> to vector<5x32xf32>
    %c1_92 = arith.constant 1 : index
    %c0_93 = arith.constant 0 : index
    %c320_94 = arith.constant 320 : index
    %137 = vector.load %arg7[%c1_92, %c0_93, %c320_94] : memref<4x5x800xf32, #tpu.memory_space<vmem>>, vector<1x5x32xf32>
    %138 = vector.shape_cast %137 : vector<1x5x32xf32> to vector<5x32xf32>
    %139 = vector.shape_cast %136 : vector<5x32xf32> to vector<1x5x32xf32>
    tpu.vector_store %arg7[%c1_92, %c0_93, %c320_94], %139 {strides = array<i32>} : memref<4x5x800xf32, #tpu.memory_space<vmem>>, vector<1x5x32xf32>,
    %140 = vector.extract_strided_slice %109 {offsets = [1, 0], sizes = [5, 32], strides = [1, 1]} : vector<7x32xf32> to vector<5x32xf32>
    %c1_95 = arith.constant 1 : index
    %c0_96 = arith.constant 0 : index
    %c352_97 = arith.constant 352 : index
    %141 = vector.load %arg7[%c1_95, %c0_96, %c352_97] : memref<4x5x800xf32, #tpu.memory_space<vmem>>, vector<1x5x32xf32>
    %142 = vector.shape_cast %141 : vector<1x5x32xf32> to vector<5x32xf32>
    %143 = vector.shape_cast %140 : vector<5x32xf32> to vector<1x5x32xf32>
    tpu.vector_store %arg7[%c1_95, %c0_96, %c352_97], %143 {strides = array<i32>} : memref<4x5x800xf32, #tpu.memory_space<vmem>>, vector<1x5x32xf32>,
    %144 = vector.extract_strided_slice %115 {offsets = [1, 0], sizes = [5, 32], strides = [1, 1]} : vector<7x32xf32> to vector<5x32xf32>
    %c1_98 = arith.constant 1 : index
    %c0_99 = arith.constant 0 : index
    %c384_100 = arith.constant 384 : index
    %145 = vector.load %arg7[%c1_98, %c0_99, %c384_100] : memref<4x5x800xf32, #tpu.memory_space<vmem>>, vector<1x5x32xf32>
    %146 = vector.shape_cast %145 : vector<1x5x32xf32> to vector<5x32xf32>
    %147 = vector.shape_cast %144 : vector<5x32xf32> to vector<1x5x32xf32>
    tpu.vector_store %arg7[%c1_98, %c0_99, %c384_100], %147 {strides = array<i32>} : memref<4x5x800xf32, #tpu.memory_space<vmem>>, vector<1x5x32xf32>,
    %148 = vector.extract_strided_slice %109 {offsets = [2, 0], sizes = [5, 32], strides = [1, 1]} : vector<7x32xf32> to vector<5x32xf32>
    %c1_101 = arith.constant 1 : index
    %c0_102 = arith.constant 0 : index
    %c416_103 = arith.constant 416 : index
    %149 = vector.load %arg7[%c1_101, %c0_102, %c416_103] : memref<4x5x800xf32, #tpu.memory_space<vmem>>, vector<1x5x32xf32>
    %150 = vector.shape_cast %149 : vector<1x5x32xf32> to vector<5x32xf32>
    %151 = vector.shape_cast %148 : vector<5x32xf32> to vector<1x5x32xf32>
    tpu.vector_store %arg7[%c1_101, %c0_102, %c416_103], %151 {strides = array<i32>} : memref<4x5x800xf32, #tpu.memory_space<vmem>>, vector<1x5x32xf32>,
    %152 = vector.extract_strided_slice %115 {offsets = [2, 0], sizes = [5, 32], strides = [1, 1]} : vector<7x32xf32> to vector<5x32xf32>
    %c1_104 = arith.constant 1 : index
    %c0_105 = arith.constant 0 : index
    %c448_106 = arith.constant 448 : index
    %153 = vector.load %arg7[%c1_104, %c0_105, %c448_106] : memref<4x5x800xf32, #tpu.memory_space<vmem>>, vector<1x5x32xf32>
    %154 = vector.shape_cast %153 : vector<1x5x32xf32> to vector<5x32xf32>
    %155 = vector.shape_cast %152 : vector<5x32xf32> to vector<1x5x32xf32>
    tpu.vector_store %arg7[%c1_104, %c0_105, %c448_106], %155 {strides = array<i32>} : memref<4x5x800xf32, #tpu.memory_space<vmem>>, vector<1x5x32xf32>,
    %c2_i32_107 = arith.constant 2 : i32
    %156 = arith.muli %c2_i32_107, %arg1 : i32
    %c0_i32_108 = arith.constant 0 : i32
    %157 = arith.addi %156, %c0_i32_108 : i32
    %c3_i32 = arith.constant 3 : i32
    %158 = arith.addi %157, %c3_i32 : i32
    %c0_109 = arith.constant 0 : index
    %159 = arith.index_cast %158 : i32 to index
    %c0_110 = arith.constant 0 : index
    %c0_111 = arith.constant 0 : index
    %160 = vector.load %arg2[%c0_109, %159, %c0_110, %c0_111] : memref<1x14x7x32xf32, #tpu.memory_space<vmem>>, vector<1x1x7x32xf32>
    %161 = vector.shape_cast %160 : vector<1x1x7x32xf32> to vector<7x32xf32>
    %c2_i32_112 = arith.constant 2 : i32
    %162 = arith.muli %c2_i32_112, %arg1 : i32
    %c0_i32_113 = arith.constant 0 : i32
    %163 = arith.addi %162, %c0_i32_113 : i32
    %c3_i32_114 = arith.constant 3 : i32
    %164 = arith.addi %163, %c3_i32_114 : i32
    %c0_115 = arith.constant 0 : index
    %165 = arith.index_cast %164 : i32 to index
    %c0_116 = arith.constant 0 : index
    %c0_117 = arith.constant 0 : index
    %166 = vector.load %arg3[%c0_115, %165, %c0_116, %c0_117] : memref<1x14x7x32xf32, #tpu.memory_space<vmem>>, vector<1x1x7x32xf32>
    %167 = vector.shape_cast %166 : vector<1x1x7x32xf32> to vector<7x32xf32>
    %168 = vector.extract_strided_slice %161 {offsets = [0, 0], sizes = [5, 32], strides = [1, 1]} : vector<7x32xf32> to vector<5x32xf32>
    %c0_118 = arith.constant 0 : index
    %c0_119 = arith.constant 0 : index
    %c480 = arith.constant 480 : index
    %169 = vector.load %arg7[%c0_118, %c0_119, %c480] : memref<4x5x800xf32, #tpu.memory_space<vmem>>, vector<1x5x32xf32>
    %170 = vector.shape_cast %169 : vector<1x5x32xf32> to vector<5x32xf32>
    %171 = vector.shape_cast %168 : vector<5x32xf32> to vector<1x5x32xf32>
    tpu.vector_store %arg7[%c0_118, %c0_119, %c480], %171 {strides = array<i32>} : memref<4x5x800xf32, #tpu.memory_space<vmem>>, vector<1x5x32xf32>,
    %172 = vector.extract_strided_slice %167 {offsets = [0, 0], sizes = [5, 32], strides = [1, 1]} : vector<7x32xf32> to vector<5x32xf32>
    %c0_120 = arith.constant 0 : index
    %c0_121 = arith.constant 0 : index
    %c512 = arith.constant 512 : index
    %173 = vector.load %arg7[%c0_120, %c0_121, %c512] : memref<4x5x800xf32, #tpu.memory_space<vmem>>, vector<1x5x32xf32>
    %174 = vector.shape_cast %173 : vector<1x5x32xf32> to vector<5x32xf32>
    %175 = vector.shape_cast %172 : vector<5x32xf32> to vector<1x5x32xf32>
    tpu.vector_store %arg7[%c0_120, %c0_121, %c512], %175 {strides = array<i32>} : memref<4x5x800xf32, #tpu.memory_space<vmem>>, vector<1x5x32xf32>,
    %176 = vector.extract_strided_slice %161 {offsets = [1, 0], sizes = [5, 32], strides = [1, 1]} : vector<7x32xf32> to vector<5x32xf32>
    %c0_122 = arith.constant 0 : index
    %c0_123 = arith.constant 0 : index
    %c544 = arith.constant 544 : index
    %177 = vector.load %arg7[%c0_122, %c0_123, %c544] : memref<4x5x800xf32, #tpu.memory_space<vmem>>, vector<1x5x32xf32>
    %178 = vector.shape_cast %177 : vector<1x5x32xf32> to vector<5x32xf32>
    %179 = vector.shape_cast %176 : vector<5x32xf32> to vector<1x5x32xf32>
    tpu.vector_store %arg7[%c0_122, %c0_123, %c544], %179 {strides = array<i32>} : memref<4x5x800xf32, #tpu.memory_space<vmem>>, vector<1x5x32xf32>,
    %180 = vector.extract_strided_slice %167 {offsets = [1, 0], sizes = [5, 32], strides = [1, 1]} : vector<7x32xf32> to vector<5x32xf32>
    %c0_124 = arith.constant 0 : index
    %c0_125 = arith.constant 0 : index
    %c576 = arith.constant 576 : index
    %181 = vector.load %arg7[%c0_124, %c0_125, %c576] : memref<4x5x800xf32, #tpu.memory_space<vmem>>, vector<1x5x32xf32>
    %182 = vector.shape_cast %181 : vector<1x5x32xf32> to vector<5x32xf32>
    %183 = vector.shape_cast %180 : vector<5x32xf32> to vector<1x5x32xf32>
    tpu.vector_store %arg7[%c0_124, %c0_125, %c576], %183 {strides = array<i32>} : memref<4x5x800xf32, #tpu.memory_space<vmem>>, vector<1x5x32xf32>,
    %184 = vector.extract_strided_slice %161 {offsets = [2, 0], sizes = [5, 32], strides = [1, 1]} : vector<7x32xf32> to vector<5x32xf32>
    %c0_126 = arith.constant 0 : index
    %c0_127 = arith.constant 0 : index
    %c608 = arith.constant 608 : index
    %185 = vector.load %arg7[%c0_126, %c0_127, %c608] : memref<4x5x800xf32, #tpu.memory_space<vmem>>, vector<1x5x32xf32>
    %186 = vector.shape_cast %185 : vector<1x5x32xf32> to vector<5x32xf32>
    %187 = vector.shape_cast %184 : vector<5x32xf32> to vector<1x5x32xf32>
    tpu.vector_store %arg7[%c0_126, %c0_127, %c608], %187 {strides = array<i32>} : memref<4x5x800xf32, #tpu.memory_space<vmem>>, vector<1x5x32xf32>,
    %188 = vector.extract_strided_slice %167 {offsets = [0, 0], sizes = [5, 32], strides = [1, 1]} : vector<7x32xf32> to vector<5x32xf32>
    %c1_128 = arith.constant 1 : index
    %c0_129 = arith.constant 0 : index
    %c480_130 = arith.constant 480 : index
    %189 = vector.load %arg7[%c1_128, %c0_129, %c480_130] : memref<4x5x800xf32, #tpu.memory_space<vmem>>, vector<1x5x32xf32>
    %190 = vector.shape_cast %189 : vector<1x5x32xf32> to vector<5x32xf32>
    %191 = vector.shape_cast %188 : vector<5x32xf32> to vector<1x5x32xf32>
    tpu.vector_store %arg7[%c1_128, %c0_129, %c480_130], %191 {strides = array<i32>} : memref<4x5x800xf32, #tpu.memory_space<vmem>>, vector<1x5x32xf32>,
    %192 = vector.extract_strided_slice %161 {offsets = [1, 0], sizes = [5, 32], strides = [1, 1]} : vector<7x32xf32> to vector<5x32xf32>
    %c1_131 = arith.constant 1 : index
    %c0_132 = arith.constant 0 : index
    %c512_133 = arith.constant 512 : index
    %193 = vector.load %arg7[%c1_131, %c0_132, %c512_133] : memref<4x5x800xf32, #tpu.memory_space<vmem>>, vector<1x5x32xf32>
    %194 = vector.shape_cast %193 : vector<1x5x32xf32> to vector<5x32xf32>
    %195 = vector.shape_cast %192 : vector<5x32xf32> to vector<1x5x32xf32>
    tpu.vector_store %arg7[%c1_131, %c0_132, %c512_133], %195 {strides = array<i32>} : memref<4x5x800xf32, #tpu.memory_space<vmem>>, vector<1x5x32xf32>,
    %196 = vector.extract_strided_slice %167 {offsets = [1, 0], sizes = [5, 32], strides = [1, 1]} : vector<7x32xf32> to vector<5x32xf32>
    %c1_134 = arith.constant 1 : index
    %c0_135 = arith.constant 0 : index
    %c544_136 = arith.constant 544 : index
    %197 = vector.load %arg7[%c1_134, %c0_135, %c544_136] : memref<4x5x800xf32, #tpu.memory_space<vmem>>, vector<1x5x32xf32>
    %198 = vector.shape_cast %197 : vector<1x5x32xf32> to vector<5x32xf32>
    %199 = vector.shape_cast %196 : vector<5x32xf32> to vector<1x5x32xf32>
    tpu.vector_store %arg7[%c1_134, %c0_135, %c544_136], %199 {strides = array<i32>} : memref<4x5x800xf32, #tpu.memory_space<vmem>>, vector<1x5x32xf32>,
    %200 = vector.extract_strided_slice %161 {offsets = [2, 0], sizes = [5, 32], strides = [1, 1]} : vector<7x32xf32> to vector<5x32xf32>
    %c1_137 = arith.constant 1 : index
    %c0_138 = arith.constant 0 : index
    %c576_139 = arith.constant 576 : index
    %201 = vector.load %arg7[%c1_137, %c0_138, %c576_139] : memref<4x5x800xf32, #tpu.memory_space<vmem>>, vector<1x5x32xf32>
    %202 = vector.shape_cast %201 : vector<1x5x32xf32> to vector<5x32xf32>
    %203 = vector.shape_cast %200 : vector<5x32xf32> to vector<1x5x32xf32>
    tpu.vector_store %arg7[%c1_137, %c0_138, %c576_139], %203 {strides = array<i32>} : memref<4x5x800xf32, #tpu.memory_space<vmem>>, vector<1x5x32xf32>,
    %204 = vector.extract_strided_slice %167 {offsets = [2, 0], sizes = [5, 32], strides = [1, 1]} : vector<7x32xf32> to vector<5x32xf32>
    %c1_140 = arith.constant 1 : index
    %c0_141 = arith.constant 0 : index
    %c608_142 = arith.constant 608 : index
    %205 = vector.load %arg7[%c1_140, %c0_141, %c608_142] : memref<4x5x800xf32, #tpu.memory_space<vmem>>, vector<1x5x32xf32>
    %206 = vector.shape_cast %205 : vector<1x5x32xf32> to vector<5x32xf32>
    %207 = vector.shape_cast %204 : vector<5x32xf32> to vector<1x5x32xf32>
    tpu.vector_store %arg7[%c1_140, %c0_141, %c608_142], %207 {strides = array<i32>} : memref<4x5x800xf32, #tpu.memory_space<vmem>>, vector<1x5x32xf32>,
    %c2_i32_143 = arith.constant 2 : i32
    %208 = arith.muli %c2_i32_143, %arg1 : i32
    %c0_i32_144 = arith.constant 0 : i32
    %209 = arith.addi %208, %c0_i32_144 : i32
    %c4_i32 = arith.constant 4 : i32
    %210 = arith.addi %209, %c4_i32 : i32
    %c0_145 = arith.constant 0 : index
    %211 = arith.index_cast %210 : i32 to index
    %c0_146 = arith.constant 0 : index
    %c0_147 = arith.constant 0 : index
    %212 = vector.load %arg2[%c0_145, %211, %c0_146, %c0_147] : memref<1x14x7x32xf32, #tpu.memory_space<vmem>>, vector<1x1x7x32xf32>
    %213 = vector.shape_cast %212 : vector<1x1x7x32xf32> to vector<7x32xf32>
    %c2_i32_148 = arith.constant 2 : i32
    %214 = arith.muli %c2_i32_148, %arg1 : i32
    %c0_i32_149 = arith.constant 0 : i32
    %215 = arith.addi %214, %c0_i32_149 : i32
    %c4_i32_150 = arith.constant 4 : i32
    %216 = arith.addi %215, %c4_i32_150 : i32
    %c0_151 = arith.constant 0 : index
    %217 = arith.index_cast %216 : i32 to index
    %c0_152 = arith.constant 0 : index
    %c0_153 = arith.constant 0 : index
    %218 = vector.load %arg3[%c0_151, %217, %c0_152, %c0_153] : memref<1x14x7x32xf32, #tpu.memory_space<vmem>>, vector<1x1x7x32xf32>
    %219 = vector.shape_cast %218 : vector<1x1x7x32xf32> to vector<7x32xf32>
    %220 = vector.extract_strided_slice %213 {offsets = [0, 0], sizes = [5, 32], strides = [1, 1]} : vector<7x32xf32> to vector<5x32xf32>
    %c0_154 = arith.constant 0 : index
    %c0_155 = arith.constant 0 : index
    %c640 = arith.constant 640 : index
    %221 = vector.load %arg7[%c0_154, %c0_155, %c640] : memref<4x5x800xf32, #tpu.memory_space<vmem>>, vector<1x5x32xf32>
    %222 = vector.shape_cast %221 : vector<1x5x32xf32> to vector<5x32xf32>
    %223 = vector.shape_cast %220 : vector<5x32xf32> to vector<1x5x32xf32>
    tpu.vector_store %arg7[%c0_154, %c0_155, %c640], %223 {strides = array<i32>} : memref<4x5x800xf32, #tpu.memory_space<vmem>>, vector<1x5x32xf32>,
    %224 = vector.extract_strided_slice %219 {offsets = [0, 0], sizes = [5, 32], strides = [1, 1]} : vector<7x32xf32> to vector<5x32xf32>
    %c0_156 = arith.constant 0 : index
    %c0_157 = arith.constant 0 : index
    %c672 = arith.constant 672 : index
    %225 = vector.load %arg7[%c0_156, %c0_157, %c672] : memref<4x5x800xf32, #tpu.memory_space<vmem>>, vector<1x5x32xf32>
    %226 = vector.shape_cast %225 : vector<1x5x32xf32> to vector<5x32xf32>
    %227 = vector.shape_cast %224 : vector<5x32xf32> to vector<1x5x32xf32>
    tpu.vector_store %arg7[%c0_156, %c0_157, %c672], %227 {strides = array<i32>} : memref<4x5x800xf32, #tpu.memory_space<vmem>>, vector<1x5x32xf32>,
    %228 = vector.extract_strided_slice %213 {offsets = [1, 0], sizes = [5, 32], strides = [1, 1]} : vector<7x32xf32> to vector<5x32xf32>
    %c0_158 = arith.constant 0 : index
    %c0_159 = arith.constant 0 : index
    %c704 = arith.constant 704 : index
    %229 = vector.load %arg7[%c0_158, %c0_159, %c704] : memref<4x5x800xf32, #tpu.memory_space<vmem>>, vector<1x5x32xf32>
    %230 = vector.shape_cast %229 : vector<1x5x32xf32> to vector<5x32xf32>
    %231 = vector.shape_cast %228 : vector<5x32xf32> to vector<1x5x32xf32>
    tpu.vector_store %arg7[%c0_158, %c0_159, %c704], %231 {strides = array<i32>} : memref<4x5x800xf32, #tpu.memory_space<vmem>>, vector<1x5x32xf32>,
    %232 = vector.extract_strided_slice %219 {offsets = [1, 0], sizes = [5, 32], strides = [1, 1]} : vector<7x32xf32> to vector<5x32xf32>
    %c0_160 = arith.constant 0 : index
    %c0_161 = arith.constant 0 : index
    %c736 = arith.constant 736 : index
    %233 = vector.load %arg7[%c0_160, %c0_161, %c736] : memref<4x5x800xf32, #tpu.memory_space<vmem>>, vector<1x5x32xf32>
    %234 = vector.shape_cast %233 : vector<1x5x32xf32> to vector<5x32xf32>
    %235 = vector.shape_cast %232 : vector<5x32xf32> to vector<1x5x32xf32>
    tpu.vector_store %arg7[%c0_160, %c0_161, %c736], %235 {strides = array<i32>} : memref<4x5x800xf32, #tpu.memory_space<vmem>>, vector<1x5x32xf32>,
    %236 = vector.extract_strided_slice %213 {offsets = [2, 0], sizes = [5, 32], strides = [1, 1]} : vector<7x32xf32> to vector<5x32xf32>
    %c0_162 = arith.constant 0 : index
    %c0_163 = arith.constant 0 : index
    %c768 = arith.constant 768 : index
    %237 = vector.load %arg7[%c0_162, %c0_163, %c768] : memref<4x5x800xf32, #tpu.memory_space<vmem>>, vector<1x5x32xf32>
    %238 = vector.shape_cast %237 : vector<1x5x32xf32> to vector<5x32xf32>
    %239 = vector.shape_cast %236 : vector<5x32xf32> to vector<1x5x32xf32>
    tpu.vector_store %arg7[%c0_162, %c0_163, %c768], %239 {strides = array<i32>} : memref<4x5x800xf32, #tpu.memory_space<vmem>>, vector<1x5x32xf32>,
    %240 = vector.extract_strided_slice %219 {offsets = [0, 0], sizes = [5, 32], strides = [1, 1]} : vector<7x32xf32> to vector<5x32xf32>
    %c1_164 = arith.constant 1 : index
    %c0_165 = arith.constant 0 : index
    %c640_166 = arith.constant 640 : index
    %241 = vector.load %arg7[%c1_164, %c0_165, %c640_166] : memref<4x5x800xf32, #tpu.memory_space<vmem>>, vector<1x5x32xf32>
    %242 = vector.shape_cast %241 : vector<1x5x32xf32> to vector<5x32xf32>
    %243 = vector.shape_cast %240 : vector<5x32xf32> to vector<1x5x32xf32>
    tpu.vector_store %arg7[%c1_164, %c0_165, %c640_166], %243 {strides = array<i32>} : memref<4x5x800xf32, #tpu.memory_space<vmem>>, vector<1x5x32xf32>,
    %244 = vector.extract_strided_slice %213 {offsets = [1, 0], sizes = [5, 32], strides = [1, 1]} : vector<7x32xf32> to vector<5x32xf32>
    %c1_167 = arith.constant 1 : index
    %c0_168 = arith.constant 0 : index
    %c672_169 = arith.constant 672 : index
    %245 = vector.load %arg7[%c1_167, %c0_168, %c672_169] : memref<4x5x800xf32, #tpu.memory_space<vmem>>, vector<1x5x32xf32>
    %246 = vector.shape_cast %245 : vector<1x5x32xf32> to vector<5x32xf32>
    %247 = vector.shape_cast %244 : vector<5x32xf32> to vector<1x5x32xf32>
    tpu.vector_store %arg7[%c1_167, %c0_168, %c672_169], %247 {strides = array<i32>} : memref<4x5x800xf32, #tpu.memory_space<vmem>>, vector<1x5x32xf32>,
    %248 = vector.extract_strided_slice %219 {offsets = [1, 0], sizes = [5, 32], strides = [1, 1]} : vector<7x32xf32> to vector<5x32xf32>
    %c1_170 = arith.constant 1 : index
    %c0_171 = arith.constant 0 : index
    %c704_172 = arith.constant 704 : index
    %249 = vector.load %arg7[%c1_170, %c0_171, %c704_172] : memref<4x5x800xf32, #tpu.memory_space<vmem>>, vector<1x5x32xf32>
    %250 = vector.shape_cast %249 : vector<1x5x32xf32> to vector<5x32xf32>
    %251 = vector.shape_cast %248 : vector<5x32xf32> to vector<1x5x32xf32>
    tpu.vector_store %arg7[%c1_170, %c0_171, %c704_172], %251 {strides = array<i32>} : memref<4x5x800xf32, #tpu.memory_space<vmem>>, vector<1x5x32xf32>,
    %252 = vector.extract_strided_slice %213 {offsets = [2, 0], sizes = [5, 32], strides = [1, 1]} : vector<7x32xf32> to vector<5x32xf32>
    %c1_173 = arith.constant 1 : index
    %c0_174 = arith.constant 0 : index
    %c736_175 = arith.constant 736 : index
    %253 = vector.load %arg7[%c1_173, %c0_174, %c736_175] : memref<4x5x800xf32, #tpu.memory_space<vmem>>, vector<1x5x32xf32>
    %254 = vector.shape_cast %253 : vector<1x5x32xf32> to vector<5x32xf32>
    %255 = vector.shape_cast %252 : vector<5x32xf32> to vector<1x5x32xf32>
    tpu.vector_store %arg7[%c1_173, %c0_174, %c736_175], %255 {strides = array<i32>} : memref<4x5x800xf32, #tpu.memory_space<vmem>>, vector<1x5x32xf32>,
    %256 = vector.extract_strided_slice %219 {offsets = [2, 0], sizes = [5, 32], strides = [1, 1]} : vector<7x32xf32> to vector<5x32xf32>
    %c1_176 = arith.constant 1 : index
    %c0_177 = arith.constant 0 : index
    %c768_178 = arith.constant 768 : index
    %257 = vector.load %arg7[%c1_176, %c0_177, %c768_178] : memref<4x5x800xf32, #tpu.memory_space<vmem>>, vector<1x5x32xf32>
    %258 = vector.shape_cast %257 : vector<1x5x32xf32> to vector<5x32xf32>
    %259 = vector.shape_cast %256 : vector<5x32xf32> to vector<1x5x32xf32>
    tpu.vector_store %arg7[%c1_176, %c0_177, %c768_178], %259 {strides = array<i32>} : memref<4x5x800xf32, #tpu.memory_space<vmem>>, vector<1x5x32xf32>,
    %c2_i32_179 = arith.constant 2 : i32
    %260 = arith.muli %c2_i32_179, %arg1 : i32
    %c1_i32_180 = arith.constant 1 : i32
    %261 = arith.addi %260, %c1_i32_180 : i32
    %c0_i32_181 = arith.constant 0 : i32
    %262 = arith.addi %261, %c0_i32_181 : i32
    %c0_182 = arith.constant 0 : index
    %263 = arith.index_cast %262 : i32 to index
    %c0_183 = arith.constant 0 : index
    %c0_184 = arith.constant 0 : index
    %264 = vector.load %arg2[%c0_182, %263, %c0_183, %c0_184] : memref<1x14x7x32xf32, #tpu.memory_space<vmem>>, vector<1x1x7x32xf32>
    %265 = vector.shape_cast %264 : vector<1x1x7x32xf32> to vector<7x32xf32>
    %c2_i32_185 = arith.constant 2 : i32
    %266 = arith.muli %c2_i32_185, %arg1 : i32
    %c1_i32_186 = arith.constant 1 : i32
    %267 = arith.addi %266, %c1_i32_186 : i32
    %c0_i32_187 = arith.constant 0 : i32
    %268 = arith.addi %267, %c0_i32_187 : i32
    %c0_188 = arith.constant 0 : index
    %269 = arith.index_cast %268 : i32 to index
    %c0_189 = arith.constant 0 : index
    %c0_190 = arith.constant 0 : index
    %270 = vector.load %arg3[%c0_188, %269, %c0_189, %c0_190] : memref<1x14x7x32xf32, #tpu.memory_space<vmem>>, vector<1x1x7x32xf32>
    %271 = vector.shape_cast %270 : vector<1x1x7x32xf32> to vector<7x32xf32>
    %272 = vector.extract_strided_slice %265 {offsets = [0, 0], sizes = [5, 32], strides = [1, 1]} : vector<7x32xf32> to vector<5x32xf32>
    %c2 = arith.constant 2 : index
    %c0_191 = arith.constant 0 : index
    %c0_192 = arith.constant 0 : index
    %273 = vector.load %arg7[%c2, %c0_191, %c0_192] : memref<4x5x800xf32, #tpu.memory_space<vmem>>, vector<1x5x32xf32>
    %274 = vector.shape_cast %273 : vector<1x5x32xf32> to vector<5x32xf32>
    %275 = vector.shape_cast %272 : vector<5x32xf32> to vector<1x5x32xf32>
    tpu.vector_store %arg7[%c2, %c0_191, %c0_192], %275 {strides = array<i32>} : memref<4x5x800xf32, #tpu.memory_space<vmem>>, vector<1x5x32xf32>,
    %276 = vector.extract_strided_slice %271 {offsets = [0, 0], sizes = [5, 32], strides = [1, 1]} : vector<7x32xf32> to vector<5x32xf32>
    %c2_193 = arith.constant 2 : index
    %c0_194 = arith.constant 0 : index
    %c32_195 = arith.constant 32 : index
    %277 = vector.load %arg7[%c2_193, %c0_194, %c32_195] : memref<4x5x800xf32, #tpu.memory_space<vmem>>, vector<1x5x32xf32>
    %278 = vector.shape_cast %277 : vector<1x5x32xf32> to vector<5x32xf32>
    %279 = vector.shape_cast %276 : vector<5x32xf32> to vector<1x5x32xf32>
    tpu.vector_store %arg7[%c2_193, %c0_194, %c32_195], %279 {strides = array<i32>} : memref<4x5x800xf32, #tpu.memory_space<vmem>>, vector<1x5x32xf32>,
    %280 = vector.extract_strided_slice %265 {offsets = [1, 0], sizes = [5, 32], strides = [1, 1]} : vector<7x32xf32> to vector<5x32xf32>
    %c2_196 = arith.constant 2 : index
    %c0_197 = arith.constant 0 : index
    %c64_198 = arith.constant 64 : index
    %281 = vector.load %arg7[%c2_196, %c0_197, %c64_198] : memref<4x5x800xf32, #tpu.memory_space<vmem>>, vector<1x5x32xf32>
    %282 = vector.shape_cast %281 : vector<1x5x32xf32> to vector<5x32xf32>
    %283 = vector.shape_cast %280 : vector<5x32xf32> to vector<1x5x32xf32>
    tpu.vector_store %arg7[%c2_196, %c0_197, %c64_198], %283 {strides = array<i32>} : memref<4x5x800xf32, #tpu.memory_space<vmem>>, vector<1x5x32xf32>,
    %284 = vector.extract_strided_slice %271 {offsets = [1, 0], sizes = [5, 32], strides = [1, 1]} : vector<7x32xf32> to vector<5x32xf32>
    %c2_199 = arith.constant 2 : index
    %c0_200 = arith.constant 0 : index
    %c96_201 = arith.constant 96 : index
    %285 = vector.load %arg7[%c2_199, %c0_200, %c96_201] : memref<4x5x800xf32, #tpu.memory_space<vmem>>, vector<1x5x32xf32>
    %286 = vector.shape_cast %285 : vector<1x5x32xf32> to vector<5x32xf32>
    %287 = vector.shape_cast %284 : vector<5x32xf32> to vector<1x5x32xf32>
    tpu.vector_store %arg7[%c2_199, %c0_200, %c96_201], %287 {strides = array<i32>} : memref<4x5x800xf32, #tpu.memory_space<vmem>>, vector<1x5x32xf32>,
    %288 = vector.extract_strided_slice %265 {offsets = [2, 0], sizes = [5, 32], strides = [1, 1]} : vector<7x32xf32> to vector<5x32xf32>
    %c2_202 = arith.constant 2 : index
    %c0_203 = arith.constant 0 : index
    %c128_204 = arith.constant 128 : index
    %289 = vector.load %arg7[%c2_202, %c0_203, %c128_204] : memref<4x5x800xf32, #tpu.memory_space<vmem>>, vector<1x5x32xf32>
    %290 = vector.shape_cast %289 : vector<1x5x32xf32> to vector<5x32xf32>
    %291 = vector.shape_cast %288 : vector<5x32xf32> to vector<1x5x32xf32>
    tpu.vector_store %arg7[%c2_202, %c0_203, %c128_204], %291 {strides = array<i32>} : memref<4x5x800xf32, #tpu.memory_space<vmem>>, vector<1x5x32xf32>,
    %292 = vector.extract_strided_slice %271 {offsets = [0, 0], sizes = [5, 32], strides = [1, 1]} : vector<7x32xf32> to vector<5x32xf32>
    %c3 = arith.constant 3 : index
    %c0_205 = arith.constant 0 : index
    %c0_206 = arith.constant 0 : index
    %293 = vector.load %arg7[%c3, %c0_205, %c0_206] : memref<4x5x800xf32, #tpu.memory_space<vmem>>, vector<1x5x32xf32>
    %294 = vector.shape_cast %293 : vector<1x5x32xf32> to vector<5x32xf32>
    %295 = vector.shape_cast %292 : vector<5x32xf32> to vector<1x5x32xf32>
    tpu.vector_store %arg7[%c3, %c0_205, %c0_206], %295 {strides = array<i32>} : memref<4x5x800xf32, #tpu.memory_space<vmem>>, vector<1x5x32xf32>,
    %296 = vector.extract_strided_slice %265 {offsets = [1, 0], sizes = [5, 32], strides = [1, 1]} : vector<7x32xf32> to vector<5x32xf32>
    %c3_207 = arith.constant 3 : index
    %c0_208 = arith.constant 0 : index
    %c32_209 = arith.constant 32 : index
    %297 = vector.load %arg7[%c3_207, %c0_208, %c32_209] : memref<4x5x800xf32, #tpu.memory_space<vmem>>, vector<1x5x32xf32>
    %298 = vector.shape_cast %297 : vector<1x5x32xf32> to vector<5x32xf32>
    %299 = vector.shape_cast %296 : vector<5x32xf32> to vector<1x5x32xf32>
    tpu.vector_store %arg7[%c3_207, %c0_208, %c32_209], %299 {strides = array<i32>} : memref<4x5x800xf32, #tpu.memory_space<vmem>>, vector<1x5x32xf32>,
    %300 = vector.extract_strided_slice %271 {offsets = [1, 0], sizes = [5, 32], strides = [1, 1]} : vector<7x32xf32> to vector<5x32xf32>
    %c3_210 = arith.constant 3 : index
    %c0_211 = arith.constant 0 : index
    %c64_212 = arith.constant 64 : index
    %301 = vector.load %arg7[%c3_210, %c0_211, %c64_212] : memref<4x5x800xf32, #tpu.memory_space<vmem>>, vector<1x5x32xf32>
    %302 = vector.shape_cast %301 : vector<1x5x32xf32> to vector<5x32xf32>
    %303 = vector.shape_cast %300 : vector<5x32xf32> to vector<1x5x32xf32>
    tpu.vector_store %arg7[%c3_210, %c0_211, %c64_212], %303 {strides = array<i32>} : memref<4x5x800xf32, #tpu.memory_space<vmem>>, vector<1x5x32xf32>,
    %304 = vector.extract_strided_slice %265 {offsets = [2, 0], sizes = [5, 32], strides = [1, 1]} : vector<7x32xf32> to vector<5x32xf32>
    %c3_213 = arith.constant 3 : index
    %c0_214 = arith.constant 0 : index
    %c96_215 = arith.constant 96 : index
    %305 = vector.load %arg7[%c3_213, %c0_214, %c96_215] : memref<4x5x800xf32, #tpu.memory_space<vmem>>, vector<1x5x32xf32>
    %306 = vector.shape_cast %305 : vector<1x5x32xf32> to vector<5x32xf32>
    %307 = vector.shape_cast %304 : vector<5x32xf32> to vector<1x5x32xf32>
    tpu.vector_store %arg7[%c3_213, %c0_214, %c96_215], %307 {strides = array<i32>} : memref<4x5x800xf32, #tpu.memory_space<vmem>>, vector<1x5x32xf32>,
    %308 = vector.extract_strided_slice %271 {offsets = [2, 0], sizes = [5, 32], strides = [1, 1]} : vector<7x32xf32> to vector<5x32xf32>
    %c3_216 = arith.constant 3 : index
    %c0_217 = arith.constant 0 : index
    %c128_218 = arith.constant 128 : index
    %309 = vector.load %arg7[%c3_216, %c0_217, %c128_218] : memref<4x5x800xf32, #tpu.memory_space<vmem>>, vector<1x5x32xf32>
    %310 = vector.shape_cast %309 : vector<1x5x32xf32> to vector<5x32xf32>
    %311 = vector.shape_cast %308 : vector<5x32xf32> to vector<1x5x32xf32>
    tpu.vector_store %arg7[%c3_216, %c0_217, %c128_218], %311 {strides = array<i32>} : memref<4x5x800xf32, #tpu.memory_space<vmem>>, vector<1x5x32xf32>,
    %c2_i32_219 = arith.constant 2 : i32
    %312 = arith.muli %c2_i32_219, %arg1 : i32
    %c1_i32_220 = arith.constant 1 : i32
    %313 = arith.addi %312, %c1_i32_220 : i32
    %c1_i32_221 = arith.constant 1 : i32
    %314 = arith.addi %313, %c1_i32_221 : i32
    %c0_222 = arith.constant 0 : index
    %315 = arith.index_cast %314 : i32 to index
    %c0_223 = arith.constant 0 : index
    %c0_224 = arith.constant 0 : index
    %316 = vector.load %arg2[%c0_222, %315, %c0_223, %c0_224] : memref<1x14x7x32xf32, #tpu.memory_space<vmem>>, vector<1x1x7x32xf32>
    %317 = vector.shape_cast %316 : vector<1x1x7x32xf32> to vector<7x32xf32>
    %c2_i32_225 = arith.constant 2 : i32
    %318 = arith.muli %c2_i32_225, %arg1 : i32
    %c1_i32_226 = arith.constant 1 : i32
    %319 = arith.addi %318, %c1_i32_226 : i32
    %c1_i32_227 = arith.constant 1 : i32
    %320 = arith.addi %319, %c1_i32_227 : i32
    %c0_228 = arith.constant 0 : index
    %321 = arith.index_cast %320 : i32 to index
    %c0_229 = arith.constant 0 : index
    %c0_230 = arith.constant 0 : index
    %322 = vector.load %arg3[%c0_228, %321, %c0_229, %c0_230] : memref<1x14x7x32xf32, #tpu.memory_space<vmem>>, vector<1x1x7x32xf32>
    %323 = vector.shape_cast %322 : vector<1x1x7x32xf32> to vector<7x32xf32>
    %324 = vector.extract_strided_slice %317 {offsets = [0, 0], sizes = [5, 32], strides = [1, 1]} : vector<7x32xf32> to vector<5x32xf32>
    %c2_231 = arith.constant 2 : index
    %c0_232 = arith.constant 0 : index
    %c160_233 = arith.constant 160 : index
    %325 = vector.load %arg7[%c2_231, %c0_232, %c160_233] : memref<4x5x800xf32, #tpu.memory_space<vmem>>, vector<1x5x32xf32>
    %326 = vector.shape_cast %325 : vector<1x5x32xf32> to vector<5x32xf32>
    %327 = vector.shape_cast %324 : vector<5x32xf32> to vector<1x5x32xf32>
    tpu.vector_store %arg7[%c2_231, %c0_232, %c160_233], %327 {strides = array<i32>} : memref<4x5x800xf32, #tpu.memory_space<vmem>>, vector<1x5x32xf32>,
    %328 = vector.extract_strided_slice %323 {offsets = [0, 0], sizes = [5, 32], strides = [1, 1]} : vector<7x32xf32> to vector<5x32xf32>
    %c2_234 = arith.constant 2 : index
    %c0_235 = arith.constant 0 : index
    %c192_236 = arith.constant 192 : index
    %329 = vector.load %arg7[%c2_234, %c0_235, %c192_236] : memref<4x5x800xf32, #tpu.memory_space<vmem>>, vector<1x5x32xf32>
    %330 = vector.shape_cast %329 : vector<1x5x32xf32> to vector<5x32xf32>
    %331 = vector.shape_cast %328 : vector<5x32xf32> to vector<1x5x32xf32>
    tpu.vector_store %arg7[%c2_234, %c0_235, %c192_236], %331 {strides = array<i32>} : memref<4x5x800xf32, #tpu.memory_space<vmem>>, vector<1x5x32xf32>,
    %332 = vector.extract_strided_slice %317 {offsets = [1, 0], sizes = [5, 32], strides = [1, 1]} : vector<7x32xf32> to vector<5x32xf32>
    %c2_237 = arith.constant 2 : index
    %c0_238 = arith.constant 0 : index
    %c224_239 = arith.constant 224 : index
    %333 = vector.load %arg7[%c2_237, %c0_238, %c224_239] : memref<4x5x800xf32, #tpu.memory_space<vmem>>, vector<1x5x32xf32>
    %334 = vector.shape_cast %333 : vector<1x5x32xf32> to vector<5x32xf32>
    %335 = vector.shape_cast %332 : vector<5x32xf32> to vector<1x5x32xf32>
    tpu.vector_store %arg7[%c2_237, %c0_238, %c224_239], %335 {strides = array<i32>} : memref<4x5x800xf32, #tpu.memory_space<vmem>>, vector<1x5x32xf32>,
    %336 = vector.extract_strided_slice %323 {offsets = [1, 0], sizes = [5, 32], strides = [1, 1]} : vector<7x32xf32> to vector<5x32xf32>
    %c2_240 = arith.constant 2 : index
    %c0_241 = arith.constant 0 : index
    %c256_242 = arith.constant 256 : index
    %337 = vector.load %arg7[%c2_240, %c0_241, %c256_242] : memref<4x5x800xf32, #tpu.memory_space<vmem>>, vector<1x5x32xf32>
    %338 = vector.shape_cast %337 : vector<1x5x32xf32> to vector<5x32xf32>
    %339 = vector.shape_cast %336 : vector<5x32xf32> to vector<1x5x32xf32>
    tpu.vector_store %arg7[%c2_240, %c0_241, %c256_242], %339 {strides = array<i32>} : memref<4x5x800xf32, #tpu.memory_space<vmem>>, vector<1x5x32xf32>,
    %340 = vector.extract_strided_slice %317 {offsets = [2, 0], sizes = [5, 32], strides = [1, 1]} : vector<7x32xf32> to vector<5x32xf32>
    %c2_243 = arith.constant 2 : index
    %c0_244 = arith.constant 0 : index
    %c288_245 = arith.constant 288 : index
    %341 = vector.load %arg7[%c2_243, %c0_244, %c288_245] : memref<4x5x800xf32, #tpu.memory_space<vmem>>, vector<1x5x32xf32>
    %342 = vector.shape_cast %341 : vector<1x5x32xf32> to vector<5x32xf32>
    %343 = vector.shape_cast %340 : vector<5x32xf32> to vector<1x5x32xf32>
    tpu.vector_store %arg7[%c2_243, %c0_244, %c288_245], %343 {strides = array<i32>} : memref<4x5x800xf32, #tpu.memory_space<vmem>>, vector<1x5x32xf32>,
    %344 = vector.extract_strided_slice %323 {offsets = [0, 0], sizes = [5, 32], strides = [1, 1]} : vector<7x32xf32> to vector<5x32xf32>
    %c3_246 = arith.constant 3 : index
    %c0_247 = arith.constant 0 : index
    %c160_248 = arith.constant 160 : index
    %345 = vector.load %arg7[%c3_246, %c0_247, %c160_248] : memref<4x5x800xf32, #tpu.memory_space<vmem>>, vector<1x5x32xf32>
    %346 = vector.shape_cast %345 : vector<1x5x32xf32> to vector<5x32xf32>
    %347 = vector.shape_cast %344 : vector<5x32xf32> to vector<1x5x32xf32>
    tpu.vector_store %arg7[%c3_246, %c0_247, %c160_248], %347 {strides = array<i32>} : memref<4x5x800xf32, #tpu.memory_space<vmem>>, vector<1x5x32xf32>,
    %348 = vector.extract_strided_slice %317 {offsets = [1, 0], sizes = [5, 32], strides = [1, 1]} : vector<7x32xf32> to vector<5x32xf32>
    %c3_249 = arith.constant 3 : index
    %c0_250 = arith.constant 0 : index
    %c192_251 = arith.constant 192 : index
    %349 = vector.load %arg7[%c3_249, %c0_250, %c192_251] : memref<4x5x800xf32, #tpu.memory_space<vmem>>, vector<1x5x32xf32>
    %350 = vector.shape_cast %349 : vector<1x5x32xf32> to vector<5x32xf32>
    %351 = vector.shape_cast %348 : vector<5x32xf32> to vector<1x5x32xf32>
    tpu.vector_store %arg7[%c3_249, %c0_250, %c192_251], %351 {strides = array<i32>} : memref<4x5x800xf32, #tpu.memory_space<vmem>>, vector<1x5x32xf32>,
    %352 = vector.extract_strided_slice %323 {offsets = [1, 0], sizes = [5, 32], strides = [1, 1]} : vector<7x32xf32> to vector<5x32xf32>
    %c3_252 = arith.constant 3 : index
    %c0_253 = arith.constant 0 : index
    %c224_254 = arith.constant 224 : index
    %353 = vector.load %arg7[%c3_252, %c0_253, %c224_254] : memref<4x5x800xf32, #tpu.memory_space<vmem>>, vector<1x5x32xf32>
    %354 = vector.shape_cast %353 : vector<1x5x32xf32> to vector<5x32xf32>
    %355 = vector.shape_cast %352 : vector<5x32xf32> to vector<1x5x32xf32>
    tpu.vector_store %arg7[%c3_252, %c0_253, %c224_254], %355 {strides = array<i32>} : memref<4x5x800xf32, #tpu.memory_space<vmem>>, vector<1x5x32xf32>,
    %356 = vector.extract_strided_slice %317 {offsets = [2, 0], sizes = [5, 32], strides = [1, 1]} : vector<7x32xf32> to vector<5x32xf32>
    %c3_255 = arith.constant 3 : index
    %c0_256 = arith.constant 0 : index
    %c256_257 = arith.constant 256 : index
    %357 = vector.load %arg7[%c3_255, %c0_256, %c256_257] : memref<4x5x800xf32, #tpu.memory_space<vmem>>, vector<1x5x32xf32>
    %358 = vector.shape_cast %357 : vector<1x5x32xf32> to vector<5x32xf32>
    %359 = vector.shape_cast %356 : vector<5x32xf32> to vector<1x5x32xf32>
    tpu.vector_store %arg7[%c3_255, %c0_256, %c256_257], %359 {strides = array<i32>} : memref<4x5x800xf32, #tpu.memory_space<vmem>>, vector<1x5x32xf32>,
    %360 = vector.extract_strided_slice %323 {offsets = [2, 0], sizes = [5, 32], strides = [1, 1]} : vector<7x32xf32> to vector<5x32xf32>
    %c3_258 = arith.constant 3 : index
    %c0_259 = arith.constant 0 : index
    %c288_260 = arith.constant 288 : index
    %361 = vector.load %arg7[%c3_258, %c0_259, %c288_260] : memref<4x5x800xf32, #tpu.memory_space<vmem>>, vector<1x5x32xf32>
    %362 = vector.shape_cast %361 : vector<1x5x32xf32> to vector<5x32xf32>
    %363 = vector.shape_cast %360 : vector<5x32xf32> to vector<1x5x32xf32>
    tpu.vector_store %arg7[%c3_258, %c0_259, %c288_260], %363 {strides = array<i32>} : memref<4x5x800xf32, #tpu.memory_space<vmem>>, vector<1x5x32xf32>,
    %c2_i32_261 = arith.constant 2 : i32
    %364 = arith.muli %c2_i32_261, %arg1 : i32
    %c1_i32_262 = arith.constant 1 : i32
    %365 = arith.addi %364, %c1_i32_262 : i32
    %c2_i32_263 = arith.constant 2 : i32
    %366 = arith.addi %365, %c2_i32_263 : i32
    %c0_264 = arith.constant 0 : index
    %367 = arith.index_cast %366 : i32 to index
    %c0_265 = arith.constant 0 : index
    %c0_266 = arith.constant 0 : index
    %368 = vector.load %arg2[%c0_264, %367, %c0_265, %c0_266] : memref<1x14x7x32xf32, #tpu.memory_space<vmem>>, vector<1x1x7x32xf32>
    %369 = vector.shape_cast %368 : vector<1x1x7x32xf32> to vector<7x32xf32>
    %c2_i32_267 = arith.constant 2 : i32
    %370 = arith.muli %c2_i32_267, %arg1 : i32
    %c1_i32_268 = arith.constant 1 : i32
    %371 = arith.addi %370, %c1_i32_268 : i32
    %c2_i32_269 = arith.constant 2 : i32
    %372 = arith.addi %371, %c2_i32_269 : i32
    %c0_270 = arith.constant 0 : index
    %373 = arith.index_cast %372 : i32 to index
    %c0_271 = arith.constant 0 : index
    %c0_272 = arith.constant 0 : index
    %374 = vector.load %arg3[%c0_270, %373, %c0_271, %c0_272] : memref<1x14x7x32xf32, #tpu.memory_space<vmem>>, vector<1x1x7x32xf32>
    %375 = vector.shape_cast %374 : vector<1x1x7x32xf32> to vector<7x32xf32>
    %376 = vector.extract_strided_slice %369 {offsets = [0, 0], sizes = [5, 32], strides = [1, 1]} : vector<7x32xf32> to vector<5x32xf32>
    %c2_273 = arith.constant 2 : index
    %c0_274 = arith.constant 0 : index
    %c320_275 = arith.constant 320 : index
    %377 = vector.load %arg7[%c2_273, %c0_274, %c320_275] : memref<4x5x800xf32, #tpu.memory_space<vmem>>, vector<1x5x32xf32>
    %378 = vector.shape_cast %377 : vector<1x5x32xf32> to vector<5x32xf32>
    %379 = vector.shape_cast %376 : vector<5x32xf32> to vector<1x5x32xf32>
    tpu.vector_store %arg7[%c2_273, %c0_274, %c320_275], %379 {strides = array<i32>} : memref<4x5x800xf32, #tpu.memory_space<vmem>>, vector<1x5x32xf32>,
    %380 = vector.extract_strided_slice %375 {offsets = [0, 0], sizes = [5, 32], strides = [1, 1]} : vector<7x32xf32> to vector<5x32xf32>
    %c2_276 = arith.constant 2 : index
    %c0_277 = arith.constant 0 : index
    %c352_278 = arith.constant 352 : index
    %381 = vector.load %arg7[%c2_276, %c0_277, %c352_278] : memref<4x5x800xf32, #tpu.memory_space<vmem>>, vector<1x5x32xf32>
    %382 = vector.shape_cast %381 : vector<1x5x32xf32> to vector<5x32xf32>
    %383 = vector.shape_cast %380 : vector<5x32xf32> to vector<1x5x32xf32>
    tpu.vector_store %arg7[%c2_276, %c0_277, %c352_278], %383 {strides = array<i32>} : memref<4x5x800xf32, #tpu.memory_space<vmem>>, vector<1x5x32xf32>,
    %384 = vector.extract_strided_slice %369 {offsets = [1, 0], sizes = [5, 32], strides = [1, 1]} : vector<7x32xf32> to vector<5x32xf32>
    %c2_279 = arith.constant 2 : index
    %c0_280 = arith.constant 0 : index
    %c384_281 = arith.constant 384 : index
    %385 = vector.load %arg7[%c2_279, %c0_280, %c384_281] : memref<4x5x800xf32, #tpu.memory_space<vmem>>, vector<1x5x32xf32>
    %386 = vector.shape_cast %385 : vector<1x5x32xf32> to vector<5x32xf32>
    %387 = vector.shape_cast %384 : vector<5x32xf32> to vector<1x5x32xf32>
    tpu.vector_store %arg7[%c2_279, %c0_280, %c384_281], %387 {strides = array<i32>} : memref<4x5x800xf32, #tpu.memory_space<vmem>>, vector<1x5x32xf32>,
    %388 = vector.extract_strided_slice %375 {offsets = [1, 0], sizes = [5, 32], strides = [1, 1]} : vector<7x32xf32> to vector<5x32xf32>
    %c2_282 = arith.constant 2 : index
    %c0_283 = arith.constant 0 : index
    %c416_284 = arith.constant 416 : index
    %389 = vector.load %arg7[%c2_282, %c0_283, %c416_284] : memref<4x5x800xf32, #tpu.memory_space<vmem>>, vector<1x5x32xf32>
    %390 = vector.shape_cast %389 : vector<1x5x32xf32> to vector<5x32xf32>
    %391 = vector.shape_cast %388 : vector<5x32xf32> to vector<1x5x32xf32>
    tpu.vector_store %arg7[%c2_282, %c0_283, %c416_284], %391 {strides = array<i32>} : memref<4x5x800xf32, #tpu.memory_space<vmem>>, vector<1x5x32xf32>,
    %392 = vector.extract_strided_slice %369 {offsets = [2, 0], sizes = [5, 32], strides = [1, 1]} : vector<7x32xf32> to vector<5x32xf32>
    %c2_285 = arith.constant 2 : index
    %c0_286 = arith.constant 0 : index
    %c448_287 = arith.constant 448 : index
    %393 = vector.load %arg7[%c2_285, %c0_286, %c448_287] : memref<4x5x800xf32, #tpu.memory_space<vmem>>, vector<1x5x32xf32>
    %394 = vector.shape_cast %393 : vector<1x5x32xf32> to vector<5x32xf32>
    %395 = vector.shape_cast %392 : vector<5x32xf32> to vector<1x5x32xf32>
    tpu.vector_store %arg7[%c2_285, %c0_286, %c448_287], %395 {strides = array<i32>} : memref<4x5x800xf32, #tpu.memory_space<vmem>>, vector<1x5x32xf32>,
    %396 = vector.extract_strided_slice %375 {offsets = [0, 0], sizes = [5, 32], strides = [1, 1]} : vector<7x32xf32> to vector<5x32xf32>
    %c3_288 = arith.constant 3 : index
    %c0_289 = arith.constant 0 : index
    %c320_290 = arith.constant 320 : index
    %397 = vector.load %arg7[%c3_288, %c0_289, %c320_290] : memref<4x5x800xf32, #tpu.memory_space<vmem>>, vector<1x5x32xf32>
    %398 = vector.shape_cast %397 : vector<1x5x32xf32> to vector<5x32xf32>
    %399 = vector.shape_cast %396 : vector<5x32xf32> to vector<1x5x32xf32>
    tpu.vector_store %arg7[%c3_288, %c0_289, %c320_290], %399 {strides = array<i32>} : memref<4x5x800xf32, #tpu.memory_space<vmem>>, vector<1x5x32xf32>,
    %400 = vector.extract_strided_slice %369 {offsets = [1, 0], sizes = [5, 32], strides = [1, 1]} : vector<7x32xf32> to vector<5x32xf32>
    %c3_291 = arith.constant 3 : index
    %c0_292 = arith.constant 0 : index
    %c352_293 = arith.constant 352 : index
    %401 = vector.load %arg7[%c3_291, %c0_292, %c352_293] : memref<4x5x800xf32, #tpu.memory_space<vmem>>, vector<1x5x32xf32>
    %402 = vector.shape_cast %401 : vector<1x5x32xf32> to vector<5x32xf32>
    %403 = vector.shape_cast %400 : vector<5x32xf32> to vector<1x5x32xf32>
    tpu.vector_store %arg7[%c3_291, %c0_292, %c352_293], %403 {strides = array<i32>} : memref<4x5x800xf32, #tpu.memory_space<vmem>>, vector<1x5x32xf32>,
    %404 = vector.extract_strided_slice %375 {offsets = [1, 0], sizes = [5, 32], strides = [1, 1]} : vector<7x32xf32> to vector<5x32xf32>
    %c3_294 = arith.constant 3 : index
    %c0_295 = arith.constant 0 : index
    %c384_296 = arith.constant 384 : index
    %405 = vector.load %arg7[%c3_294, %c0_295, %c384_296] : memref<4x5x800xf32, #tpu.memory_space<vmem>>, vector<1x5x32xf32>
    %406 = vector.shape_cast %405 : vector<1x5x32xf32> to vector<5x32xf32>
    %407 = vector.shape_cast %404 : vector<5x32xf32> to vector<1x5x32xf32>
    tpu.vector_store %arg7[%c3_294, %c0_295, %c384_296], %407 {strides = array<i32>} : memref<4x5x800xf32, #tpu.memory_space<vmem>>, vector<1x5x32xf32>,
    %408 = vector.extract_strided_slice %369 {offsets = [2, 0], sizes = [5, 32], strides = [1, 1]} : vector<7x32xf32> to vector<5x32xf32>
    %c3_297 = arith.constant 3 : index
    %c0_298 = arith.constant 0 : index
    %c416_299 = arith.constant 416 : index
    %409 = vector.load %arg7[%c3_297, %c0_298, %c416_299] : memref<4x5x800xf32, #tpu.memory_space<vmem>>, vector<1x5x32xf32>
    %410 = vector.shape_cast %409 : vector<1x5x32xf32> to vector<5x32xf32>
    %411 = vector.shape_cast %408 : vector<5x32xf32> to vector<1x5x32xf32>
    tpu.vector_store %arg7[%c3_297, %c0_298, %c416_299], %411 {strides = array<i32>} : memref<4x5x800xf32, #tpu.memory_space<vmem>>, vector<1x5x32xf32>,
    %412 = vector.extract_strided_slice %375 {offsets = [2, 0], sizes = [5, 32], strides = [1, 1]} : vector<7x32xf32> to vector<5x32xf32>
    %c3_300 = arith.constant 3 : index
    %c0_301 = arith.constant 0 : index
    %c448_302 = arith.constant 448 : index
    %413 = vector.load %arg7[%c3_300, %c0_301, %c448_302] : memref<4x5x800xf32, #tpu.memory_space<vmem>>, vector<1x5x32xf32>
    %414 = vector.shape_cast %413 : vector<1x5x32xf32> to vector<5x32xf32>
    %415 = vector.shape_cast %412 : vector<5x32xf32> to vector<1x5x32xf32>
    tpu.vector_store %arg7[%c3_300, %c0_301, %c448_302], %415 {strides = array<i32>} : memref<4x5x800xf32, #tpu.memory_space<vmem>>, vector<1x5x32xf32>,
    %c2_i32_303 = arith.constant 2 : i32
    %416 = arith.muli %c2_i32_303, %arg1 : i32
    %c1_i32_304 = arith.constant 1 : i32
    %417 = arith.addi %416, %c1_i32_304 : i32
    %c3_i32_305 = arith.constant 3 : i32
    %418 = arith.addi %417, %c3_i32_305 : i32
    %c0_306 = arith.constant 0 : index
    %419 = arith.index_cast %418 : i32 to index
    %c0_307 = arith.constant 0 : index
    %c0_308 = arith.constant 0 : index
    %420 = vector.load %arg2[%c0_306, %419, %c0_307, %c0_308] : memref<1x14x7x32xf32, #tpu.memory_space<vmem>>, vector<1x1x7x32xf32>
    %421 = vector.shape_cast %420 : vector<1x1x7x32xf32> to vector<7x32xf32>
    %c2_i32_309 = arith.constant 2 : i32
    %422 = arith.muli %c2_i32_309, %arg1 : i32
    %c1_i32_310 = arith.constant 1 : i32
    %423 = arith.addi %422, %c1_i32_310 : i32
    %c3_i32_311 = arith.constant 3 : i32
    %424 = arith.addi %423, %c3_i32_311 : i32
    %c0_312 = arith.constant 0 : index
    %425 = arith.index_cast %424 : i32 to index
    %c0_313 = arith.constant 0 : index
    %c0_314 = arith.constant 0 : index
    %426 = vector.load %arg3[%c0_312, %425, %c0_313, %c0_314] : memref<1x14x7x32xf32, #tpu.memory_space<vmem>>, vector<1x1x7x32xf32>
    %427 = vector.shape_cast %426 : vector<1x1x7x32xf32> to vector<7x32xf32>
    %428 = vector.extract_strided_slice %421 {offsets = [0, 0], sizes = [5, 32], strides = [1, 1]} : vector<7x32xf32> to vector<5x32xf32>
    %c2_315 = arith.constant 2 : index
    %c0_316 = arith.constant 0 : index
    %c480_317 = arith.constant 480 : index
    %429 = vector.load %arg7[%c2_315, %c0_316, %c480_317] : memref<4x5x800xf32, #tpu.memory_space<vmem>>, vector<1x5x32xf32>
    %430 = vector.shape_cast %429 : vector<1x5x32xf32> to vector<5x32xf32>
    %431 = vector.shape_cast %428 : vector<5x32xf32> to vector<1x5x32xf32>
    tpu.vector_store %arg7[%c2_315, %c0_316, %c480_317], %431 {strides = array<i32>} : memref<4x5x800xf32, #tpu.memory_space<vmem>>, vector<1x5x32xf32>,
    %432 = vector.extract_strided_slice %427 {offsets = [0, 0], sizes = [5, 32], strides = [1, 1]} : vector<7x32xf32> to vector<5x32xf32>
    %c2_318 = arith.constant 2 : index
    %c0_319 = arith.constant 0 : index
    %c512_320 = arith.constant 512 : index
    %433 = vector.load %arg7[%c2_318, %c0_319, %c512_320] : memref<4x5x800xf32, #tpu.memory_space<vmem>>, vector<1x5x32xf32>
    %434 = vector.shape_cast %433 : vector<1x5x32xf32> to vector<5x32xf32>
    %435 = vector.shape_cast %432 : vector<5x32xf32> to vector<1x5x32xf32>
    tpu.vector_store %arg7[%c2_318, %c0_319, %c512_320], %435 {strides = array<i32>} : memref<4x5x800xf32, #tpu.memory_space<vmem>>, vector<1x5x32xf32>,
    %436 = vector.extract_strided_slice %421 {offsets = [1, 0], sizes = [5, 32], strides = [1, 1]} : vector<7x32xf32> to vector<5x32xf32>
    %c2_321 = arith.constant 2 : index
    %c0_322 = arith.constant 0 : index
    %c544_323 = arith.constant 544 : index
    %437 = vector.load %arg7[%c2_321, %c0_322, %c544_323] : memref<4x5x800xf32, #tpu.memory_space<vmem>>, vector<1x5x32xf32>
    %438 = vector.shape_cast %437 : vector<1x5x32xf32> to vector<5x32xf32>
    %439 = vector.shape_cast %436 : vector<5x32xf32> to vector<1x5x32xf32>
    tpu.vector_store %arg7[%c2_321, %c0_322, %c544_323], %439 {strides = array<i32>} : memref<4x5x800xf32, #tpu.memory_space<vmem>>, vector<1x5x32xf32>,
    %440 = vector.extract_strided_slice %427 {offsets = [1, 0], sizes = [5, 32], strides = [1, 1]} : vector<7x32xf32> to vector<5x32xf32>
    %c2_324 = arith.constant 2 : index
    %c0_325 = arith.constant 0 : index
    %c576_326 = arith.constant 576 : index
    %441 = vector.load %arg7[%c2_324, %c0_325, %c576_326] : memref<4x5x800xf32, #tpu.memory_space<vmem>>, vector<1x5x32xf32>
    %442 = vector.shape_cast %441 : vector<1x5x32xf32> to vector<5x32xf32>
    %443 = vector.shape_cast %440 : vector<5x32xf32> to vector<1x5x32xf32>
    tpu.vector_store %arg7[%c2_324, %c0_325, %c576_326], %443 {strides = array<i32>} : memref<4x5x800xf32, #tpu.memory_space<vmem>>, vector<1x5x32xf32>,
    %444 = vector.extract_strided_slice %421 {offsets = [2, 0], sizes = [5, 32], strides = [1, 1]} : vector<7x32xf32> to vector<5x32xf32>
    %c2_327 = arith.constant 2 : index
    %c0_328 = arith.constant 0 : index
    %c608_329 = arith.constant 608 : index
    %445 = vector.load %arg7[%c2_327, %c0_328, %c608_329] : memref<4x5x800xf32, #tpu.memory_space<vmem>>, vector<1x5x32xf32>
    %446 = vector.shape_cast %445 : vector<1x5x32xf32> to vector<5x32xf32>
    %447 = vector.shape_cast %444 : vector<5x32xf32> to vector<1x5x32xf32>
    tpu.vector_store %arg7[%c2_327, %c0_328, %c608_329], %447 {strides = array<i32>} : memref<4x5x800xf32, #tpu.memory_space<vmem>>, vector<1x5x32xf32>,
    %448 = vector.extract_strided_slice %427 {offsets = [0, 0], sizes = [5, 32], strides = [1, 1]} : vector<7x32xf32> to vector<5x32xf32>
    %c3_330 = arith.constant 3 : index
    %c0_331 = arith.constant 0 : index
    %c480_332 = arith.constant 480 : index
    %449 = vector.load %arg7[%c3_330, %c0_331, %c480_332] : memref<4x5x800xf32, #tpu.memory_space<vmem>>, vector<1x5x32xf32>
    %450 = vector.shape_cast %449 : vector<1x5x32xf32> to vector<5x32xf32>
    %451 = vector.shape_cast %448 : vector<5x32xf32> to vector<1x5x32xf32>
    tpu.vector_store %arg7[%c3_330, %c0_331, %c480_332], %451 {strides = array<i32>} : memref<4x5x800xf32, #tpu.memory_space<vmem>>, vector<1x5x32xf32>,
    %452 = vector.extract_strided_slice %421 {offsets = [1, 0], sizes = [5, 32], strides = [1, 1]} : vector<7x32xf32> to vector<5x32xf32>
    %c3_333 = arith.constant 3 : index
    %c0_334 = arith.constant 0 : index
    %c512_335 = arith.constant 512 : index
    %453 = vector.load %arg7[%c3_333, %c0_334, %c512_335] : memref<4x5x800xf32, #tpu.memory_space<vmem>>, vector<1x5x32xf32>
    %454 = vector.shape_cast %453 : vector<1x5x32xf32> to vector<5x32xf32>
    %455 = vector.shape_cast %452 : vector<5x32xf32> to vector<1x5x32xf32>
    tpu.vector_store %arg7[%c3_333, %c0_334, %c512_335], %455 {strides = array<i32>} : memref<4x5x800xf32, #tpu.memory_space<vmem>>, vector<1x5x32xf32>,
    %456 = vector.extract_strided_slice %427 {offsets = [1, 0], sizes = [5, 32], strides = [1, 1]} : vector<7x32xf32> to vector<5x32xf32>
    %c3_336 = arith.constant 3 : index
    %c0_337 = arith.constant 0 : index
    %c544_338 = arith.constant 544 : index
    %457 = vector.load %arg7[%c3_336, %c0_337, %c544_338] : memref<4x5x800xf32, #tpu.memory_space<vmem>>, vector<1x5x32xf32>
    %458 = vector.shape_cast %457 : vector<1x5x32xf32> to vector<5x32xf32>
    %459 = vector.shape_cast %456 : vector<5x32xf32> to vector<1x5x32xf32>
    tpu.vector_store %arg7[%c3_336, %c0_337, %c544_338], %459 {strides = array<i32>} : memref<4x5x800xf32, #tpu.memory_space<vmem>>, vector<1x5x32xf32>,
    %460 = vector.extract_strided_slice %421 {offsets = [2, 0], sizes = [5, 32], strides = [1, 1]} : vector<7x32xf32> to vector<5x32xf32>
    %c3_339 = arith.constant 3 : index
    %c0_340 = arith.constant 0 : index
    %c576_341 = arith.constant 576 : index
    %461 = vector.load %arg7[%c3_339, %c0_340, %c576_341] : memref<4x5x800xf32, #tpu.memory_space<vmem>>, vector<1x5x32xf32>
    %462 = vector.shape_cast %461 : vector<1x5x32xf32> to vector<5x32xf32>
    %463 = vector.shape_cast %460 : vector<5x32xf32> to vector<1x5x32xf32>
    tpu.vector_store %arg7[%c3_339, %c0_340, %c576_341], %463 {strides = array<i32>} : memref<4x5x800xf32, #tpu.memory_space<vmem>>, vector<1x5x32xf32>,
    %464 = vector.extract_strided_slice %427 {offsets = [2, 0], sizes = [5, 32], strides = [1, 1]} : vector<7x32xf32> to vector<5x32xf32>
    %c3_342 = arith.constant 3 : index
    %c0_343 = arith.constant 0 : index
    %c608_344 = arith.constant 608 : index
    %465 = vector.load %arg7[%c3_342, %c0_343, %c608_344] : memref<4x5x800xf32, #tpu.memory_space<vmem>>, vector<1x5x32xf32>
    %466 = vector.shape_cast %465 : vector<1x5x32xf32> to vector<5x32xf32>
    %467 = vector.shape_cast %464 : vector<5x32xf32> to vector<1x5x32xf32>
    tpu.vector_store %arg7[%c3_342, %c0_343, %c608_344], %467 {strides = array<i32>} : memref<4x5x800xf32, #tpu.memory_space<vmem>>, vector<1x5x32xf32>,
    %c2_i32_345 = arith.constant 2 : i32
    %468 = arith.muli %c2_i32_345, %arg1 : i32
    %c1_i32_346 = arith.constant 1 : i32
    %469 = arith.addi %468, %c1_i32_346 : i32
    %c4_i32_347 = arith.constant 4 : i32
    %470 = arith.addi %469, %c4_i32_347 : i32
    %c0_348 = arith.constant 0 : index
    %471 = arith.index_cast %470 : i32 to index
    %c0_349 = arith.constant 0 : index
    %c0_350 = arith.constant 0 : index
    %472 = vector.load %arg2[%c0_348, %471, %c0_349, %c0_350] : memref<1x14x7x32xf32, #tpu.memory_space<vmem>>, vector<1x1x7x32xf32>
    %473 = vector.shape_cast %472 : vector<1x1x7x32xf32> to vector<7x32xf32>
    %c2_i32_351 = arith.constant 2 : i32
    %474 = arith.muli %c2_i32_351, %arg1 : i32
    %c1_i32_352 = arith.constant 1 : i32
    %475 = arith.addi %474, %c1_i32_352 : i32
    %c4_i32_353 = arith.constant 4 : i32
    %476 = arith.addi %475, %c4_i32_353 : i32
    %c0_354 = arith.constant 0 : index
    %477 = arith.index_cast %476 : i32 to index
    %c0_355 = arith.constant 0 : index
    %c0_356 = arith.constant 0 : index
    %478 = vector.load %arg3[%c0_354, %477, %c0_355, %c0_356] : memref<1x14x7x32xf32, #tpu.memory_space<vmem>>, vector<1x1x7x32xf32>
    %479 = vector.shape_cast %478 : vector<1x1x7x32xf32> to vector<7x32xf32>
    %480 = vector.extract_strided_slice %473 {offsets = [0, 0], sizes = [5, 32], strides = [1, 1]} : vector<7x32xf32> to vector<5x32xf32>
    %c2_357 = arith.constant 2 : index
    %c0_358 = arith.constant 0 : index
    %c640_359 = arith.constant 640 : index
    %481 = vector.load %arg7[%c2_357, %c0_358, %c640_359] : memref<4x5x800xf32, #tpu.memory_space<vmem>>, vector<1x5x32xf32>
    %482 = vector.shape_cast %481 : vector<1x5x32xf32> to vector<5x32xf32>
    %483 = vector.shape_cast %480 : vector<5x32xf32> to vector<1x5x32xf32>
    tpu.vector_store %arg7[%c2_357, %c0_358, %c640_359], %483 {strides = array<i32>} : memref<4x5x800xf32, #tpu.memory_space<vmem>>, vector<1x5x32xf32>,
    %484 = vector.extract_strided_slice %479 {offsets = [0, 0], sizes = [5, 32], strides = [1, 1]} : vector<7x32xf32> to vector<5x32xf32>
    %c2_360 = arith.constant 2 : index
    %c0_361 = arith.constant 0 : index
    %c672_362 = arith.constant 672 : index
    %485 = vector.load %arg7[%c2_360, %c0_361, %c672_362] : memref<4x5x800xf32, #tpu.memory_space<vmem>>, vector<1x5x32xf32>
    %486 = vector.shape_cast %485 : vector<1x5x32xf32> to vector<5x32xf32>
    %487 = vector.shape_cast %484 : vector<5x32xf32> to vector<1x5x32xf32>
    tpu.vector_store %arg7[%c2_360, %c0_361, %c672_362], %487 {strides = array<i32>} : memref<4x5x800xf32, #tpu.memory_space<vmem>>, vector<1x5x32xf32>,
    %488 = vector.extract_strided_slice %473 {offsets = [1, 0], sizes = [5, 32], strides = [1, 1]} : vector<7x32xf32> to vector<5x32xf32>
    %c2_363 = arith.constant 2 : index
    %c0_364 = arith.constant 0 : index
    %c704_365 = arith.constant 704 : index
    %489 = vector.load %arg7[%c2_363, %c0_364, %c704_365] : memref<4x5x800xf32, #tpu.memory_space<vmem>>, vector<1x5x32xf32>
    %490 = vector.shape_cast %489 : vector<1x5x32xf32> to vector<5x32xf32>
    %491 = vector.shape_cast %488 : vector<5x32xf32> to vector<1x5x32xf32>
    tpu.vector_store %arg7[%c2_363, %c0_364, %c704_365], %491 {strides = array<i32>} : memref<4x5x800xf32, #tpu.memory_space<vmem>>, vector<1x5x32xf32>,
    %492 = vector.extract_strided_slice %479 {offsets = [1, 0], sizes = [5, 32], strides = [1, 1]} : vector<7x32xf32> to vector<5x32xf32>
    %c2_366 = arith.constant 2 : index
    %c0_367 = arith.constant 0 : index
    %c736_368 = arith.constant 736 : index
    %493 = vector.load %arg7[%c2_366, %c0_367, %c736_368] : memref<4x5x800xf32, #tpu.memory_space<vmem>>, vector<1x5x32xf32>
    %494 = vector.shape_cast %493 : vector<1x5x32xf32> to vector<5x32xf32>
    %495 = vector.shape_cast %492 : vector<5x32xf32> to vector<1x5x32xf32>
    tpu.vector_store %arg7[%c2_366, %c0_367, %c736_368], %495 {strides = array<i32>} : memref<4x5x800xf32, #tpu.memory_space<vmem>>, vector<1x5x32xf32>,
    %496 = vector.extract_strided_slice %473 {offsets = [2, 0], sizes = [5, 32], strides = [1, 1]} : vector<7x32xf32> to vector<5x32xf32>
    %c2_369 = arith.constant 2 : index
    %c0_370 = arith.constant 0 : index
    %c768_371 = arith.constant 768 : index
    %497 = vector.load %arg7[%c2_369, %c0_370, %c768_371] : memref<4x5x800xf32, #tpu.memory_space<vmem>>, vector<1x5x32xf32>
    %498 = vector.shape_cast %497 : vector<1x5x32xf32> to vector<5x32xf32>
    %499 = vector.shape_cast %496 : vector<5x32xf32> to vector<1x5x32xf32>
    tpu.vector_store %arg7[%c2_369, %c0_370, %c768_371], %499 {strides = array<i32>} : memref<4x5x800xf32, #tpu.memory_space<vmem>>, vector<1x5x32xf32>,
    %500 = vector.extract_strided_slice %479 {offsets = [0, 0], sizes = [5, 32], strides = [1, 1]} : vector<7x32xf32> to vector<5x32xf32>
    %c3_372 = arith.constant 3 : index
    %c0_373 = arith.constant 0 : index
    %c640_374 = arith.constant 640 : index
    %501 = vector.load %arg7[%c3_372, %c0_373, %c640_374] : memref<4x5x800xf32, #tpu.memory_space<vmem>>, vector<1x5x32xf32>
    %502 = vector.shape_cast %501 : vector<1x5x32xf32> to vector<5x32xf32>
    %503 = vector.shape_cast %500 : vector<5x32xf32> to vector<1x5x32xf32>
    tpu.vector_store %arg7[%c3_372, %c0_373, %c640_374], %503 {strides = array<i32>} : memref<4x5x800xf32, #tpu.memory_space<vmem>>, vector<1x5x32xf32>,
    %504 = vector.extract_strided_slice %473 {offsets = [1, 0], sizes = [5, 32], strides = [1, 1]} : vector<7x32xf32> to vector<5x32xf32>
    %c3_375 = arith.constant 3 : index
    %c0_376 = arith.constant 0 : index
    %c672_377 = arith.constant 672 : index
    %505 = vector.load %arg7[%c3_375, %c0_376, %c672_377] : memref<4x5x800xf32, #tpu.memory_space<vmem>>, vector<1x5x32xf32>
    %506 = vector.shape_cast %505 : vector<1x5x32xf32> to vector<5x32xf32>
    %507 = vector.shape_cast %504 : vector<5x32xf32> to vector<1x5x32xf32>
    tpu.vector_store %arg7[%c3_375, %c0_376, %c672_377], %507 {strides = array<i32>} : memref<4x5x800xf32, #tpu.memory_space<vmem>>, vector<1x5x32xf32>,
    %508 = vector.extract_strided_slice %479 {offsets = [1, 0], sizes = [5, 32], strides = [1, 1]} : vector<7x32xf32> to vector<5x32xf32>
    %c3_378 = arith.constant 3 : index
    %c0_379 = arith.constant 0 : index
    %c704_380 = arith.constant 704 : index
    %509 = vector.load %arg7[%c3_378, %c0_379, %c704_380] : memref<4x5x800xf32, #tpu.memory_space<vmem>>, vector<1x5x32xf32>
    %510 = vector.shape_cast %509 : vector<1x5x32xf32> to vector<5x32xf32>
    %511 = vector.shape_cast %508 : vector<5x32xf32> to vector<1x5x32xf32>
    tpu.vector_store %arg7[%c3_378, %c0_379, %c704_380], %511 {strides = array<i32>} : memref<4x5x800xf32, #tpu.memory_space<vmem>>, vector<1x5x32xf32>,
    %512 = vector.extract_strided_slice %473 {offsets = [2, 0], sizes = [5, 32], strides = [1, 1]} : vector<7x32xf32> to vector<5x32xf32>
    %c3_381 = arith.constant 3 : index
    %c0_382 = arith.constant 0 : index
    %c736_383 = arith.constant 736 : index
    %513 = vector.load %arg7[%c3_381, %c0_382, %c736_383] : memref<4x5x800xf32, #tpu.memory_space<vmem>>, vector<1x5x32xf32>
    %514 = vector.shape_cast %513 : vector<1x5x32xf32> to vector<5x32xf32>
    %515 = vector.shape_cast %512 : vector<5x32xf32> to vector<1x5x32xf32>
    tpu.vector_store %arg7[%c3_381, %c0_382, %c736_383], %515 {strides = array<i32>} : memref<4x5x800xf32, #tpu.memory_space<vmem>>, vector<1x5x32xf32>,
    %516 = vector.extract_strided_slice %479 {offsets = [2, 0], sizes = [5, 32], strides = [1, 1]} : vector<7x32xf32> to vector<5x32xf32>
    %c3_384 = arith.constant 3 : index
    %c0_385 = arith.constant 0 : index
    %c768_386 = arith.constant 768 : index
    %517 = vector.load %arg7[%c3_384, %c0_385, %c768_386] : memref<4x5x800xf32, #tpu.memory_space<vmem>>, vector<1x5x32xf32>
    %518 = vector.shape_cast %517 : vector<1x5x32xf32> to vector<5x32xf32>
    %519 = vector.shape_cast %516 : vector<5x32xf32> to vector<1x5x32xf32>
    tpu.vector_store %arg7[%c3_384, %c0_385, %c768_386], %519 {strides = array<i32>} : memref<4x5x800xf32, #tpu.memory_space<vmem>>, vector<1x5x32xf32>,
    %c0_387 = arith.constant 0 : index
    %c0_388 = arith.constant 0 : index
    %c0_389 = arith.constant 0 : index
    %520 = vector.load %arg7[%c0_387, %c0_388, %c0_389] : memref<4x5x800xf32, #tpu.memory_space<vmem>>, vector<1x5x800xf32>
    %521 = vector.shape_cast %520 : vector<1x5x800xf32> to vector<5x800xf32>
    %522 = arith.truncf %521 : vector<5x800xf32> to vector<5x800xbf16>
    %c0_390 = arith.constant 0 : index
    %c0_391 = arith.constant 0 : index
    %523 = vector.load %arg4[%c0_390, %c0_391] : memref<800x64xbf16, #tpu.memory_space<vmem>>, vector<800x64xbf16>
    %cst = arith.constant dense<0.000000e+00> : vector<5x64xf32>
    %524 = tpu.matmul %522, %523, %cst {dimension_numbers = #tpu.dot_dimension_numbers<[1], [0], [0], [1], [0, 0, 1, 1], [], []>} : vector<5x800xbf16>, vector<800x64xbf16>, vector<5x64xf32> -> vector<5x64xf32>
    %c1_392 = arith.constant 1 : index
    %c0_393 = arith.constant 0 : index
    %c0_394 = arith.constant 0 : index
    %525 = vector.load %arg7[%c1_392, %c0_393, %c0_394] : memref<4x5x800xf32, #tpu.memory_space<vmem>>, vector<1x5x800xf32>
    %526 = vector.shape_cast %525 : vector<1x5x800xf32> to vector<5x800xf32>
    %527 = arith.truncf %526 : vector<5x800xf32> to vector<5x800xbf16>
    %c0_395 = arith.constant 0 : index
    %c0_396 = arith.constant 0 : index
    %528 = vector.load %arg4[%c0_395, %c0_396] : memref<800x64xbf16, #tpu.memory_space<vmem>>, vector<800x64xbf16>
    %cst_397 = arith.constant dense<0.000000e+00> : vector<5x64xf32>
    %529 = tpu.matmul %527, %528, %cst_397 {dimension_numbers = #tpu.dot_dimension_numbers<[1], [0], [0], [1], [0, 0, 1, 1], [], []>} : vector<5x800xbf16>, vector<800x64xbf16>, vector<5x64xf32> -> vector<5x64xf32>
    %530 = arith.maximumf %524, %529 : vector<5x64xf32>
    %c2_398 = arith.constant 2 : index
    %c0_399 = arith.constant 0 : index
    %c0_400 = arith.constant 0 : index
    %531 = vector.load %arg7[%c2_398, %c0_399, %c0_400] : memref<4x5x800xf32, #tpu.memory_space<vmem>>, vector<1x5x800xf32>
    %532 = vector.shape_cast %531 : vector<1x5x800xf32> to vector<5x800xf32>
    %533 = arith.truncf %532 : vector<5x800xf32> to vector<5x800xbf16>
    %c0_401 = arith.constant 0 : index
    %c0_402 = arith.constant 0 : index
    %534 = vector.load %arg4[%c0_401, %c0_402] : memref<800x64xbf16, #tpu.memory_space<vmem>>, vector<800x64xbf16>
    %cst_403 = arith.constant dense<0.000000e+00> : vector<5x64xf32>
    %535 = tpu.matmul %533, %534, %cst_403 {dimension_numbers = #tpu.dot_dimension_numbers<[1], [0], [0], [1], [0, 0, 1, 1], [], []>} : vector<5x800xbf16>, vector<800x64xbf16>, vector<5x64xf32> -> vector<5x64xf32>
    %c3_404 = arith.constant 3 : index
    %c0_405 = arith.constant 0 : index
    %c0_406 = arith.constant 0 : index
    %536 = vector.load %arg7[%c3_404, %c0_405, %c0_406] : memref<4x5x800xf32, #tpu.memory_space<vmem>>, vector<1x5x800xf32>
    %537 = vector.shape_cast %536 : vector<1x5x800xf32> to vector<5x800xf32>
    %538 = arith.truncf %537 : vector<5x800xf32> to vector<5x800xbf16>
    %c0_407 = arith.constant 0 : index
    %c0_408 = arith.constant 0 : index
    %539 = vector.load %arg4[%c0_407, %c0_408] : memref<800x64xbf16, #tpu.memory_space<vmem>>, vector<800x64xbf16>
    %cst_409 = arith.constant dense<0.000000e+00> : vector<5x64xf32>
    %540 = tpu.matmul %538, %539, %cst_409 {dimension_numbers = #tpu.dot_dimension_numbers<[1], [0], [0], [1], [0, 0, 1, 1], [], []>} : vector<5x800xbf16>, vector<800x64xbf16>, vector<5x64xf32> -> vector<5x64xf32>
    %541 = arith.maximumf %535, %540 : vector<5x64xf32>
    %542 = arith.maximumf %530, %541 : vector<5x64xf32>
    %c0_410 = arith.constant 0 : index
    %c0_411 = arith.constant 0 : index
    %543 = vector.load %arg5[%c0_410, %c0_411] : memref<1x64xf32, #tpu.memory_space<vmem>>, vector<1x64xf32>
    %544 = vector.broadcast %543 : vector<1x64xf32> to vector<5x64xf32>
    %545 = arith.addf %542, %544 : vector<5x64xf32>
    %cst_412 = arith.constant 0.000000e+00 : f32
    %546 = vector.broadcast %cst_412 : f32 to vector<5x64xf32>
    %547 = arith.maximumf %545, %546 : vector<5x64xf32>
    %c0_413 = arith.constant 0 : index
    %c0_414 = arith.constant 0 : index
    %c0_415 = arith.constant 0 : index
    %c0_416 = arith.constant 0 : index
    %548 = vector.load %arg6[%c0_413, %c0_414, %c0_415, %c0_416] : memref<1x1x5x64xf32, #tpu.memory_space<vmem>>, vector<1x1x5x64xf32>
    %549 = vector.shape_cast %548 : vector<1x1x5x64xf32> to vector<5x64xf32>
    %550 = vector.shape_cast %547 : vector<5x64xf32> to vector<1x1x5x64xf32>
    tpu.vector_store %arg6[%c0_413, %c0_414, %c0_415, %c0_416], %550 {strides = array<i32>} : memref<1x1x5x64xf32, #tpu.memory_space<vmem>>, vector<1x1x5x64xf32>,
    return
  }
  func.func @transform_0(%arg0: i32, %arg1: i32) -> (i32, i32, i32, i32) {
    %c0_i32 = arith.constant 0 : i32
    %c0_i32_0 = arith.constant 0 : i32
    %c0_i32_1 = arith.constant 0 : i32
    %c0_i32_2 = arith.constant 0 : i32
    return %arg0, %c0_i32, %c0_i32_0, %c0_i32_1 : i32, i32, i32, i32
  }
  func.func @transform_1(%arg0: i32, %arg1: i32) -> (i32, i32, i32, i32) {
    %c0_i32 = arith.constant 0 : i32
    %c0_i32_0 = arith.constant 0 : i32
    %c0_i32_1 = arith.constant 0 : i32
    %c0_i32_2 = arith.constant 0 : i32
    return %arg0, %c0_i32, %c0_i32_0, %c0_i32_1 : i32, i32, i32, i32
  }
  func.func @transform_2(%arg0: i32, %arg1: i32) -> (i32, i32) {
    %c0_i32 = arith.constant 0 : i32
    %c0_i32_0 = arith.constant 0 : i32
    %c0_i32_1 = arith.constant 0 : i32
    return %c0_i32, %c0_i32_0 : i32, i32
  }
  func.func @transform_3(%arg0: i32, %arg1: i32) -> (i32, i32) {
    %c0_i32 = arith.constant 0 : i32
    %c0_i32_0 = arith.constant 0 : i32
    %c0_i32_1 = arith.constant 0 : i32
    return %c0_i32, %c0_i32_0 : i32, i32
  }
  func.func @transform_4(%arg0: i32, %arg1: i32) -> (i32, i32, i32, i32) {
    %c0_i32 = arith.constant 0 : i32
    %c0_i32_0 = arith.constant 0 : i32
    %c0_i32_1 = arith.constant 0 : i32
    return %arg0, %arg1, %c0_i32, %c0_i32_0 : i32, i32, i32, i32
  }
}

module attributes {stable_mosaic.version = 11 : i64} {
  func.func @_fc_head_kernel(%arg0: i32, %arg1: memref<2x1600xbf16, #tpu.memory_space<vmem>>, %arg2: memref<1600x200xbf16, #tpu.memory_space<vmem>>, %arg3: memref<1x200xf32, #tpu.memory_space<vmem>>, %arg4: memref<200x100xbf16, #tpu.memory_space<vmem>>, %arg5: memref<1x100xf32, #tpu.memory_space<vmem>>, %arg6: memref<100x128xbf16, #tpu.memory_space<vmem>>, %arg7: memref<1x128xf32, #tpu.memory_space<vmem>>, %arg8: memref<2x128xf32, #tpu.memory_space<vmem>>) attributes {dimension_semantics = [#tpu.dimension_semantics<parallel>], iteration_bounds = array<i64: 1>, scalar_prefetch = 0 : i64, scratch_operands = 0 : i64, tpu.core_type = #tpu.core_type<tc>, window_params = [{transform_indices = @transform_0, window_bounds = array<i64: 2, 1600>}, {pipeline_mode = #tpu.pipeline_mode<synchronous>, transform_indices = @transform_1, window_bounds = array<i64: 1600, 200>}, {pipeline_mode = #tpu.pipeline_mode<synchronous>, transform_indices = @transform_2, window_bounds = array<i64: 1, 200>}, {pipeline_mode = #tpu.pipeline_mode<synchronous>, transform_indices = @transform_3, window_bounds = array<i64: 200, 100>}, {pipeline_mode = #tpu.pipeline_mode<synchronous>, transform_indices = @transform_4, window_bounds = array<i64: 1, 100>}, {pipeline_mode = #tpu.pipeline_mode<synchronous>, transform_indices = @transform_5, window_bounds = array<i64: 100, 128>}, {pipeline_mode = #tpu.pipeline_mode<synchronous>, transform_indices = @transform_6, window_bounds = array<i64: 1, 128>}, {transform_indices = @transform_7, window_bounds = array<i64: 2, 128>}]} {
    %c0 = arith.constant 0 : index
    %c0_0 = arith.constant 0 : index
    %0 = vector.load %arg1[%c0, %c0_0] : memref<2x1600xbf16, #tpu.memory_space<vmem>>, vector<2x1600xbf16>
    %c0_1 = arith.constant 0 : index
    %c0_2 = arith.constant 0 : index
    %1 = vector.load %arg2[%c0_1, %c0_2] : memref<1600x200xbf16, #tpu.memory_space<vmem>>, vector<1600x200xbf16>
    %cst = arith.constant dense<0.000000e+00> : vector<2x200xf32>
    %2 = tpu.matmul %0, %1, %cst {dimension_numbers = #tpu.dot_dimension_numbers<[1], [0], [0], [1], [0, 0, 1, 1], [], []>} : vector<2x1600xbf16>, vector<1600x200xbf16>, vector<2x200xf32> -> vector<2x200xf32>
    %c0_3 = arith.constant 0 : index
    %c0_4 = arith.constant 0 : index
    %3 = vector.load %arg3[%c0_3, %c0_4] : memref<1x200xf32, #tpu.memory_space<vmem>>, vector<1x200xf32>
    %4 = vector.broadcast %3 : vector<1x200xf32> to vector<2x200xf32>
    %5 = arith.addf %2, %4 : vector<2x200xf32>
    %cst_5 = arith.constant 0.000000e+00 : f32
    %6 = vector.broadcast %cst_5 : f32 to vector<2x200xf32>
    %7 = arith.maximumf %5, %6 : vector<2x200xf32>
    %8 = arith.truncf %7 : vector<2x200xf32> to vector<2x200xbf16>
    %c0_6 = arith.constant 0 : index
    %c0_7 = arith.constant 0 : index
    %9 = vector.load %arg4[%c0_6, %c0_7] : memref<200x100xbf16, #tpu.memory_space<vmem>>, vector<200x100xbf16>
    %cst_8 = arith.constant dense<0.000000e+00> : vector<2x100xf32>
    %10 = tpu.matmul %8, %9, %cst_8 {dimension_numbers = #tpu.dot_dimension_numbers<[1], [0], [0], [1], [0, 0, 1, 1], [], []>} : vector<2x200xbf16>, vector<200x100xbf16>, vector<2x100xf32> -> vector<2x100xf32>
    %c0_9 = arith.constant 0 : index
    %c0_10 = arith.constant 0 : index
    %11 = vector.load %arg5[%c0_9, %c0_10] : memref<1x100xf32, #tpu.memory_space<vmem>>, vector<1x100xf32>
    %12 = vector.broadcast %11 : vector<1x100xf32> to vector<2x100xf32>
    %13 = arith.addf %10, %12 : vector<2x100xf32>
    %cst_11 = arith.constant 0.000000e+00 : f32
    %14 = vector.broadcast %cst_11 : f32 to vector<2x100xf32>
    %15 = arith.maximumf %13, %14 : vector<2x100xf32>
    %16 = arith.truncf %15 : vector<2x100xf32> to vector<2x100xbf16>
    %c0_12 = arith.constant 0 : index
    %c0_13 = arith.constant 0 : index
    %17 = vector.load %arg6[%c0_12, %c0_13] : memref<100x128xbf16, #tpu.memory_space<vmem>>, vector<100x128xbf16>
    %cst_14 = arith.constant dense<0.000000e+00> : vector<2x128xf32>
    %18 = tpu.matmul %16, %17, %cst_14 {dimension_numbers = #tpu.dot_dimension_numbers<[1], [0], [0], [1], [0, 0, 1, 1], [], []>} : vector<2x100xbf16>, vector<100x128xbf16>, vector<2x128xf32> -> vector<2x128xf32>
    %c0_15 = arith.constant 0 : index
    %c0_16 = arith.constant 0 : index
    %19 = vector.load %arg7[%c0_15, %c0_16] : memref<1x128xf32, #tpu.memory_space<vmem>>, vector<1x128xf32>
    %20 = vector.broadcast %19 : vector<1x128xf32> to vector<2x128xf32>
    %21 = arith.addf %18, %20 : vector<2x128xf32>
    %c0_17 = arith.constant 0 : index
    %c0_18 = arith.constant 0 : index
    %22 = vector.load %arg8[%c0_17, %c0_18] : memref<2x128xf32, #tpu.memory_space<vmem>>, vector<2x128xf32>
    tpu.vector_store %arg8[%c0_17, %c0_18], %21 {strides = array<i32>} : memref<2x128xf32, #tpu.memory_space<vmem>>, vector<2x128xf32>,
    return
  }
  func.func @transform_0(%arg0: i32) -> (i32, i32) {
    %c0_i32 = arith.constant 0 : i32
    %c0_i32_0 = arith.constant 0 : i32
    return %arg0, %c0_i32 : i32, i32
  }
  func.func @transform_1(%arg0: i32) -> (i32, i32) {
    %c0_i32 = arith.constant 0 : i32
    %c0_i32_0 = arith.constant 0 : i32
    %c0_i32_1 = arith.constant 0 : i32
    return %c0_i32, %c0_i32_0 : i32, i32
  }
  func.func @transform_2(%arg0: i32) -> (i32, i32) {
    %c0_i32 = arith.constant 0 : i32
    %c0_i32_0 = arith.constant 0 : i32
    %c0_i32_1 = arith.constant 0 : i32
    return %c0_i32, %c0_i32_0 : i32, i32
  }
  func.func @transform_3(%arg0: i32) -> (i32, i32) {
    %c0_i32 = arith.constant 0 : i32
    %c0_i32_0 = arith.constant 0 : i32
    %c0_i32_1 = arith.constant 0 : i32
    return %c0_i32, %c0_i32_0 : i32, i32
  }
  func.func @transform_4(%arg0: i32) -> (i32, i32) {
    %c0_i32 = arith.constant 0 : i32
    %c0_i32_0 = arith.constant 0 : i32
    %c0_i32_1 = arith.constant 0 : i32
    return %c0_i32, %c0_i32_0 : i32, i32
  }
  func.func @transform_5(%arg0: i32) -> (i32, i32) {
    %c0_i32 = arith.constant 0 : i32
    %c0_i32_0 = arith.constant 0 : i32
    %c0_i32_1 = arith.constant 0 : i32
    return %c0_i32, %c0_i32_0 : i32, i32
  }
  func.func @transform_6(%arg0: i32) -> (i32, i32) {
    %c0_i32 = arith.constant 0 : i32
    %c0_i32_0 = arith.constant 0 : i32
    %c0_i32_1 = arith.constant 0 : i32
    return %c0_i32, %c0_i32_0 : i32, i32
  }
  func.func @transform_7(%arg0: i32) -> (i32, i32) {
    %c0_i32 = arith.constant 0 : i32
    %c0_i32_0 = arith.constant 0 : i32
    return %arg0, %c0_i32 : i32, i32
  }
}

</mosaic_0001>

<bundles_post_ra>
// kernel: model_forward.3
= control target key start
LH: loop header
LB: loop body
LE: loop exit
PB: predicated region body
PF: predicated region fallthrough
CT: control target
= control target key end

     0   :  { %s1931_s15 = smov 0   ;;  %s1933_s16 = smov 0   ;;  %s2714_s0 = inlined_call_operand.vmem [shape: f32[2,32,16,3], index: 0, kind: input, shape index: {}]   ;;  %s2715_s1 = inlined_call_operand.vmem [shape: f32[2,32,16,3], index: 1, kind: input, shape index: {}]   ;;  %s2716_s2 = inlined_call_operand.vmem [shape: bf16[75,32], index: 2, kind: input, shape index: {}]   ;;  %s2717_s3 = inlined_call_operand.vmem [shape: f32[1,32], index: 3, kind: input, shape index: {}]   ;;  %s2718_s4 = inlined_call_operand.vmem [shape: f32[2,14,14,32], index: 4, kind: output, shape index: {}]  }
   0x1   :  { %s1935_s17 = smov 0   ;;  %s1937_s18 = smov 0  }
   0x2   :  { %s1939_s19 = smov 0  }
   0x3 LB: > { %s23_s20 = sadd.s32 1, %s1869_s17  ;;  %s26_s21 = sadd.s32 1, %s1873_s18  ;;  %s1877_s19 = sphi %s1939_s19, %s14_s19   ;;  %s1873_s18 = sphi %s1937_s18, %s2855_s18   ;;  %s1869_s17 = sphi %s1935_s17, %s2854_s17   ;;  %s1865_s16 = sphi %s1933_s16, %s2853_s16   ;;  %s1861_s15 = sphi %s1931_s15, %s2852_s15  }
   0x4   : > { %p24_p0 = scmp.ge.s32.totalorder %s23_s20, 14  ;;  %p1596_p1 = scmp.ge.s32.totalorder %s1877_s19, 1 }
   0x5   : > { %p186_p2 = scmp.lt.s32.totalorder %s1877_s19, 29 }
   0x6   : > { %s2857_s20 = smov (%p24_p0, %s23_s20), 0  ;;  %s2859_s21 = smov (!%p24_p0, %s26_s21), %s1873_s18 }
   0x7   : > { %p187_p3 = pnand %p1596_p1, %p186_p2  ;;  %p28_p4 = scmp.ge.s32.totalorder %s2859_s21, 2 }
   0x8   : > { %p221_p5 = scmp.lt.s32.totalorder (!%p187_p3), %s1865_s16, 1  ;;  %s1675_s22 = sshll.u32 (!%p187_p3), %s1861_s15, 5 }
   0x9   : > { %s2861_s21 = smov (%p28_p4, %s2859_s21), 0  ;;  %190 = sbr.rel (%p187_p3) target bundleno = 732 (0x2dc), region = 36 }
   0xa   : > { %s1879_s6 = smov (!%p187_p3), 3   ;;  %s1880_s7 = smov (!%p187_p3), 6  }
   0xb   : > { %s1881_s8 = smov (!%p187_p3), 9   ;;  %s1882_s9 = smov (!%p187_p3), 12  }
   0xc   : > { %s1883_s10 = smov (!%p187_p3), 15   ;;  %s1884_s11 = smov (!%p187_p3), 18  }
   0xd   : > { %s1885_s12 = smov (!%p187_p3), 21   ;;  %s1886_s13 = smov (!%p187_p3), 24  }
   0xe   : > { %s2863_s16 = smov (!%p221_p5, %s1865_s16), 1  ;;  %vm249_vm0 = vcmask 23552   ;;  %vm251_vm1 = vcmask 21504   ;;  %s1887_s14 = smov 27   ;;  %vm261_vm2 = vcmask 48152   ;;  %vm273_vm3 = vcmask 72753  }
   0xf   : > { %s1673_s23 = sshll.u32 %s2863_s16, 9  ;;  %s1890_s24 = smov 36   ;;  %vm263_vm4 = vcmask 46104   ;;  %vm275_vm5 = vcmask 71728   ;;  %vm283_vm6 = vcmask 97353   ;;  %vm285_vm7 = vcmask 96328  }
  0x10   : > { %s230_s26 = scalar_lea.vmem %s2715_s1, %s1673_s23  ;;  %s225_s29 = scalar_lea.vmem %s2714_s0, %s1673_s23  ;;  %vm2726_vm8 = vcmask 121954   ;;  %vm2725_vm9 = vcmask 121952   ;;  %vm306_vm10 = vcmask 48153   ;;  %vm308_vm11 = vcmask 47128   ;;  %v1834_v60 = vld [vmem:[%s2716_s2 + $0x20] sm:$0x3f]  }
  0x11   : > { %s1973_s30 = scalar_lea.vmem %s230_s26, %s1675_s22  ;;  %s1975_s5 = scalar_lea.vmem %s225_s29, %s1675_s22  ;;  %vm2730_vm12 = vcmask 97354   ;;  %vm2729_vm13 = vcmask 97352   ;;  %vm352_vm14 = vcmask 146552   ;;  %vm354_vm15 = vcmask 144504  }
  0x12   : > { %v247_v0 = vld [vmem:[%s1973_s30] sm:$0xff]  ;;  %v248_v2 = vld [vmem:[%s1973_s30 + $0x8] sm:$0xff]  ;;  %v1984_v4 = vld [vmem:[%s1975_s5 + $0x10] sm:$0xff]  ;;  %s1888_s22 = smov 30   ;;  %s1889_s23 = smov 33   ;;  %v1901_v61 = vmov 65535  }
  0x13   : > { %v244_v1 = vld [vmem:[%s1975_s5] sm:$0xff]  ;;  %255 = vrot.lane.b32.xlu0 %v247_v0, %s1879_s6  ;;  %v245_v3 = vld [vmem:[%s1975_s5 + $0x8] sm:$0xff]  ;;  %298 = vst.msk [vmem:[#allocation2 + $0x10] sm:$0xff] %vm249_vm0, %v247_v0  ;;  %v1990_v5 = vld [vmem:[%s1975_s5 + $0x18] sm:$0xff]  ;;  %s1891_s25 = smov 39   ;;  %s1892_s26 = smov 42  }
  0x14   : > { %267 = vrot.lane.b32.xlu1 %v244_v1, %s1880_s7  ;;  %250 = vst.msk [vmem:[#allocation2] sm:$0xff] %vm249_vm0, %v244_v1  ;;  %v1993_v6 = vld [vmem:[%s1973_s30 + $0x10] sm:$0xff]  ;;  %v1996_v7 = vld [vmem:[%s1973_s30 + $0x18] sm:$0xff]  ;;  %765 = vst.msk [vmem:[#allocation2 + $0x20] sm:$0xff] %vm249_vm0, %v1984_v4  ;;  %s1893_s27 = smov 45   ;;  %s2719_s28 = smov 48  }
  0x15   : > { %299 = vst.msk [vmem:[#allocation2 + $0x18] sm:$0x3f] %vm251_vm1, %v248_v2  ;;  %252 = vst.msk [vmem:[#allocation2 + $0x8] sm:$0x3f] %vm251_vm1, %v245_v3  ;;  %v2062_v8 = vld [vmem:[%s1975_s5 + $0x20] sm:$0xff]  ;;  %v2065_v9 = vld [vmem:[%s1975_s5 + $0x28] sm:$0xff] }
  0x16   : > { %804 = vst.msk [vmem:[#allocation2 + $0x30] sm:$0xff] %vm249_vm0, %v1993_v6  ;;  %v2072_v10 = vld [vmem:[%s1973_s30 + $0x20] sm:$0xff]  ;;  %v2079_v11 = vld [vmem:[%s1973_s30 + $0x28] sm:$0xff]  ;;  %v2114_v12 = vld [vmem:[%s1975_s5 + $0x30] sm:$0xff]  ;;  %s2721_s29 = smov 51   ;;  %vm2728_vm0 = vcmask 171152  }
  0x17   : > { %805 = vst.msk [vmem:[#allocation2 + $0x38] sm:$0x3f] %vm251_vm1, %v1996_v7  ;;  %766 = vst.msk [vmem:[#allocation2 + $0x28] sm:$0x3f] %vm251_vm1, %v1990_v5  ;;  %257 = vrot.lane.b32.xlu0 %v248_v2, %s1879_s6  ;;  %v2117_v13 = vld [vmem:[%s1975_s5 + $0x38] sm:$0xff]  ;;  %v2124_v14 = vld [vmem:[%s1973_s30 + $0x30] sm:$0xff] }
  0x18   : > { %269 = vrot.lane.b32.xlu1 %v245_v3, %s1880_s7  ;;  %v2127_v15 = vld [vmem:[%s1973_s30 + $0x38] sm:$0xff]  ;;  %vm2727_vm1 = vcmask 169104   ;;  %v2184_v34 = vld [vmem:[%s1975_s5 + $0x40] sm:$0xff]  ;;  %v2187_v35 = vld [vmem:[%s1975_s5 + $0x48] sm:$0xff]  ;;  %p233_p6 = scmp.lt.s32.totalorder %s1861_s15, 13 }
  0x19   : > { %v2196_v38 = vld [vmem:[%s1973_s30 + $0x40] sm:$0xff]  ;;  %v2199_v39 = vld [vmem:[%s1973_s30 + $0x48] sm:$0xff] }
  0x1a   : > { %s2865_s15 = smov (!%p233_p6, %s1861_s15), 13 }
  0x1b   : > { %277 = vrot.lane.b32.xlu0 %v247_v0, %s1881_s8 }
  0x1c   : > { %279 = vrot.lane.b32.xlu1 %v248_v2, %s1881_s8 }
  0x1f   : > { %287 = vrot.lane.b32.xlu0 %v244_v1, %s1882_s9 }
  0x20   : > { %289 = vrot.lane.b32.xlu1 %v245_v3, %s1882_s9 }
  0x23   : > { %300 = vrot.lane.b32.xlu0 %v244_v1, %s1879_s6 }
  0x24   : > { %302 = vrot.lane.b32.xlu1 %v245_v3, %s1879_s6 }
  0x27   : > { %310 = vrot.lane.b32.xlu0 %v247_v0, %s1880_s7 }
  0x28   : > { %312 = vrot.lane.b32.xlu1 %v248_v2, %s1880_s7 }
  0x2b   : > { %318 = vrot.lane.b32.xlu0 %v244_v1, %s1881_s8  ;;  %v1902_v1 = vmov 0.0  }
  0x2c   : > { %320 = vrot.lane.b32.xlu1 %v245_v3, %s1881_s8  ;;  %1710 = vmatprep.subr.bf16.mxu0 %v1902_v1 }
  0x2d   : > { %1724 = vmatprep.subr.bf16.mxu1 %v1902_v1 }
  0x2f   : > { %328 = vrot.lane.b32.xlu0 %v247_v0, %s1882_s9 }
  0x30   : > { %330 = vrot.lane.b32.xlu1 %v248_v2, %s1882_s9 }
  0x33   : > { %346 = vrot.lane.b32.xlu0 %v1984_v4, %s1883_s10 }
  0x34   : > { %348 = vrot.lane.b32.xlu1 %v1990_v5, %s1883_s10 }
  0x37   : > { %358 = vrot.lane.b32.xlu0 %v1993_v6, %s1884_s11 }
  0x38   : > { %360 = vrot.lane.b32.xlu1 %v1996_v7, %s1884_s11 }
  0x3b   : > { %368 = vrot.lane.b32.xlu0 %v1984_v4, %s1885_s12 }
  0x3c   : > { %370 = vrot.lane.b32.xlu1 %v1990_v5, %s1885_s12 }
  0x3f   : > { %378 = vrot.lane.b32.xlu0 %v1993_v6, %s1886_s13 }
  0x40   : > { %380 = vrot.lane.b32.xlu1 %v1996_v7, %s1886_s13 }
  0x43   : > { %388 = vrot.lane.b32.xlu0 %v1984_v4, %s1887_s14 }
  0x44   : > { %390 = vrot.lane.b32.xlu1 %v1990_v5, %s1887_s14 }
  0x47   : > { %398 = vrot.lane.b32.xlu0 %v1993_v6, %s1883_s10 }
  0x48   : > { %400 = vrot.lane.b32.xlu1 %v1996_v7, %s1883_s10 }
  0x4b   : > { %406 = vrot.lane.b32.xlu0 %v1984_v4, %s1884_s11 }
  0x4c   : > { %408 = vrot.lane.b32.xlu1 %v1990_v5, %s1884_s11 }
  0x4f   : > { %416 = vrot.lane.b32.xlu0 %v1993_v6, %s1885_s12 }
  0x50   : > { %418 = vrot.lane.b32.xlu1 %v1996_v7, %s1885_s12 }
  0x53   : > { %424 = vrot.lane.b32.xlu0 %v1984_v4, %s1886_s13 }
  0x54   : > { %426 = vrot.lane.b32.xlu1 %v1990_v5, %s1886_s13 }
  0x57   : > { %434 = vrot.lane.b32.xlu0 %v1993_v6, %s1887_s14 }
  0x58   : > { %436 = vrot.lane.b32.xlu1 %v1996_v7, %s1887_s14 }
  0x5b   : > { %452 = vrot.lane.b32.xlu0 %v2062_v8, %s1888_s22 }
  0x5c   : > { %454 = vrot.lane.b32.xlu1 %v2065_v9, %s1888_s22 }
  0x5f   : > { %464 = vrot.lane.b32.xlu0 %v2072_v10, %s1889_s23 }
  0x60   : > { %504 = vrot.lane.b32.xlu1 %v2072_v10, %s1888_s22 }
  0x63   : > { %506 = vrot.lane.b32.xlu0 %v2079_v11, %s1888_s22 }
  0x64   : > { %466 = vrot.lane.b32.xlu1 %v2079_v11, %s1889_s23 }
  0x67   : > { %512 = vrot.lane.b32.xlu0 %v2062_v8, %s1889_s23 }
  0x68   : > { %514 = vrot.lane.b32.xlu1 %v2065_v9, %s1889_s23 }
  0x6b   : > { %474 = vrot.lane.b32.xlu0 %v2062_v8, %s1890_s24 }
  0x6c   : > { %476 = vrot.lane.b32.xlu1 %v2065_v9, %s1890_s24 }
  0x6f   : > { %522 = vrot.lane.b32.xlu0 %v2072_v10, %s1890_s24 }
  0x70   : > { %524 = vrot.lane.b32.xlu1 %v2079_v11, %s1890_s24 }
  0x73   : > { %484 = vrot.lane.b32.xlu0 %v2072_v10, %s1891_s25 }
  0x74   : > { %486 = vrot.lane.b32.xlu1 %v2079_v11, %s1891_s25 }
  0x77   : > { %530 = vrot.lane.b32.xlu0 %v2062_v8, %s1891_s25 }
  0x78   : > { %532 = vrot.lane.b32.xlu1 %v2065_v9, %s1891_s25 }
  0x7b   : > { %494 = vrot.lane.b32.xlu0 %v2062_v8, %s1892_s26 }
  0x7c   : > { %496 = vrot.lane.b32.xlu1 %v2065_v9, %s1892_s26 }
  0x7f   : > { %540 = vrot.lane.b32.xlu0 %v2072_v10, %s1892_s26 }
  0x80   : > { %542 = vrot.lane.b32.xlu1 %v2079_v11, %s1892_s26 }
  0x83   : > { %558 = vrot.lane.b32.xlu0 %v2114_v12, %s1893_s27 }
  0x84   : > { %560 = vrot.lane.b32.xlu1 %v2117_v13, %s1893_s27 }
  0x85   : > { %v256_v16 = vpop.permute.xlu0 %255 }
  0x86   : > { %v268_v17 = vpop.permute.xlu1 %267  ;;  %262 = vst.msk [vmem:[#allocation2] sm:$0xff] %vm261_vm2, %v256_v16  ;;  %v2281_v16 = vld [vmem:[%s2716_s2 + $0x18] sm:$0xff]  }
  0x87   : > { %274 = vst.msk [vmem:[#allocation2 - $0x1] sm:$0xfe] %vm273_vm3, %v268_v17  ;;  %610 = vrot.lane.b32.xlu0 %v2124_v14, %s1893_s27 }
  0x88   : > { %612 = vrot.lane.b32.xlu1 %v2127_v15, %s1893_s27 }
  0x89   : > { %v258_v18 = vpop.permute.xlu0 %257 }
  0x8a   : > { %v270_v19 = vpop.permute.xlu1 %269  ;;  %264 = vst.msk [vmem:[#allocation2 + $0x8] sm:$0x3f] %vm263_vm4, %v258_v18 }
  0x8b   : > { %276 = vst.msk [vmem:[#allocation2 + $0x7] sm:$0x7f] %vm275_vm5, %v270_v19  ;;  %570 = vrot.lane.b32.xlu0 %v2124_v14, %s2719_s28  ;;  %v2296_v19 = vld [vmem:[%s2716_s2 + $0x10] sm:$0xff]  }
  0x8c   : > { %572 = vrot.lane.b32.xlu1 %v2127_v15, %s2719_s28 }
  0x8d   : > { %v278_v20 = vpop.permute.xlu0 %277 }
  0x8e   : > { %v280_v21 = vpop.permute.xlu1 %279  ;;  %284 = vst.msk [vmem:[#allocation2 - $0x1] sm:$0xfe] %vm283_vm6, %v278_v20 }
  0x8f   : > { %286 = vst.msk [vmem:[#allocation2 + $0x7] sm:$0x7f] %vm285_vm7, %v280_v21  ;;  %618 = vrot.lane.b32.xlu0 %v2114_v12, %s2719_s28 }
  0x90   : > { %620 = vrot.lane.b32.xlu1 %v2117_v13, %s2719_s28  ;;  %s2723_s28 = smov 54  }
  0x91   : > { %v288_v22 = vpop.permute.xlu0 %287 }
  0x92   : > { %v290_v23 = vpop.permute.xlu1 %289  ;;  %294 = vst.msk [vmem:[#allocation2 - $0x2] sm:$0xfc] %vm2726_vm8, %v288_v22  ;;  %v2311_v22 = vld [vmem:[%s2716_s2 + $0x8] sm:$0xff]  }
  0x93   : > { %296 = vst.msk [vmem:[#allocation2 + $0x6] sm:$0xff] %vm2725_vm9, %v290_v23  ;;  %580 = vrot.lane.b32.xlu0 %v2114_v12, %s2721_s29 }
  0x94   : > { %582 = vrot.lane.b32.xlu1 %v2117_v13, %s2721_s29 }
  0x95   : > { %v301_v24 = vpop.permute.xlu0 %300 }
  0x96   : > { %v303_v25 = vpop.permute.xlu1 %302  ;;  %307 = vst.msk [vmem:[#allocation2 + $0xf] sm:$0xfe] %vm306_vm10, %v301_v24 }
  0x97   : > { %309 = vst.msk [vmem:[#allocation2 + $0x17] sm:$0x7f] %vm308_vm11, %v303_v25  ;;  %628 = vrot.lane.b32.xlu0 %v2124_v14, %s2721_s29  ;;  %v2326_v25 = vld [vmem:[%s2716_s2] sm:$0xff]  }
  0x98   : > { %630 = vrot.lane.b32.xlu1 %v2127_v15, %s2721_s29  ;;  %s1897_s29 = smov 57  }
  0x99   : > { %v311_v26 = vpop.permute.xlu0 %310 }
  0x9a   : > { %v313_v27 = vpop.permute.xlu1 %312  ;;  %316 = vst.msk [vmem:[#allocation2 + $0xf] sm:$0xfe] %vm273_vm3, %v311_v26 }
  0x9b   : > { %317 = vst.msk [vmem:[#allocation2 + $0x17] sm:$0x7f] %vm275_vm5, %v313_v27  ;;  %590 = vrot.lane.b32.xlu0 %v2124_v14, %s2723_s28 }
  0x9c   : > { %592 = vrot.lane.b32.xlu1 %v2127_v15, %s2723_s28 }
  0x9d   : > { %v319_v28 = vpop.permute.xlu0 %318 }
  0x9e   : > { %v321_v29 = vpop.permute.xlu1 %320  ;;  %325 = vst.msk [vmem:[#allocation2 + $0xe] sm:$0xfc] %vm2730_vm12, %v319_v28  ;;  %vm2739_vm12 = vcmask 244952  }
  0x9f   : > { %327 = vst.msk [vmem:[#allocation2 + $0x16] sm:$0xff] %vm2729_vm13, %v321_v29  ;;  %636 = vrot.lane.b32.xlu0 %v2114_v12, %s2723_s28  ;;  %vm2740_vm13 = vcmask 244954  }
  0xa0   : > { %638 = vrot.lane.b32.xlu1 %v2117_v13, %s2723_s28  ;;  %s2731_s28 = smov 60  }
  0xa1   : > { %v329_v30 = vpop.permute.xlu0 %328 }
  0xa2   : > { %v331_v31 = vpop.permute.xlu1 %330  ;;  %334 = vst.msk [vmem:[#allocation2 + $0xe] sm:$0xfc] %vm2726_vm8, %v329_v30  ;;  %vm2743_vm8 = vcmask 194728  }
  0xa3   : > { %335 = vst.msk [vmem:[#allocation2 + $0x16] sm:$0xff] %vm2725_vm9, %v331_v31  ;;  %600 = vrot.lane.b32.xlu0 %v2114_v12, %s1897_s29  ;;  %vm2744_vm9 = vcmask 195753  }
  0xa4   : > { %602 = vrot.lane.b32.xlu1 %v2117_v13, %s1897_s29 }
  0xa5   : > { %v347_v32 = vpop.permute.xlu0 %346 }
  0xa6   : > { %v349_v33 = vpop.permute.xlu1 %348  ;;  %353 = vst.msk [vmem:[#allocation2] sm:$0xff] %vm352_vm14, %v347_v32 }
  0xa7   : > { %355 = vst.msk [vmem:[#allocation2 + $0x8] sm:$0x3f] %vm354_vm15, %v349_v33  ;;  %646 = vrot.lane.b32.xlu0 %v2124_v14, %s1897_s29 }
  0xa8   : > { %648 = vrot.lane.b32.xlu1 %v2127_v15, %s1897_s29 }
  0xa9   : > { %v359_v36 = vpop.permute.xlu0 %358 }
  0xaa   : > { %v361_v37 = vpop.permute.xlu1 %360  ;;  %365 = vst.msk [vmem:[#allocation2] sm:$0xff] %vm2728_vm0, %v359_v36  ;;  %vm2733_vm0 = vcmask 219328  }
  0xab   : > { %367 = vst.msk [vmem:[#allocation2 + $0x8] sm:$0x3f] %vm2727_vm1, %v361_v37  ;;  %664 = vrot.lane.b32.xlu0 %v2184_v34, %s2731_s28  ;;  %vm2734_vm1 = vcmask 220353  }
  0xac   : > { %666 = vrot.lane.b32.xlu1 %v2187_v35, %s2731_s28 }
  0xad   : > { %v369_v40 = vpop.permute.xlu0 %368 }
  0xae   : > { %v371_v41 = vpop.permute.xlu1 %370  ;;  %375 = vst.msk [vmem:[#allocation2 - $0x1] sm:$0xfe] %vm2744_vm9, %v369_v40 }
  0xaf   : > { %377 = vst.msk [vmem:[#allocation2 + $0x7] sm:$0x7f] %vm2743_vm8, %v371_v41  ;;  %716 = vrot.lane.b32.xlu0 %v2196_v38, %s2731_s28 }
  0xb0   : > { %718 = vrot.lane.b32.xlu1 %v2199_v39, %s2731_s28  ;;  %s2741_s28 = smov 63  }
  0xb1   : > { %v379_v42 = vpop.permute.xlu0 %378 }
  0xb2   : > { %v381_v43 = vpop.permute.xlu1 %380  ;;  %385 = vst.msk [vmem:[#allocation2 - $0x1] sm:$0xfe] %vm2734_vm1, %v379_v42  ;;  %vm2736_vm1 = vcmask 170128  }
  0xb3   : > { %387 = vst.msk [vmem:[#allocation2 + $0x7] sm:$0x7f] %vm2733_vm0, %v381_v43  ;;  %769 = vrot.lane.b32.xlu0 %v1993_v6, %s1879_s6  ;;  %vm2735_vm0 = vcmask 171153  }
  0xb4   : > { %771 = vrot.lane.b32.xlu1 %v1996_v7, %s1879_s6 }
  0xb5   : > { %v389_v44 = vpop.permute.xlu0 %388 }
  0xb6   : > { %v391_v45 = vpop.permute.xlu1 %390  ;;  %395 = vst.msk [vmem:[#allocation2 - $0x2] sm:$0xfc] %vm2740_vm13, %v389_v44 }
  0xb7   : > { %397 = vst.msk [vmem:[#allocation2 + $0x6] sm:$0xff] %vm2739_vm12, %v391_v45  ;;  %806 = vrot.lane.b32.xlu0 %v1984_v4, %s1879_s6 }
  0xb8   : > { %808 = vrot.lane.b32.xlu1 %v1990_v5, %s1879_s6  ;;  %s1900_s6 = smov 66  }
  0xb9   : > { %v399_v46 = vpop.permute.xlu0 %398 }
  0xba   : > { %v401_v47 = vpop.permute.xlu1 %400  ;;  %404 = vst.msk [vmem:[#allocation2 + $0x10] sm:$0xff] %vm352_vm14, %v399_v46 }
  0xbb   : > { %405 = vst.msk [vmem:[#allocation2 + $0x18] sm:$0x3f] %vm354_vm15, %v401_v47  ;;  %676 = vrot.lane.b32.xlu0 %v2196_v38, %s2741_s28 }
  0xbc   : > { %678 = vrot.lane.b32.xlu1 %v2199_v39, %s2741_s28 }
  0xbd   : > { %v407_v48 = vpop.permute.xlu0 %406 }
  0xbe   : > { %v409_v49 = vpop.permute.xlu1 %408  ;;  %413 = vst.msk [vmem:[#allocation2 + $0xf] sm:$0xfe] %vm2735_vm0, %v407_v48  ;;  %vm2738_vm0 = vcmask 220354  }
  0xbf   : > { %415 = vst.msk [vmem:[#allocation2 + $0x17] sm:$0x7f] %vm2736_vm1, %v409_v49  ;;  %724 = vrot.lane.b32.xlu0 %v2184_v34, %s2741_s28  ;;  %vm2737_vm1 = vcmask 220352  }
  0xc0   : > { %726 = vrot.lane.b32.xlu1 %v2187_v35, %s2741_s28  ;;  %s1905_s28 = smov 72  }
  0xc1   : > { %v417_v50 = vpop.permute.xlu0 %416 }
  0xc2   : > { %v419_v51 = vpop.permute.xlu1 %418  ;;  %422 = vst.msk [vmem:[#allocation2 + $0xf] sm:$0xfe] %vm2744_vm9, %v417_v50  ;;  %vm2745_vm9 = vcmask 292104  }
  0xc3   : > { %423 = vst.msk [vmem:[#allocation2 + $0x17] sm:$0x7f] %vm2743_vm8, %v419_v51  ;;  %779 = vrot.lane.b32.xlu0 %v1984_v4, %s1880_s7  ;;  %vm1241_vm8 = vcmask 1045504  }
  0xc4   : > { %781 = vrot.lane.b32.xlu1 %v1990_v5, %s1880_s7 }
  0xc5   : > { %v425_v52 = vpop.permute.xlu0 %424 }
  0xc6   : > { %v427_v53 = vpop.permute.xlu1 %426  ;;  %431 = vst.msk [vmem:[#allocation2 + $0xe] sm:$0xfc] %vm2738_vm0, %v425_v52  ;;  %vm2751_vm0 = vcmask 267504  }
  0xc7   : > { %433 = vst.msk [vmem:[#allocation2 + $0x16] sm:$0xff] %vm2737_vm1, %v427_v53  ;;  %814 = vrot.lane.b32.xlu0 %v1993_v6, %s1880_s7  ;;  %vm458_vm1 = vcmask 269552  }
  0xc8   : > { %816 = vrot.lane.b32.xlu1 %v1996_v7, %s1880_s7 }
  0xc9   : > { %v435_v54 = vpop.permute.xlu0 %434 }
  0xca   : > { %v437_v55 = vpop.permute.xlu1 %436  ;;  %440 = vst.msk [vmem:[#allocation2 + $0xe] sm:$0xfc] %vm2740_vm13, %v435_v54  ;;  %vm1240_vm13 = vcmask 1044480  }
  0xcb   : > { %441 = vst.msk [vmem:[#allocation2 + $0x16] sm:$0xff] %vm2739_vm12, %v437_v55  ;;  %686 = vrot.lane.b32.xlu0 %v2184_v34, %s1900_s6  ;;  %vm2746_vm12 = vcmask 294152   ;;  %v1242_v62 = vsel %vm1240_vm13, 4294967295, %v1901_v61  ;;  %vm2747_vm13 = vcmask 293128  }
  0xcc   : > { %688 = vrot.lane.b32.xlu1 %v2187_v35, %s1900_s6  ;;  %v1243_v63 = vsel %vm1241_vm8, %v1242_v62, 0  ;;  %vm2748_vm8 = vcmask 294153  }
  0xcd   : > { %v453_v56 = vpop.permute.xlu0 %452  ;;  %v2264_v0 = vand.u32 %v1834_v60, %v1243_v63 }
  0xce   : > { %v455_v57 = vpop.permute.xlu1 %454  ;;  %459 = vst.msk [vmem:[#allocation2] sm:$0xff] %vm458_vm1, %v453_v56 }
  0xcf   : > { %461 = vst.msk [vmem:[#allocation2 + $0x8] sm:$0x3f] %vm2751_vm0, %v455_v57  ;;  %734 = vrot.lane.b32.xlu0 %v2196_v38, %s1900_s6  ;;  %1711 = vmatpush3.bf16.msra.mxu0 %v2264_v0 }
  0xd0   : > { %736 = vrot.lane.b32.xlu1 %v2199_v39, %s1900_s6  ;;  %1725 = vmatpush3.bf16.msra.mxu1 %v2264_v0 }
  0xd1   : > { %v465_v58 = vpop.permute.xlu0 %464  ;;  %1712 = vmatprep.subr.bf16.mxu0 %v1902_v1  ;;  %1726 = vmatprep.subr.bf16.mxu1 %v1902_v1 }
  0xd2   : > { %v505_v59 = vpop.permute.xlu1 %504  ;;  %471 = vst.msk [vmem:[#allocation2] sm:$0xff] %vm2746_vm12, %v465_v58  ;;  %vm2749_vm12 = vcmask 317728  }
  0xd3   : > { %510 = vst.msk [vmem:[#allocation2 + $0x10] sm:$0xff] %vm458_vm1, %v505_v59  ;;  %787 = vrot.lane.b32.xlu0 %v1993_v6, %s1881_s8  ;;  %1713 = vmatpush3.bf16.msra.mxu0 %v2281_v16 }
  0xd4   : > { %789 = vrot.lane.b32.xlu1 %v1996_v7, %s1881_s8  ;;  %1727 = vmatpush3.bf16.msra.mxu1 %v2281_v16 }
  0xd5   : > { %v507_v2 = vpop.permute.xlu0 %506  ;;  %1714 = vmatprep.subr.bf16.mxu0 %v1902_v1  ;;  %1728 = vmatprep.subr.bf16.mxu1 %v1902_v1 }
  0xd6   : > { %v467_v3 = vpop.permute.xlu1 %466  ;;  %511 = vst.msk [vmem:[#allocation2 + $0x18] sm:$0x3f] %vm2751_vm0, %v507_v2  ;;  %vm1904_vm0 = vmmov 0  }
  0xd7   : > { %473 = vst.msk [vmem:[#allocation2 + $0x8] sm:$0x3f] %vm2745_vm9, %v467_v3  ;;  %822 = vrot.lane.b32.xlu0 %v1984_v4, %s1881_s8  ;;  %vm2750_vm9 = vcmask 318753   ;;  %1715 = vmatpush3.bf16.msra.mxu0 %v2296_v19 }
  0xd8   : > { %824 = vrot.lane.b32.xlu1 %v1990_v5, %s1881_s8  ;;  %s1903_s8 = smov 69   ;;  %1729 = vmatpush3.bf16.msra.mxu1 %v2296_v19 }
  0xd9   : > { %v513_v17 = vpop.permute.xlu0 %512  ;;  %1716 = vmatprep.subr.bf16.mxu0 %v1902_v1  ;;  %1730 = vmatprep.subr.bf16.mxu1 %v1902_v1 }
  0xda   : > { %v515_v18 = vpop.permute.xlu1 %514  ;;  %519 = vst.msk [vmem:[#allocation2 + $0xf] sm:$0xfe] %vm2748_vm8, %v513_v17  ;;  %vm2752_vm8 = vcmask 342328   ;;  %1720 = vmatprep.mubr.msk.bf16.mxu0 %vm1904_vm0, %v1902_v1  ;;  %1734 = vmatprep.mubr.msk.bf16.mxu1 %vm1904_vm0, %v1902_v1 }
  0xdb   : > { %521 = vst.msk [vmem:[#allocation2 + $0x17] sm:$0x7f] %vm2747_vm13, %v515_v18  ;;  %696 = vrot.lane.b32.xlu0 %v2196_v38, %s1903_s8  ;;  %1717 = vmatpush3.bf16.msra.mxu0 %v2311_v22  ;;  %vm2753_vm13 = vcmask 343353  }
  0xdc   : > { %698 = vrot.lane.b32.xlu1 %v2199_v39, %s1903_s8  ;;  %1731 = vmatpush3.bf16.msra.mxu1 %v2311_v22 }
  0xdd   : > { %v475_v20 = vpop.permute.xlu0 %474  ;;  %1718 = vmatprep.subr.bf16.mxu0 %v1902_v1  ;;  %1732 = vmatprep.subr.bf16.mxu1 %v1902_v1 }
  0xde   : > { %v477_v21 = vpop.permute.xlu1 %476  ;;  %481 = vst.msk [vmem:[#allocation2 - $0x1] sm:$0xfe] %vm2750_vm9, %v475_v20 }
  0xdf   : > { %483 = vst.msk [vmem:[#allocation2 + $0x7] sm:$0x7f] %vm2749_vm12, %v477_v21  ;;  %742 = vrot.lane.b32.xlu0 %v2184_v34, %s1903_s8  ;;  %1719 = vmatpush3.bf16.msra.mxu0 %v2326_v25 }
  0xe0   : > { %744 = vrot.lane.b32.xlu1 %v2187_v35, %s1903_s8  ;;  %1733 = vmatpush3.bf16.msra.mxu1 %v2326_v25 }
  0xe1   : > { %v523_v23 = vpop.permute.xlu0 %522  ;;  %1738 = vmatprep.subr.bf16.mxu0 %v1902_v1  ;;  %1752 = vmatprep.subr.bf16.mxu1 %v1902_v1 }
  0xe2   : > { %v525_v24 = vpop.permute.xlu1 %524  ;;  %528 = vst.msk [vmem:[#allocation2 + $0xf] sm:$0xfe] %vm2750_vm9, %v523_v23  ;;  %vm2754_vm9 = vcmask 343352  }
  0xe3   : > { %529 = vst.msk [vmem:[#allocation2 + $0x17] sm:$0x7f] %vm2749_vm12, %v525_v24  ;;  %795 = vrot.lane.b32.xlu0 %v1984_v4, %s1882_s9  ;;  %vm2755_vm12 = vcmask 343354  }
  0xe4   : > { %797 = vrot.lane.b32.xlu1 %v1990_v5, %s1882_s9 }
  0xe5   : > { %v485_v26 = vpop.permute.xlu0 %484 }
  0xe6   : > { %v487_v27 = vpop.permute.xlu1 %486  ;;  %491 = vst.msk [vmem:[#allocation2 - $0x1] sm:$0xfe] %vm2753_vm13, %v485_v26  ;;  %vm2756_vm13 = vcmask 367952  }
  0xe7   : > { %493 = vst.msk [vmem:[#allocation2 + $0x7] sm:$0x7f] %vm2752_vm8, %v487_v27  ;;  %830 = vrot.lane.b32.xlu0 %v1993_v6, %s1882_s9  ;;  %vm2757_vm8 = vcmask 367954  }
  0xe8   : > { %832 = vrot.lane.b32.xlu1 %v1996_v7, %s1882_s9  ;;  %s2781_s9 = smov 48  }
  0xe9   : > { %v531_v4 = vpop.permute.xlu0 %530 }
  0xea   : > { %v533_v5 = vpop.permute.xlu1 %532  ;;  %537 = vst.msk [vmem:[#allocation2 + $0xe] sm:$0xfc] %vm2755_vm12, %v531_v4  ;;  %vm2758_vm12 = vcmask 390504  }
  0xeb   : > { %539 = vst.msk [vmem:[#allocation2 + $0x16] sm:$0xff] %vm2754_vm9, %v533_v5  ;;  %706 = vrot.lane.b32.xlu0 %v2184_v34, %s1905_s28  ;;  %vm2759_vm9 = vcmask 392552  }
  0xec   : > { %708 = vrot.lane.b32.xlu1 %v2187_v35, %s1905_s28 }
  0xed   : > { %v495_v6 = vpop.permute.xlu0 %494 }
  0xee   : > { %v497_v7 = vpop.permute.xlu1 %496  ;;  %501 = vst.msk [vmem:[#allocation2 - $0x2] sm:$0xfc] %vm2757_vm8, %v495_v6 }
  0xef   : > { %503 = vst.msk [vmem:[#allocation2 + $0x6] sm:$0xff] %vm2756_vm13, %v497_v7  ;;  %752 = vrot.lane.b32.xlu0 %v2196_v38, %s1905_s28 }
  0xf0   : > { %754 = vrot.lane.b32.xlu1 %v2199_v39, %s1905_s28 }
  0xf1   : > { %v541_v28 = vpop.permute.xlu0 %540 }
  0xf2   : > { %v543_v29 = vpop.permute.xlu1 %542  ;;  %546 = vst.msk [vmem:[#allocation2 + $0xe] sm:$0xfc] %vm2757_vm8, %v541_v28  ;;  %vm2760_vm8 = vcmask 415104  }
  0xf3   : > { %547 = vst.msk [vmem:[#allocation2 + $0x16] sm:$0xff] %vm2756_vm13, %v543_v29  ;;  %844 = vrot.lane.b32.xlu0 %v2062_v8, %s1883_s10  ;;  %vm2761_vm13 = vcmask 417152  }
  0xf4   : > { %846 = vrot.lane.b32.xlu1 %v2065_v9, %s1883_s10 }
  0xf5   : > { %v559_v30 = vpop.permute.xlu0 %558 }
  0xf6   : > { %v561_v31 = vpop.permute.xlu1 %560  ;;  %565 = vst.msk [vmem:[#allocation2] sm:$0xff] %vm2759_vm9, %v559_v30 }
  0xf7   : > { %567 = vst.msk [vmem:[#allocation2 + $0x8] sm:$0x3f] %vm2758_vm12, %v561_v31  ;;  %886 = vrot.lane.b32.xlu0 %v2072_v10, %s1883_s10 }
  0xf8   : > { %888 = vrot.lane.b32.xlu1 %v2079_v11, %s1883_s10  ;;  %s2782_s10 = smov 51  }
  0xf9   : > { %v611_v32 = vpop.permute.xlu0 %610 }
  0xfa   : > { %v613_v33 = vpop.permute.xlu1 %612  ;;  %616 = vst.msk [vmem:[#allocation2 + $0x10] sm:$0xff] %vm2759_vm9, %v611_v32  ;;  %vm2762_vm9 = vcmask 416128  }
  0xfb   : > { %617 = vst.msk [vmem:[#allocation2 + $0x18] sm:$0x3f] %vm2758_vm12, %v613_v33  ;;  %854 = vrot.lane.b32.xlu0 %v2072_v10, %s1884_s11  ;;  %vm2763_vm12 = vcmask 417153  }
  0xfc   : > { %856 = vrot.lane.b32.xlu1 %v2079_v11, %s1884_s11 }
  0xfd   : > { %v571_v36 = vpop.permute.xlu0 %570 }
  0xfe   : > { %v573_v37 = vpop.permute.xlu1 %572  ;;  %577 = vst.msk [vmem:[#allocation2] sm:$0xff] %vm2761_vm13, %v571_v36  ;;  %vm2764_vm13 = vcmask 440728  }
  0xff   : > { %579 = vst.msk [vmem:[#allocation2 + $0x8] sm:$0x3f] %vm2760_vm8, %v573_v37  ;;  %894 = vrot.lane.b32.xlu0 %v2062_v8, %s1884_s11  ;;  %vm2765_vm8 = vcmask 441753  }
 0x100   : > { %896 = vrot.lane.b32.xlu1 %v2065_v9, %s1884_s11  ;;  %s2787_s11 = smov 54  }
 0x101   : > { %v619_v40 = vpop.permute.xlu0 %618 }
 0x102   : > { %v621_v41 = vpop.permute.xlu1 %620  ;;  %625 = vst.msk [vmem:[#allocation2 + $0xf] sm:$0xfe] %vm2763_vm12, %v619_v40  ;;  %vm2766_vm12 = vcmask 465328  }
 0x103   : > { %627 = vst.msk [vmem:[#allocation2 + $0x17] sm:$0x7f] %vm2762_vm9, %v621_v41  ;;  %862 = vrot.lane.b32.xlu0 %v2062_v8, %s1885_s12  ;;  %vm2767_vm9 = vcmask 466353  }
 0x104   : > { %864 = vrot.lane.b32.xlu1 %v2065_v9, %s1885_s12 }
 0x105   : > { %v581_v42 = vpop.permute.xlu0 %580 }
 0x106   : > { %v583_v43 = vpop.permute.xlu1 %582  ;;  %587 = vst.msk [vmem:[#allocation2 - $0x1] sm:$0xfe] %vm2765_vm8, %v581_v42 }
 0x107   : > { %589 = vst.msk [vmem:[#allocation2 + $0x7] sm:$0x7f] %vm2764_vm13, %v583_v43  ;;  %902 = vrot.lane.b32.xlu0 %v2072_v10, %s1885_s12 }
 0x108   : > { %904 = vrot.lane.b32.xlu1 %v2079_v11, %s1885_s12  ;;  %s2788_s12 = smov 60  }
 0x109   : > { %v629_v44 = vpop.permute.xlu0 %628 }
 0x10a   : > { %v631_v45 = vpop.permute.xlu1 %630  ;;  %634 = vst.msk [vmem:[#allocation2 + $0xf] sm:$0xfe] %vm2765_vm8, %v629_v44  ;;  %vm2768_vm8 = vcmask 466352  }
 0x10b   : > { %635 = vst.msk [vmem:[#allocation2 + $0x17] sm:$0x7f] %vm2764_vm13, %v631_v45  ;;  %870 = vrot.lane.b32.xlu0 %v2072_v10, %s1886_s13  ;;  %vm2769_vm13 = vcmask 466354   ;;  %v2556_v45 = vld [vmem:[%s1973_s30 + $0x58] sm:$0xff] }
 0x10c   : > { %872 = vrot.lane.b32.xlu1 %v2079_v11, %s1886_s13 }
 0x10d   : > { %v591_v46 = vpop.permute.xlu0 %590 }
 0x10e   : > { %v593_v47 = vpop.permute.xlu1 %592  ;;  %597 = vst.msk [vmem:[#allocation2 - $0x1] sm:$0xfe] %vm2767_vm9, %v591_v46  ;;  %vm608_vm9 = vcmask 490952  }
 0x10f   : > { %599 = vst.msk [vmem:[#allocation2 + $0x7] sm:$0x7f] %vm2766_vm12, %v593_v47  ;;  %910 = vrot.lane.b32.xlu0 %v2062_v8, %s1886_s13  ;;  %vm606_vm12 = vcmask 490954  }
 0x110   : > { %912 = vrot.lane.b32.xlu1 %v2065_v9, %s1886_s13  ;;  %s1601_s13 = sshll.u32 %s2865_s15, 1 }
 0x111   : > { %v637_v48 = vpop.permute.xlu0 %636 }
 0x112   : > { %v639_v49 = vpop.permute.xlu1 %638  ;;  %643 = vst.msk [vmem:[#allocation2 + $0xe] sm:$0xfc] %vm2769_vm13, %v637_v48  ;;  %vm672_vm13 = vcmask 513504  }
 0x113   : > { %645 = vst.msk [vmem:[#allocation2 + $0x16] sm:$0xff] %vm2768_vm8, %v639_v49  ;;  %878 = vrot.lane.b32.xlu0 %v2062_v8, %s1887_s14  ;;  %vm670_vm8 = vcmask 515552  }
 0x114   : > { %880 = vrot.lane.b32.xlu1 %v2065_v9, %s1887_s14 }
 0x115   : > { %v601_v50 = vpop.permute.xlu0 %600 }
 0x116   : > { %v603_v51 = vpop.permute.xlu1 %602  ;;  %607 = vst.msk [vmem:[#allocation2 - $0x2] sm:$0xfc] %vm606_vm12, %v601_v50 }
 0x117   : > { %609 = vst.msk [vmem:[#allocation2 + $0x6] sm:$0xff] %vm608_vm9, %v603_v51  ;;  %918 = vrot.lane.b32.xlu0 %v2072_v10, %s1887_s14 }
 0x118   : > { %920 = vrot.lane.b32.xlu1 %v2079_v11, %s1887_s14 }
 0x119   : > { %v647_v52 = vpop.permute.xlu0 %646 }
 0x11a   : > { %v649_v53 = vpop.permute.xlu1 %648  ;;  %652 = vst.msk [vmem:[#allocation2 + $0xe] sm:$0xfc] %vm606_vm12, %v647_v52 }
 0x11b   : > { %653 = vst.msk [vmem:[#allocation2 + $0x16] sm:$0xff] %vm608_vm9, %v649_v53  ;;  %932 = vrot.lane.b32.xlu0 %v2114_v12, %s1888_s22 }
 0x11c   : > { %934 = vrot.lane.b32.xlu1 %v2117_v13, %s1888_s22 }
 0x11d   : > { %v665_v8 = vpop.permute.xlu0 %664 }
 0x11e   : > { %v667_v9 = vpop.permute.xlu1 %666  ;;  %671 = vst.msk [vmem:[#allocation2] sm:$0xff] %vm670_vm8, %v665_v8 }
 0x11f   : > { %673 = vst.msk [vmem:[#allocation2 + $0x8] sm:$0x3f] %vm672_vm13, %v667_v9  ;;  %974 = vrot.lane.b32.xlu0 %v2124_v14, %s1888_s22 }
 0x120   : > { %976 = vrot.lane.b32.xlu1 %v2127_v15, %s1888_s22 }
 0x121   : > { %v717_v10 = vpop.permute.xlu0 %716 }
 0x122   : > { %v719_v11 = vpop.permute.xlu1 %718  ;;  %722 = vst.msk [vmem:[#allocation2 + $0x10] sm:$0xff] %vm670_vm8, %v717_v10 }
 0x123   : > { %723 = vst.msk [vmem:[#allocation2 + $0x18] sm:$0x3f] %vm672_vm13, %v719_v11  ;;  %942 = vrot.lane.b32.xlu0 %v2124_v14, %s1889_s23 }
 0x124   : > { %944 = vrot.lane.b32.xlu1 %v2127_v15, %s1889_s23 }
 0x125   : > { %v770_v54 = vpop.permute.xlu0 %769 }
 0x126   : > { %v772_v55 = vpop.permute.xlu1 %771  ;;  %775 = vst.msk [vmem:[#allocation2 + $0x20] sm:$0xff] %vm261_vm2, %v770_v54  ;;  %vm682_vm2 = vcmask 540152  }
 0x127   : > { %776 = vst.msk [vmem:[#allocation2 + $0x28] sm:$0x3f] %vm263_vm4, %v772_v55  ;;  %982 = vrot.lane.b32.xlu0 %v2114_v12, %s1889_s23  ;;  %vm684_vm4 = vcmask 538104  }
 0x128   : > { %984 = vrot.lane.b32.xlu1 %v2117_v13, %s1889_s23 }
 0x129   : > { %v807_v56 = vpop.permute.xlu0 %806 }
 0x12a   : > { %v809_v57 = vpop.permute.xlu1 %808  ;;  %812 = vst.msk [vmem:[#allocation2 + $0x2f] sm:$0xfe] %vm306_vm10, %v807_v56  ;;  %vm2771_vm10 = vcmask 540153  }
 0x12b   : > { %813 = vst.msk [vmem:[#allocation2 + $0x37] sm:$0x7f] %vm308_vm11, %v809_v57  ;;  %950 = vrot.lane.b32.xlu0 %v2114_v12, %s1890_s24  ;;  %vm2770_vm11 = vcmask 539128  }
 0x12c   : > { %952 = vrot.lane.b32.xlu1 %v2117_v13, %s1890_s24 }
 0x12d   : > { %v677_v58 = vpop.permute.xlu0 %676 }
 0x12e   : > { %v679_v59 = vpop.permute.xlu1 %678  ;;  %683 = vst.msk [vmem:[#allocation2] sm:$0xff] %vm682_vm2, %v677_v58 }
 0x12f   : > { %685 = vst.msk [vmem:[#allocation2 + $0x8] sm:$0x3f] %vm684_vm4, %v679_v59  ;;  %990 = vrot.lane.b32.xlu0 %v2124_v14, %s1890_s24 }
 0x130   : > { %992 = vrot.lane.b32.xlu1 %v2127_v15, %s1890_s24 }
 0x131   : > { %v725_v60 = vpop.permute.xlu0 %724 }
 0x132   : > { %v727_v61 = vpop.permute.xlu1 %726  ;;  %731 = vst.msk [vmem:[#allocation2 + $0xf] sm:$0xfe] %vm2771_vm10, %v725_v60  ;;  %vm694_vm10 = vcmask 563728  }
 0x133   : > { %733 = vst.msk [vmem:[#allocation2 + $0x17] sm:$0x7f] %vm2770_vm11, %v727_v61  ;;  %958 = vrot.lane.b32.xlu0 %v2124_v14, %s1891_s25  ;;  %vm692_vm11 = vcmask 564753  }
 0x134   : > { %960 = vrot.lane.b32.xlu1 %v2127_v15, %s1891_s25 }
 0x135   : > { %v780_v62 = vpop.permute.xlu0 %779 }
 0x136   : > { %v782_v63 = vpop.permute.xlu1 %781  ;;  %785 = vst.msk [vmem:[#allocation2 + $0x1f] sm:$0xfe] %vm273_vm3, %v780_v62 }
 0x137   : > { %786 = vst.msk [vmem:[#allocation2 + $0x27] sm:$0x7f] %vm275_vm5, %v782_v63  ;;  %998 = vrot.lane.b32.xlu0 %v2114_v12, %s1891_s25 }
 0x138   : > { %1000 = vrot.lane.b32.xlu1 %v2117_v13, %s1891_s25 }
 0x139   : > { %v815_v2 = vpop.permute.xlu0 %814 }
 0x13a   : > { %v817_v3 = vpop.permute.xlu1 %816  ;;  %820 = vst.msk [vmem:[#allocation2 + $0x2f] sm:$0xfe] %vm273_vm3, %v815_v2  ;;  %vm2779_vm3 = vcmask 97354  }
 0x13b   : > { %821 = vst.msk [vmem:[#allocation2 + $0x37] sm:$0x7f] %vm275_vm5, %v817_v3  ;;  %966 = vrot.lane.b32.xlu0 %v2114_v12, %s1892_s26  ;;  %vm2780_vm5 = vcmask 97352  }
 0x13c   : > { %968 = vrot.lane.b32.xlu1 %v2117_v13, %s1892_s26 }
 0x13d   : > { %v687_v17 = vpop.permute.xlu0 %686 }
 0x13e   : > { %v689_v18 = vpop.permute.xlu1 %688  ;;  %693 = vst.msk [vmem:[#allocation2 - $0x1] sm:$0xfe] %vm692_vm11, %v687_v17 }
 0x13f   : > { %695 = vst.msk [vmem:[#allocation2 + $0x7] sm:$0x7f] %vm694_vm10, %v689_v18  ;;  %1006 = vrot.lane.b32.xlu0 %v2124_v14, %s1892_s26 }
 0x140   : > { %1008 = vrot.lane.b32.xlu1 %v2127_v15, %s1892_s26 }
 0x141   : > { %v735_v20 = vpop.permute.xlu0 %734 }
 0x142   : > { %v737_v21 = vpop.permute.xlu1 %736  ;;  %740 = vst.msk [vmem:[#allocation2 + $0xf] sm:$0xfe] %vm692_vm11, %v735_v20 }
 0x143   : > { %741 = vst.msk [vmem:[#allocation2 + $0x17] sm:$0x7f] %vm694_vm10, %v737_v21  ;;  %1020 = vrot.lane.b32.xlu0 %v2184_v34, %s1893_s27 }
 0x144   : > { %1022 = vrot.lane.b32.xlu1 %v2187_v35, %s1893_s27 }
 0x145   : > { %v788_v12 = vpop.permute.xlu0 %787 }
 0x146   : > { %v790_v13 = vpop.permute.xlu1 %789  ;;  %793 = vst.msk [vmem:[#allocation2 + $0x1f] sm:$0xfe] %vm283_vm6, %v788_v12  ;;  %vm2773_vm6 = vcmask 589353  }
 0x147   : > { %794 = vst.msk [vmem:[#allocation2 + $0x27] sm:$0x7f] %vm285_vm7, %v790_v13  ;;  %1062 = vrot.lane.b32.xlu0 %v2196_v38, %s1893_s27  ;;  %vm2772_vm7 = vcmask 588328  }
 0x148   : > { %1064 = vrot.lane.b32.xlu1 %v2199_v39, %s1893_s27 }
 0x149   : > { %v823_v14 = vpop.permute.xlu0 %822 }
 0x14a   : > { %v825_v15 = vpop.permute.xlu1 %824  ;;  %828 = vst.msk [vmem:[#allocation2 + $0x2e] sm:$0xfc] %vm2779_vm3, %v823_v14  ;;  %vm2775_vm3 = vcmask 589354  }
 0x14b   : > { %829 = vst.msk [vmem:[#allocation2 + $0x36] sm:$0xff] %vm2780_vm5, %v825_v15  ;;  %1030 = vrot.lane.b32.xlu0 %v2196_v38, %s2781_s9  ;;  %vm2774_vm5 = vcmask 589352  }
 0x14c   : > { %1032 = vrot.lane.b32.xlu1 %v2199_v39, %s2781_s9 }
 0x14d   : > { %v697_v23 = vpop.permute.xlu0 %696 }
 0x14e   : > { %v699_v24 = vpop.permute.xlu1 %698  ;;  %703 = vst.msk [vmem:[#allocation2 - $0x1] sm:$0xfe] %vm2773_vm6, %v697_v23  ;;  %vm2784_vm6 = vcmask 121952  }
 0x14f   : > { %705 = vst.msk [vmem:[#allocation2 + $0x7] sm:$0x7f] %vm2772_vm7, %v699_v24  ;;  %1070 = vrot.lane.b32.xlu0 %v2184_v34, %s2781_s9  ;;  %vm2783_vm7 = vcmask 121954  }
 0x150   : > { %1072 = vrot.lane.b32.xlu1 %v2187_v35, %s2781_s9 }
 0x151   : > { %v743_v26 = vpop.permute.xlu0 %742 }
 0x152   : > { %v745_v27 = vpop.permute.xlu1 %744  ;;  %749 = vst.msk [vmem:[#allocation2 + $0xe] sm:$0xfc] %vm2775_vm3, %v743_v26  ;;  %vm2786_vm3 = vmmov %vm2784_vm6 }
 0x153   : > { %751 = vst.msk [vmem:[#allocation2 + $0x16] sm:$0xff] %vm2774_vm5, %v745_v27  ;;  %1038 = vrot.lane.b32.xlu0 %v2184_v34, %s2782_s10  ;;  %vm2785_vm5 = vmmov %vm2783_vm7 }
 0x154   : > { %1040 = vrot.lane.b32.xlu1 %v2187_v35, %s2782_s10 }
 0x155   : > { %v796_v4 = vpop.permute.xlu0 %795 }
 0x156   : > { %v798_v5 = vpop.permute.xlu1 %797  ;;  %801 = vst.msk [vmem:[#allocation2 + $0x1e] sm:$0xfc] %vm2783_vm7, %v796_v4  ;;  %vm2778_vm7 = vcmask 613954  }
 0x157   : > { %802 = vst.msk [vmem:[#allocation2 + $0x26] sm:$0xff] %vm2784_vm6, %v798_v5  ;;  %1078 = vrot.lane.b32.xlu0 %v2196_v38, %s2782_s10  ;;  %vm2777_vm6 = vcmask 613952  }
 0x158   : > { %1080 = vrot.lane.b32.xlu1 %v2199_v39, %s2782_s10 }
 0x159   : > { %v831_v6 = vpop.permute.xlu0 %830 }
 0x15a   : > { %v833_v7 = vpop.permute.xlu1 %832  ;;  %836 = vst.msk [vmem:[#allocation2 + $0x2e] sm:$0xfc] %vm2785_vm5, %v831_v6  ;;  %vm2791_vm5 = vcmask 171153  }
 0x15b   : > { %837 = vst.msk [vmem:[#allocation2 + $0x36] sm:$0xff] %vm2786_vm3, %v833_v7  ;;  %1046 = vrot.lane.b32.xlu0 %v2196_v38, %s2787_s11  ;;  %vm2776_vm3 = vcmask 613376  }
 0x15c   : > { %1048 = vrot.lane.b32.xlu1 %v2199_v39, %s2787_s11 }
 0x15d   : > { %v707_v28 = vpop.permute.xlu0 %706 }
 0x15e   : > { %v709_v29 = vpop.permute.xlu1 %708  ;;  %713 = vst.msk [vmem:[#allocation2 - $0x2] sm:$0xfc] %vm2778_vm7, %v707_v28 }
 0x15f   : > { %715 = vst.msk [vmem:[#allocation2 + $0x6] sm:$0xff] %vm2777_vm6, %v709_v29  ;;  %1086 = vrot.lane.b32.xlu0 %v2184_v34, %s2787_s11 }
 0x160   : > { %1088 = vrot.lane.b32.xlu1 %v2187_v35, %s2787_s11 }
 0x161   : > { %v753_v30 = vpop.permute.xlu0 %752 }
 0x162   : > { %v755_v31 = vpop.permute.xlu1 %754  ;;  %758 = vst.msk [vmem:[#allocation2 + $0xe] sm:$0xfc] %vm2778_vm7, %v753_v30  ;;  %vm2813_vm7 = vcmask 317728  }
 0x163   : > { %759 = vst.msk [vmem:[#allocation2 + $0x16] sm:$0xff] %vm2777_vm6, %v755_v31  ;;  %1054 = vrot.lane.b32.xlu0 %v2184_v34, %s1897_s29  ;;  %v2536_v34 = vld [vmem:[%s1975_s5 + $0x50] sm:$0xff]  ;;  %vm2812_vm6 = vcmask 318753  }
 0x164   : > { %1056 = vrot.lane.b32.xlu1 %v2187_v35, %s1897_s29  ;;  %v2539_v35 = vld [vmem:[%s1975_s5 + $0x58] sm:$0xff]  ;;  %s1766_s5 = smul.u32 28, %s2863_s16 }
 0x165   : > { %v845_v32 = vpop.permute.xlu0 %844 }
 0x166   : > { %v847_v33 = vpop.permute.xlu1 %846  ;;  %v1194_v36 = vld [vmem:[#allocation2] sm:$0xff]  ;;  %v1195_v37 = vld [vmem:[#allocation2 + $0x8] sm:$0x3f]  ;;  %850 = vst.msk [vmem:[#allocation2 + $0x20] sm:$0xff] %vm352_vm14, %v845_v32  ;;  %s237_s14 = sadd.s32 %s1766_s5, %s1601_s13 }
 0x167   : > { %851 = vst.msk [vmem:[#allocation2 + $0x28] sm:$0x3f] %vm354_vm15, %v847_v33  ;;  %v1196_v40 = vpack.c.bf16 %v1195_v37, %v1194_v36  ;;  %1094 = vrot.lane.b32.xlu0 %v2196_v38, %s1897_s29  ;;  %s1602_s24 = sshll.u32 %s237_s14, 3 }
 0x168   : > { %1096 = vrot.lane.b32.xlu1 %v2199_v39, %s1897_s29  ;;  %v2553_v39 = vld [vmem:[%s1973_s30 + $0x50] sm:$0xff]  ;;  %s2793_s30 = smov 63   ;;  %s239_s15 = scalar_lea.vmem %s2718_s4, %s1602_s24 }
 0x169   : > { %1721 = vmatmul.mubr.msk.bf16.vlgmr.msra.gmra.mxu0 %vm2776_vm3, %v1196_v40  ;;  %v887_v41 = vpop.permute.xlu0 %886 }
 0x16a   : > { %v889_v42 = vpop.permute.xlu1 %888  ;;  %v1288_v43 = vld [vmem:[#allocation2 + $0x10] sm:$0xff]  ;;  %v1289_v44 = vld [vmem:[#allocation2 + $0x18] sm:$0x3f]  ;;  %1739 = vmatpush3.bf16.msra.mxu0 %v2264_v0  ;;  %1748 = vmatprep.mubr.msk.bf16.mxu0 %vm1904_vm0, %v1902_v1  ;;  %892 = vst.msk [vmem:[#allocation2 + $0x30] sm:$0xff] %vm352_vm14, %v887_v41  ;;  %vm2789_vm14 = vcmask 171152  }
 0x16b   : > { %893 = vst.msk [vmem:[#allocation2 + $0x38] sm:$0x3f] %vm354_vm15, %v889_v42  ;;  %v1290_v38 = vpack.c.bf16 %v1289_v44, %v1288_v43  ;;  %1740 = vmatprep.subr.bf16.mxu0 %v1902_v1  ;;  %1112 = vrot.lane.b32.xlu0 %v2536_v34, %s2788_s12  ;;  %vm2790_vm15 = vcmask 169104  }
 0x16c   : > { %1114 = vrot.lane.b32.xlu1 %v2539_v35, %s2788_s12 }
 0x16d   : > { %1735 = vmatmul.mubr.msk.bf16.vlgmr.msra.gmra.mxu1 %vm2776_vm3, %v1290_v38  ;;  %v855_v46 = vpop.permute.xlu0 %854  ;;  %vm2811_vm3 = vcmask 293128  }
 0x16e   : > { %v857_v47 = vpop.permute.xlu1 %856  ;;  %1753 = vmatpush3.bf16.msra.mxu1 %v2264_v0  ;;  %1741 = vmatpush3.bf16.msra.mxu0 %v2281_v16  ;;  %860 = vst.msk [vmem:[#allocation2 + $0x20] sm:$0xff] %vm2789_vm14, %v855_v46  ;;  %vm2792_vm14 = vcmask 170128  }
 0x16f   : > { %861 = vst.msk [vmem:[#allocation2 + $0x28] sm:$0x3f] %vm2790_vm15, %v857_v47  ;;  %1742 = vmatprep.subr.bf16.mxu0 %v1902_v1  ;;  %1754 = vmatprep.subr.bf16.mxu1 %v1902_v1  ;;  %vm2795_vm15 = vcmask 194728  }
 0x170   : > { %1154 = vrot.lane.b32.xlu0 %v2553_v39, %s2788_s12  ;;  %1156 = vrot.lane.b32.xlu1 %v2556_v45, %s2788_s12 }
 0x171   : > { %1762 = vmatprep.mubr.msk.bf16.mxu1 %vm1904_vm0, %v1902_v1  ;;  %v895_v0 = vpop.permute.xlu0 %894  ;;  %vm2794_vm0 = vcmask 195753  }
 0x172   : > { %v897_v48 = vpop.permute.xlu1 %896  ;;  %1755 = vmatpush3.bf16.msra.mxu1 %v2281_v16  ;;  %1743 = vmatpush3.bf16.msra.mxu0 %v2296_v19  ;;  %900 = vst.msk [vmem:[#allocation2 + $0x2f] sm:$0xfe] %vm2791_vm5, %v895_v0  ;;  %vm2796_vm5 = vmmov %vm2794_vm0 }
 0x173   : > { %901 = vst.msk [vmem:[#allocation2 + $0x37] sm:$0x7f] %vm2792_vm14, %v897_v48  ;;  %1744 = vmatprep.subr.bf16.mxu0 %v1902_v1  ;;  %1756 = vmatprep.subr.bf16.mxu1 %v1902_v1  ;;  %vm2797_vm14 = vmmov %vm2795_vm15 }
 0x174   : > { %1122 = vrot.lane.b32.xlu0 %v2553_v39, %s2793_s30  ;;  %1124 = vrot.lane.b32.xlu1 %v2556_v45, %s2793_s30 }
 0x175   : > { %v863_v49 = vpop.permute.xlu0 %862 }
 0x176   : > { %v865_v50 = vpop.permute.xlu1 %864  ;;  %1757 = vmatpush3.bf16.msra.mxu1 %v2296_v19  ;;  %1745 = vmatpush3.bf16.msra.mxu0 %v2311_v22  ;;  %868 = vst.msk [vmem:[#allocation2 + $0x1f] sm:$0xfe] %vm2794_vm0, %v863_v49  ;;  %vm2798_vm0 = vcmask 220353  }
 0x177   : > { %869 = vst.msk [vmem:[#allocation2 + $0x27] sm:$0x7f] %vm2795_vm15, %v865_v50  ;;  %1746 = vmatprep.subr.bf16.mxu0 %v1902_v1  ;;  %1758 = vmatprep.subr.bf16.mxu1 %v1902_v1  ;;  %vm2799_vm15 = vcmask 219328  }
 0x178   : > { %1162 = vrot.lane.b32.xlu0 %v2536_v34, %s2793_s30  ;;  %1164 = vrot.lane.b32.xlu1 %v2539_v35, %s2793_s30 }
 0x179   : > { %v903_v16 = vpop.permute.xlu0 %902 }
 0x17a   : > { %v905_v51 = vpop.permute.xlu1 %904  ;;  %1747 = vmatpush3.bf16.msra.mxu0 %v2326_v25  ;;  %1759 = vmatpush3.bf16.msra.mxu1 %v2311_v22  ;;  %908 = vst.msk [vmem:[#allocation2 + $0x2f] sm:$0xfe] %vm2796_vm5, %v903_v16  ;;  %vm2800_vm5 = vcmask 220354  }
 0x17b   : > { %909 = vst.msk [vmem:[#allocation2 + $0x37] sm:$0x7f] %vm2797_vm14, %v905_v51  ;;  %1760 = vmatprep.subr.bf16.mxu1 %v1902_v1  ;;  %vm2801_vm14 = vcmask 220352  }
 0x17c   : > { %1130 = vrot.lane.b32.xlu0 %v2536_v34, %s1900_s6  ;;  %1132 = vrot.lane.b32.xlu1 %v2539_v35, %s1900_s6 }
 0x17d   : > { %v871_v19 = vpop.permute.xlu0 %870 }
 0x17e   : > { %v873_v52 = vpop.permute.xlu1 %872  ;;  %1761 = vmatpush3.bf16.msra.mxu1 %v2326_v25  ;;  %876 = vst.msk [vmem:[#allocation2 + $0x1f] sm:$0xfe] %vm2798_vm0, %v871_v19  ;;  %vm2802_vm0 = vcmask 244954  }
 0x17f   : > { %877 = vst.msk [vmem:[#allocation2 + $0x27] sm:$0x7f] %vm2799_vm15, %v873_v52  ;;  %vm2803_vm15 = vcmask 244952  }
 0x180   : > { %1170 = vrot.lane.b32.xlu0 %v2553_v39, %s1900_s6  ;;  %1172 = vrot.lane.b32.xlu1 %v2556_v45, %s1900_s6 }
 0x181   : > { %v911_v1 = vpop.permute.xlu0 %910 }
 0x182   : > { %v913_v22 = vpop.permute.xlu1 %912  ;;  %916 = vst.msk [vmem:[#allocation2 + $0x2e] sm:$0xfc] %vm2800_vm5, %v911_v1  ;;  %vm2804_vm5 = vmmov %vm2802_vm0 }
 0x183   : > { %917 = vst.msk [vmem:[#allocation2 + $0x36] sm:$0xff] %vm2801_vm14, %v913_v22  ;;  %vm2805_vm14 = vmmov %vm2803_vm15 }
 0x184   : > { %1138 = vrot.lane.b32.xlu0 %v2553_v39, %s1903_s8  ;;  %1140 = vrot.lane.b32.xlu1 %v2556_v45, %s1903_s8 }
 0x185   : > { %v879_v25 = vpop.permute.xlu0 %878 }
 0x186   : > { %v881_v53 = vpop.permute.xlu1 %880  ;;  %884 = vst.msk [vmem:[#allocation2 + $0x1e] sm:$0xfc] %vm2802_vm0, %v879_v25  ;;  %vm2806_vm0 = vcmask 267504  }
 0x187   : > { %885 = vst.msk [vmem:[#allocation2 + $0x26] sm:$0xff] %vm2803_vm15, %v881_v53  ;;  %vm2807_vm15 = vmmov %vm2806_vm0 }
 0x188   : > { %1178 = vrot.lane.b32.xlu0 %v2536_v34, %s1903_s8  ;;  %1180 = vrot.lane.b32.xlu1 %v2539_v35, %s1903_s8 }
 0x189   : > { %v919_v8 = vpop.permute.xlu0 %918 }
 0x18a   : > { %v921_v9 = vpop.permute.xlu1 %920  ;;  %924 = vst.msk [vmem:[#allocation2 + $0x2e] sm:$0xfc] %vm2804_vm5, %v919_v8  ;;  %vm2808_vm5 = vcmask 294152  }
 0x18b   : > { %925 = vst.msk [vmem:[#allocation2 + $0x36] sm:$0xff] %vm2805_vm14, %v921_v9  ;;  %vm2809_vm14 = vcmask 292104  }
 0x18c   : > { %1146 = vrot.lane.b32.xlu0 %v2536_v34, %s1905_s28  ;;  %1148 = vrot.lane.b32.xlu1 %v2539_v35, %s1905_s28 }
 0x18d   : > { %v933_v10 = vpop.permute.xlu0 %932 }
 0x18e   : > { %v935_v11 = vpop.permute.xlu1 %934  ;;  %938 = vst.msk [vmem:[#allocation2 + $0x20] sm:$0xff] %vm458_vm1, %v933_v10 }
 0x18f   : > { %939 = vst.msk [vmem:[#allocation2 + $0x28] sm:$0x3f] %vm2806_vm0, %v935_v11  ;;  %vm2810_vm0 = vcmask 294153  }
 0x190   : > { %1186 = vrot.lane.b32.xlu0 %v2553_v39, %s1905_s28  ;;  %1188 = vrot.lane.b32.xlu1 %v2556_v45, %s1905_s28 }
 0x191   : > { %v975_v54 = vpop.permute.xlu0 %974 }
 0x192   : > { %v977_v55 = vpop.permute.xlu1 %976  ;;  %980 = vst.msk [vmem:[#allocation2 + $0x30] sm:$0xff] %vm458_vm1, %v975_v54  ;;  %vm2814_vm1 = vmmov %vm2812_vm6 }
 0x193   : > { %981 = vst.msk [vmem:[#allocation2 + $0x38] sm:$0x3f] %vm2807_vm15, %v977_v55  ;;  %vm2815_vm15 = vmmov %vm2813_vm7 }
 0x195   : > { %v943_v56 = vpop.permute.xlu0 %942 }
 0x196   : > { %v945_v57 = vpop.permute.xlu1 %944  ;;  %948 = vst.msk [vmem:[#allocation2 + $0x20] sm:$0xff] %vm2808_vm5, %v943_v56  ;;  %vm2816_vm5 = vcmask 343353  }
 0x197   : > { %949 = vst.msk [vmem:[#allocation2 + $0x28] sm:$0x3f] %vm2809_vm14, %v945_v57  ;;  %vm2817_vm14 = vcmask 342328  }
 0x199   : > { %v983_v58 = vpop.permute.xlu0 %982 }
 0x19a   : > { %v985_v59 = vpop.permute.xlu1 %984  ;;  %988 = vst.msk [vmem:[#allocation2 + $0x2f] sm:$0xfe] %vm2810_vm0, %v983_v58  ;;  %vm2819_vm0 = vcmask 343352  }
 0x19b   : > { %989 = vst.msk [vmem:[#allocation2 + $0x37] sm:$0x7f] %vm2811_vm3, %v985_v59  ;;  %vm2818_vm3 = vcmask 343354  }
 0x19d   : > { %v951_v60 = vpop.permute.xlu0 %950 }
 0x19e   : > { %v953_v61 = vpop.permute.xlu1 %952  ;;  %956 = vst.msk [vmem:[#allocation2 + $0x1f] sm:$0xfe] %vm2812_vm6, %v951_v60  ;;  %vm2821_vm6 = vcmask 367952  }
 0x19f   : > { %957 = vst.msk [vmem:[#allocation2 + $0x27] sm:$0x7f] %vm2813_vm7, %v953_v61  ;;  %vm2820_vm7 = vcmask 367954  }
 0x1a1   : > { %v991_v62 = vpop.permute.xlu0 %990 }
 0x1a2   : > { %v993_v63 = vpop.permute.xlu1 %992  ;;  %996 = vst.msk [vmem:[#allocation2 + $0x2f] sm:$0xfe] %vm2814_vm1, %v991_v62  ;;  %vm2822_vm1 = vmmov %vm2820_vm7 }
 0x1a3   : > { %997 = vst.msk [vmem:[#allocation2 + $0x37] sm:$0x7f] %vm2815_vm15, %v993_v63  ;;  %vm2823_vm15 = vmmov %vm2821_vm6 }
 0x1a5   : > { %v959_v2 = vpop.permute.xlu0 %958 }
 0x1a6   : > { %v961_v3 = vpop.permute.xlu1 %960  ;;  %964 = vst.msk [vmem:[#allocation2 + $0x1f] sm:$0xfe] %vm2816_vm5, %v959_v2  ;;  %vm2824_vm5 = vcmask 392552  }
 0x1a7   : > { %965 = vst.msk [vmem:[#allocation2 + $0x27] sm:$0x7f] %vm2817_vm14, %v961_v3  ;;  %vm2825_vm14 = vcmask 390504  }
 0x1a9   : > { %v999_v17 = vpop.permute.xlu0 %998 }
 0x1aa   : > { %v1001_v18 = vpop.permute.xlu1 %1000  ;;  %1004 = vst.msk [vmem:[#allocation2 + $0x2e] sm:$0xfc] %vm2818_vm3, %v999_v17  ;;  %vm2826_vm3 = vmmov %vm2824_vm5 }
 0x1ab   : > { %1005 = vst.msk [vmem:[#allocation2 + $0x36] sm:$0xff] %vm2819_vm0, %v1001_v18  ;;  %vm2827_vm0 = vmmov %vm2825_vm14 }
 0x1ad   : > { %v967_v20 = vpop.permute.xlu0 %966 }
 0x1ae   : > { %v969_v21 = vpop.permute.xlu1 %968  ;;  %972 = vst.msk [vmem:[#allocation2 + $0x1e] sm:$0xfc] %vm2820_vm7, %v967_v20  ;;  %vm2828_vm7 = vcmask 417152  }
 0x1af   : > { %973 = vst.msk [vmem:[#allocation2 + $0x26] sm:$0xff] %vm2821_vm6, %v969_v21  ;;  %vm2829_vm6 = vcmask 415104   ;;  %v1670_v21 = vld [vmem:[%s2717_s3] ss:$0 sm:$0xff] }
 0x1b1   : > { %v1007_v12 = vpop.permute.xlu0 %1006 }
 0x1b2   : > { %v1009_v13 = vpop.permute.xlu1 %1008  ;;  %1012 = vst.msk [vmem:[#allocation2 + $0x2e] sm:$0xfc] %vm2822_vm1, %v1007_v12  ;;  %vm2830_vm1 = vcmask 417153  }
 0x1b3   : > { %1013 = vst.msk [vmem:[#allocation2 + $0x36] sm:$0xff] %vm2823_vm15, %v1009_v13  ;;  %vm2831_vm15 = vcmask 416128  }
 0x1b5   : > { %v1021_v14 = vpop.permute.xlu0 %1020 }
 0x1b6   : > { %v1023_v15 = vpop.permute.xlu1 %1022  ;;  %1026 = vst.msk [vmem:[#allocation2 + $0x20] sm:$0xff] %vm2824_vm5, %v1021_v14  ;;  %vm2832_vm5 = vcmask 441753  }
 0x1b7   : > { %1027 = vst.msk [vmem:[#allocation2 + $0x28] sm:$0x3f] %vm2825_vm14, %v1023_v15  ;;  %vm2833_vm14 = vcmask 440728  }
 0x1b9   : > { %v1063_v23 = vpop.permute.xlu0 %1062 }
 0x1ba   : > { %v1065_v24 = vpop.permute.xlu1 %1064  ;;  %1068 = vst.msk [vmem:[#allocation2 + $0x30] sm:$0xff] %vm2826_vm3, %v1063_v23  ;;  %vm2834_vm3 = vmmov %vm2832_vm5 }
 0x1bb   : > { %1069 = vst.msk [vmem:[#allocation2 + $0x38] sm:$0x3f] %vm2827_vm0, %v1065_v24  ;;  %vm2835_vm0 = vmmov %vm2833_vm14 }
 0x1bd   : > { %v1031_v26 = vpop.permute.xlu0 %1030 }
 0x1be   : > { %v1033_v27 = vpop.permute.xlu1 %1032  ;;  %1036 = vst.msk [vmem:[#allocation2 + $0x20] sm:$0xff] %vm2828_vm7, %v1031_v26  ;;  %vm2836_vm7 = vcmask 466353  }
 0x1bf   : > { %1037 = vst.msk [vmem:[#allocation2 + $0x28] sm:$0x3f] %vm2829_vm6, %v1033_v27  ;;  %vm2837_vm6 = vcmask 465328  }
 0x1c1   : > { %v1071_v4 = vpop.permute.xlu0 %1070 }
 0x1c2   : > { %v1073_v5 = vpop.permute.xlu1 %1072  ;;  %1076 = vst.msk [vmem:[#allocation2 + $0x2f] sm:$0xfe] %vm2830_vm1, %v1071_v4  ;;  %vm2838_vm1 = vcmask 466354  }
 0x1c3   : > { %1077 = vst.msk [vmem:[#allocation2 + $0x37] sm:$0x7f] %vm2831_vm15, %v1073_v5  ;;  %vm2839_vm15 = vcmask 466352  }
 0x1c5   : > { %v1039_v6 = vpop.permute.xlu0 %1038 }
 0x1c6   : > { %v1041_v7 = vpop.permute.xlu1 %1040  ;;  %1044 = vst.msk [vmem:[#allocation2 + $0x1f] sm:$0xfe] %vm2832_vm5, %v1039_v6  ;;  %vm2846_vm5 = vcmask 613954  }
 0x1c7   : > { %1045 = vst.msk [vmem:[#allocation2 + $0x27] sm:$0x7f] %vm2833_vm14, %v1041_v7  ;;  %vm2847_vm14 = vcmask 613952  }
 0x1c9   : > { %v1079_v28 = vpop.permute.xlu0 %1078 }
 0x1ca   : > { %v1081_v29 = vpop.permute.xlu1 %1080  ;;  %1084 = vst.msk [vmem:[#allocation2 + $0x2f] sm:$0xfe] %vm2834_vm3, %v1079_v28  ;;  %vm2850_vm3 = vcmask 613376  }
 0x1cb   : > { %1085 = vst.msk [vmem:[#allocation2 + $0x37] sm:$0x7f] %vm2835_vm0, %v1081_v29  ;;  %vm2851_vm0 = vmmov %vm2850_vm3 }
 0x1cd   : > { %v1047_v30 = vpop.permute.xlu0 %1046 }
 0x1ce   : > { %v1049_v31 = vpop.permute.xlu1 %1048  ;;  %1052 = vst.msk [vmem:[#allocation2 + $0x1f] sm:$0xfe] %vm2836_vm7, %v1047_v30  ;;  %vm1446_vm7 = vcmask 261120  }
 0x1cf   : > { %1053 = vst.msk [vmem:[#allocation2 + $0x27] sm:$0x7f] %vm2837_vm6, %v1049_v31  ;;  %vm1448_vm6 = vcmask 259072  }
 0x1d1   : > { %v1087_v32 = vpop.permute.xlu0 %1086 }
 0x1d2   : > { %v1089_v33 = vpop.permute.xlu1 %1088  ;;  %1092 = vst.msk [vmem:[#allocation2 + $0x2e] sm:$0xfc] %vm2838_vm1, %v1087_v32 }
 0x1d3   : > { %1093 = vst.msk [vmem:[#allocation2 + $0x36] sm:$0xff] %vm2839_vm15, %v1089_v33 }
 0x1d5   : > { %v1055_v36 = vpop.permute.xlu0 %1054 }
 0x1d6   : > { %v1057_v37 = vpop.permute.xlu1 %1056  ;;  %1060 = vst.msk [vmem:[#allocation2 + $0x1e] sm:$0xfc] %vm606_vm12, %v1055_v36 }
 0x1d7   : > { %1061 = vst.msk [vmem:[#allocation2 + $0x26] sm:$0xff] %vm608_vm9, %v1057_v37 }
 0x1d9   : > { %v1095_v40 = vpop.permute.xlu0 %1094 }
 0x1da   : > { %v1097_v34 = vpop.permute.xlu1 %1096  ;;  %1100 = vst.msk [vmem:[#allocation2 + $0x2e] sm:$0xfc] %vm606_vm12, %v1095_v40  ;;  %vm2841_vm12 = vcmask 539128  }
 0x1db   : > { %1101 = vst.msk [vmem:[#allocation2 + $0x36] sm:$0xff] %vm608_vm9, %v1097_v34  ;;  %vm2840_vm9 = vcmask 540153  }
 0x1dd   : > { %v1113_v35 = vpop.permute.xlu0 %1112 }
 0x1de   : > { %v1115_v41 = vpop.permute.xlu1 %1114  ;;  %1118 = vst.msk [vmem:[#allocation2 + $0x20] sm:$0xff] %vm670_vm8, %v1113_v35 }
 0x1df   : > { %1119 = vst.msk [vmem:[#allocation2 + $0x28] sm:$0x3f] %vm672_vm13, %v1115_v41 }
 0x1e2   : > { %v1155_v42 = vpop.permute.xlu0 %1154  ;;  %v1157_v43 = vpop.permute.xlu1 %1156 }
 0x1e3   : > { %1160 = vst.msk [vmem:[#allocation2 + $0x30] sm:$0xff] %vm670_vm8, %v1155_v42  ;;  %vm2842_vm8 = vcmask 589353  }
 0x1e4   : > { %1161 = vst.msk [vmem:[#allocation2 + $0x38] sm:$0x3f] %vm672_vm13, %v1157_v43  ;;  %vm2843_vm13 = vcmask 588328  }
 0x1e6   : > { %v1123_v44 = vpop.permute.xlu0 %1122  ;;  %v1125_v38 = vpop.permute.xlu1 %1124 }
 0x1e7   : > { %1128 = vst.msk [vmem:[#allocation2 + $0x20] sm:$0xff] %vm682_vm2, %v1123_v44  ;;  %vm2844_vm2 = vcmask 589354  }
 0x1e8   : > { %1129 = vst.msk [vmem:[#allocation2 + $0x28] sm:$0x3f] %vm684_vm4, %v1125_v38  ;;  %vm2845_vm4 = vcmask 589352  }
 0x1ea   : > { %v1163_v39 = vpop.permute.xlu0 %1162  ;;  %v1165_v45 = vpop.permute.xlu1 %1164 }
 0x1eb   : > { %1168 = vst.msk [vmem:[#allocation2 + $0x2f] sm:$0xfe] %vm2840_vm9, %v1163_v39 }
 0x1ec   : > { %1169 = vst.msk [vmem:[#allocation2 + $0x37] sm:$0x7f] %vm2841_vm12, %v1165_v45 }
 0x1ee   : > { %v1131_v46 = vpop.permute.xlu0 %1130  ;;  %v1133_v47 = vpop.permute.xlu1 %1132 }
 0x1ef   : > { %1136 = vst.msk [vmem:[#allocation2 + $0x1f] sm:$0xfe] %vm692_vm11, %v1131_v46 }
 0x1f0   : > { %1137 = vst.msk [vmem:[#allocation2 + $0x27] sm:$0x7f] %vm694_vm10, %v1133_v47 }
 0x1f2   : > { %v1171_v0 = vpop.permute.xlu0 %1170  ;;  %v1173_v48 = vpop.permute.xlu1 %1172 }
 0x1f3   : > { %1176 = vst.msk [vmem:[#allocation2 + $0x2f] sm:$0xfe] %vm692_vm11, %v1171_v0  ;;  %vm2849_vm11 = vmmov %vm2847_vm14 }
 0x1f4   : > { %1177 = vst.msk [vmem:[#allocation2 + $0x37] sm:$0x7f] %vm694_vm10, %v1173_v48  ;;  %vm2848_vm10 = vmmov %vm2846_vm5 }
 0x1f6   : > { %v1139_v49 = vpop.permute.xlu0 %1138  ;;  %v1141_v50 = vpop.permute.xlu1 %1140 }
 0x1f7   : > { %1144 = vst.msk [vmem:[#allocation2 + $0x1f] sm:$0xfe] %vm2842_vm8, %v1139_v49 }
 0x1f8   : > { %1145 = vst.msk [vmem:[#allocation2 + $0x27] sm:$0x7f] %vm2843_vm13, %v1141_v50 }
 0x1fa   : > { %v1179_v16 = vpop.permute.xlu0 %1178  ;;  %v1181_v51 = vpop.permute.xlu1 %1180 }
 0x1fb   : > { %1184 = vst.msk [vmem:[#allocation2 + $0x2e] sm:$0xfc] %vm2844_vm2, %v1179_v16 }
 0x1fc   : > { %1185 = vst.msk [vmem:[#allocation2 + $0x36] sm:$0xff] %vm2845_vm4, %v1181_v51 }
 0x1fe   : > { %v1147_v19 = vpop.permute.xlu0 %1146  ;;  %v1149_v52 = vpop.permute.xlu1 %1148 }
 0x1ff   : > { %1152 = vst.msk [vmem:[#allocation2 + $0x1e] sm:$0xfc] %vm2846_vm5, %v1147_v19 }
 0x200   : > { %1153 = vst.msk [vmem:[#allocation2 + $0x26] sm:$0xff] %vm2847_vm14, %v1149_v52 }
 0x202   : > { %v1187_v1 = vpop.permute.xlu0 %1186  ;;  %v1189_v22 = vpop.permute.xlu1 %1188 }
 0x203   : > { %1192 = vst.msk [vmem:[#allocation2 + $0x2e] sm:$0xfc] %vm2848_vm10, %v1187_v1 }
 0x204   : > { %1193 = vst.msk [vmem:[#allocation2 + $0x36] sm:$0xff] %vm2849_vm11, %v1189_v22 }
 0x207   : > { %v1337_v25 = vld [vmem:[#allocation2 + $0x20] sm:$0xff]  ;;  %v1338_v53 = vld [vmem:[#allocation2 + $0x28] sm:$0x3f] }
 0x208   : > { %v1339_v8 = vpack.c.bf16 %v1338_v53, %v1337_v25 }
 0x20a   : > { %1749 = vmatmul.mubr.msk.bf16.vlgmr.msra.gmra.mxu0 %vm2850_vm3, %v1339_v8 }
 0x20b   : > { %v1384_v9 = vld [vmem:[#allocation2 + $0x30] sm:$0xff]  ;;  %v1385_v10 = vld [vmem:[#allocation2 + $0x38] sm:$0x3f] }
 0x20c   : > { %v1386_v11 = vpack.c.bf16 %v1385_v10, %v1384_v9 }
 0x20e   : > { %1763 = vmatmul.mubr.msk.bf16.vlgmr.msra.gmra.mxu1 %vm2851_vm0, %v1386_v11 }
 0x229   : > { %v1281_v54 = vpop.f32.mrf.mxu0 }
 0x22b   : > { %v1722_v55 = vpop.f32.mrf.mxu0 }
 0x22d   : > { %v1284_v56 = vpop.f32.mrf.mxu0  ;;  %v1328_v57 = vpop.f32.mrf.mxu1 }
 0x22e   : > { %v1335_v58 = vmax.f32 %v1281_v54, %v1328_v57 }
 0x22f   : > { %v1723_v59 = vpop.f32.mrf.mxu0  ;;  %v1736_v60 = vpop.f32.mrf.mxu1 }
 0x231   : > { %v1331_v61 = vpop.f32.mrf.mxu1 }
 0x232   : > { %v1336_v62 = vmax.f32 %v1284_v56, %v1331_v61 }
 0x233   : > { %v1737_v63 = vpop.f32.mrf.mxu1 }
 0x2ca   : > { %v1377_v2 = vpop.f32.mrf.mxu0 }
 0x2cc   : > { %v1750_v3 = vpop.f32.mrf.mxu0 }
 0x2ce   : > { %v1380_v17 = vpop.f32.mrf.mxu0  ;;  %v1424_v18 = vpop.f32.mrf.mxu1 }
 0x2cf   : > { %v1431_v20 = vmax.f32 %v1377_v2, %v1424_v18 }
 0x2d0   : > { %v1751_v12 = vpop.f32.mrf.mxu0  ;;  %v1764_v13 = vpop.f32.mrf.mxu1 }
 0x2d1   : > { %v1433_v14 = vmax.f32 %v1335_v58, %v1431_v20 }
 0x2d2   : > { %v1427_v15 = vpop.f32.mrf.mxu1 }
 0x2d3   : > { %v1442_v23 = vadd.f32 %v1670_v21, %v1433_v14  ;;  %v1432_v24 = vmax.f32 %v1380_v17, %v1427_v15 }
 0x2d4   : > { %v1765_v26 = vpop.f32.mrf.mxu1 }
 0x2d5   : > { %v1444_v27 = vmax.f32 %v1442_v23, 0.0  ;;  %v1434_v4 = vmax.f32 %v1336_v62, %v1432_v24 }
 0x2d7   : > { %1447 = vst.msk [vmem:[%s239_s15] sm:$0xff] %vm1446_vm7, %v1444_v27  ;;  %v1443_v5 = vadd.f32 %v1670_v21, %v1434_v4 }
 0x2d9   : > { %v1445_v6 = vmax.f32 %v1443_v5, 0.0 }
 0x2db   : > { %1449 = vst.msk [vmem:[%s239_s15 + $0x8] sm:$0x3f] %vm1448_vm6, %v1445_v6 }
 0x2dc PF: > { %s14_s19 = sadd.s32 1, %s1877_s19   ;;  %s2852_s15 = smov %s1869_s17 }
 0x2dd   : > { %p11_p7 = scmp.ge.s32.totalorder %s14_s19, 30   ;;  %s2853_s16 = smov %s1873_s18 }
 0x2de   : > { %s2854_s17 = smov %s2857_s20  ;;  %s2855_s18 = smov %s2861_s21 }
 0x2df   :  { %13 = sbr.rel (!%p11_p7) target bundleno = 3 (0x3), region = 84 }

// kernel: model_forward.5
= control target key start
LH: loop header
LB: loop body
LE: loop exit
PB: predicated region body
PF: predicated region fallthrough
CT: control target
= control target key end

     0   :  { %v232_v35 = vlaneseq  ;;  %v2518_v36 = vmov 1966171168   ;;  %s3288_s0 = inlined_call_operand.vmem [shape: bf16[2,1600], index: 0, kind: input, shape index: {}]   ;;  %s3289_s1 = inlined_call_operand.vmem [shape: bf16[1600,200], index: 1, kind: input, shape index: {}]   ;;  %s3290_s2 = inlined_call_operand.vmem [shape: f32[1,200], index: 2, kind: input, shape index: {}]   ;;  %s3291_s3 = inlined_call_operand.vmem [shape: bf16[200,100], index: 3, kind: input, shape index: {}]   ;;  %s3292_s4 = inlined_call_operand.vmem [shape: f32[1,100], index: 4, kind: input, shape index: {}]   ;;  %s3293_s5 = inlined_call_operand.vmem [shape: bf16[100,128], index: 5, kind: input, shape index: {}]   ;;  %s3294_s6 = inlined_call_operand.vmem [shape: f32[1,128], index: 6, kind: input, shape index: {}]   ;;  %s3295_s7 = inlined_call_operand.hbm [shape: f32[2,128], index: 7, kind: output, shape index: {}]  }
   0x1   :  { %v2174_v0 = vld [vmem:[%s3289_s1 + $0x74] ss:$8 sps:$4 sm:$0xff]   ;;  %v2176_v1 = vld [vmem:[%s3289_s1 + $0x70] ss:$8 sps:$4 sm:$0xff]   ;;  %v2180_v4 = vld [vmem:[%s3289_s1 + $0x64] ss:$8 sps:$4 sm:$0xff]   ;;  %v246_v37 = vunpack.c.l.s4 %v2518_v36 }
   0x2   :  { %1348 = vmatprep.subr.bf16.mxu0 %v2174_v0  ;;  %v2177_v2 = vld [vmem:[%s3289_s1 + $0x174] ss:$8 sps:$4 sm:$0xff]   ;;  %v2179_v3 = vld [vmem:[%s3289_s1 + $0x170] ss:$8 sps:$4 sm:$0xff]   ;;  %v2182_v5 = vld [vmem:[%s3289_s1 + $0x60] ss:$8 sps:$4 sm:$0xff]  }
   0x3   :  { %1349 = vmatpush1.bf16.msra.mxu0 %v2176_v1  ;;  %1389 = vmatprep.subr.bf16.mxu1 %v2177_v2  ;;  %v2183_v6 = vld [vmem:[%s3289_s1 + $0x164] ss:$8 sps:$4 sm:$0xff]   ;;  %v2185_v7 = vld [vmem:[%s3289_s1 + $0x160] ss:$8 sps:$4 sm:$0xff]   ;;  %v2186_v8 = vld [vmem:[%s3289_s1 + $0x54] ss:$8 sps:$4 sm:$0xff]   ;;  %v247_v43 = vunpack.c.0.s8 %v246_v37 }
   0x4   :  { %1390 = vmatpush1.bf16.msra.mxu1 %v2179_v3  ;;  %1350 = vmatprep.subr.bf16.mxu0 %v2180_v4  ;;  %v2188_v9 = vld [vmem:[%s3289_s1 + $0x50] ss:$8 sps:$4 sm:$0xff]   ;;  %v2189_v10 = vld [vmem:[%s3289_s1 + $0x154] ss:$8 sps:$4 sm:$0xff]   ;;  %v2192_v11 = vld [vmem:[%s3289_s1 + $0x44] ss:$8 sps:$4 sm:$0xff]  }
   0x5   :  { %1391 = vmatprep.subr.bf16.mxu1 %v2183_v6  ;;  %v2191_v12 = vld [vmem:[%s3289_s1 + $0x150] ss:$8 sps:$4 sm:$0xff]   ;;  %v2195_v13 = vld [vmem:[%s3289_s1 + $0x144] ss:$8 sps:$4 sm:$0xff]   ;;  %v2194_v14 = vld [vmem:[%s3289_s1 + $0x40] ss:$8 sps:$4 sm:$0xff]  }
   0x6   :  { %v2198_v15 = vld [vmem:[%s3289_s1 + $0x34] ss:$8 sps:$4 sm:$0xff]   ;;  %v2197_v16 = vld [vmem:[%s3289_s1 + $0x140] ss:$8 sps:$4 sm:$0xff]   ;;  %v2200_v18 = vld [vmem:[%s3289_s1 + $0x30] ss:$8 sps:$4 sm:$0xff]  }
   0x7   :  { %1351 = vmatpush1.bf16.msra.mxu0 %v2182_v5  ;;  %v2201_v17 = vld [vmem:[%s3289_s1 + $0x134] ss:$8 sps:$4 sm:$0xff]   ;;  %v2204_v19 = vld [vmem:[%s3289_s1 + $0x24] ss:$8 sps:$4 sm:$0xff]   ;;  %v2203_v20 = vld [vmem:[%s3289_s1 + $0x130] ss:$8 sps:$4 sm:$0xff]  }
   0x8   :  { %1352 = vmatprep.subr.bf16.mxu0 %v2186_v8  ;;  %1392 = vmatpush1.bf16.msra.mxu1 %v2185_v7  ;;  %v2207_v21 = vld [vmem:[%s3289_s1 + $0x124] ss:$8 sps:$4 sm:$0xff]   ;;  %v2206_v22 = vld [vmem:[%s3289_s1 + $0x20] ss:$8 sps:$4 sm:$0xff]   ;;  %v2210_v23 = vld [vmem:[%s3289_s1 + $0x14] ss:$8 sps:$4 sm:$0xff]  }
   0x9   :  { %1393 = vmatprep.subr.bf16.mxu1 %v2189_v10  ;;  %v2209_v24 = vld [vmem:[%s3289_s1 + $0x120] ss:$8 sps:$4 sm:$0xff]   ;;  %v2213_v25 = vld [vmem:[%s3289_s1 + $0x114] ss:$8 sps:$4 sm:$0xff]   ;;  %v2212_v26 = vld [vmem:[%s3289_s1 + $0x10] ss:$8 sps:$4 sm:$0xff]  }
   0xa   :  { %v2216_v27 = vld [vmem:[%s3289_s1 + $0x4] ss:$8 sps:$4 sm:$0xff]   ;;  %v2215_v28 = vld [vmem:[%s3289_s1 + $0x110] ss:$8 sps:$4 sm:$0xff]   ;;  %v2218_v30 = vld [vmem:[%s3289_s1] ss:$8 sps:$4 sm:$0xff]  }
   0xb   :  { %1353 = vmatpush1.bf16.msra.mxu0 %v2188_v9  ;;  %v2219_v29 = vld [vmem:[%s3289_s1 + $0x104] ss:$8 sps:$4 sm:$0xff]   ;;  %v2222_v31 = vld [vmem:[%s3289_s1 + $0xf4] ss:$8 sps:$4 sm:$0xff]   ;;  %v2221_v32 = vld [vmem:[%s3289_s1 + $0x100] ss:$8 sps:$4 sm:$0xff]  }
   0xc   :  { %1354 = vmatprep.subr.bf16.mxu0 %v2192_v11  ;;  %1394 = vmatpush1.bf16.msra.mxu1 %v2191_v12  ;;  %v2225_v33 = vld [vmem:[%s3289_s1 + $0x1f4] ss:$8 sps:$4 sm:$0xff]   ;;  %v2224_v34 = vld [vmem:[%s3289_s1 + $0xf0] ss:$8 sps:$4 sm:$0xff]   ;;  %v2228_v38 = vld [vmem:[%s3289_s1 + $0xe4] ss:$8 sps:$4 sm:$0xff]  }
   0xd   :  { %1395 = vmatprep.subr.bf16.mxu1 %v2195_v13  ;;  %v2227_v39 = vld [vmem:[%s3289_s1 + $0x1f0] ss:$8 sps:$4 sm:$0xff]   ;;  %v2231_v40 = vld [vmem:[%s3289_s1 + $0x1e4] ss:$8 sps:$4 sm:$0xff]   ;;  %v2230_v41 = vld [vmem:[%s3289_s1 + $0xe0] ss:$8 sps:$4 sm:$0xff]  }
   0xe   :  { %v2680_v42 = vshrl.u32 %v232_v35, 7  ;;  %v2234_v44 = vld [vmem:[%s3289_s1 + $0xd4] ss:$8 sps:$4 sm:$0xff]   ;;  %v2233_v45 = vld [vmem:[%s3289_s1 + $0x1e0] ss:$8 sps:$4 sm:$0xff]  }
   0xf   :  { %1355 = vmatpush1.bf16.msra.mxu0 %v2194_v14  ;;  %v2237_v46 = vld [vmem:[%s3289_s1 + $0x1d4] ss:$8 sps:$4 sm:$0xff]   ;;  %v2236_v47 = vld [vmem:[%s3289_s1 + $0xd0] ss:$8 sps:$4 sm:$0xff]   ;;  %v2240_v49 = vld [vmem:[%s3289_s1 + $0xc4] ss:$8 sps:$4 sm:$0xff]  }
  0x10   :  { %1356 = vmatprep.subr.bf16.mxu0 %v2198_v15  ;;  %1396 = vmatpush1.bf16.msra.mxu1 %v2197_v16  ;;  %v2695_v48 = vsub.s32 %v247_v43, %v2680_v42  ;;  %v2239_v50 = vld [vmem:[%s3289_s1 + $0x1d0] ss:$8 sps:$4 sm:$0xff]   ;;  %v2243_v51 = vld [vmem:[%s3289_s1 + $0x1c4] ss:$8 sps:$4 sm:$0xff]   ;;  %v2242_v53 = vld [vmem:[%s3289_s1 + $0xc0] ss:$8 sps:$4 sm:$0xff]  }
  0x11   :  { %1397 = vmatprep.subr.bf16.mxu1 %v2201_v17  ;;  %v28_v52 = vld [vmem:[%s3288_s0] sm:$0xff]  ;;  %v2246_v55 = vld [vmem:[%s3289_s1 + $0xb4] ss:$8 sps:$4 sm:$0xff]   ;;  %v2248_v59 = vld [vmem:[%s3289_s1 + $0xb0] ss:$8 sps:$4 sm:$0xff]  }
  0x12   :  { %v251_v54 = vrot.slane %v28_v52, %v2695_v48  ;;  %v2245_v56 = vld [vmem:[%s3289_s1 + $0x1c0] ss:$8 sps:$4 sm:$0xff]   ;;  %v2249_v58 = vld [vmem:[%s3289_s1 + $0x1b4] ss:$8 sps:$4 sm:$0xff]   ;;  %v2252_v61 = vld [vmem:[%s3289_s1 + $0xa4] ss:$8 sps:$4 sm:$0xff]   ;;  %v244_v63 = vcombine.high %v28_v52, %v28_v52 }
  0x13   :  { %1357 = vmatpush1.bf16.msra.mxu0 %v2200_v18  ;;  %v2251_v62 = vld [vmem:[%s3289_s1 + $0x1b0] ss:$8 sps:$4 sm:$0xff]   ;;  %v2255_v1 = vld [vmem:[%s3289_s1 + $0x1a4] ss:$8 sps:$4 sm:$0xff]   ;;  %v2254_v2 = vld [vmem:[%s3289_s1 + $0xa0] ss:$8 sps:$4 sm:$0xff]  }
  0x14   :  { %1358 = vmatprep.subr.bf16.mxu0 %v2204_v19  ;;  %1398 = vmatpush1.bf16.msra.mxu1 %v2203_v20  ;;  %v259_v57 = vcombine.high %v251_v54, %v251_v54  ;;  %v2258_v3 = vld [vmem:[%s3289_s1 + $0x94] ss:$8 sps:$4 sm:$0xff]   ;;  %v2257_v4 = vld [vmem:[%s3289_s1 + $0x1a0] ss:$8 sps:$4 sm:$0xff]   ;;  %v2745_v5 = vrot.slane %v244_v63, %v2695_v48  ;;  %v2260_v7 = vld [vmem:[%s3289_s1 + $0x90] ss:$8 sps:$4 sm:$0xff]   ;;  %v267_v13 = vrot.slane %v251_v54, %v2695_v48 }
  0x15   :  { %1399 = vmatprep.subr.bf16.mxu1 %v2207_v21  ;;  %v2261_v6 = vld [vmem:[%s3289_s1 + $0x194] ss:$8 sps:$4 sm:$0xff]   ;;  %v2264_v8 = vld [vmem:[%s3289_s1 + $0x84] ss:$8 sps:$4 sm:$0xff]   ;;  %v2263_v9 = vld [vmem:[%s3289_s1 + $0x190] ss:$8 sps:$4 sm:$0xff]  }
  0x16   :  { %v281_v60 = vrot.slane %v259_v57, %v2695_v48  ;;  %v260_v10 = vcombine.high %v2745_v5, %v2745_v5  ;;  %v2267_v11 = vld [vmem:[%s3289_s1 + $0x184] ss:$8 sps:$4 sm:$0xff]   ;;  %v2266_v12 = vld [vmem:[%s3289_s1 + $0x80] ss:$8 sps:$4 sm:$0xff]   ;;  %v2273_v14 = vld [vmem:[%s3289_s1 + $0x274] ss:$8 sps:$4 sm:$0xff]   ;;  %v289_v19 = vcombine.high %v267_v13, %v267_v13 }
  0x17   :  { %1359 = vmatpush1.bf16.msra.mxu0 %v2206_v22  ;;  %v2270_v15 = vld [vmem:[%s3289_s1 + $0x180] ss:$8 sps:$4 sm:$0xff]   ;;  %v2276_v17 = vld [vmem:[%s3289_s1 + $0x374] ss:$8 sps:$4 sm:$0xff]   ;;  %v2271_v18 = vld [vmem:[%s3289_s1 + $0x270] ss:$8 sps:$4 sm:$0xff]  }
  0x18   :  { %1360 = vmatprep.subr.bf16.mxu0 %v2210_v23  ;;  %1400 = vmatpush1.bf16.msra.mxu1 %v2209_v24  ;;  %v291_v0 = vcombine.high %v281_v60, %v281_v60  ;;  %v288_v16 = vrot.slane %v260_v10, %v2695_v48  ;;  %v2279_v20 = vld [vmem:[%s3289_s1 + $0x264] ss:$8 sps:$4 sm:$0xff]   ;;  %v2274_v21 = vld [vmem:[%s3289_s1 + $0x370] ss:$8 sps:$4 sm:$0xff]   ;;  %v2277_v24 = vld [vmem:[%s3289_s1 + $0x260] ss:$8 sps:$4 sm:$0xff]  }
  0x19   :  { %1401 = vmatprep.subr.bf16.mxu1 %v2213_v25  ;;  %1380 = vmatprep.mubr.bf16.mxu0 %v281_v60  ;;  %v2282_v23 = vld [vmem:[%s3289_s1 + $0x364] ss:$8 sps:$4 sm:$0xff]   ;;  %v2285_v25 = vld [vmem:[%s3289_s1 + $0x254] ss:$8 sps:$4 sm:$0xff]   ;;  %v2295_v36 = vld [vmem:[%s3289_s1 + $0x230] ss:$8 sps:$4 sm:$0xff]  }
  0x1a   :  { %1421 = vmatprep.mubr.bf16.mxu1 %v291_v0  ;;  %v292_v22 = vcombine.high %v288_v16, %v288_v16  ;;  %v2300_v35 = vld [vmem:[%s3289_s1 + $0x334] ss:$8 sps:$4 sm:$0xff]   ;;  %v2303_v37 = vld [vmem:[%s3289_s1 + $0x224] ss:$8 sps:$4 sm:$0xff]   ;;  %v2304_v43 = vld [vmem:[%s3289_s1 + $0x320] ss:$8 sps:$4 sm:$0xff]  }
  0x1b   :  { %1361 = vmatpush1.bf16.msra.mxu0 %v2212_v26  ;;  %v2280_v26 = vld [vmem:[%s3289_s1 + $0x360] ss:$8 sps:$4 sm:$0xff]   ;;  %v2319_v54 = vld [vmem:[%s3289_s1 + $0x2f0] ss:$8 sps:$4 sm:$0xff]   ;;  %v2330_v57 = vld [vmem:[%s3289_s1 + $0x3e4] ss:$8 sps:$4 sm:$0xff]  }
  0x1c   :  { %1362 = vmatprep.subr.bf16.mxu0 %v2216_v27  ;;  %1402 = vmatpush1.bf16.msra.mxu1 %v2215_v28  ;;  %v2288_v27 = vld [vmem:[%s3289_s1 + $0x354] ss:$8 sps:$4 sm:$0xff]   ;;  %v2283_v28 = vld [vmem:[%s3289_s1 + $0x250] ss:$8 sps:$4 sm:$0xff]   ;;  %v2316_v52 = vld [vmem:[%s3289_s1 + $0x300] ss:$8 sps:$4 sm:$0xff]  }
  0x1d   :  { %1403 = vmatprep.subr.bf16.mxu1 %v2219_v29  ;;  %v2291_v29 = vld [vmem:[%s3289_s1 + $0x244] ss:$8 sps:$4 sm:$0xff]   ;;  %v2328_v60 = vld [vmem:[%s3289_s1 + $0x3e0] ss:$8 sps:$4 sm:$0xff]   ;;  %v2334_v0 = vld [vmem:[%s3289_s1 + $0x3d0] ss:$8 sps:$4 sm:$0xff]  }
  0x1e   :  { %v2339_v63 = vld [vmem:[%s3289_s1 + $0x2c4] ss:$8 sps:$4 sm:$0xff]  }
  0x1f   :  { %1363 = vmatpush1.bf16.msra.mxu0 %v2218_v30  ;;  %v2286_v30 = vld [vmem:[%s3289_s1 + $0x350] ss:$8 sps:$4 sm:$0xff]   ;;  %v2354_v10 = vld [vmem:[%s3289_s1 + $0x3a4] ss:$8 sps:$4 sm:$0xff]  }
  0x20   :  { %1364 = vmatprep.subr.bf16.mxu0 %v2222_v31  ;;  %1404 = vmatpush1.bf16.msra.mxu1 %v2221_v32  ;;  %v2294_v31 = vld [vmem:[%s3289_s1 + $0x344] ss:$8 sps:$4 sm:$0xff]   ;;  %v2289_v32 = vld [vmem:[%s3289_s1 + $0x240] ss:$8 sps:$4 sm:$0xff]  }
  0x21   :  { %1405 = vmatprep.subr.bf16.mxu1 %v2225_v33  ;;  %v2297_v33 = vld [vmem:[%s3289_s1 + $0x234] ss:$8 sps:$4 sm:$0xff]  }
  0x23   :  { %1365 = vmatpush2.bf16.msra.mxu0 %v2224_v34  ;;  %v2292_v34 = vld [vmem:[%s3289_s1 + $0x340] ss:$8 sps:$4 sm:$0xff]  }
  0x24   :  { %1366 = vmatprep.subr.bf16.mxu0 %v2228_v38  ;;  %1406 = vmatpush2.bf16.msra.mxu1 %v2227_v39  ;;  %v2298_v38 = vld [vmem:[%s3289_s1 + $0x330] ss:$8 sps:$4 sm:$0xff]   ;;  %v2306_v39 = vld [vmem:[%s3289_s1 + $0x324] ss:$8 sps:$4 sm:$0xff]  }
  0x25   :  { %1407 = vmatprep.subr.bf16.mxu1 %v2231_v40  ;;  %v2301_v40 = vld [vmem:[%s3289_s1 + $0x220] ss:$8 sps:$4 sm:$0xff]  }
  0x27   :  { %1367 = vmatpush2.bf16.msra.mxu0 %v2230_v41  ;;  %v2309_v41 = vld [vmem:[%s3289_s1 + $0x214] ss:$8 sps:$4 sm:$0xff]  }
  0x28   :  { %1368 = vmatprep.subr.bf16.mxu0 %v2234_v44  ;;  %1408 = vmatpush2.bf16.msra.mxu1 %v2233_v45  ;;  %v2312_v44 = vld [vmem:[%s3289_s1 + $0x314] ss:$8 sps:$4 sm:$0xff]   ;;  %v2307_v45 = vld [vmem:[%s3289_s1 + $0x210] ss:$8 sps:$4 sm:$0xff]  }
  0x29   :  { %1409 = vmatprep.subr.bf16.mxu1 %v2237_v46  ;;  %v2315_v46 = vld [vmem:[%s3289_s1 + $0x204] ss:$8 sps:$4 sm:$0xff]  }
  0x2b   :  { %1369 = vmatpush2.bf16.msra.mxu0 %v2236_v47  ;;  %v2310_v47 = vld [vmem:[%s3289_s1 + $0x310] ss:$8 sps:$4 sm:$0xff]  }
  0x2c   :  { %1370 = vmatprep.subr.bf16.mxu0 %v2240_v49  ;;  %1410 = vmatpush2.bf16.msra.mxu1 %v2239_v50  ;;  %v2318_v49 = vld [vmem:[%s3289_s1 + $0x304] ss:$8 sps:$4 sm:$0xff]   ;;  %v2313_v50 = vld [vmem:[%s3289_s1 + $0x200] ss:$8 sps:$4 sm:$0xff]  }
  0x2d   :  { %1411 = vmatprep.subr.bf16.mxu1 %v2243_v51  ;;  %v2321_v51 = vld [vmem:[%s3289_s1 + $0x2f4] ss:$8 sps:$4 sm:$0xff]  }
  0x2f   :  { %1371 = vmatpush2.bf16.msra.mxu0 %v2242_v53  ;;  %v2324_v53 = vld [vmem:[%s3289_s1 + $0x3f4] ss:$8 sps:$4 sm:$0xff]  }
  0x30   :  { %1372 = vmatprep.subr.bf16.mxu0 %v2246_v55  ;;  %1412 = vmatpush2.bf16.msra.mxu1 %v2245_v56  ;;  %v2327_v55 = vld [vmem:[%s3289_s1 + $0x2e4] ss:$8 sps:$4 sm:$0xff]   ;;  %v2322_v56 = vld [vmem:[%s3289_s1 + $0x3f0] ss:$8 sps:$4 sm:$0xff]  }
  0x31   :  { %1413 = vmatprep.subr.bf16.mxu1 %v2249_v58  ;;  %v2325_v58 = vld [vmem:[%s3289_s1 + $0x2e0] ss:$8 sps:$4 sm:$0xff]  }
  0x33   :  { %1373 = vmatpush2.bf16.msra.mxu0 %v2248_v59  ;;  %v2333_v59 = vld [vmem:[%s3289_s1 + $0x2d4] ss:$8 sps:$4 sm:$0xff]  }
  0x34   :  { %1374 = vmatprep.subr.bf16.mxu0 %v2252_v61  ;;  %1414 = vmatpush2.bf16.msra.mxu1 %v2251_v62  ;;  %v2336_v61 = vld [vmem:[%s3289_s1 + $0x3d4] ss:$8 sps:$4 sm:$0xff]   ;;  %v2331_v62 = vld [vmem:[%s3289_s1 + $0x2d0] ss:$8 sps:$4 sm:$0xff]  }
  0x35   :  { %1415 = vmatprep.subr.bf16.mxu1 %v2255_v1  ;;  %v2342_v1 = vld [vmem:[%s3289_s1 + $0x3c4] ss:$8 sps:$4 sm:$0xff]  }
  0x37   :  { %1375 = vmatpush2.bf16.msra.mxu0 %v2254_v2  ;;  %v2337_v2 = vld [vmem:[%s3289_s1 + $0x2c0] ss:$8 sps:$4 sm:$0xff]  }
  0x38   :  { %1376 = vmatprep.subr.bf16.mxu0 %v2258_v3  ;;  %1416 = vmatpush2.bf16.msra.mxu1 %v2257_v4  ;;  %v2345_v3 = vld [vmem:[%s3289_s1 + $0x2b4] ss:$8 sps:$4 sm:$0xff]   ;;  %v2340_v4 = vld [vmem:[%s3289_s1 + $0x3c0] ss:$8 sps:$4 sm:$0xff]  }
  0x39   :  { %1417 = vmatprep.subr.bf16.mxu1 %v2261_v6  ;;  %v2348_v6 = vld [vmem:[%s3289_s1 + $0x3b4] ss:$8 sps:$4 sm:$0xff]  }
  0x3b   :  { %1377 = vmatpush2.bf16.msra.mxu0 %v2260_v7  ;;  %v2343_v7 = vld [vmem:[%s3289_s1 + $0x2b0] ss:$8 sps:$4 sm:$0xff]  }
  0x3c   :  { %1378 = vmatprep.subr.bf16.mxu0 %v2264_v8  ;;  %1418 = vmatpush2.bf16.msra.mxu1 %v2263_v9  ;;  %v2351_v8 = vld [vmem:[%s3289_s1 + $0x2a4] ss:$8 sps:$4 sm:$0xff]   ;;  %v2346_v9 = vld [vmem:[%s3289_s1 + $0x3b0] ss:$8 sps:$4 sm:$0xff]  }
  0x3d   :  { %1419 = vmatprep.subr.bf16.mxu1 %v2267_v11  ;;  %v2349_v11 = vld [vmem:[%s3289_s1 + $0x2a0] ss:$8 sps:$4 sm:$0xff]  }
  0x3f   :  { %1379 = vmatpush2.bf16.msra.mxu0 %v2266_v12  ;;  %v2357_v12 = vld [vmem:[%s3289_s1 + $0x294] ss:$8 sps:$4 sm:$0xff]  }
  0x40   :  { %1430 = vmatprep.subr.bf16.mxu0 %v2273_v14  ;;  %1420 = vmatpush2.bf16.msra.mxu1 %v2270_v15  ;;  %v2360_v14 = vld [vmem:[%s3289_s1 + $0x394] ss:$8 sps:$4 sm:$0xff]   ;;  %v2355_v15 = vld [vmem:[%s3289_s1 + $0x290] ss:$8 sps:$4 sm:$0xff]  }
  0x41   :  { %1471 = vmatprep.subr.bf16.mxu1 %v2276_v17  ;;  %v2358_v17 = vld [vmem:[%s3289_s1 + $0x390] ss:$8 sps:$4 sm:$0xff]  }
  0x42   :  { %1381 = vmatmul.mubr.bf16.vlgmr.msra.gmra.mxu0 %v267_v13  ;;  %v2352_v13 = vld [vmem:[%s3289_s1 + $0x3a0] ss:$8 sps:$4 sm:$0xff]  }
  0x43   :  { %1431 = vmatpush1.bf16.msra.mxu0 %v2271_v18  ;;  %1462 = vmatprep.mubr.bf16.mxu0 %v288_v16  ;;  %v2363_v16 = vld [vmem:[%s3289_s1 + $0x284] ss:$8 sps:$4 sm:$0xff]  }
  0x44   :  { %1422 = vmatmul.mubr.bf16.vlgmr.msra.gmra.mxu1 %v289_v19  ;;  %1432 = vmatprep.subr.bf16.mxu0 %v2279_v20  ;;  %v2366_v18 = vld [vmem:[%s3289_s1 + $0x384] ss:$8 sps:$4 sm:$0xff]   ;;  %v2361_v19 = vld [vmem:[%s3289_s1 + $0x280] ss:$8 sps:$4 sm:$0xff]   ;;  %v274_v20 = vrot.slane %v2745_v5, %v2695_v48 }
  0x45   :  { %1472 = vmatpush1.bf16.msra.mxu1 %v2274_v21  ;;  %1503 = vmatprep.mubr.bf16.mxu1 %v292_v22  ;;  %v2369_v21 = vld [vmem:[%s3289_s1 + $0x474] ss:$8 sps:$4 sm:$0xff]   ;;  %v2364_v22 = vld [vmem:[%s3289_s1 + $0x380] ss:$8 sps:$4 sm:$0xff]  }
  0x46   :  { %1473 = vmatprep.subr.bf16.mxu1 %v2282_v23  ;;  %v2372_v23 = vld [vmem:[%s3289_s1 + $0x574] ss:$8 sps:$4 sm:$0xff]   ;;  %v290_v5 = vcombine.high %v274_v20, %v274_v20 }
  0x47   :  { %1433 = vmatpush1.bf16.msra.mxu0 %v2277_v24  ;;  %v2367_v24 = vld [vmem:[%s3289_s1 + $0x470] ss:$8 sps:$4 sm:$0xff]  }
  0x48   :  { %1434 = vmatprep.subr.bf16.mxu0 %v2285_v25  ;;  %v2375_v25 = vld [vmem:[%s3289_s1 + $0x464] ss:$8 sps:$4 sm:$0xff]  }
  0x49   :  { %1474 = vmatpush1.bf16.msra.mxu1 %v2280_v26  ;;  %v2981_v26 = vld [vmem:[%s3288_s0 + $0x8] sm:$0x1f] }
  0x4a   :  { %1475 = vmatprep.subr.bf16.mxu1 %v2288_v27  ;;  %v2370_v27 = vld [vmem:[%s3289_s1 + $0x570] ss:$8 sps:$4 sm:$0xff]  }
  0x4b   :  { %1435 = vmatpush1.bf16.msra.mxu0 %v2283_v28  ;;  %v2988_v28 = vrot.slane %v2981_v26, %v2695_v48 }
  0x4c   :  { %1436 = vmatprep.subr.bf16.mxu0 %v2291_v29  ;;  %v2378_v29 = vld [vmem:[%s3289_s1 + $0x564] ss:$8 sps:$4 sm:$0xff]  }
  0x4d   :  { %1476 = vmatpush1.bf16.msra.mxu1 %v2286_v30  ;;  %v2373_v30 = vld [vmem:[%s3289_s1 + $0x460] ss:$8 sps:$4 sm:$0xff]  }
  0x4e   :  { %1477 = vmatprep.subr.bf16.mxu1 %v2294_v31  ;;  %v308_v31 = vcombine.high %v2988_v28, %v2988_v28 }
  0x4f   :  { %1437 = vmatpush1.bf16.msra.mxu0 %v2289_v32  ;;  %v2376_v32 = vld [vmem:[%s3289_s1 + $0x560] ss:$8 sps:$4 sm:$0xff]  }
  0x50   :  { %1438 = vmatprep.subr.bf16.mxu0 %v2297_v33  ;;  %v2381_v33 = vld [vmem:[%s3289_s1 + $0x454] ss:$8 sps:$4 sm:$0xff]  }
  0x51   :  { %1478 = vmatpush1.bf16.msra.mxu1 %v2292_v34  ;;  %v2379_v34 = vld [vmem:[%s3289_s1 + $0x450] ss:$8 sps:$4 sm:$0xff]  }
  0x52   :  { %1479 = vmatprep.subr.bf16.mxu1 %v2300_v35  ;;  %v2384_v35 = vld [vmem:[%s3289_s1 + $0x554] ss:$8 sps:$4 sm:$0xff]  }
  0x53   :  { %1439 = vmatpush1.bf16.msra.mxu0 %v2295_v36  ;;  %v329_v36 = vrot.slane %v308_v31, %v2695_v48 }
  0x54   :  { %1440 = vmatprep.subr.bf16.mxu0 %v2303_v37  ;;  %v2387_v37 = vld [vmem:[%s3289_s1 + $0x444] ss:$8 sps:$4 sm:$0xff]  }
  0x55   :  { %1480 = vmatpush1.bf16.msra.mxu1 %v2298_v38  ;;  %v2382_v38 = vld [vmem:[%s3289_s1 + $0x550] ss:$8 sps:$4 sm:$0xff]  }
  0x56   :  { %1481 = vmatprep.subr.bf16.mxu1 %v2306_v39  ;;  %v331_v39 = vcombine.high %v329_v36, %v329_v36 }
  0x57   :  { %1441 = vmatpush1.bf16.msra.mxu0 %v2301_v40  ;;  %v2390_v40 = vld [vmem:[%s3289_s1 + $0x544] ss:$8 sps:$4 sm:$0xff]  }
  0x58   :  { %1442 = vmatprep.subr.bf16.mxu0 %v2309_v41  ;;  %v2385_v41 = vld [vmem:[%s3289_s1 + $0x440] ss:$8 sps:$4 sm:$0xff]  }
  0x59   :  { %1482 = vmatpush1.bf16.msra.mxu1 %v2304_v43  ;;  %v2393_v43 = vld [vmem:[%s3289_s1 + $0x434] ss:$8 sps:$4 sm:$0xff]  }
  0x5a   :  { %1483 = vmatprep.subr.bf16.mxu1 %v2312_v44  ;;  %v2388_v44 = vld [vmem:[%s3289_s1 + $0x540] ss:$8 sps:$4 sm:$0xff]  }
  0x5b   :  { %1443 = vmatpush1.bf16.msra.mxu0 %v2307_v45  ;;  %v2396_v45 = vld [vmem:[%s3289_s1 + $0x534] ss:$8 sps:$4 sm:$0xff]  }
  0x5c   :  { %1444 = vmatprep.subr.bf16.mxu0 %v2315_v46  ;;  %v2391_v46 = vld [vmem:[%s3289_s1 + $0x430] ss:$8 sps:$4 sm:$0xff]  }
  0x5d   :  { %1484 = vmatpush1.bf16.msra.mxu1 %v2310_v47  ;;  %v2399_v47 = vld [vmem:[%s3289_s1 + $0x424] ss:$8 sps:$4 sm:$0xff]  }
  0x5e   :  { %1485 = vmatprep.subr.bf16.mxu1 %v2318_v49  ;;  %v2394_v49 = vld [vmem:[%s3289_s1 + $0x530] ss:$8 sps:$4 sm:$0xff]  }
  0x5f   :  { %1445 = vmatpush1.bf16.msra.mxu0 %v2313_v50  ;;  %v2402_v50 = vld [vmem:[%s3289_s1 + $0x524] ss:$8 sps:$4 sm:$0xff]  }
  0x60   :  { %1446 = vmatprep.subr.bf16.mxu0 %v2321_v51  ;;  %v2397_v51 = vld [vmem:[%s3289_s1 + $0x420] ss:$8 sps:$4 sm:$0xff]  }
  0x61   :  { %1486 = vmatpush1.bf16.msra.mxu1 %v2316_v52 }
  0x62   :  { %1487 = vmatprep.subr.bf16.mxu1 %v2324_v53 }
  0x63   :  { %1447 = vmatpush2.bf16.msra.mxu0 %v2319_v54 }
  0x64   :  { %1448 = vmatprep.subr.bf16.mxu0 %v2327_v55 }
  0x65   :  { %1488 = vmatpush2.bf16.msra.mxu1 %v2322_v56 }
  0x66   :  { %1489 = vmatprep.subr.bf16.mxu1 %v2330_v57 }
  0x67   :  { %1449 = vmatpush2.bf16.msra.mxu0 %v2325_v58 }
  0x68   :  { %1450 = vmatprep.subr.bf16.mxu0 %v2333_v59 }
  0x69   :  { %1490 = vmatpush2.bf16.msra.mxu1 %v2328_v60 }
  0x6a   :  { %1491 = vmatprep.subr.bf16.mxu1 %v2336_v61 }
  0x6b   :  { %1451 = vmatpush2.bf16.msra.mxu0 %v2331_v62 }
  0x6c   :  { %1452 = vmatprep.subr.bf16.mxu0 %v2339_v63 }
  0x6d   :  { %1492 = vmatpush2.bf16.msra.mxu1 %v2334_v0 }
  0x6e   :  { %1493 = vmatprep.subr.bf16.mxu1 %v2342_v1 }
  0x6f   :  { %1453 = vmatpush2.bf16.msra.mxu0 %v2337_v2 }
  0x70   :  { %1454 = vmatprep.subr.bf16.mxu0 %v2345_v3 }
  0x71   :  { %1494 = vmatpush2.bf16.msra.mxu1 %v2340_v4 }
  0x72   :  { %1495 = vmatprep.subr.bf16.mxu1 %v2348_v6 }
  0x73   :  { %1455 = vmatpush2.bf16.msra.mxu0 %v2343_v7 }
  0x74   :  { %1456 = vmatprep.subr.bf16.mxu0 %v2351_v8 }
  0x75   :  { %1496 = vmatpush2.bf16.msra.mxu1 %v2346_v9 }
  0x76   :  { %1497 = vmatprep.subr.bf16.mxu1 %v2354_v10 }
  0x77   :  { %1457 = vmatpush2.bf16.msra.mxu0 %v2349_v11 }
  0x78   :  { %1458 = vmatprep.subr.bf16.mxu0 %v2357_v12 }
  0x79   :  { %1498 = vmatpush2.bf16.msra.mxu1 %v2352_v13 }
  0x7a   :  { %1499 = vmatprep.subr.bf16.mxu1 %v2360_v14 }
  0x7b   :  { %1459 = vmatpush2.bf16.msra.mxu0 %v2355_v15 }
  0x7c   :  { %1460 = vmatprep.subr.bf16.mxu0 %v2363_v16 }
  0x7d   :  { %1500 = vmatpush2.bf16.msra.mxu1 %v2358_v17 }
  0x7e   :  { %1501 = vmatprep.subr.bf16.mxu1 %v2366_v18 }
  0x7f   :  { %1461 = vmatpush2.bf16.msra.mxu0 %v2361_v19 }
  0x80   :  { %1512 = vmatprep.subr.bf16.mxu0 %v2369_v21 }
  0x81   :  { %1502 = vmatpush2.bf16.msra.mxu1 %v2364_v22 }
  0x82   :  { %1463 = vmatmul.mubr.bf16.vlgmr.msra.gmra.mxu0 %v274_v20  ;;  %1553 = vmatprep.subr.bf16.mxu1 %v2372_v23 }
  0x83   :  { %1513 = vmatpush1.bf16.msra.mxu0 %v2367_v24  ;;  %1544 = vmatprep.mubr.bf16.mxu0 %v329_v36 }
  0x84   :  { %1504 = vmatmul.mubr.bf16.vlgmr.msra.gmra.mxu1 %v290_v5  ;;  %1514 = vmatprep.subr.bf16.mxu0 %v2375_v25 }
  0x85   :  { %1554 = vmatpush1.bf16.msra.mxu1 %v2370_v27  ;;  %1585 = vmatprep.mubr.bf16.mxu1 %v331_v39 }
  0x86   :  { %1555 = vmatprep.subr.bf16.mxu1 %v2378_v29 }
  0x87   :  { %1515 = vmatpush1.bf16.msra.mxu0 %v2373_v30 }
  0x88   :  { %1516 = vmatprep.subr.bf16.mxu0 %v2381_v33 }
  0x89   :  { %1556 = vmatpush1.bf16.msra.mxu1 %v2376_v32 }
  0x8a   :  { %1557 = vmatprep.subr.bf16.mxu1 %v2384_v35 }
  0x8b   :  { %1517 = vmatpush1.bf16.msra.mxu0 %v2379_v34 }
  0x8c   :  { %1518 = vmatprep.subr.bf16.mxu0 %v2387_v37 }
  0x8d   :  { %1558 = vmatpush1.bf16.msra.mxu1 %v2382_v38 }
  0x8e   :  { %1559 = vmatprep.subr.bf16.mxu1 %v2390_v40 }
  0x8f   :  { %1519 = vmatpush1.bf16.msra.mxu0 %v2385_v41 }
  0x90   :  { %1520 = vmatprep.subr.bf16.mxu0 %v2393_v43 }
  0x91   :  { %1560 = vmatpush1.bf16.msra.mxu1 %v2388_v44 }
  0x92   :  { %1561 = vmatprep.subr.bf16.mxu1 %v2396_v45 }
  0x93   :  { %1521 = vmatpush1.bf16.msra.mxu0 %v2391_v46 }
  0x94   :  { %12 = vsyncpa [#allocation3], 0  ;;  %1522 = vmatprep.subr.bf16.mxu0 %v2399_v47  ;;  %v2405_v52 = vld [vmem:[%s3289_s1 + $0x414] ss:$8 sps:$4 sm:$0xff]   ;;  %v2400_v53 = vld [vmem:[%s3289_s1 + $0x520] ss:$8 sps:$4 sm:$0xff]   ;;  %v315_v30 = vrot.slane %v2988_v28, %v2695_v48  ;;  %v293_v38 = vcombine.high %v2981_v26, %v2981_v26 }
  0x95   :  { %1562 = vmatpush1.bf16.msra.mxu1 %v2394_v49  ;;  %v2408_v54 = vld [vmem:[%s3289_s1 + $0x514] ss:$8 sps:$4 sm:$0xff]   ;;  %v2403_v55 = vld [vmem:[%s3289_s1 + $0x410] ss:$8 sps:$4 sm:$0xff]   ;;  %v2411_v56 = vld [vmem:[%s3289_s1 + $0x404] ss:$8 sps:$4 sm:$0xff]  }
  0x96   :  { %1563 = vmatprep.subr.bf16.mxu1 %v2402_v50  ;;  %v2406_v57 = vld [vmem:[%s3289_s1 + $0x510] ss:$8 sps:$4 sm:$0xff]   ;;  %v2414_v58 = vld [vmem:[%s3289_s1 + $0x504] ss:$8 sps:$4 sm:$0xff]   ;;  %v2409_v59 = vld [vmem:[%s3289_s1 + $0x400] ss:$8 sps:$4 sm:$0xff]   ;;  %v330_v34 = vcombine.high %v315_v30, %v315_v30  ;;  %v307_v41 = vrot.slane %v293_v38, %v2695_v48 }
  0x97   :  { %1523 = vmatpush1.bf16.msra.mxu0 %v2397_v51  ;;  %v2417_v60 = vld [vmem:[%s3289_s1 + $0x4f4] ss:$8 sps:$4 sm:$0xff]   ;;  %v2412_v61 = vld [vmem:[%s3289_s1 + $0x500] ss:$8 sps:$4 sm:$0xff]   ;;  %v2415_v63 = vld [vmem:[%s3289_s1 + $0x4f0] ss:$8 sps:$4 sm:$0xff]  }
  0x98   :  { %1524 = vmatprep.subr.bf16.mxu0 %v2405_v52  ;;  %v2420_v62 = vld [vmem:[%s3289_s1 + $0x5f4] ss:$8 sps:$4 sm:$0xff]   ;;  %v2423_v0 = vld [vmem:[%s3289_s1 + $0x4e4] ss:$8 sps:$4 sm:$0xff]   ;;  %v2418_v1 = vld [vmem:[%s3289_s1 + $0x5f0] ss:$8 sps:$4 sm:$0xff]   ;;  %v322_v45 = vrot.slane %v307_v41, %v2695_v48 }
  0x99   :  { %1564 = vmatpush1.bf16.msra.mxu1 %v2400_v53  ;;  %v2426_v2 = vld [vmem:[%s3289_s1 + $0x5e4] ss:$8 sps:$4 sm:$0xff]   ;;  %v2421_v3 = vld [vmem:[%s3289_s1 + $0x4e0] ss:$8 sps:$4 sm:$0xff]   ;;  %v2429_v4 = vld [vmem:[%s3289_s1 + $0x4d4] ss:$8 sps:$4 sm:$0xff]  }
  0x9a   :  { %1565 = vmatprep.subr.bf16.mxu1 %v2408_v54  ;;  %v2424_v6 = vld [vmem:[%s3289_s1 + $0x5e0] ss:$8 sps:$4 sm:$0xff]   ;;  %v2432_v7 = vld [vmem:[%s3289_s1 + $0x5d4] ss:$8 sps:$4 sm:$0xff]   ;;  %v2427_v8 = vld [vmem:[%s3289_s1 + $0x4d0] ss:$8 sps:$4 sm:$0xff]  }
  0x9b   :  { %1525 = vmatpush1.bf16.msra.mxu0 %v2403_v55  ;;  %v2435_v9 = vld [vmem:[%s3289_s1 + $0x4c4] ss:$8 sps:$4 sm:$0xff]   ;;  %v2430_v10 = vld [vmem:[%s3289_s1 + $0x5d0] ss:$8 sps:$4 sm:$0xff]   ;;  %v2433_v12 = vld [vmem:[%s3289_s1 + $0x4c0] ss:$8 sps:$4 sm:$0xff]  }
  0x9c   :  { %1526 = vmatprep.subr.bf16.mxu0 %v2411_v56  ;;  %v2438_v11 = vld [vmem:[%s3289_s1 + $0x5c4] ss:$8 sps:$4 sm:$0xff]   ;;  %v2441_v13 = vld [vmem:[%s3289_s1 + $0x4b4] ss:$8 sps:$4 sm:$0xff]   ;;  %v2436_v14 = vld [vmem:[%s3289_s1 + $0x5c0] ss:$8 sps:$4 sm:$0xff]  }
  0x9d   :  { %1566 = vmatpush1.bf16.msra.mxu1 %v2406_v57  ;;  %v2444_v15 = vld [vmem:[%s3289_s1 + $0x5b4] ss:$8 sps:$4 sm:$0xff]   ;;  %v2439_v16 = vld [vmem:[%s3289_s1 + $0x4b0] ss:$8 sps:$4 sm:$0xff]   ;;  %v2447_v17 = vld [vmem:[%s3289_s1 + $0x4a4] ss:$8 sps:$4 sm:$0xff]  }
  0x9e   :  { %1567 = vmatprep.subr.bf16.mxu1 %v2414_v58  ;;  %v2442_v18 = vld [vmem:[%s3289_s1 + $0x5b0] ss:$8 sps:$4 sm:$0xff]   ;;  %v2450_v19 = vld [vmem:[%s3289_s1 + $0x5a4] ss:$8 sps:$4 sm:$0xff]   ;;  %v2445_v20 = vld [vmem:[%s3289_s1 + $0x4a0] ss:$8 sps:$4 sm:$0xff]  }
  0x9f   :  { %1527 = vmatpush1.bf16.msra.mxu0 %v2409_v59  ;;  %v2453_v21 = vld [vmem:[%s3289_s1 + $0x494] ss:$8 sps:$4 sm:$0xff]   ;;  %v2448_v22 = vld [vmem:[%s3289_s1 + $0x5a0] ss:$8 sps:$4 sm:$0xff]   ;;  %v2451_v24 = vld [vmem:[%s3289_s1 + $0x490] ss:$8 sps:$4 sm:$0xff]  }
  0xa0   :  { %1528 = vmatprep.subr.bf16.mxu0 %v2417_v60  ;;  %v2456_v23 = vld [vmem:[%s3289_s1 + $0x594] ss:$8 sps:$4 sm:$0xff]   ;;  %v2459_v5 = vld [vmem:[%s3289_s1 + $0x484] ss:$8 sps:$4 sm:$0xff]   ;;  %v2454_v25 = vld [vmem:[%s3289_s1 + $0x590] ss:$8 sps:$4 sm:$0xff]  }
  0xa1   :  { %1568 = vmatpush1.bf16.msra.mxu1 %v2412_v61  ;;  %v2462_v27 = vld [vmem:[%s3289_s1 + $0x584] ss:$8 sps:$4 sm:$0xff]   ;;  %v2457_v29 = vld [vmem:[%s3289_s1 + $0x480] ss:$8 sps:$4 sm:$0xff]   ;;  %v2466_v31 = vld [vmem:[%s3289_s1 + $0x634] ss:$8 sps:$4 sm:$0xff]  }
  0xa2   :  { %1569 = vmatprep.subr.bf16.mxu1 %v2420_v62  ;;  %v2460_v32 = vld [vmem:[%s3289_s1 + $0x580] ss:$8 sps:$4 sm:$0xff]   ;;  %v2464_v33 = vld [vmem:[%s3289_s1 + $0x630] ss:$8 sps:$4 sm:$0xff]   ;;  %v2469_v28 = vld [vmem:[%s3289_s1 + $0x624] ss:$8 sps:$4 sm:$0xff]  }
  0xa3   :  { %1529 = vmatpush2.bf16.msra.mxu0 %v2415_v63  ;;  %v2519_v35 = vmov 0   ;;  %v2467_v36 = vld [vmem:[%s3289_s1 + $0x620] ss:$8 sps:$4 sm:$0xff]   ;;  %v2472_v37 = vld [vmem:[%s3289_s1 + $0x614] ss:$8 sps:$4 sm:$0xff]   ;;  %vm1344_vm0 = vcmask 523264  }
  0xa4   :  { %1530 = vmatprep.subr.bf16.mxu0 %v2423_v0  ;;  %v2470_v39 = vld [vmem:[%s3289_s1 + $0x610] ss:$8 sps:$4 sm:$0xff]   ;;  %v2475_v40 = vld [vmem:[%s3289_s1 + $0x604] ss:$8 sps:$4 sm:$0xff]   ;;  %v2473_v26 = vld [vmem:[%s3289_s1 + $0x600] ss:$8 sps:$4 sm:$0xff]  }
  0xa5   :  { %1570 = vmatpush2.bf16.msra.mxu1 %v2418_v1  ;;  %v2476_v43 = vld [vmem:[%s3291_s3 + $0x38] sm:$0xff]   ;;  %v2477_v44 = vld [vmem:[%s3291_s3 + $0x30] sm:$0xff]   ;;  %v2478_v46 = vld [vmem:[%s3291_s3 + $0x28] sm:$0xff]   ;;  %v234_v51 = vsub.s32 0, %v2680_v42  ;;  %v238_v53 = vsub.s32 1, %v2680_v42  ;;  %vm1750_vm1 = vcmask 1043456  }
  0xa6   :  { %1571 = vmatprep.subr.bf16.mxu1 %v2426_v2  ;;  %v2479_v47 = vld [vmem:[%s3291_s3 + $0x20] sm:$0xff]   ;;  %v2480_v48 = vld [vmem:[%s3291_s3 + $0x18] sm:$0xff]   ;;  %v2481_v49 = vld [vmem:[%s3291_s3 + $0x10] sm:$0xff]   ;;  %vm1859_vm2 = vcmask 1041408   ;;  %vm1746_vm3 = vcmask 588800   ;;  %vm2521_vm4 = vmmov 0  }
  0xa7   :  { %1531 = vmatpush2.bf16.msra.mxu0 %v2421_v3  ;;  %v2482_v50 = vld [vmem:[%s3291_s3 + $0x8] sm:$0xff]   ;;  %v230_v52 = vld [vmem:[%s3290_s2] sm:$0x3]  ;;  %vm1855_vm5 = vcmask 818176  }
  0xa8   :  { %1532 = vmatprep.subr.bf16.mxu0 %v2429_v4  ;;  %v235_v54 = vrot.slane %v230_v52, %v234_v51  ;;  %v239_v55 = vrot.slane %v230_v52, %v238_v53  ;;  %v2483_v58 = vld [vmem:[%s3291_s3] sm:$0xff]   ;;  %v2494_v52 = vld [vmem:[%s3293_s5 + $0x8] sm:$0xff]  }
  0xa9   :  { %1572 = vmatpush2.bf16.msra.mxu1 %v2424_v6  ;;  %v2484_v42 = vld [vmem:[%s3291_s3 + $0x60] ss:$0 sps:$4 sm:$0xff]   ;;  %v2485_v6 = vld [vmem:[%s3291_s3 + $0x58] sm:$0xff]  }
  0xaa   :  { %1573 = vmatprep.subr.bf16.mxu1 %v2432_v7  ;;  %v1752_v4 = vsel %vm1750_vm1, %v2484_v42, 0  ;;  %v2495_v53 = vld [vmem:[%s3293_s5] sm:$0xff]  }
  0xab   :  { %1533 = vmatpush2.bf16.msra.mxu0 %v2427_v8  ;;  %v2486_v8 = vld [vmem:[%s3291_s3 + $0x50] sm:$0xff]  }
  0xac   :  { %1534 = vmatprep.subr.bf16.mxu0 %v2435_v9  ;;  %v2487_v9 = vld [vmem:[%s3291_s3 + $0x48] sm:$0xff]  }
  0xad   :  { %1574 = vmatpush2.bf16.msra.mxu1 %v2430_v10  ;;  %v2488_v10 = vld [vmem:[%s3291_s3 + $0x40] sm:$0xff]  }
  0xae   :  { %1575 = vmatprep.subr.bf16.mxu1 %v2438_v11  ;;  %v2489_v11 = vld [vmem:[%s3293_s5 + $0x30] ss:$0 sps:$4 sm:$0x33]  }
  0xaf   :  { %1535 = vmatpush2.bf16.msra.mxu0 %v2433_v12  ;;  %v2520_v12 = vmov 0.0  }
  0xb0   :  { %1536 = vmatprep.subr.bf16.mxu0 %v2441_v13  ;;  %v1861_v13 = vsel %vm1859_vm2, %v2489_v11, 0 }
  0xb1   :  { %1576 = vmatpush2.bf16.msra.mxu1 %v2436_v14  ;;  %v2490_v14 = vld [vmem:[%s3293_s5 + $0x28] sm:$0xff]  }
  0xb2   :  { %1577 = vmatprep.subr.bf16.mxu1 %v2444_v15  ;;  %v2491_v15 = vld [vmem:[%s3293_s5 + $0x20] sm:$0xff]  }
  0xb3   :  { %1537 = vmatpush2.bf16.msra.mxu0 %v2439_v16  ;;  %v2492_v16 = vld [vmem:[%s3293_s5 + $0x18] sm:$0xff]  }
  0xb4   :  { %1538 = vmatprep.subr.bf16.mxu0 %v2447_v17  ;;  %v2493_v17 = vld [vmem:[%s3293_s5 + $0x10] sm:$0xff]   ;;  %s2522_s5 = smov [#allocation2]  }
  0xb5   :  { %1578 = vmatpush2.bf16.msra.mxu1 %v2442_v18  ;;  %s1910_s24 = sshll.u32 %s2522_s5, 4  ;;  %s1911_s24 = int_to_ptr.vmem [resolvable:$true] %s1910_s24 }
  0xb6   :  { %1579 = vmatprep.subr.bf16.mxu1 %v2450_v19  ;;  %p2501_p1 = scmp.lt.s32.totalorder %s1911_s24, %s1911_s24 }
  0xb7   :  { %1539 = vmatpush2.bf16.msra.mxu0 %v2445_v20 }
  0xb8   :  { %1540 = vmatprep.subr.bf16.mxu0 %v2453_v21 }
  0xb9   :  { %1580 = vmatpush2.bf16.msra.mxu1 %v2448_v22 }
  0xba   :  { %1581 = vmatprep.subr.bf16.mxu1 %v2456_v23 }
  0xbb   :  { %1541 = vmatpush2.bf16.msra.mxu0 %v2451_v24 }
  0xbc   :  { %1542 = vmatprep.subr.bf16.mxu0 %v2459_v5 }
  0xbd   :  { %1582 = vmatpush2.bf16.msra.mxu1 %v2454_v25 }
  0xbe   :  { %1583 = vmatprep.subr.bf16.mxu1 %v2462_v27 }
  0xbf   :  { %1543 = vmatpush2.bf16.msra.mxu0 %v2457_v29 }
  0xc0   :  { %1602 = vmatprep.subr.bf16.mxu0 %v2466_v31 }
  0xc1   :  { %1584 = vmatpush2.bf16.msra.mxu1 %v2460_v32 }
  0xc2   :  { %1545 = vmatmul.mubr.bf16.vlgmr.msra.gmra.mxu0 %v315_v30  ;;  %1754 = vmatprep.subr.bf16.mxu1 %v2519_v35 }
  0xc3   :  { %1603 = vmatpush1.bf16.msra.mxu0 %v2464_v33  ;;  %1626 = vmatprep.mubr.bf16.mxu0 %v2519_v35 }
  0xc4   :  { %1586 = vmatmul.mubr.bf16.vlgmr.msra.gmra.mxu1 %v330_v34  ;;  %1604 = vmatprep.subr.bf16.mxu0 %v2469_v28 }
  0xc5   :  { %1755 = vmatpush1.bf16.msra.mxu1 %v2476_v43 }
  0xc6   :  { %1756 = vmatprep.subr.bf16.mxu1 %v2519_v35 }
  0xc7   :  { %1605 = vmatpush1.bf16.msra.mxu0 %v2467_v36 }
  0xc8   :  { %1606 = vmatprep.subr.bf16.mxu0 %v2472_v37 }
  0xc9   :  { %1757 = vmatpush1.bf16.msra.mxu1 %v2477_v44 }
  0xca   :  { %1758 = vmatprep.subr.bf16.mxu1 %v2519_v35 }
  0xcb   :  { %1607 = vmatpush1.bf16.msra.mxu0 %v2470_v39 }
  0xcc   :  { %1608 = vmatprep.subr.bf16.mxu0 %v2475_v40 }
  0xcd   :  { %1759 = vmatpush1.bf16.msra.mxu1 %v2478_v46 }
  0xce   :  { %1760 = vmatprep.subr.bf16.mxu1 %v2519_v35 }
  0xcf   :  { %1609 = vmatpush1.bf16.msra.mxu0 %v2473_v26 }
  0xd0   :  { %2151 = vmatprep.subr.bf16.mxu0 %v2520_v12 }
  0xd1   :  { %1761 = vmatpush1.bf16.msra.mxu1 %v2479_v47 }
  0xd2   :  { %2118 = vmatmul.mubr.msk.bf16.vlgmr.msra.gmra.mxu0 %vm1344_vm0, %v322_v45  ;;  %1762 = vmatprep.subr.bf16.mxu1 %v2519_v35 }
  0xd3   :  { %2152 = vmatpush3.bf16.msra.mxu0 %v1861_v13  ;;  %2165 = vmatprep.mubr.msk.bf16.mxu0 %vm2521_vm4, %v2520_v12 }
  0xd4   :  { %2153 = vmatprep.subr.bf16.mxu0 %v2520_v12 }
  0xd5   :  { %1763 = vmatpush1.bf16.msra.mxu1 %v2480_v48 }
  0xd6   :  { %1764 = vmatprep.subr.bf16.mxu1 %v2519_v35 }
  0xd7   :  { %2154 = vmatpush3.bf16.msra.mxu0 %v2490_v14 }
  0xd8   :  { %2155 = vmatprep.subr.bf16.mxu0 %v2520_v12 }
  0xd9   :  { %1765 = vmatpush1.bf16.msra.mxu1 %v2481_v49 }
  0xda   :  { %1766 = vmatprep.subr.bf16.mxu1 %v2519_v35 }
  0xdb   :  { %2156 = vmatpush3.bf16.msra.mxu0 %v2491_v15 }
  0xdc   :  { %2157 = vmatprep.subr.bf16.mxu0 %v2520_v12 }
  0xdd   :  { %1767 = vmatpush1.bf16.msra.mxu1 %v2482_v50 }
  0xde   :  { %1768 = vmatprep.subr.bf16.mxu1 %v2519_v35 }
  0xdf   :  { %2158 = vmatpush3.bf16.msra.mxu0 %v2492_v16 }
  0xe0   :  { %2159 = vmatprep.subr.bf16.mxu0 %v2520_v12 }
  0xe1   :  { %1769 = vmatpush1.bf16.msra.mxu1 %v2483_v58 }
  0xe2   :  { %1776 = vmatprep.subr.bf16.mxu1 %v2519_v35 }
  0xe3   :  { %2160 = vmatpush3.bf16.msra.mxu0 %v2493_v17 }
  0xe4   :  { %2161 = vmatprep.subr.bf16.mxu0 %v2520_v12 }
  0xe5   :  { %1777 = vmatpush2.bf16.msra.mxu1 %v1752_v4 }
  0xe6   :  { %1778 = vmatprep.subr.bf16.mxu1 %v2519_v35 }
  0xe7   :  { %2162 = vmatpush3.bf16.msra.mxu0 %v2494_v52 }
  0xe8   :  { %2163 = vmatprep.subr.bf16.mxu0 %v2520_v12 }
  0xe9   :  { %1779 = vmatpush2.bf16.msra.mxu1 %v2485_v6 }
  0xea   :  { %1780 = vmatprep.subr.bf16.mxu1 %v2519_v35 }
  0xeb   :  { %2164 = vmatpush3.bf16.msra.mxu0 %v2495_v53 }
  0xed   :  { %1781 = vmatpush2.bf16.msra.mxu1 %v2486_v8 }
  0xee   :  { %1782 = vmatprep.subr.bf16.mxu1 %v2519_v35 }
  0xf1   :  { %1783 = vmatpush2.bf16.msra.mxu1 %v2487_v9 }
  0xf2   :  { %1784 = vmatprep.subr.bf16.mxu1 %v2519_v35 }
  0xf5   :  { %1785 = vmatpush2.bf16.msra.mxu1 %v2488_v10 }
 0x102   :  { %v1382_v56 = vpop.f32.mrf.mxu0 }
 0x103   :  { %v1383_v57 = vadd.f32 %v1382_v56, %v235_v54  ;;  %v2119_v54 = vld [vmem:[%s3292_s4] ss:$0 sm:$0xff]  ;;  %s2496_s4 = scalar_lea.vmem %s1911_s24, 32 }
 0x104   :  { %v1384_v59 = vpop.f32.mrf.mxu0  ;;  %v1423_v60 = vpop.f32.mrf.mxu1  ;;  %p2497_p0 = scmp.ne.s32.totalorder %s1911_s24, %s2496_s4  ;;  %p2502_p2 = scmp.lt.s32.totalorder %s2496_s4, %s2496_s4 }
 0x105   :  { %v1385_v61 = vadd.f32 %v1384_v59, %v239_v55  ;;  %v1424_v62 = vadd.f32 %v1423_v60, %v1383_v57 }
 0x106   :  { %v1386_v63 = vpop.f32.mrf.mxu0  ;;  %v1425_v0 = vpop.f32.mrf.mxu1  ;;  %p2503_p3 = por %p2502_p2, %p2501_p1 }
 0x107   :  { %v1426_v1 = vadd.f32 %v1425_v0, %v1385_v61 }
 0x108   :  { %v1387_v2 = vpop.f32.mrf.mxu0  ;;  %v1427_v3 = vpop.f32.mrf.mxu1  ;;  %p2504_p4 = pnand %p2503_p3, %p2497_p0 }
 0x10a   :  { %v1428_v7 = vpop.f32.mrf.mxu1 }
 0x142   :  { %v1464_v18 = vpop.f32.mrf.mxu0 }
 0x143   :  { %v1465_v19 = vadd.f32 %v1464_v18, %v1424_v62  ;;  %v2134_v62 = vld [vmem:[%s3294_s6] ss:$0 sm:$0xff] }
 0x144   :  { %v1466_v20 = vpop.f32.mrf.mxu0  ;;  %v1505_v21 = vpop.f32.mrf.mxu1 }
 0x145   :  { %v1467_v22 = vadd.f32 %v1466_v20, %v1426_v1  ;;  %v1506_v23 = vadd.f32 %v1505_v21, %v1465_v19 }
 0x146   :  { %v1468_v24 = vpop.f32.mrf.mxu0  ;;  %v1507_v5 = vpop.f32.mrf.mxu1 }
 0x147   :  { %v1508_v25 = vadd.f32 %v1507_v5, %v1467_v22 }
 0x148   :  { %v1469_v27 = vpop.f32.mrf.mxu0  ;;  %v1509_v29 = vpop.f32.mrf.mxu1 }
 0x14a   :  { %v1510_v30 = vpop.f32.mrf.mxu1 }
 0x182   :  { %v1546_v31 = vpop.f32.mrf.mxu0 }
 0x183   :  { %v1547_v38 = vadd.f32 %v1546_v31, %v1506_v23 }
 0x184   :  { %v1548_v32 = vpop.f32.mrf.mxu0  ;;  %v1587_v33 = vpop.f32.mrf.mxu1 }
 0x185   :  { %v1549_v39 = vadd.f32 %v1548_v32, %v1508_v25  ;;  %v1588_v40 = vadd.f32 %v1587_v33, %v1547_v38 }
 0x186   :  { %v1550_v34 = vpop.f32.mrf.mxu0  ;;  %v1589_v28 = vpop.f32.mrf.mxu1 }
 0x187   :  { %v1590_v43 = vadd.f32 %v1589_v28, %v1549_v39 }
 0x188   :  { %v1551_v35 = vpop.f32.mrf.mxu0  ;;  %v1591_v36 = vpop.f32.mrf.mxu1 }
 0x18a   :  { %v1592_v37 = vpop.f32.mrf.mxu1 }
 0x192   :  { %v1628_v41 = vpop.f32.mrf.mxu0 }
 0x193   :  { %v1629_v26 = vadd.f32 %v1628_v41, %v1588_v40 }
 0x194   :  { %v1630_v44 = vpop.f32.mrf.mxu0 }
 0x195   :  { %v1631_v45 = vadd.f32 %v1630_v44, %v1590_v43  ;;  %v1635_v46 = vmax.f32 %v1629_v26, 0.0 }
 0x196   :  { %v1632_v47 = vpop.f32.mrf.mxu0 }
 0x197   :  { %v1636_v48 = vmax.f32 %v1631_v45, 0.0  ;;  %v1637_v51 = vpack.c.bf16 %v1635_v46, %v1635_v46 }
 0x198   :  { %v1633_v49 = vpop.f32.mrf.mxu0 }
 0x199   :  { %v1638_v50 = vpack.c.bf16 %v1636_v48, %v1636_v48 }
 0x19b   :  { %2133 = vmatprep.mubr.msk.bf16.mxu1 %vm1746_vm3, %v1638_v50 }
 0x19c   :  { %1787 = vmatmul.mubr.bf16.vlgmr.msra.gmra.mxu1 %v1637_v51 }
 0x25c   :  { %v1788_v55 = vpop.f32.mrf.mxu1 }
 0x25d   :  { %v1789_v56 = vadd.f32 %v2119_v54, %v1788_v55 }
 0x25e   :  { %v1790_v57 = vpop.f32.mrf.mxu1 }
 0x25f   :  { %v1794_v58 = vmax.f32 %v1789_v56, 0.0 }
 0x260   :  { %v1791_v59 = vpop.f32.mrf.mxu1 }
 0x261   :  { %v1795_v60 = vpack.c.bf16 %v1794_v58, %v1794_v58 }
 0x262   :  { %v1792_v61 = vpop.f32.mrf.mxu1 }
 0x263   :  { %2166 = vmatmul.mubr.msk.bf16.vlgmr.msra.gmra.mxu0 %vm1855_vm5, %v1795_v60 }
 0x323   :  { %v1897_v63 = vpop.f32.mrf.mxu0 }
 0x324   :  { %v1898_v0 = vadd.f32 %v2134_v62, %v1897_v63 }
 0x325   :  { %v2167_v42 = vpop.f32.mrf.mxu0 }
 0x326   :  { %1903 = vst [vmem:[#allocation2] sm:$0x3] %v1898_v0 }
 0x327   :  { %v1900_v1 = vpop.f32.mrf.mxu0 }
 0x328   :  { %2507 = shalt.err (!%p2504_p4)
}
 0x329   :  { %1913 = dma.vmem_to_hbm [thread:$0]  %s1911_s24, 32, %s3295_s7, [#allocation3]   ;;  %v2168_v2 = vpop.f32.mrf.mxu0 }
 0x32a   :  { %2516 = dma.done.wait [#allocation3], 32  }
 0x32b   :  { %2517 = vsyncadd [#allocation3], 4294967264 }
 0x32c   :  { %1917 = vsyncpa [#allocation3], 1 }

// kernel: model_forward.4
= control target key start
LH: loop header
LB: loop body
LE: loop exit
PB: predicated region body
PF: predicated region fallthrough
CT: control target
= control target key end

     0   :  { %s2560_s15 = smov 0   ;;  %s2562_s16 = smov 0   ;;  %s3541_s0 = inlined_call_operand.vmem [shape: f32[2,14,7,32], index: 0, kind: input, shape index: {}]   ;;  %s3542_s1 = inlined_call_operand.vmem [shape: f32[2,14,7,32], index: 1, kind: input, shape index: {}]   ;;  %s3543_s2 = inlined_call_operand.vmem [shape: bf16[800,64], index: 2, kind: input, shape index: {}]   ;;  %s3544_s3 = inlined_call_operand.vmem [shape: f32[1,64], index: 3, kind: input, shape index: {}]   ;;  %s3545_s4 = inlined_call_operand.vmem [shape: f32[2,5,5,64], index: 4, kind: output, shape index: {}]  }
   0x1   :  { %s2564_s17 = smov 0   ;;  %s2566_s18 = smov 0  }
   0x2   :  { %s2568_s19 = smov 0  }
   0x3 LB: > { %s23_s20 = sadd.s32 1, %s2520_s17  ;;  %s26_s21 = sadd.s32 1, %s2524_s18  ;;  %s2528_s19 = sphi %s2568_s19, %s14_s19   ;;  %s2524_s18 = sphi %s2566_s18, %s3558_s18   ;;  %s2520_s17 = sphi %s2564_s17, %s3557_s17   ;;  %s2516_s16 = sphi %s2562_s16, %s3556_s16   ;;  %s2512_s15 = sphi %s2560_s15, %s3555_s15  }
   0x4   : > { %p24_p0 = scmp.ge.s32.totalorder %s23_s20, 5  ;;  %p1947_p1 = scmp.ge.s32.totalorder %s2528_s19, 1 }
   0x5   : > { %p186_p2 = scmp.lt.s32.totalorder %s2528_s19, 11 }
   0x6   : > { %s3560_s20 = smov (%p24_p0, %s23_s20), 0  ;;  %s3562_s21 = smov (!%p24_p0, %s26_s21), %s2524_s18 }
   0x7   : > { %p187_p3 = pnand %p1947_p1, %p186_p2  ;;  %p28_p4 = scmp.ge.s32.totalorder %s3562_s21, 2 }
   0x8   : > { %p220_p5 = scmp.lt.s32.totalorder (!%p187_p3), %s2516_s16, 1  ;;  %s2048_s24 = sshll.u32 (!%p187_p3), %s2512_s15, 4 }
   0x9   : > { %s3564_s21 = smov (%p28_p4, %s3562_s21), 0  ;;  %190 = sbr.rel (%p187_p3) target bundleno = 546 (0x222), region = 36 }
   0xa   : > { %s2530_s28 = smov (!%p187_p3), 96   ;;  %p232_p6 = scmp.lt.s32.totalorder (!%p187_p3), %s2512_s15, 4 }
   0xe   : > { %v2595_v0 = vld [vmem:[%s3543_s2 + $0xf8] sm:$0xff]   ;;  %s3566_s16 = smov (!%p220_p5, %s2516_s16), 1  ;;  %v2609_v2 = vld [vmem:[%s3543_s2 + $0xf0] sm:$0xff]   ;;  %v2622_v4 = vld [vmem:[%s3543_s2 + $0xe8] sm:$0xff]   ;;  %vm245_vm0 = vcmask 258048   ;;  %vm251_vm1 = vcmask 520448  }
   0xf   : > { %2081 = vmatprep.subr.bf16.mxu1 %v2595_v0  ;;  %v2604_v1 = vld [vmem:[%s3543_s2 + $0xb8] sm:$0xff]   ;;  %s2367_s29 = smul.u32 112, %s3566_s16  ;;  %v2616_v3 = vld [vmem:[%s3543_s2 + $0xb0] sm:$0xff]   ;;  %v2633_v5 = vld [vmem:[%s3543_s2 + $0xa8] sm:$0xff]   ;;  %vm258_vm2 = vcmask 782848   ;;  %vm264_vm3 = vcmask 1045248  }
  0x10   : > { %2082 = vmatpush3.bf16.msra.mxu1 %v2604_v1  ;;  %v2642_v6 = vld [vmem:[%s3543_s2 + $0x78] sm:$0xff]   ;;  %v2741_v32 = vld [vmem:[%s3543_s2 + $0xe0] sm:$0xff]   ;;  %v2770_v36 = vld [vmem:[%s3543_s2 + $0x70] sm:$0xff]   ;;  %vm2534_vm4 = vmmov 0   ;;  %vm1098_vm5 = vcmask 261120   ;;  %s2368_s5 = smul.u32 5, %s3566_s16 }
  0x11   : > { %2083 = vmatprep.subr.bf16.mxu1 %v2609_v2  ;;  %s224_s10 = scalar_lea.vmem %s3541_s0, %s2367_s29  ;;  %s229_s13 = scalar_lea.vmem %s3542_s1, %s2367_s29  ;;  %2059 = vmatprep.subr.bf16.mxu0 %v2642_v6  ;;  %v2727_v30 = vld [vmem:[%s3543_s2 + $0x38] sm:$0xff]   ;;  %v2758_v33 = vld [vmem:[%s3543_s2 + $0xa0] sm:$0xff]   ;;  %v2783_v38 = vld [vmem:[%s3543_s2 + $0x30] sm:$0xff]   ;;  %vm1805_vm6 = vcmask 520192  }
  0x12   : > { %s2635_s23 = scalar_lea.vmem %s224_s10, %s2048_s24  ;;  %s2637_s25 = scalar_lea.vmem %s229_s13, %s2048_s24  ;;  %2060 = vmatpush3.bf16.msra.mxu0 %v2727_v30  ;;  %v2789_v39 = vld [vmem:[%s3543_s2 + $0xd8] sm:$0xff]   ;;  %v2813_v44 = vld [vmem:[%s3543_s2 + $0x68] sm:$0xff]   ;;  %v2825_v46 = vld [vmem:[%s3543_s2 + $0xd0] sm:$0xff]  }
  0x13   : > { %v2645_v7 = vld [vmem:[%s2635_s23 + $0x18] sm:$0x7f]  ;;  %v2648_v8 = vld [vmem:[%s2635_s23 + $0x10] sm:$0x7f]  ;;  %s2531_s24 = smov 64   ;;  %s2532_s29 = smov 32   ;;  %2061 = vmatprep.subr.bf16.mxu0 %v2770_v36 }
  0x14   : > { %v2651_v9 = vld [vmem:[%s2637_s25 + $0x10] sm:$0x7f]  ;;  %2084 = vmatpush3.bf16.msra.mxu1 %v2616_v3  ;;  %389 = vrot.lane.b32.xlu0 %v2645_v7, %s2530_s28  ;;  %v2660_v11 = vld [vmem:[%s2635_s23 + $0x8] sm:$0x7f]  ;;  %v2663_v12 = vld [vmem:[%s2637_s25] sm:$0x7f] }
  0x15   : > { %341 = vrot.lane.b32.xlu1 %v2648_v8, %s2531_s24  ;;  %v353_v10 = vrot.slane %v2651_v9, 1  ;;  %v310_v13 = vrot.slane %v2660_v11, 2  ;;  %v2667_v14 = vld [vmem:[%s2635_s23] sm:$0x7f]  ;;  %270 = vst.msk [vmem:[#allocation2 + $0x38] sm:$0x1f] %vm245_vm0, %v2663_v12  ;;  %2085 = vmatprep.subr.bf16.mxu1 %v2622_v4 }
  0x16   : > { %v2674_v15 = vld [vmem:[%s2637_s25 + $0x8] sm:$0x7f]  ;;  %v2677_v16 = vld [vmem:[%s2637_s25 + $0x20] sm:$0x7f]  ;;  %246 = vst.msk [vmem:[#allocation2] sm:$0x1f] %vm245_vm0, %v2667_v14  ;;  %2062 = vmatpush3.bf16.msra.mxu0 %v2783_v38 }
  0x17   : > { %372 = vst.msk [vmem:[#allocation2 + $0x50] sm:$0x1f] %vm245_vm0, %v353_v10  ;;  %v394_v17 = vrot.slane %v2645_v7, 1  ;;  %v468_v18 = vrot.slane %v2677_v16, 2  ;;  %328 = vst.msk [vmem:[#allocation2 + $0x48] sm:$0x1f] %vm245_vm0, %v310_v13  ;;  %2063 = vmatprep.subr.bf16.mxu0 %v2813_v44 }
  0x18   : > { %455 = vst.msk [vmem:[#allocation2 + $0x60] sm:$0x1f] %vm245_vm0, %v2677_v16  ;;  %v2688_v19 = vld [vmem:[%s2635_s23 + $0x20] sm:$0x7f]  ;;  %v2691_v20 = vld [vmem:[%s2637_s25 + $0x18] sm:$0x7f]  ;;  %2086 = vmatpush3.bf16.msra.mxu1 %v2633_v5  ;;  %354 = vrot.lane.b32.xlu0 %v353_v10, %s2532_s29 }
  0x19   : > { %346 = vrot.lane.b32.xlu1 %v2651_v9, %s2530_s28  ;;  %v358_v21 = vrot.slane %v2648_v8, 2  ;;  %415 = vst.msk [vmem:[#allocation2 + $0x58] sm:$0x1f] %vm245_vm0, %v394_v17  ;;  %435 = vst.msk [vmem:[#allocation2 + $0x28] sm:$0x1f] %vm245_vm0, %v2688_v19  ;;  %v307_v22 = vrot.slane %v2674_v15, 1  ;;  %2087 = vmatprep.subr.bf16.mxu1 %v2741_v32 }
  0x1a   : > { %393 = vst.msk [vmem:[#allocation2 + $0x20] sm:$0x1f] %vm245_vm0, %v2691_v20  ;;  %v266_v23 = vrot.slane %v2667_v14, 2  ;;  %v2708_v24 = vld [vmem:[%s2637_s25 + $0x18] sm:$0x7f]  ;;  %v350_v25 = vrot.slane %v2648_v8, 1 }
  0x1b   : > { %470 = vst.msk [vmem:[#allocation2 + $0x68] sm:$0x1f] %vm245_vm0, %v468_v18  ;;  %v452_v26 = vrot.slane %v2688_v19, 2  ;;  %v2714_v27 = vld [vmem:[%s2635_s23 + $0x10] sm:$0x7f]  ;;  %v570_v28 = vrot.slane %v2708_v24, 1 }
  0x1c   : > { %309 = vst.msk [vmem:[#allocation2 + $0x10] sm:$0x1f] %vm245_vm0, %v307_v22  ;;  %268 = vst.msk [vmem:[#allocation2 + $0x8] sm:$0x1f] %vm245_vm0, %v266_v23  ;;  %v531_v29 = vrot.slane %v2714_v27, 2  ;;  %311 = vrot.lane.b32.xlu0 %v310_v13, %s2532_s29  ;;  %2088 = vmatpush3.bf16.msra.mxu1 %v2758_v33  ;;  %v254_v37 = vrot.slane %v2667_v14, 1 }
  0x1d   : > { %352 = vst.msk [vmem:[#allocation2 + $0x18] sm:$0x1f] %vm245_vm0, %v350_v25  ;;  %454 = vst.msk [vmem:[#allocation2 + $0x30] sm:$0x1f] %vm245_vm0, %v452_v26  ;;  %v2736_v31 = vld [vmem:[%s2635_s23 + $0x20] sm:$0x7f]  ;;  %359 = vrot.lane.b32.xlu1 %v358_v21, %s2531_s24  ;;  %2089 = vmatprep.subr.bf16.mxu1 %v2789_v39 }
  0x1e   : > { %589 = vst.msk [vmem:[#allocation2 + $0xc0] sm:$0x1f] %vm245_vm0, %v570_v28  ;;  %549 = vst.msk [vmem:[#allocation2 + $0xb8] sm:$0x1f] %vm245_vm0, %v531_v29  ;;  %v3550_v34 = vrot.slane %v2736_v31, 1  ;;  %v2795_v40 = vld [vmem:[%s3543_s2 + $0x98] sm:$0xff]  }
  0x1f   : > { %v2762_v35 = vld [vmem:[%s2637_s25 + $0x8] sm:$0x7f]  ;;  %v302_v42 = vrot.slane %v2660_v11, 1  ;;  %v260_v43 = vrot.slane %v2663_v12, 1  ;;  %v2831_v47 = vld [vmem:[%s3543_s2 + $0x90] sm:$0xff]   ;;  %v2843_v49 = vld [vmem:[%s3543_s2 + $0x60] sm:$0xff]  }
  0x20   : > { %495 = vst.msk [vmem:[#allocation2 + $0xa8] sm:$0x1f] %vm245_vm0, %v2762_v35  ;;  %628 = vst.msk [vmem:[#allocation2 + $0xc8] sm:$0x1f] %vm245_vm0, %v3550_v34  ;;  %293 = vrot.lane.b32.xlu0 %v2660_v11, %s2532_s29  ;;  %v2799_v41 = vld [vmem:[%s2635_s23 + $0x8] sm:$0x7f]  ;;  %2090 = vmatpush3.bf16.msra.mxu1 %v2795_v40 }
  0x21   : > { %248 = vrot.lane.b32.xlu1 %v2663_v12, %s2532_s29  ;;  %474 = vst.msk [vmem:[#allocation2 + $0x70] sm:$0x1f] %vm245_vm0, %v2799_v41  ;;  %v2819_v45 = vld [vmem:[%s3543_s2 + $0x28] sm:$0xff]   ;;  %v2838_v48 = vld [vmem:[%s2637_s25 + $0x10] sm:$0x7f]  ;;  %v283_v50 = vrot.slane %v2663_v12, 2  ;;  %2091 = vmatprep.subr.bf16.mxu1 %v2825_v46 }
  0x22   : > { %2064 = vmatpush3.bf16.msra.mxu0 %v2819_v45  ;;  %v2850_v51 = vld [vmem:[%s3543_s2 + $0x20] sm:$0xff]   ;;  %v2857_v52 = vld [vmem:[%s3543_s2 + $0xc8] sm:$0xff]   ;;  %v3549_v54 = vrot.slane %v2838_v48, 1  ;;  %v442_v55 = vrot.slane %v2688_v19, 1  ;;  %v3548_v56 = vrot.slane %v2799_v41, 2  ;;  %v2878_v57 = vld [vmem:[%s3543_s2 + $0x58] sm:$0xff]  }
  0x23   : > { %2065 = vmatprep.subr.bf16.mxu0 %v2843_v49  ;;  %285 = vst.msk [vmem:[#allocation2 + $0x40] sm:$0x1f] %vm245_vm0, %v283_v50  ;;  %v2864_v53 = vld [vmem:[%s3543_s2 + $0x88] sm:$0xff]   ;;  %v2887_v58 = vld [vmem:[%s3543_s2 + $0x18] sm:$0xff]   ;;  %v2896_v59 = vld [vmem:[%s3543_s2 + $0xc0] sm:$0xff]   ;;  %v400_v60 = vrot.slane %v2691_v20, 1 }
  0x24   : > { %298 = vrot.lane.b32.xlu0 %v2674_v15, %s2531_s24  ;;  %2092 = vmatpush3.bf16.msra.mxu1 %v2831_v47  ;;  %530 = vst.msk [vmem:[#allocation2 + $0x80] sm:$0x1f] %vm245_vm0, %v3549_v54  ;;  %493 = vst.msk [vmem:[#allocation2 + $0x78] sm:$0x1f] %vm245_vm0, %v3548_v56  ;;  %v447_v61 = vrot.slane %v2677_v16, 1  ;;  %v2906_v62 = vld [vmem:[%s3543_s2 + $0x80] sm:$0xff]  }
  0x25   : > { %255 = vrot.lane.b32.xlu1 %v254_v37, %s2531_s24  ;;  %2093 = vmatprep.subr.bf16.mxu1 %v2857_v52  ;;  %v2913_v63 = vld [vmem:[%s3543_s2 + $0x50] sm:$0xff]   ;;  %v2916_v10 = vld [vmem:[%s2637_s25 + $0x28] sm:$0x7f]  ;;  %v2961_v56 = vld [vmem:[%s2637_s25 + $0x20] sm:$0x7f]  ;;  %v377_v12 = vrot.slane %v2651_v9, 2 }
  0x26   : > { %2066 = vmatpush3.bf16.msra.mxu0 %v2850_v51  ;;  %v681_v11 = vrot.slane %v2916_v10, 2  ;;  %668 = vst.msk [vmem:[#allocation2 + $0xd0] sm:$0x1f] %vm245_vm0, %v2916_v10  ;;  %v2925_v13 = vld [vmem:[%s3543_s2 + $0x10] sm:$0xff]   ;;  %v2939_v18 = vld [vmem:[%s2635_s23 + $0x28] sm:$0x7f] }
  0x27   : > { %2067 = vmatprep.subr.bf16.mxu0 %v2878_v57  ;;  %648 = vst.msk [vmem:[#allocation2 + $0x98] sm:$0x1f] %vm245_vm0, %v2939_v18  ;;  %v2946_v50 = vld [vmem:[%s3543_s2 + $0x8] sm:$0xff]   ;;  %606 = vst.msk [vmem:[#allocation2 + $0x90] sm:$0x1f] %vm245_vm0, %v2961_v56  ;;  %v665_v14 = vrot.slane %v2939_v18, 2 }
  0x28   : > { %303 = vrot.lane.b32.xlu0 %v302_v42, %s2530_s28  ;;  %2094 = vmatpush3.bf16.msra.mxu1 %v2864_v53  ;;  %683 = vst.msk [vmem:[#allocation2 + $0xd8] sm:$0x1f] %vm245_vm0, %v681_v11  ;;  %v405_v11 = vrot.slane %v2645_v7, 2  ;;  %v2974_v7 = vld [vmem:[%s3543_s2 + $0x178] sm:$0xff]   ;;  %v523_v19 = vrot.slane %v2714_v27, 1  ;;  %s3568_s15 = smov (!%p232_p6, %s2512_s15), 4 }
  0x29   : > { %261 = vrot.lane.b32.xlu1 %v260_v43, %s2530_s28  ;;  %2095 = vmatprep.subr.bf16.mxu1 %v2896_v59  ;;  %v2990_v54 = vld [vmem:[%s2635_s23 + $0x18] sm:$0x7f]  ;;  %667 = vst.msk [vmem:[#allocation2 + $0xa0] sm:$0x1f] %vm245_vm0, %v665_v14  ;;  %s235_s6 = sadd.s32 %s2368_s5, %s3568_s15 }
  0x2a   : > { %2068 = vmatpush3.bf16.msra.mxu0 %v2887_v58  ;;  %v567_v34 = vrot.slane %v2990_v54, 1  ;;  %v575_v8 = vrot.slane %v2990_v54, 2  ;;  %s1950_s9 = sshll.u32 %s235_s6, 3 }
  0x2b   : > { %2069 = vmatprep.subr.bf16.mxu0 %v2913_v63  ;;  %s237_s16 = scalar_lea.vmem %s3545_s4, %s1950_s9 }
  0x2c   : > { %437 = vrot.lane.b32.xlu0 %v2677_v16, %s2532_s29  ;;  %2096 = vmatpush3.bf16.msra.mxu1 %v2906_v62  ;;  %v3546_v16 = vmov 0.0   ;;  %569 = vst.msk [vmem:[#allocation2 + $0x88] sm:$0x1f] %vm245_vm0, %v567_v34 }
  0x2d   : > { %395 = vrot.lane.b32.xlu1 %v394_v17, %s2532_s29  ;;  %2335 = vmatprep.subr.bf16.mxu1 %v3546_v16  ;;  %v2936_v17 = vld [vmem:[%s3543_s2 + $0x48] sm:$0xff]   ;;  %v2957_v16 = vld [vmem:[%s3543_s2 + $0x40] sm:$0xff]  }
  0x2e   : > { %2070 = vmatpush3.bf16.msra.mxu0 %v2925_v13 }
  0x2f   : > { %2071 = vmatprep.subr.bf16.mxu0 %v2936_v17 }
  0x30   : > { %443 = vrot.lane.b32.xlu0 %v442_v55, %s2531_s24 }
  0x31   : > { %315 = vrot.lane.b32.xlu1 %v2674_v15, %s2532_s29 }
  0x32   : > { %2072 = vmatpush3.bf16.msra.mxu0 %v2946_v50 }
  0x33   : > { %2073 = vmatprep.subr.bf16.mxu0 %v2957_v16 }
  0x34   : > { %401 = vrot.lane.b32.xlu0 %v400_v60, %s2531_s24 }
  0x35   : > { %448 = vrot.lane.b32.xlu1 %v447_v61, %s2530_s28 }
  0x38   : > { %271 = vrot.lane.b32.xlu0 %v254_v37, %s2532_s29  ;;  %v2969_v37 = vld [vmem:[%s3543_s2] sm:$0xff]  }
  0x39   : > { %319 = vrot.lane.b32.xlu1 %v302_v42, %s2531_s24  ;;  %2074 = vmatpush3.bf16.msra.mxu0 %v2969_v37  ;;  %v329_v42 = vrot.slane %v2674_v15, 2  ;;  %v481_v15 = vrot.slane %v2799_v41, 1 }
  0x3a   : > { %2103 = vmatprep.subr.bf16.mxu0 %v2974_v7 }
  0x3c   : > { %406 = vrot.lane.b32.xlu0 %v405_v11, %s2530_s28 }
  0x3d   : > { %275 = vrot.lane.b32.xlu1 %v260_v43, %s2531_s24  ;;  %v3553_v43 = vrot.slane %v2799_v41, 2  ;;  %v508_v41 = vrot.slane %v2762_v35, 2 }
  0x3f   : > { %510 = vst.msk [vmem:[#allocation2 + $0xb0] sm:$0x1f] %vm245_vm0, %v508_v41  ;;  %v3160_v41 = vld [vmem:[%s3543_s2 + $0x128] sm:$0xff]  }
  0x40   : > { %323 = vrot.lane.b32.xlu0 %v307_v22, %s2530_s28  ;;  %v655_v22 = vrot.slane %v2939_v18, 1 }
  0x41   : > { %279 = vrot.lane.b32.xlu1 %v266_v23, %s2530_s28  ;;  %v613_v23 = vrot.slane %v2961_v56, 1 }
  0x44   : > { %373 = vrot.lane.b32.xlu0 %v358_v21, %s2532_s29  ;;  %v3551_v21 = vrot.slane %v2736_v31, 1 }
  0x45   : > { %330 = vrot.lane.b32.xlu1 %v329_v42, %s2532_s29 }
  0x48   : > { %378 = vrot.lane.b32.xlu0 %v377_v12, %s2531_s24 }
  0x49   : > { %363 = vrot.lane.b32.xlu1 %v2651_v9, %s2531_s24  ;;  %v424_v9 = vrot.slane %v2691_v20, 2 }
  0x4c   : > { %410 = vrot.lane.b32.xlu0 %v2691_v20, %s2530_s28  ;;  %v486_v20 = vrot.slane %v2762_v35, 1 }
  0x4d   : > { %456 = vrot.lane.b32.xlu1 %v442_v55, %s2532_s29  ;;  %v550_v55 = vrot.slane %v2838_v48, 2 }
  0x50   : > { %367 = vrot.lane.b32.xlu0 %v350_v25, %s2530_s28  ;;  %v660_v25 = vrot.slane %v2916_v10, 1 }
  0x51   : > { %416 = vrot.lane.b32.xlu1 %v400_v60, %s2532_s29 }
  0x54   : > { %460 = vrot.lane.b32.xlu0 %v447_v61, %s2531_s24 }
  0x55   : > { %420 = vrot.lane.b32.xlu1 %v405_v11, %s2531_s24 }
  0x58   : > { %464 = vrot.lane.b32.xlu0 %v452_v26, %s2530_s28  ;;  %v618_v26 = vrot.slane %v2736_v31, 2 }
  0x59   : > { %425 = vrot.lane.b32.xlu1 %v424_v9, %s2530_s28 }
  0x5c   : > { %571 = vrot.lane.b32.xlu0 %v570_v28, %s2532_s29 }
  0x5d   : > { %532 = vrot.lane.b32.xlu1 %v531_v29, %s2532_s29  ;;  %v3552_v29 = vrot.slane %v2838_v48, 1 }
  0x60   : > { %576 = vrot.lane.b32.xlu0 %v575_v8, %s2531_s24 }
  0x61   : > { %558 = vrot.lane.b32.xlu1 %v2990_v54, %s2531_s24  ;;  %v690_v54 = vld [vmem:[#allocation2 + $0x30] sm:$0x1f] }
  0x64   : > { %602 = vrot.lane.b32.xlu0 %v2736_v31, %s2530_s28  ;;  %v594_v31 = vrot.slane %v2708_v24, 2 }
  0x65   : > { %563 = vrot.lane.b32.xlu1 %v2708_v24, %s2530_s28 }
  0x68   : > { %514 = vrot.lane.b32.xlu0 %v2714_v27, %s2532_s29 }
  0x69   : > { %476 = vrot.lane.b32.xlu1 %v2762_v35, %s2532_s29 }
  0x6c   : > { %519 = vrot.lane.b32.xlu0 %v2838_v48, %s2531_s24 }
  0x6d   : > { %482 = vrot.lane.b32.xlu1 %v481_v15, %s2531_s24 }
  0x70   : > { %524 = vrot.lane.b32.xlu0 %v523_v19, %s2530_s28 }
  0x71   : > { %487 = vrot.lane.b32.xlu1 %v486_v20, %s2530_s28 }
  0x74   : > { %650 = vrot.lane.b32.xlu0 %v2916_v10, %s2532_s29 }
  0x75   : > { %608 = vrot.lane.b32.xlu1 %v3551_v21, %s2532_s29 }
  0x78   : > { %656 = vrot.lane.b32.xlu0 %v655_v22, %s2531_s24 }
  0x79   : > { %536 = vrot.lane.b32.xlu1 %v2838_v48, %s2532_s29 }
  0x7c   : > { %614 = vrot.lane.b32.xlu0 %v613_v23, %s2531_s24 }
  0x7d   : > { %661 = vrot.lane.b32.xlu1 %v660_v25, %s2530_s28 }
  0x80   : > { %496 = vrot.lane.b32.xlu0 %v481_v15, %s2532_s29  ;;  %v3097_v15 = vld [vmem:[%s3543_s2 + $0x188] sm:$0xff]  }
  0x81   : > { %540 = vrot.lane.b32.xlu1 %v523_v19, %s2531_s24 }
  0x84   : > { %619 = vrot.lane.b32.xlu0 %v618_v26, %s2530_s28 }
  0x85   : > { %500 = vrot.lane.b32.xlu1 %v486_v20, %s2531_s24 }
  0x86   : > { %v390_v27 = vpop.permute.xlu0 %389 }
  0x87   : > { %v342_v28 = vpop.permute.xlu1 %341 }
  0x88   : > { %544 = vrot.lane.b32.xlu0 %v3552_v29, %s2530_s28  ;;  %v697_v29 = vpack.c.bf16 %v690_v54, %v690_v54  ;;  %v3201_v54 = vld [vmem:[%s3543_s2 + $0x150] sm:$0xff]  }
  0x89   : > { %504 = vrot.lane.b32.xlu1 %v3553_v43, %s2530_s28 }
  0x8a   : > { %v355_v60 = vpop.permute.xlu0 %354 }
  0x8b   : > { %v347_v61 = vpop.permute.xlu1 %346  ;;  %357 = vst.msk [vmem:[#allocation2 + $0x18] sm:$0x1f] %vm251_vm1, %v355_v60 }
  0x8c   : > { %590 = vrot.lane.b32.xlu0 %v575_v8, %s2532_s29 }
  0x8d   : > { %551 = vrot.lane.b32.xlu1 %v550_v55, %s2532_s29 }
  0x8e   : > { %v312_v11 = vpop.permute.xlu0 %311 }
  0x8f   : > { %v360_v10 = vpop.permute.xlu1 %359  ;;  %314 = vst.msk [vmem:[#allocation2 + $0x10] sm:$0x1f] %vm251_vm1, %v312_v11 }
  0x90   : > { %362 = vst.msk [vmem:[#allocation2 + $0x18] sm:$0x1f] %vm258_vm2, %v360_v10  ;;  %344 = vst.msk [vmem:[#allocation2 + $0x10] sm:$0x1f] %vm258_vm2, %v342_v28  ;;  %595 = vrot.lane.b32.xlu0 %v594_v31, %s2531_s24  ;;  %v637_v28 = vrot.slane %v2961_v56, 2  ;;  %v3144_v31 = vld [vmem:[%s3543_s2 + $0x130] sm:$0xff]  }
  0x91   : > { %392 = vst.msk [vmem:[#allocation2 + $0x18] sm:$0x1f] %vm264_vm3, %v390_v27  ;;  %580 = vrot.lane.b32.xlu1 %v2708_v24, %s2531_s24  ;;  %349 = vst.msk [vmem:[#allocation2 + $0x10] sm:$0x1f] %vm264_vm3, %v347_v61  ;;  %v3129_v61 = vld [vmem:[%s3543_s2 + $0x138] sm:$0xff]  }
  0x92   : > { %v294_v48 = vpop.permute.xlu0 %293 }
  0x93   : > { %v249_v42 = vpop.permute.xlu1 %248  ;;  %296 = vst.msk [vmem:[#allocation2 + $0x8] sm:$0x1f] %vm251_vm1, %v294_v48  ;;  %v3169_v48 = vld [vmem:[%s3543_s2 + $0x160] sm:$0xff]  }
  0x94   : > { %252 = vst.msk [vmem:[#allocation2] sm:$0x1f] %vm251_vm1, %v249_v42  ;;  %623 = vrot.lane.b32.xlu0 %v2961_v56, %s2530_s28 }
  0x95   : > { %669 = vrot.lane.b32.xlu1 %v655_v22, %s2532_s29  ;;  %v3109_v22 = vld [vmem:[%s3543_s2 + $0x180] sm:$0xff]  }
  0x96   : > { %v299_v12 = vpop.permute.xlu0 %298 }
  0x97   : > { %v256_v9 = vpop.permute.xlu1 %255  ;;  %301 = vst.msk [vmem:[#allocation2 + $0x8] sm:$0x1f] %vm258_vm2, %v299_v12 }
  0x98   : > { %259 = vst.msk [vmem:[#allocation2] sm:$0x1f] %vm258_vm2, %v256_v9  ;;  %v687_v24 = vld [vmem:[#allocation2 + $0x18] sm:$0x1f]  ;;  %v686_v8 = vld [vmem:[#allocation2 + $0x10] sm:$0x1f]  ;;  %584 = vrot.lane.b32.xlu0 %v567_v34, %s2530_s28 }
  0x99   : > { %v694_v35 = vpack.c.bf16 %v687_v24, %v687_v24  ;;  %629 = vrot.lane.b32.xlu1 %v613_v23, %s2532_s29  ;;  %v693_v19 = vpack.c.bf16 %v686_v8, %v686_v8  ;;  %v3554_v34 = vmov 0.0   ;;  %v3176_v24 = vld [vmem:[%s3543_s2 + $0x120] sm:$0xff]   ;;  %v3185_v8 = vld [vmem:[%s3543_s2 + $0x158] sm:$0xff]  }
  0x9a   : > { %v304_v20 = vpop.permute.xlu0 %303 }
  0x9b   : > { %1174 = vmatprep.mubr.bf16.mxu1 %v694_v35  ;;  %v262_v21 = vpop.permute.xlu1 %261  ;;  %306 = vst.msk [vmem:[#allocation2 + $0x8] sm:$0x1f] %vm264_vm3, %v304_v20 }
  0x9c   : > { %1175 = vmatmul.mubr.bf16.vlgmr.msra.gmra.mxu1 %v693_v19  ;;  %265 = vst.msk [vmem:[#allocation2] sm:$0x1f] %vm264_vm3, %v262_v21  ;;  %673 = vrot.lane.b32.xlu0 %v660_v25, %s2531_s24  ;;  %v3192_v21 = vld [vmem:[%s3543_s2 + $0x118] sm:$0xff]  }
  0x9d   : > { %2336 = vmatpush3.bf16.msra.mxu1 %v3097_v15  ;;  %2339 = vmatprep.mubr.msk.bf16.mxu1 %vm2534_vm4, %v3554_v34 }
  0x9e   : > { %2337 = vmatprep.subr.bf16.mxu1 %v3554_v34  ;;  %v438_v23 = vpop.permute.xlu0 %437  ;;  %633 = vrot.lane.b32.xlu1 %v618_v26, %s2531_s24 }
  0x9f   : > { %v396_v27 = vpop.permute.xlu1 %395  ;;  %440 = vst.msk [vmem:[#allocation2 + $0x28] sm:$0x1f] %vm251_vm1, %v438_v23 }
  0xa0   : > { %398 = vst.msk [vmem:[#allocation2 + $0x20] sm:$0x1f] %vm251_vm1, %v396_v27  ;;  %677 = vrot.lane.b32.xlu0 %v665_v14, %s2530_s28 }
  0xa1   : > { %2338 = vmatpush3.bf16.msra.mxu1 %v3109_v22 }
  0xa2   : > { %2128 = vmatprep.subr.bf16.mxu1 %v2642_v6  ;;  %v685_v25 = vld [vmem:[#allocation2 + $0x8] sm:$0x1f]  ;;  %v444_v55 = vpop.permute.xlu0 %443  ;;  %638 = vrot.lane.b32.xlu1 %v637_v28, %s2530_s28  ;;  %v3137_v6 = vld [vmem:[%s3543_s2 + $0x170] sm:$0xff]  }
  0xa3   : > { %v684_v43 = vld [vmem:[#allocation2] sm:$0x1f]  ;;  %v316_v26 = vpop.permute.xlu1 %315  ;;  %v692_v56 = vpack.c.bf16 %v685_v25, %v685_v25  ;;  %446 = vst.msk [vmem:[#allocation2 + $0x28] sm:$0x1f] %vm258_vm2, %v444_v55  ;;  %v3208_v28 = vld [vmem:[%s3543_s2 + $0x110] sm:$0xff]  }
  0xa4   : > { %2340 = vmatmul.mubr.msk.bf16.vlgmr.msra.gmra.mxu1 %vm1098_vm5, %v697_v29  ;;  %v691_v60 = vpack.c.bf16 %v684_v43, %v684_v43  ;;  %318 = vst.msk [vmem:[#allocation2 + $0x40] sm:$0x1f] %vm251_vm1, %v316_v26  ;;  %v3217_v29 = vld [vmem:[%s3543_s2 + $0x148] sm:$0xff]  }
  0xa5   : > { %2129 = vmatpush3.bf16.msra.mxu1 %v2727_v30  ;;  %1134 = vmatprep.mubr.bf16.mxu0 %v692_v56  ;;  %v3153_v30 = vld [vmem:[%s3543_s2 + $0x168] sm:$0xff]  }
  0xa6   : > { %2130 = vmatprep.subr.bf16.mxu1 %v2770_v36  ;;  %1135 = vmatmul.mubr.bf16.vlgmr.msra.gmra.mxu0 %v691_v60  ;;  %v402_v18 = vpop.permute.xlu0 %401  ;;  %v3224_v26 = vld [vmem:[%s3543_s2 + $0x108] sm:$0xff]   ;;  %v3233_v60 = vld [vmem:[%s3543_s2 + $0x140] sm:$0xff]  }
  0xa7   : > { %v449_v14 = vpop.permute.xlu1 %448  ;;  %2104 = vmatpush3.bf16.msra.mxu0 %v3129_v61  ;;  %404 = vst.msk [vmem:[#allocation2 + $0x20] sm:$0x1f] %vm258_vm2, %v402_v18 }
  0xa8   : > { %451 = vst.msk [vmem:[#allocation2 + $0x28] sm:$0x1f] %vm264_vm3, %v449_v14  ;;  %2105 = vmatprep.subr.bf16.mxu0 %v3137_v6 }
  0xa9   : > { %2131 = vmatpush3.bf16.msra.mxu1 %v2783_v38 }
  0xaa   : > { %2132 = vmatprep.subr.bf16.mxu1 %v2813_v44  ;;  %v272_v10 = vpop.permute.xlu0 %271 }
  0xab   : > { %v320_v11 = vpop.permute.xlu1 %319  ;;  %2106 = vmatpush3.bf16.msra.mxu0 %v3144_v31  ;;  %274 = vst.msk [vmem:[#allocation2 + $0x38] sm:$0x1f] %vm251_vm1, %v272_v10 }
  0xac   : > { %322 = vst.msk [vmem:[#allocation2 + $0x40] sm:$0x1f] %vm258_vm2, %v320_v11  ;;  %2107 = vmatprep.subr.bf16.mxu0 %v3153_v30  ;;  %v3240_v11 = vld [vmem:[%s3543_s2 + $0x100] sm:$0xff]  }
  0xad   : > { %2133 = vmatpush3.bf16.msra.mxu1 %v2819_v45 }
  0xae   : > { %2134 = vmatprep.subr.bf16.mxu1 %v2843_v49  ;;  %v407_v42 = vpop.permute.xlu0 %406 }
  0xaf   : > { %v276_v12 = vpop.permute.xlu1 %275  ;;  %v689_v9 = vld [vmem:[#allocation2 + $0x28] sm:$0x1f]  ;;  %2108 = vmatpush3.bf16.msra.mxu0 %v3160_v41  ;;  %409 = vst.msk [vmem:[#allocation2 + $0x20] sm:$0x1f] %vm264_vm3, %v407_v42 }
  0xb0   : > { %278 = vst.msk [vmem:[#allocation2 + $0x38] sm:$0x1f] %vm258_vm2, %v276_v12  ;;  %v696_v35 = vpack.c.bf16 %v689_v9, %v689_v9  ;;  %2109 = vmatprep.subr.bf16.mxu0 %v3169_v48 }
  0xb1   : > { %2135 = vmatpush3.bf16.msra.mxu1 %v2850_v51 }
  0xb2   : > { %2136 = vmatprep.subr.bf16.mxu1 %v2878_v57  ;;  %1214 = vmatprep.mubr.bf16.mxu0 %v696_v35  ;;  %v324_v19 = vpop.permute.xlu0 %323 }
  0xb3   : > { %v280_v20 = vpop.permute.xlu1 %279  ;;  %2110 = vmatpush3.bf16.msra.mxu0 %v3176_v24  ;;  %326 = vst.msk [vmem:[#allocation2 + $0x40] sm:$0x1f] %vm264_vm3, %v324_v19 }
  0xb4   : > { %282 = vst.msk [vmem:[#allocation2 + $0x38] sm:$0x1f] %vm264_vm3, %v280_v20  ;;  %2111 = vmatprep.subr.bf16.mxu0 %v3185_v8 }
  0xb5   : > { %2137 = vmatpush3.bf16.msra.mxu1 %v2887_v58 }
  0xb6   : > { %2138 = vmatprep.subr.bf16.mxu1 %v2913_v63  ;;  %v374_v23 = vpop.permute.xlu0 %373  ;;  %v688_v12 = vld [vmem:[#allocation2 + $0x20] sm:$0x1f] }
  0xb7   : > { %v331_v27 = vpop.permute.xlu1 %330  ;;  %2112 = vmatpush3.bf16.msra.mxu0 %v3192_v21  ;;  %376 = vst.msk [vmem:[#allocation2 + $0x50] sm:$0x1f] %vm251_vm1, %v374_v23  ;;  %v695_v19 = vpack.c.bf16 %v688_v12, %v688_v12 }
  0xb8   : > { %333 = vst.msk [vmem:[#allocation2 + $0x48] sm:$0x1f] %vm251_vm1, %v331_v27  ;;  %2113 = vmatprep.subr.bf16.mxu0 %v3201_v54 }
  0xb9   : > { %2139 = vmatpush3.bf16.msra.mxu1 %v2925_v13 }
  0xba   : > { %2140 = vmatprep.subr.bf16.mxu1 %v2936_v17  ;;  %v1263_v25 = vld [vmem:[#allocation2 + $0x40] sm:$0x1f]  ;;  %v379_v43 = vpop.permute.xlu0 %378 }
  0xbb   : > { %v364_v55 = vpop.permute.xlu1 %363  ;;  %2114 = vmatpush3.bf16.msra.mxu0 %v3208_v28  ;;  %v1270_v56 = vpack.c.bf16 %v1263_v25, %v1263_v25  ;;  %381 = vst.msk [vmem:[#allocation2 + $0x50] sm:$0x1f] %vm258_vm2, %v379_v43  ;;  %v1262_v18 = vld [vmem:[#allocation2 + $0x38] sm:$0x1f] }
  0xbc   : > { %366 = vst.msk [vmem:[#allocation2 + $0x48] sm:$0x1f] %vm258_vm2, %v364_v55  ;;  %2115 = vmatprep.subr.bf16.mxu0 %v3217_v29  ;;  %v1269_v42 = vpack.c.bf16 %v1262_v18, %v1262_v18 }
  0xbd   : > { %2141 = vmatpush3.bf16.msra.mxu1 %v2946_v50  ;;  %1311 = vmatprep.mubr.bf16.mxu1 %v1270_v56 }
  0xbe   : > { %2142 = vmatprep.subr.bf16.mxu1 %v2957_v16  ;;  %v411_v14 = vpop.permute.xlu0 %410 }
  0xbf   : > { %v457_v10 = vpop.permute.xlu1 %456  ;;  %2116 = vmatpush3.bf16.msra.mxu0 %v3224_v26  ;;  %413 = vst.msk [vmem:[#allocation2 + $0x50] sm:$0x1f] %vm264_vm3, %v411_v14 }
  0xc0   : > { %459 = vst.msk [vmem:[#allocation2 + $0x60] sm:$0x1f] %vm251_vm1, %v457_v10  ;;  %2117 = vmatprep.subr.bf16.mxu0 %v3233_v60 }
  0xc1   : > { %2143 = vmatpush3.bf16.msra.mxu1 %v2969_v37 }
  0xc2   : > { %2172 = vmatprep.subr.bf16.mxu1 %v2974_v7  ;;  %v368_v9 = vpop.permute.xlu0 %367 }
  0xc3   : > { %v417_v35 = vpop.permute.xlu1 %416  ;;  %2118 = vmatpush3.bf16.msra.mxu0 %v3240_v11  ;;  %370 = vst.msk [vmem:[#allocation2 + $0x48] sm:$0x1f] %vm264_vm3, %v368_v9 }
  0xc4   : > { %1312 = vmatmul.mubr.bf16.vlgmr.msra.gmra.mxu1 %v1269_v42  ;;  %419 = vst.msk [vmem:[#allocation2 + $0x58] sm:$0x1f] %vm251_vm1, %v417_v35  ;;  %2150 = vmatprep.subr.bf16.mxu0 %v2595_v0 }
  0xc5   : > { %2173 = vmatpush3.bf16.msra.mxu1 %v3129_v61 }
  0xc6   : > { %2174 = vmatprep.subr.bf16.mxu1 %v3137_v6  ;;  %1215 = vmatmul.mubr.bf16.vlgmr.msra.gmra.mxu0 %v695_v19  ;;  %v461_v20 = vpop.permute.xlu0 %460  ;;  %v1265_v27 = vld [vmem:[#allocation2 + $0x50] sm:$0x1f] }
  0xc7   : > { %v421_v23 = vpop.permute.xlu1 %420  ;;  %2151 = vmatpush3.bf16.msra.mxu0 %v2604_v1  ;;  %463 = vst.msk [vmem:[#allocation2 + $0x60] sm:$0x1f] %vm258_vm2, %v461_v20  ;;  %v1272_v25 = vpack.c.bf16 %v1265_v27, %v1265_v27  ;;  %v3297_v20 = vld [vmem:[%s3543_s2 + $0xf8] sm:$0xff]  }
  0xc8   : > { %423 = vst.msk [vmem:[#allocation2 + $0x58] sm:$0x1f] %vm258_vm2, %v421_v23  ;;  %2152 = vmatprep.subr.bf16.mxu0 %v2609_v2 }
  0xc9   : > { %2175 = vmatpush3.bf16.msra.mxu1 %v3144_v31  ;;  %1351 = vmatprep.mubr.bf16.mxu0 %v1272_v25 }
  0xca   : > { %2176 = vmatprep.subr.bf16.mxu1 %v3153_v30  ;;  %v465_v0 = vpop.permute.xlu0 %464  ;;  %v1264_v23 = vld [vmem:[#allocation2 + $0x48] sm:$0x1f] }
  0xcb   : > { %v426_v43 = vpop.permute.xlu1 %425  ;;  %2153 = vmatpush3.bf16.msra.mxu0 %v2616_v3  ;;  %467 = vst.msk [vmem:[#allocation2 + $0x60] sm:$0x1f] %vm264_vm3, %v465_v0 }
  0xcc   : > { %428 = vst.msk [vmem:[#allocation2 + $0x58] sm:$0x1f] %vm264_vm3, %v426_v43  ;;  %2154 = vmatprep.subr.bf16.mxu0 %v2622_v4  ;;  %v3306_v43 = vld [vmem:[%s3543_s2 + $0xb8] sm:$0xff]  }
  0xcd   : > { %2177 = vmatpush3.bf16.msra.mxu1 %v3160_v41 }
  0xce   : > { %2178 = vmatprep.subr.bf16.mxu1 %v3169_v48  ;;  %v572_v1 = vpop.permute.xlu0 %571 }
  0xcf   : > { %v533_v55 = vpop.permute.xlu1 %532  ;;  %2155 = vmatpush3.bf16.msra.mxu0 %v2633_v5  ;;  %574 = vst.msk [vmem:[#allocation2 + $0x88] sm:$0x1f] %vm251_vm1, %v572_v1  ;;  %v1271_v1 = vpack.c.bf16 %v1264_v23, %v1264_v23 }
  0xd0   : > { %535 = vst.msk [vmem:[#allocation2 + $0x80] sm:$0x1f] %vm251_vm1, %v533_v55  ;;  %2156 = vmatprep.subr.bf16.mxu0 %v2741_v32  ;;  %v3313_v55 = vld [vmem:[%s3543_s2 + $0xf0] sm:$0xff]  }
  0xd1   : > { %2179 = vmatpush3.bf16.msra.mxu1 %v3176_v24 }
  0xd2   : > { %2180 = vmatprep.subr.bf16.mxu1 %v3185_v8  ;;  %v1267_v2 = vld [vmem:[#allocation2 + $0x60] sm:$0x1f]  ;;  %v577_v3 = vpop.permute.xlu0 %576 }
  0xd3   : > { %v559_v56 = vpop.permute.xlu1 %558  ;;  %2157 = vmatpush3.bf16.msra.mxu0 %v2758_v33  ;;  %v1274_v4 = vpack.c.bf16 %v1267_v2, %v1267_v2  ;;  %579 = vst.msk [vmem:[#allocation2 + $0x88] sm:$0x1f] %vm258_vm2, %v577_v3  ;;  %v1266_v42 = vld [vmem:[#allocation2 + $0x58] sm:$0x1f] }
  0xd4   : > { %561 = vst.msk [vmem:[#allocation2 + $0x80] sm:$0x1f] %vm258_vm2, %v559_v56  ;;  %2158 = vmatprep.subr.bf16.mxu0 %v2789_v39  ;;  %v1273_v19 = vpack.c.bf16 %v1266_v42, %v1266_v42  ;;  %v1268_v56 = vld [vmem:[#allocation2 + $0x68] sm:$0x1f] }
  0xd5   : > { %2181 = vmatpush3.bf16.msra.mxu1 %v3192_v21  ;;  %1391 = vmatprep.mubr.bf16.mxu1 %v1274_v4  ;;  %v3324_v4 = vld [vmem:[%s3543_s2 + $0xb0] sm:$0xff]  }
  0xd6   : > { %2182 = vmatprep.subr.bf16.mxu1 %v3201_v54  ;;  %v603_v5 = vpop.permute.xlu0 %602 }
  0xd7   : > { %v564_v18 = vpop.permute.xlu1 %563  ;;  %2159 = vmatpush3.bf16.msra.mxu0 %v2795_v40  ;;  %605 = vst.msk [vmem:[#allocation2 + $0x88] sm:$0x1f] %vm264_vm3, %v603_v5  ;;  %v3331_v5 = vld [vmem:[%s3543_s2 + $0xe8] sm:$0xff]  }
  0xd8   : > { %566 = vst.msk [vmem:[#allocation2 + $0x80] sm:$0x1f] %vm264_vm3, %v564_v18  ;;  %2160 = vmatprep.subr.bf16.mxu0 %v2825_v46  ;;  %v1275_v18 = vpack.c.bf16 %v1268_v56, %v1268_v56 }
  0xd9   : > { %2183 = vmatpush3.bf16.msra.mxu1 %v3208_v28 }
  0xda   : > { %2184 = vmatprep.subr.bf16.mxu1 %v3217_v29  ;;  %v515_v14 = vpop.permute.xlu0 %514 }
  0xdb   : > { %v477_v10 = vpop.permute.xlu1 %476  ;;  %2161 = vmatpush3.bf16.msra.mxu0 %v2831_v47  ;;  %517 = vst.msk [vmem:[#allocation2 + $0x78] sm:$0x1f] %vm251_vm1, %v515_v14 }
  0xdc   : > { %479 = vst.msk [vmem:[#allocation2 + $0x70] sm:$0x1f] %vm251_vm1, %v477_v10  ;;  %2162 = vmatprep.subr.bf16.mxu0 %v2857_v52 }
  0xdd   : > { %2185 = vmatpush3.bf16.msra.mxu1 %v3224_v26 }
  0xde   : > { %2186 = vmatprep.subr.bf16.mxu1 %v3233_v60  ;;  %v520_v12 = vpop.permute.xlu0 %519  ;;  %v1443_v35 = vld [vmem:[#allocation2 + $0x88] sm:$0x1f] }
  0xdf   : > { %v483_v9 = vpop.permute.xlu1 %482  ;;  %2163 = vmatpush3.bf16.msra.mxu0 %v2864_v53  ;;  %522 = vst.msk [vmem:[#allocation2 + $0x78] sm:$0x1f] %vm258_vm2, %v520_v12  ;;  %v1450_v27 = vpack.c.bf16 %v1443_v35, %v1443_v35  ;;  %v3346_v35 = vld [vmem:[%s3543_s2 + $0x78] sm:$0xff]  }
  0xe0   : > { %485 = vst.msk [vmem:[#allocation2 + $0x70] sm:$0x1f] %vm258_vm2, %v483_v9  ;;  %2164 = vmatprep.subr.bf16.mxu0 %v2896_v59  ;;  %v3340_v9 = vld [vmem:[%s3543_s2 + $0xa8] sm:$0xff]  }
  0xe1   : > { %2187 = vmatpush3.bf16.msra.mxu1 %v3240_v11 }
  0xe2   : > { %2219 = vmatprep.subr.bf16.mxu1 %v3297_v20  ;;  %v525_v25 = vpop.permute.xlu0 %524 }
  0xe3   : > { %v488_v0 = vpop.permute.xlu1 %487  ;;  %2165 = vmatpush3.bf16.msra.mxu0 %v2906_v62  ;;  %527 = vst.msk [vmem:[#allocation2 + $0x78] sm:$0x1f] %vm264_vm3, %v525_v25 }
  0xe4   : > { %1392 = vmatmul.mubr.bf16.vlgmr.msra.gmra.mxu1 %v1273_v19  ;;  %490 = vst.msk [vmem:[#allocation2 + $0x70] sm:$0x1f] %vm264_vm3, %v488_v0  ;;  %2343 = vmatprep.subr.bf16.mxu0 %v3554_v34 }
  0xe5   : > { %2220 = vmatpush3.bf16.msra.mxu1 %v3306_v43  ;;  %1529 = vmatprep.mubr.bf16.mxu1 %v1450_v27  ;;  %v3354_v27 = vld [vmem:[%s3543_s2 + $0x38] sm:$0xff]  }
  0xe6   : > { %2221 = vmatprep.subr.bf16.mxu1 %v3313_v55  ;;  %1352 = vmatmul.mubr.bf16.vlgmr.msra.gmra.mxu0 %v1271_v1  ;;  %v651_v2 = vpop.permute.xlu0 %650 }
  0xe7   : > { %v609_v3 = vpop.permute.xlu1 %608  ;;  %2344 = vmatpush3.bf16.msra.mxu0 %v3097_v15  ;;  %2347 = vmatprep.mubr.msk.bf16.mxu0 %vm2534_vm4, %v3554_v34  ;;  %653 = vst.msk [vmem:[#allocation2 + $0x98] sm:$0x1f] %vm251_vm1, %v651_v2 }
  0xe8   : > { %611 = vst.msk [vmem:[#allocation2 + $0x90] sm:$0x1f] %vm251_vm1, %v609_v3  ;;  %2345 = vmatprep.subr.bf16.mxu0 %v3554_v34 }
  0xe9   : > { %2222 = vmatpush3.bf16.msra.mxu1 %v3324_v4 }
  0xea   : > { %2223 = vmatprep.subr.bf16.mxu1 %v3331_v5  ;;  %v1441_v14 = vld [vmem:[#allocation2 + $0x78] sm:$0x1f]  ;;  %v657_v10 = vpop.permute.xlu0 %656 }
  0xeb   : > { %v537_v42 = vpop.permute.xlu1 %536  ;;  %2346 = vmatpush3.bf16.msra.mxu0 %v3109_v22  ;;  %v1448_v12 = vpack.c.bf16 %v1441_v14, %v1441_v14  ;;  %659 = vst.msk [vmem:[#allocation2 + $0x98] sm:$0x1f] %vm258_vm2, %v657_v10  ;;  %v2473_v10 = vld [vmem:[%s3543_s2 + $0x30] sm:$0xff]  }
  0xec   : > { %539 = vst.msk [vmem:[#allocation2 + $0xb0] sm:$0x1f] %vm251_vm1, %v537_v42  ;;  %2197 = vmatprep.subr.bf16.mxu0 %v3346_v35 }
  0xed   : > { %2224 = vmatpush3.bf16.msra.mxu1 %v3340_v9 }
  0xee   : > { %2225 = vmatprep.subr.bf16.mxu1 %v2741_v32  ;;  %2348 = vmatmul.mubr.msk.bf16.vlgmr.msra.gmra.mxu0 %vm1098_vm5, %v1275_v18  ;;  %v615_v19 = vpop.permute.xlu0 %614  ;;  %v2472_v18 = vld [vmem:[%s3543_s2 + $0x70] sm:$0xff]  }
  0xef   : > { %v662_v23 = vpop.permute.xlu1 %661  ;;  %2198 = vmatpush3.bf16.msra.mxu0 %v3354_v27  ;;  %1489 = vmatprep.mubr.bf16.mxu0 %v1448_v12  ;;  %617 = vst.msk [vmem:[#allocation2 + $0x90] sm:$0x1f] %vm258_vm2, %v615_v19  ;;  %v2474_v12 = vld [vmem:[%s3543_s2 + $0x68] sm:$0xff]  }
  0xf0   : > { %664 = vst.msk [vmem:[#allocation2 + $0x98] sm:$0x1f] %vm264_vm3, %v662_v23  ;;  %2199 = vmatprep.subr.bf16.mxu0 %v2770_v36  ;;  %v2475_v19 = vld [vmem:[%s3543_s2 + $0x28] sm:$0xff]  }
  0xf1   : > { %2226 = vmatpush3.bf16.msra.mxu1 %v2758_v33 }
  0xf2   : > { %2227 = vmatprep.subr.bf16.mxu1 %v2789_v39  ;;  %v497_v32 = vpop.permute.xlu0 %496  ;;  %v1442_v39 = vld [vmem:[#allocation2 + $0x80] sm:$0x1f] }
  0xf3   : > { %v541_v25 = vpop.permute.xlu1 %540  ;;  %2200 = vmatpush3.bf16.msra.mxu0 %v2783_v38  ;;  %499 = vst.msk [vmem:[#allocation2 + $0xa8] sm:$0x1f] %vm251_vm1, %v497_v32  ;;  %v2477_v32 = vld [vmem:[%s3543_s2 + $0x20] sm:$0xff]  }
  0xf4   : > { %543 = vst.msk [vmem:[#allocation2 + $0xb0] sm:$0x1f] %vm258_vm2, %v541_v25  ;;  %2201 = vmatprep.subr.bf16.mxu0 %v2813_v44  ;;  %v2478_v25 = vld [vmem:[%s3543_s2 + $0x58] sm:$0xff]  }
  0xf5   : > { %2228 = vmatpush3.bf16.msra.mxu1 %v2795_v40 }
  0xf6   : > { %2229 = vmatprep.subr.bf16.mxu1 %v2825_v46  ;;  %v620_v0 = vpop.permute.xlu0 %619 }
  0xf7   : > { %v501_v33 = vpop.permute.xlu1 %500  ;;  %2202 = vmatpush3.bf16.msra.mxu0 %v2819_v45  ;;  %622 = vst.msk [vmem:[#allocation2 + $0x90] sm:$0x1f] %vm264_vm3, %v620_v0  ;;  %v1449_v45 = vpack.c.bf16 %v1442_v39, %v1442_v39  ;;  %v2479_v0 = vld [vmem:[%s3543_s2 + $0x18] sm:$0xff]  }
  0xf8   : > { %503 = vst.msk [vmem:[#allocation2 + $0xa8] sm:$0x1f] %vm258_vm2, %v501_v33  ;;  %2203 = vmatprep.subr.bf16.mxu0 %v2843_v49  ;;  %v1446_v49 = vld [vmem:[#allocation2 + $0xa0] sm:$0x1f] }
  0xf9   : > { %2230 = vmatpush3.bf16.msra.mxu1 %v2831_v47 }
  0xfa   : > { %2231 = vmatprep.subr.bf16.mxu1 %v2857_v52  ;;  %v545_v36 = vpop.permute.xlu0 %544 }
  0xfb   : > { %v505_v38 = vpop.permute.xlu1 %504  ;;  %2204 = vmatpush3.bf16.msra.mxu0 %v2850_v51  ;;  %547 = vst.msk [vmem:[#allocation2 + $0xb0] sm:$0x1f] %vm264_vm3, %v545_v36 }
  0xfc   : > { %507 = vst.msk [vmem:[#allocation2 + $0xa8] sm:$0x1f] %vm264_vm3, %v505_v38  ;;  %2205 = vmatprep.subr.bf16.mxu0 %v2878_v57  ;;  %v1453_v57 = vpack.c.bf16 %v1446_v49, %v1446_v49 }
  0xfd   : > { %2232 = vmatpush3.bf16.msra.mxu1 %v2864_v53 }
  0xfe   : > { %2233 = vmatprep.subr.bf16.mxu1 %v2896_v59  ;;  %v591_v40 = vpop.permute.xlu0 %590  ;;  %v1445_v59 = vld [vmem:[#allocation2 + $0x98] sm:$0x1f] }
  0xff   : > { %v552_v44 = vpop.permute.xlu1 %551  ;;  %2206 = vmatpush3.bf16.msra.mxu0 %v2887_v58  ;;  %593 = vst.msk [vmem:[#allocation2 + $0xc0] sm:$0x1f] %vm251_vm1, %v591_v40  ;;  %v1440_v58 = vld [vmem:[#allocation2 + $0x70] sm:$0x1f]  ;;  %v1452_v56 = vpack.c.bf16 %v1445_v59, %v1445_v59 }
 0x100   : > { %554 = vst.msk [vmem:[#allocation2 + $0xb8] sm:$0x1f] %vm251_vm1, %v552_v44  ;;  %2207 = vmatprep.subr.bf16.mxu0 %v2913_v63  ;;  %v1447_v1 = vpack.c.bf16 %v1440_v58, %v1440_v58 }
 0x101   : > { %2234 = vmatpush3.bf16.msra.mxu1 %v2906_v62 }
 0x102   : > { %2351 = vmatprep.subr.bf16.mxu1 %v3554_v34  ;;  %v596_v46 = vpop.permute.xlu0 %595  ;;  %v1618_v51 = vld [vmem:[#allocation2 + $0xb0] sm:$0x1f] }
 0x103   : > { %v581_v47 = vpop.permute.xlu1 %580  ;;  %2208 = vmatpush3.bf16.msra.mxu0 %v2925_v13  ;;  %598 = vst.msk [vmem:[#allocation2 + $0xc0] sm:$0x1f] %vm258_vm2, %v596_v46  ;;  %v1625_v62 = vpack.c.bf16 %v1618_v51, %v1618_v51  ;;  %v1617_v33 = vld [vmem:[#allocation2 + $0xa8] sm:$0x1f] }
 0x104   : > { %1530 = vmatmul.mubr.bf16.vlgmr.msra.gmra.mxu1 %v1449_v45  ;;  %583 = vst.msk [vmem:[#allocation2 + $0xb8] sm:$0x1f] %vm258_vm2, %v581_v47  ;;  %2209 = vmatprep.subr.bf16.mxu0 %v2936_v17 }
 0x105   : > { %2352 = vmatpush3.bf16.msra.mxu1 %v3097_v15  ;;  %2355 = vmatprep.mubr.msk.bf16.mxu1 %vm2534_vm4, %v3554_v34 }
 0x106   : > { %2353 = vmatprep.subr.bf16.mxu1 %v3554_v34  ;;  %v624_v52 = vpop.permute.xlu0 %623 }
 0x107   : > { %v670_v53 = vpop.permute.xlu1 %669  ;;  %2210 = vmatpush3.bf16.msra.mxu0 %v2946_v50  ;;  %626 = vst.msk [vmem:[#allocation2 + $0xc0] sm:$0x1f] %vm264_vm3, %v624_v52 }
 0x108   : > { %672 = vst.msk [vmem:[#allocation2 + $0xd0] sm:$0x1f] %vm251_vm1, %v670_v53  ;;  %2211 = vmatprep.subr.bf16.mxu0 %v2957_v16 }
 0x109   : > { %2354 = vmatpush3.bf16.msra.mxu1 %v3109_v22 }
 0x10a   : > { %2266 = vmatprep.subr.bf16.mxu1 %v3346_v35  ;;  %v585_v2 = vpop.permute.xlu0 %584 }
 0x10b   : > { %v630_v3 = vpop.permute.xlu1 %629  ;;  %2212 = vmatpush3.bf16.msra.mxu0 %v2969_v37  ;;  %587 = vst.msk [vmem:[#allocation2 + $0xb8] sm:$0x1f] %vm264_vm3, %v585_v2 }
 0x10c   : > { %2356 = vmatmul.mubr.msk.bf16.vlgmr.msra.gmra.mxu1 %vm1098_vm5, %v1453_v57  ;;  %632 = vst.msk [vmem:[#allocation2 + $0xc8] sm:$0x1f] %vm251_vm1, %v630_v3  ;;  %2241 = vmatprep.subr.bf16.mxu0 %v2974_v7 }
 0x10d   : > { %2267 = vmatpush3.bf16.msra.mxu1 %v3354_v27  ;;  %1666 = vmatprep.mubr.bf16.mxu1 %v1625_v62  ;;  %v2476_v27 = vld [vmem:[%s3543_s2 + $0x60] sm:$0xff]  }
 0x10e   : > { %2268 = vmatprep.subr.bf16.mxu1 %v2472_v18  ;;  %1490 = vmatmul.mubr.bf16.vlgmr.msra.gmra.mxu0 %v1447_v1  ;;  %v674_v14 = vpop.permute.xlu0 %673 }
 0x10f   : > { %2242 = vmatpush3.bf16.msra.mxu0 %v3129_v61  ;;  %1569 = vmatprep.mubr.bf16.mxu0 %v1452_v56  ;;  %676 = vst.msk [vmem:[#allocation2 + $0xd0] sm:$0x1f] %vm258_vm2, %v674_v14 }
 0x110   : > { %2243 = vmatprep.subr.bf16.mxu0 %v3137_v6  ;;  %v634_v42 = vpop.permute.xlu1 %633 }
 0x111   : > { %2269 = vmatpush3.bf16.msra.mxu1 %v2473_v10  ;;  %636 = vst.msk [vmem:[#allocation2 + $0xc8] sm:$0x1f] %vm258_vm2, %v634_v42 }
 0x112   : > { %2270 = vmatprep.subr.bf16.mxu1 %v2474_v12  ;;  %v678_v35 = vpop.permute.xlu0 %677 }
 0x113   : > { %2244 = vmatpush3.bf16.msra.mxu0 %v3144_v31  ;;  %680 = vst.msk [vmem:[#allocation2 + $0xd0] sm:$0x1f] %vm264_vm3, %v678_v35 }
 0x114   : > { %2245 = vmatprep.subr.bf16.mxu0 %v3153_v30  ;;  %v639_v23 = vpop.permute.xlu1 %638 }
 0x115   : > { %2271 = vmatpush3.bf16.msra.mxu1 %v2475_v19  ;;  %641 = vst.msk [vmem:[#allocation2 + $0xc8] sm:$0x1f] %vm264_vm3, %v639_v23 }
 0x116   : > { %2272 = vmatprep.subr.bf16.mxu1 %v2476_v27 }
 0x117   : > { %2246 = vmatpush3.bf16.msra.mxu0 %v3160_v41 }
 0x118   : > { %2247 = vmatprep.subr.bf16.mxu0 %v3169_v48 }
 0x119   : > { %2273 = vmatpush3.bf16.msra.mxu1 %v2477_v32 }
 0x11a   : > { %2274 = vmatprep.subr.bf16.mxu1 %v2478_v25  ;;  %v1622_v36 = vld [vmem:[#allocation2 + $0xd0] sm:$0x1f] }
 0x11b   : > { %2248 = vmatpush3.bf16.msra.mxu0 %v3176_v24  ;;  %v1629_v38 = vpack.c.bf16 %v1622_v36, %v1622_v36 }
 0x11c   : > { %2249 = vmatprep.subr.bf16.mxu0 %v3185_v8 }
 0x11d   : > { %2275 = vmatpush3.bf16.msra.mxu1 %v2479_v0 }
 0x11e   : > { %2276 = vmatprep.subr.bf16.mxu1 %v2913_v63  ;;  %v1624_v63 = vpack.c.bf16 %v1617_v33, %v1617_v33 }
 0x11f   : > { %2250 = vmatpush3.bf16.msra.mxu0 %v3192_v21 }
 0x120   : > { %2251 = vmatprep.subr.bf16.mxu0 %v3201_v54 }
 0x121   : > { %2277 = vmatpush3.bf16.msra.mxu1 %v2925_v13  ;;  %v1620_v13 = vld [vmem:[#allocation2 + $0xc0] sm:$0x1f] }
 0x122   : > { %2278 = vmatprep.subr.bf16.mxu1 %v2936_v17  ;;  %v1444_v17 = vld [vmem:[#allocation2 + $0x90] sm:$0x1f] }
 0x123   : > { %2252 = vmatpush3.bf16.msra.mxu0 %v3208_v28 }
 0x124   : > { %2253 = vmatprep.subr.bf16.mxu0 %v3217_v29 }
 0x125   : > { %2279 = vmatpush3.bf16.msra.mxu1 %v2946_v50  ;;  %v1627_v50 = vpack.c.bf16 %v1620_v13, %v1620_v13 }
 0x126   : > { %2280 = vmatprep.subr.bf16.mxu1 %v2957_v16  ;;  %v1451_v16 = vpack.c.bf16 %v1444_v17, %v1444_v17 }
 0x127   : > { %2254 = vmatpush3.bf16.msra.mxu0 %v3224_v26 }
 0x128   : > { %2255 = vmatprep.subr.bf16.mxu0 %v3233_v60 }
 0x129   : > { %2281 = vmatpush3.bf16.msra.mxu1 %v2969_v37  ;;  %v2480_v37 = vld [vmem:[%s3543_s2 + $0xe0] sm:$0xff]  }
 0x12a   : > { %2310 = vmatprep.subr.bf16.mxu1 %v2974_v7  ;;  %v2481_v7 = vld [vmem:[%s3543_s2 + $0xa0] sm:$0xff]  }
 0x12b   : > { %2256 = vmatpush3.bf16.msra.mxu0 %v3240_v11 }
 0x12c   : > { %1667 = vmatmul.mubr.bf16.vlgmr.msra.gmra.mxu1 %v1624_v63  ;;  %2288 = vmatprep.subr.bf16.mxu0 %v3297_v20 }
 0x12d   : > { %2311 = vmatpush3.bf16.msra.mxu1 %v3129_v61  ;;  %1746 = vmatprep.mubr.bf16.mxu1 %v1629_v38  ;;  %v2482_v61 = vld [vmem:[%s3543_s2 + $0xd8] sm:$0xff]  }
 0x12e   : > { %2312 = vmatprep.subr.bf16.mxu1 %v3137_v6  ;;  %1570 = vmatmul.mubr.bf16.vlgmr.msra.gmra.mxu0 %v1451_v16  ;;  %v2483_v6 = vld [vmem:[%s3543_s2 + $0x98] sm:$0xff]  }
 0x12f   : > { %2289 = vmatpush3.bf16.msra.mxu0 %v3306_v43  ;;  %1706 = vmatprep.mubr.bf16.mxu0 %v1627_v50 }
 0x130   : > { %2290 = vmatprep.subr.bf16.mxu0 %v3313_v55 }
 0x131   : > { %2313 = vmatpush3.bf16.msra.mxu1 %v3144_v31  ;;  %v2484_v31 = vld [vmem:[%s3543_s2 + $0xd0] sm:$0xff]  }
 0x132   : > { %2314 = vmatprep.subr.bf16.mxu1 %v3153_v30  ;;  %v2485_v30 = vld [vmem:[%s3543_s2 + $0x90] sm:$0xff]  }
 0x133   : > { %2291 = vmatpush3.bf16.msra.mxu0 %v3324_v4 }
 0x134   : > { %2292 = vmatprep.subr.bf16.mxu0 %v3331_v5 }
 0x135   : > { %2315 = vmatpush3.bf16.msra.mxu1 %v3160_v41  ;;  %v2486_v41 = vld [vmem:[%s3543_s2 + $0xc8] sm:$0xff]  }
 0x136   : > { %2316 = vmatprep.subr.bf16.mxu1 %v3169_v48  ;;  %v1621_v48 = vld [vmem:[#allocation2 + $0xc8] sm:$0x1f] }
 0x137   : > { %2293 = vmatpush3.bf16.msra.mxu0 %v3340_v9 }
 0x138   : > { %2294 = vmatprep.subr.bf16.mxu0 %v2480_v37 }
 0x139   : > { %2317 = vmatpush3.bf16.msra.mxu1 %v3176_v24  ;;  %v2487_v24 = vld [vmem:[%s3543_s2 + $0x88] sm:$0xff]  }
 0x13a   : > { %2318 = vmatprep.subr.bf16.mxu1 %v3185_v8  ;;  %v1628_v8 = vpack.c.bf16 %v1621_v48, %v1621_v48 }
 0x13b   : > { %2295 = vmatpush3.bf16.msra.mxu0 %v2481_v7 }
 0x13c   : > { %2296 = vmatprep.subr.bf16.mxu0 %v2482_v61 }
 0x13d   : > { %2319 = vmatpush3.bf16.msra.mxu1 %v3192_v21  ;;  %v2488_v21 = vld [vmem:[%s3543_s2 + $0xc0] sm:$0xff]  }
 0x13e   : > { %2320 = vmatprep.subr.bf16.mxu1 %v3201_v54  ;;  %v1619_v54 = vld [vmem:[#allocation2 + $0xb8] sm:$0x1f] }
 0x13f   : > { %2297 = vmatpush3.bf16.msra.mxu0 %v2483_v6 }
 0x140   : > { %2298 = vmatprep.subr.bf16.mxu0 %v2484_v31 }
 0x141   : > { %2321 = vmatpush3.bf16.msra.mxu1 %v3208_v28  ;;  %v2489_v28 = vld [vmem:[%s3543_s2 + $0x80] sm:$0xff]  }
 0x142   : > { %2322 = vmatprep.subr.bf16.mxu1 %v3217_v29  ;;  %v1626_v29 = vpack.c.bf16 %v1619_v54, %v1619_v54 }
 0x143   : > { %2299 = vmatpush3.bf16.msra.mxu0 %v2485_v30 }
 0x144   : > { %2300 = vmatprep.subr.bf16.mxu0 %v2486_v41 }
 0x145   : > { %2323 = vmatpush3.bf16.msra.mxu1 %v3224_v26  ;;  %v1623_v26 = vld [vmem:[#allocation2 + $0xd8] sm:$0x1f] }
 0x146   : > { %2324 = vmatprep.subr.bf16.mxu1 %v3233_v60  ;;  %v1630_v60 = vpack.c.bf16 %v1623_v26, %v1623_v26 }
 0x147   : > { %2301 = vmatpush3.bf16.msra.mxu0 %v2487_v24 }
 0x148   : > { %2302 = vmatprep.subr.bf16.mxu0 %v2488_v21 }
 0x149   : > { %2325 = vmatpush3.bf16.msra.mxu1 %v3240_v11 }
 0x14b   : > { %2303 = vmatpush3.bf16.msra.mxu0 %v2489_v28 }
 0x14c   : > { %1747 = vmatmul.mubr.bf16.vlgmr.msra.gmra.mxu1 %v1628_v8  ;;  %2359 = vmatprep.subr.bf16.mxu0 %v3554_v34 }
 0x14e   : > { %1707 = vmatmul.mubr.bf16.vlgmr.msra.gmra.mxu0 %v1626_v29 }
 0x14f   : > { %2360 = vmatpush3.bf16.msra.mxu0 %v3097_v15  ;;  %2363 = vmatprep.mubr.msk.bf16.mxu0 %vm2534_vm4, %v3554_v34 }
 0x150   : > { %2361 = vmatprep.subr.bf16.mxu0 %v3554_v34 }
 0x153   : > { %2362 = vmatpush3.bf16.msra.mxu0 %v3109_v22 }
 0x156   : > { %2364 = vmatmul.mubr.msk.bf16.vlgmr.msra.gmra.mxu0 %vm1098_vm5, %v1630_v60 }
 0x15c   : > { %v2097_v11 = vpop.f32.mrf.mxu1 }
 0x15e   : > { %v2098_v20 = vpop.f32.mrf.mxu1 }
 0x15f   : > { %v2099_v43 = vadd.f32 %v2098_v20, %v2097_v11 }
 0x160   : > { %v2100_v55 = vpop.f32.mrf.mxu1 }
 0x162   : > { %v2101_v4 = vpop.f32.mrf.mxu1 }
 0x164   : > { %v1256_v5 = vpop.f32.mrf.mxu1 }
 0x166   : > { %v2341_v9 = vpop.f32.mrf.mxu1  ;;  %v2075_v39 = vpop.f32.mrf.mxu0 }
 0x168   : > { %v1259_v15 = vpop.f32.mrf.mxu1  ;;  %v2076_v40 = vpop.f32.mrf.mxu0 }
 0x169   : > { %v2077_v44 = vadd.f32 %v2076_v40, %v2075_v39 }
 0x16a   : > { %v2342_v45 = vpop.f32.mrf.mxu1  ;;  %v2078_v46 = vpop.f32.mrf.mxu0 }
 0x16b   : > { %v1177_v47 = vadd.f32 %v2099_v43, %v2077_v44 }
 0x16c   : > { %v2079_v34 = vpop.f32.mrf.mxu0 }
 0x184   : > { %v2144_v49 = vpop.f32.mrf.mxu1 }
 0x186   : > { %v2145_v51 = vpop.f32.mrf.mxu1  ;;  %v2119_v22 = vpop.f32.mrf.mxu0 }
 0x187   : > { %v2146_v52 = vadd.f32 %v2145_v51, %v2144_v49 }
 0x188   : > { %v2147_v53 = vpop.f32.mrf.mxu1  ;;  %v2120_v57 = vpop.f32.mrf.mxu0 }
 0x189   : > { %v2121_v58 = vadd.f32 %v2120_v57, %v2119_v22 }
 0x18a   : > { %v2148_v59 = vpop.f32.mrf.mxu1  ;;  %v2122_v62 = vpop.f32.mrf.mxu0 }
 0x18b   : > { %v1217_v1 = vadd.f32 %v2121_v58, %v1177_v47 }
 0x18c   : > { %v2123_v2 = vpop.f32.mrf.mxu0 }
 0x18d   : > { %v3514_v3 = vadd.f32 %v1256_v5, %v1217_v1  ;;  %v2045_v1 = vld [vmem:[%s3544_s3] ss:$0 sm:$0xff] }
 0x1a4   : > { %v2188_v56 = vpop.f32.mrf.mxu1 }
 0x1a6   : > { %v2189_v18 = vpop.f32.mrf.mxu1  ;;  %v2166_v14 = vpop.f32.mrf.mxu0 }
 0x1a7   : > { %v2190_v10 = vadd.f32 %v2189_v18, %v2188_v56 }
 0x1a8   : > { %v2191_v42 = vpop.f32.mrf.mxu1  ;;  %v2167_v12 = vpop.f32.mrf.mxu0 }
 0x1a9   : > { %v2168_v35 = vadd.f32 %v2167_v12, %v2166_v14 }
 0x1aa   : > { %v2192_v19 = vpop.f32.mrf.mxu1  ;;  %v2169_v23 = vpop.f32.mrf.mxu0 }
 0x1ab   : > { %v1354_v27 = vadd.f32 %v2168_v35, %v2146_v52 }
 0x1ac   : > { %v2170_v32 = vpop.f32.mrf.mxu0 }
 0x1ad   : > { %v1394_v25 = vadd.f32 %v2190_v10, %v1354_v27 }
 0x1ae   : > { %v1433_v0 = vpop.f32.mrf.mxu0 }
 0x1af   : > { %v1434_v33 = vadd.f32 %v1433_v0, %v1394_v25 }
 0x1b0   : > { %v2349_v36 = vpop.f32.mrf.mxu0 }
 0x1b1   : > { %v1439_v63 = vmax.f32 %v3514_v3, %v1434_v33 }
 0x1b2   : > { %v1436_v13 = vpop.f32.mrf.mxu0 }
 0x1b4   : > { %v2350_v17 = vpop.f32.mrf.mxu0 }
 0x1c4   : > { %v2235_v38 = vpop.f32.mrf.mxu1 }
 0x1c6   : > { %v2236_v50 = vpop.f32.mrf.mxu1 }
 0x1c7   : > { %v2237_v16 = vadd.f32 %v2236_v50, %v2235_v38 }
 0x1c8   : > { %v2238_v37 = vpop.f32.mrf.mxu1 }
 0x1ca   : > { %v2239_v7 = vpop.f32.mrf.mxu1 }
 0x1cc   : > { %v1611_v61 = vpop.f32.mrf.mxu1 }
 0x1ce   : > { %v2357_v6 = vpop.f32.mrf.mxu1  ;;  %v2213_v31 = vpop.f32.mrf.mxu0 }
 0x1d0   : > { %v1614_v30 = vpop.f32.mrf.mxu1  ;;  %v2214_v41 = vpop.f32.mrf.mxu0 }
 0x1d1   : > { %v2215_v48 = vadd.f32 %v2214_v41, %v2213_v31 }
 0x1d2   : > { %v2358_v24 = vpop.f32.mrf.mxu1  ;;  %v2216_v8 = vpop.f32.mrf.mxu0 }
 0x1d3   : > { %v1532_v21 = vadd.f32 %v2237_v16, %v2215_v48 }
 0x1d4   : > { %v2217_v54 = vpop.f32.mrf.mxu0 }
 0x1ec   : > { %v2282_v28 = vpop.f32.mrf.mxu1 }
 0x1ee   : > { %v2283_v29 = vpop.f32.mrf.mxu1  ;;  %v2257_v26 = vpop.f32.mrf.mxu0 }
 0x1ef   : > { %v2284_v46 = vadd.f32 %v2283_v29, %v2282_v28 }
 0x1f0   : > { %v2285_v60 = vpop.f32.mrf.mxu1  ;;  %v2258_v11 = vpop.f32.mrf.mxu0 }
 0x1f1   : > { %v2259_v20 = vadd.f32 %v2258_v11, %v2257_v26 }
 0x1f2   : > { %v2286_v43 = vpop.f32.mrf.mxu1  ;;  %v2260_v55 = vpop.f32.mrf.mxu0 }
 0x1f3   : > { %v1572_v4 = vadd.f32 %v2259_v20, %v1532_v21 }
 0x1f4   : > { %v2261_v5 = vpop.f32.mrf.mxu0 }
 0x1f5   : > { %v1612_v9 = vadd.f32 %v1611_v61, %v1572_v4 }
 0x20c   : > { %v2326_v39 = vpop.f32.mrf.mxu1 }
 0x20e   : > { %v2327_v15 = vpop.f32.mrf.mxu1  ;;  %v2304_v40 = vpop.f32.mrf.mxu0 }
 0x20f   : > { %v2328_v51 = vadd.f32 %v2327_v15, %v2326_v39 }
 0x210   : > { %v2329_v44 = vpop.f32.mrf.mxu1  ;;  %v2305_v45 = vpop.f32.mrf.mxu0 }
 0x211   : > { %v2306_v47 = vadd.f32 %v2305_v45, %v2304_v40 }
 0x212   : > { %v2330_v34 = vpop.f32.mrf.mxu1  ;;  %v2307_v49 = vpop.f32.mrf.mxu0 }
 0x213   : > { %v1709_v22 = vadd.f32 %v2306_v47, %v2284_v46 }
 0x214   : > { %v2308_v52 = vpop.f32.mrf.mxu0 }
 0x215   : > { %v1749_v53 = vadd.f32 %v2328_v51, %v1709_v22 }
 0x216   : > { %v1788_v57 = vpop.f32.mrf.mxu0 }
 0x217   : > { %v1789_v58 = vadd.f32 %v1788_v57, %v1749_v53 }
 0x218   : > { %v2365_v59 = vpop.f32.mrf.mxu0 }
 0x219   : > { %v1794_v62 = vmax.f32 %v1612_v9, %v1789_v58 }
 0x21a   : > { %v1791_v2 = vpop.f32.mrf.mxu0 }
 0x21b   : > { %v1795_v3 = vmax.f32 %v1439_v63, %v1794_v62 }
 0x21c   : > { %v2366_v56 = vpop.f32.mrf.mxu0 }
 0x21d   : > { %v1803_v18 = vadd.f32 %v2045_v1, %v1795_v3 }
 0x21f   : > { %v1804_v14 = vmax.f32 %v1803_v18, 0.0 }
 0x221   : > { %1806 = vst.msk [vmem:[%s237_s16] sm:$0x1f] %vm1805_vm6, %v1804_v14 }
 0x222 PF: > { %s14_s19 = sadd.s32 1, %s2528_s19   ;;  %s3555_s15 = smov %s2520_s17 }
 0x223   : > { %p11_p7 = scmp.ge.s32.totalorder %s14_s19, 12   ;;  %s3556_s16 = smov %s2524_s18 }
 0x224   : > { %s3557_s17 = smov %s3560_s20  ;;  %s3558_s18 = smov %s3564_s21 }
 0x225   :  { %13 = sbr.rel (!%p11_p7) target bundleno = 3 (0x3), region = 84 }

</bundles_post_ra>
